<compile_context>
chip_gen: v7x
topology: tpu7x:2x2x1
jax: 0.10.0
libtpu: 0.0.40
codegen_flags: <defaults>
</compile_context>

<pallas_src>
import functools
import math

import numpy as np
import jax
import jax.numpy as jnp
from jax import lax
from jax.experimental import pallas as pl
from jax.experimental.pallas import tpu as pltpu

F32 = jnp.float32
BF16 = jnp.bfloat16
_SQRT_HALF = 0.7071067811865476
_NEG_INF = -1e30

_CPARAMS = pltpu.CompilerParams(
    dimension_semantics=("parallel",),
    vmem_limit_bytes=64 * 1024 * 1024,
)

# Single-buffer grid-invariant weights when BlockSpec(pipeline_mode=...) exists;
# otherwise fall back to default double-buffering (correctness unaffected).
try:
    _SINGLE_BUF_KW = {"pipeline_mode": pl.Buffered(1)}
    pl.BlockSpec((8, 128), lambda i: (0, 0), **_SINGLE_BUF_KW)
except Exception:  # pragma: no cover - older JAX without pipeline_mode support
    _SINGLE_BUF_KW = {}


def _rep_spec(a):
    """Grid-invariant (replicated) operand: constant index_map, single buffer."""
    zeros = (0,) * a.ndim
    return pl.BlockSpec(a.shape, lambda b, _z=zeros: _z, **_SINGLE_BUF_KW)


def _batch_spec(shape):
    return pl.BlockSpec(shape, lambda b: (b, 0, 0))


# --------------------------------------------------------------------------
# In-kernel math helpers (f32 VPU/EUP math, bf16 MXU operands, f32 accumulate)
# --------------------------------------------------------------------------
def _erf(x):
    # Abramowitz & Stegun 7.1.26 polynomial (|err| < 1.5e-7 ~ f32 precision floor).
    a1, a2, a3, a4, a5 = (0.254829592, -0.284496736, 1.421413741,
                          -1.453152027, 1.061405429)
    p = 0.3275911
    sgn = jnp.where(x >= 0.0, 1.0, -1.0)
    z = jnp.abs(x)
    t = 1.0 / (1.0 + p * z)
    poly = ((((a5 * t + a4) * t + a3) * t + a2) * t + a1) * t
    return sgn * (1.0 - poly * jnp.exp(-z * z))


def _gelu(x):
    # erf-based GELU == torch.nn.GELU() default
    return 0.5 * x * (1.0 + _erf(x * _SQRT_HALF))


def _layernorm(x, gamma, beta, eps=1e-5):
    mu = jnp.mean(x, axis=-1, keepdims=True)
    var = jnp.mean(jnp.square(x - mu), axis=-1, keepdims=True)
    return (x - mu) * jax.lax.rsqrt(var + eps) * gamma + beta


def _mxu(a, b):
    """bf16 x bf16 MXU matmul with f32 accumulation."""
    return jnp.dot(a.astype(BF16), b.astype(BF16), preferred_element_type=F32)


def _mxu_nt(a, b):
    """a @ b.T without materialising a transpose (contract last dims)."""
    return lax.dot_general(a.astype(BF16), b.astype(BF16),
                           (((1,), (1,)), ((), ())),
                           preferred_element_type=F32)


def _mha(q, k, v, wo, bo, num_heads, causal=False):
    """Multi-head attention; per-head contexts are concatenated and fed through a
    single full-width output projection (one [T,H]x[H,H] dot, one bias add)."""
    T, H = q.shape
    Tk = k.shape[0]
    hd = H // num_heads
    scale = 1.0 / math.sqrt(hd)
    if causal:
        row = lax.broadcasted_iota(jnp.int32, (T, Tk), 0)
        col = lax.broadcasted_iota(jnp.int32, (T, Tk), 1)
        keep = col <= row
    ctxs = []
    for h in range(num_heads):
        sl = slice(h * hd, (h + 1) * hd)
        s = _mxu_nt(q[:, sl], k[:, sl]) * scale
        if causal:
            s = jnp.where(keep, s, _NEG_INF)
        s = s - jnp.max(s, axis=-1, keepdims=True)
        p = jnp.exp(s)
        p = p * pl.reciprocal(jnp.sum(p, axis=-1, keepdims=True), approx=True)
        ctxs.append(_mxu(p, v[:, sl]))
    ctx = jnp.concatenate(ctxs, axis=-1) if num_heads > 1 else ctxs[0]
    return _mxu(ctx, wo) + bo


def _conv_rowtaps(x_bf, w_ref, b, t_out):
    """Valid conv as K row-offset FULL-WIDTH MXU dots (no lane slicing of x)."""
    ksize = w_ref.shape[0]
    acc = None
    for k in range(ksize):
        part = jnp.dot(x_bf[k:k + t_out, :], w_ref[k], preferred_element_type=F32)
        acc = part if acc is None else acc + part
    return acc + b


# --------------------------------------------------------------------------
# Kernel 1: FeatureExtractor (all convs + projection fused)
# --------------------------------------------------------------------------
def _fe_kernel(*args, n_extra, ksize, stride, t_outs, pad_out):
    xg_ref = args[0]
    w0_ref, b0_ref = args[1], args[2]
    extra = args[3:3 + 2 * n_extra]
    pw_ref, pb_ref, o_ref = args[3 + 2 * n_extra:]

    # conv layer 0: stride folded into the weight (merged taps) -> R full-width dots
    x = xg_ref[0].astype(BF16)                       # [G, stride*Cin]
    y = _gelu(_conv_rowtaps(x, w0_ref, b0_ref[...], t_outs[0]))

    # conv layers >= 1: stride-1 row-tap dots + static 0/1 row-subsample matmul
    for i in range(n_extra):
        w_ref, b_ref = extra[2 * i], extra[2 * i + 1]
        t_full = y.shape[0] - ksize + 1
        t_out = t_outs[i + 1]
        acc = _conv_rowtaps(y.astype(BF16), w_ref, b_ref[...], t_full)
        row = lax.broadcasted_iota(jnp.int32, (t_out, t_full), 0)
        col = lax.broadcasted_iota(jnp.int32, (t_out, t_full), 1)
        sel = jnp.where(col == stride * row, 1.0, 0.0)
        y = _gelu(_mxu(sel, acc))

    # fe.proj linear
    y = _mxu(y, pw_ref[...]) + pb_ref[...]

    # zero rows for the encoder pre-net 'same' conv folded into this output
    if pad_out:
        z = jnp.zeros((pad_out, y.shape[1]), F32)
        y = jnp.concatenate([z, y, z], axis=0)
    o_ref[0] = y


def feature_extractor(x, fe_pack, cfg):
    B, Tin, Cin = x.shape
    K, s = cfg["fe_conv_kernel"], cfg["fe_conv_stride"]
    n = cfg["fe_conv_layer"]
    t_outs, t = [], Tin
    for _ in range(n):
        t = (t - K) // s + 1
        t_outs.append(t)
    T2 = t_outs[-1]
    pad_out = cfg["conv_kernel_size"] // 2 if cfg["conv_layers"] > 0 else 0

    # regroup time by the stride so the first conv uses merged-tap full-width dots
    R = -(-K // s)                       # ceil(K / s)
    G = t_outs[0] + R - 1
    t_need = s * G
    if t_need > Tin:
        x = jnp.pad(x, ((0, 0), (0, t_need - Tin), (0, 0)))
    elif t_need < Tin:
        x = x[:, :t_need, :]
    xg = x.reshape(B, G, s * Cin)        # pure row-major relabel (free)

    args = [xg, fe_pack["w0m"], fe_pack["b0"]]
    for w, b in fe_pack["extra"]:
        args += [w, b]
    args += [fe_pack["proj_w"], fe_pack["proj_b"]]
    D = fe_pack["proj_w"].shape[1]
    Tp = T2 + 2 * pad_out

    out = pl.pallas_call(
        functools.partial(_fe_kernel, n_extra=n - 1, ksize=K, stride=s,
                          t_outs=tuple(t_outs), pad_out=pad_out),
        out_shape=jax.ShapeDtypeStruct((B, Tp, D), F32),
        grid=(B,),
        in_specs=[_batch_spec((1, G, s * Cin))] + [_rep_spec(a) for a in args[1:]],
        out_specs=_batch_spec((1, Tp, D)),
        compiler_params=_CPARAMS,
    )(*args)
    return out, T2


# --------------------------------------------------------------------------
# Kernel 2: Encoder (pre-net conv + embed + pos + full layer stack)
# --------------------------------------------------------------------------
_ENC_KEYS = ("wqkv", "bqkv", "wo", "bo", "ln1g", "ln1b",
             "w1", "b1", "w2", "b2", "ln2g", "ln2b")


def _encoder_kernel(*args, num_heads, num_layers, n_prenet, prenet_k, prenet_pad):
    x_ref = args[0]
    prenet = args[1:1 + 2 * n_prenet]
    (embw_ref, embb_ref, pos_ref,
     wqkv, bqkv, wo, bo, ln1g, ln1b,
     w1, b1, w2, b2, ln2g, ln2b,
     o_ref) = args[1 + 2 * n_prenet:]

    x = x_ref[0]                                     # [Tp, C] (edge rows are zeros)
    # pre-net conv(s), ReLU ('same' padding already present for the first layer)
    for i in range(n_prenet):
        w_ref, b_ref = prenet[2 * i], prenet[2 * i + 1]
        if i > 0 and prenet_pad:
            z = jnp.zeros((prenet_pad, x.shape[1]), F32)
            x = jnp.concatenate([z, x, z], axis=0)
        t_out = x.shape[0] - prenet_k + 1
        x = jnp.maximum(_conv_rowtaps(x.astype(BF16), w_ref, b_ref[...], t_out), 0.0)

    # embedding + positional encoding
    h = _mxu(x, embw_ref[...]) + embb_ref[...] + pos_ref[...]

    H = h.shape[1]
    for l in range(num_layers):
        qkv = _mxu(h, wqkv[l]) + bqkv[l]
        y = _mha(qkv[:, 0:H], qkv[:, H:2 * H], qkv[:, 2 * H:3 * H],
                 wo[l], bo[l], num_heads)
        h1 = _layernorm(h + y, ln1g[l], ln1b[l])
        f = jnp.maximum(_mxu(h1, w1[l]) + b1[l], 0.0)
        f = _mxu(f, w2[l]) + b2[l]
        h = _layernorm(h1 + f, ln2g[l], ln2b[l])
    o_ref[0] = h


def encoder(x_pad, enc_pack, cfg, T2):
    B, Tp, C = x_pad.shape
    H = cfg["enc_att_hidden_dim"]
    K = cfg["conv_kernel_size"]
    pp = K // 2
    T_enc = T2 + cfg["conv_layers"] * (2 * pp - K + 1)   # == T2 for odd K

    args = [x_pad]
    for w, b in enc_pack["prenet"]:
        args += [w, b]
    args += [enc_pack["emb_w"], enc_pack["emb_b"], enc_pack["pos"][:T_enc]]
    args += [enc_pack["layers"][k] for k in _ENC_KEYS]

    return pl.pallas_call(
        functools.partial(_encoder_kernel,
                          num_heads=cfg["enc_num_heads"],
                          num_layers=cfg["enc_num_layers"],
                          n_prenet=cfg["conv_layers"],
                          prenet_k=K, prenet_pad=pp),
        out_shape=jax.ShapeDtypeStruct((B, T_enc, H), F32),
        grid=(B,),
        in_specs=[_batch_spec((1, Tp, C))] + [_rep_spec(a) for a in args[1:]],
        out_specs=_batch_spec((1, T_enc, H)),
        compiler_params=_CPARAMS,
    )(*args)


# --------------------------------------------------------------------------
# Kernel 3: downsample + Decoder stack + classifier head (GELU -> LN -> Linear)
# --------------------------------------------------------------------------
_DEC_KEYS = ("swqkv", "sbqkv", "swo", "sbo", "slng", "slnb",
             "cwq", "cbq", "cwkv", "cbkv", "cwo", "cbo", "clng", "clnb",
             "w1", "b1", "w2", "b2", "flng", "flnb")
_HEAD_KEYS = ("ln_g", "ln_b", "cls_w", "cls_b")


def _decoder_kernel(*args, num_heads, num_layers):
    (e_ref, sds_ref, pos_ref,
     swqkv, sbqkv, swo, sbo, slng, slnb,
     cwq, cbq, cwkv, cbkv, cwo, cbo, clng, clnb,
     w1, b1, w2, b2, flng, flnb,
     hg_ref, hb_ref, hw_ref, hbias_ref,
     o_ref) = args

    e = e_ref[0]                                     # [Te, H] encoder memory
    H = e.shape[1]

    # nearest-exact downsample (static 0/1 selection matmul) + positional encoding
    x = _mxu(sds_ref[...], e) + pos_ref[...]

    for l in range(num_layers):
        # causal self-attention
        # TODO(synk): decoder internals not in the provided source; standard causal
        #             self-attention assumed, no key-padding mask from input_lengths.
        qkv = _mxu(x, swqkv[l]) + sbqkv[l]
        y = _mha(qkv[:, 0:H], qkv[:, H:2 * H], qkv[:, 2 * H:3 * H],
                 swo[l], sbo[l], num_heads, causal=True)
        x1 = _layernorm(x + y, slng[l], slnb[l])
        # cross-attention over the encoder memory
        q = _mxu(x1, cwq[l]) + cbq[l]
        kv = _mxu(e, cwkv[l]) + cbkv[l]
        y = _mha(q, kv[:, 0:H], kv[:, H:2 * H], cwo[l], cbo[l], num_heads)
        x2 = _layernorm(x1 + y, clng[l], clnb[l])
        # FFN
        f = jnp.maximum(_mxu(x2, w1[l]) + b1[l], 0.0)
        f = _mxu(f, w2[l]) + b2[l]
        x = _layernorm(x2 + f, flng[l], flnb[l])

    # classifier head: GELU -> LayerNorm -> Linear (fused into this kernel)
    g = _layernorm(_gelu(x), hg_ref[...], hb_ref[...])
    o_ref[0] = _mxu(g, hw_ref[...]) + hbias_ref[...]


def decoder(enc_out, dec_pack, cfg):
    B, Te, H = enc_out.shape
    Td = int(round(Te * cfg["ds_rate"]))
    # nearest-exact interpolation indices (static) expressed as a 0/1 matmul
    idx = np.minimum(np.floor((np.arange(Td) + 0.5) * (Te / Td)).astype(np.int64),
                     Te - 1)
    sds = np.zeros((Td, Te), np.float32)
    sds[np.arange(Td), idx] = 1.0
    sds = jnp.asarray(sds, dtype=BF16)

    args = [enc_out, sds, dec_pack["pos"][:Td]]
    args += [dec_pack["layers"][k] for k in _DEC_KEYS]
    args += [dec_pack["head"][k] for k in _HEAD_KEYS]

    return pl.pallas_call(
        functools.partial(_decoder_kernel,
                          num_heads=cfg["dec_num_heads"],
                          num_layers=cfg["dec_num_layers"]),
        out_shape=jax.ShapeDtypeStruct((B, Td, H), F32),
        grid=(B,),
        in_specs=[_batch_spec((1, Te, H))] + [_rep_spec(a) for a in args[1:]],
        out_specs=_batch_spec((1, Td, H)),
        compiler_params=_CPARAMS,
    )(*args)


# --------------------------------------------------------------------------
# Full forward (3 pallas_calls)
# --------------------------------------------------------------------------
def my_e2e_forward(kp, cfg, input_sequence, input_lengths, tau):
    # tau feeds Quantize, which the reference forward() never uses -> unused.
    del tau
    x_pad, T2 = feature_extractor(input_sequence, kp["fe"], cfg)
    lengths2 = input_lengths
    for _ in range(cfg["fe_conv_layer"]):
        lengths2 = (lengths2 - cfg["fe_conv_kernel"]) // cfg["fe_conv_stride"] + 1
    enc_out = encoder(x_pad, kp["encoder"], cfg, T2)
    outputs = decoder(enc_out, kp["decoder"], cfg)
    outputs_lens = jnp.ceil(lengths2.astype(F32) * cfg["ds_rate"]).astype(jnp.int32)
    return outputs, outputs_lens


# --------------------------------------------------------------------------
# Parameter initialisation (deterministic) + kernel-ready packing
# --------------------------------------------------------------------------
def sinusoidal_pe(maxlen, dim):
    pos = jnp.arange(maxlen, dtype=F32)[:, None]
    i = jnp.arange(dim, dtype=F32)[None, :]
    angle = pos / jnp.power(10000.0, (2.0 * jnp.floor(i / 2.0)) / dim)
    even = (jnp.arange(dim)[None, :] % 2) == 0
    return jnp.where(even, jnp.sin(angle), jnp.cos(angle)).astype(F32)


def _dense(key, fin, fout):
    return jax.random.normal(key, (fin, fout), F32) * 0.02


def _self_attn_params(kit, H):
    return {"wqkv": _dense(next(kit), H, 3 * H), "bqkv": jnp.zeros((3 * H,), F32),
            "wo": _dense(next(kit), H, H), "bo": jnp.zeros((H,), F32),
            "ln_g": jnp.ones((H,), F32), "ln_b": jnp.zeros((H,), F32)}


def _cross_attn_params(kit, H):
    return {"wq": _dense(next(kit), H, H), "bq": jnp.zeros((H,), F32),
            "wkv": _dense(next(kit), H, 2 * H), "bkv": jnp.zeros((2 * H,), F32),
            "wo": _dense(next(kit), H, H), "bo": jnp.zeros((H,), F32),
            "ln_g": jnp.ones((H,), F32), "ln_b": jnp.zeros((H,), F32)}


def _ffn_params(kit, H, Fdim):
    return {"w1": _dense(next(kit), H, Fdim), "b1": jnp.zeros((Fdim,), F32),
            "w2": _dense(next(kit), Fdim, H), "b2": jnp.zeros((H,), F32),
            "ln_g": jnp.ones((H,), F32), "ln_b": jnp.zeros((H,), F32)}


def init_params(key, cfg):
    kit = iter(jax.random.split(key, 128))
    H = cfg["enc_att_hidden_dim"]
    Hd = cfg["dec_att_hidden_dim"]

    fe_convs = []
    cin = cfg["dim_in"]
    for _ in range(cfg["fe_conv_layer"]):
        fe_convs.append({
            "w": jax.random.normal(next(kit),
                                   (cfg["fe_conv_kernel"], cin, cfg["fe_conv_channel"]),
                                   F32) * 0.02,
            "b": jnp.zeros((cfg["fe_conv_channel"],), F32)})
        cin = cfg["fe_conv_channel"]
    fe = {"convs": fe_convs,
          "proj": {"w": _dense(next(kit), cin, cfg["fe_out_dim"]),
                   "b": jnp.zeros((cfg["fe_out_dim"],), F32)}}

    prenet = []
    cin = cfg["fe_out_dim"]
    for _ in range(cfg["conv_layers"]):
        prenet.append({
            "w": jax.random.normal(next(kit),
                                   (cfg["conv_kernel_size"], cin, cfg["conv_channels"]),
                                   F32) * 0.02,
            "b": jnp.zeros((cfg["conv_channels"],), F32)})
        cin = cfg["conv_channels"]
    enc_layers = [{"self": _self_attn_params(kit, H),
                   "ffn": _ffn_params(kit, H, cfg["enc_att_filter_size"])}
                  for _ in range(cfg["enc_num_layers"])]
    enc = {"prenet": prenet,
           "embed": {"w": _dense(next(kit), cin, H), "b": jnp.zeros((H,), F32)},
           "pos_enc": sinusoidal_pe(cfg["enc_input_maxlen"], H),
           "layers": enc_layers}

    dec_layers = [{"self": _self_attn_params(kit, Hd),
                   "cross": _cross_attn_params(kit, Hd),
                   "ffn": _ffn_params(kit, Hd, cfg["dec_att_filter_size"])}
                  for _ in range(cfg["dec_num_layers"])]
    dec = {"pos_enc": sinusoidal_pe(cfg["dec_target_maxlen"], Hd),
           "layers": dec_layers}

    head = {"ln_g": jnp.ones((Hd,), F32), "ln_b": jnp.zeros((Hd,), F32),
            "cls_w": _dense(next(kit), Hd, Hd), "cls_b": jnp.zeros((Hd,), F32)}

    return {"fe": fe, "encoder": enc, "decoder": dec, "head": head}


def _merge_taps(w, stride):
    """[K, Cin, Cout] -> [ceil(K/stride), stride*Cin, Cout] (zero-padded), so the
    strided conv is ceil(K/stride) full-width dots on stride-regrouped input."""
    w = np.asarray(w)
    K, Cin, Cout = w.shape
    R = -(-K // stride)
    wm = np.zeros((R, stride * Cin, Cout), np.float32)
    for k in range(K):
        r, c = k // stride, k % stride
        wm[r, c * Cin:(c + 1) * Cin, :] = w[k]
    return jnp.asarray(wm, dtype=BF16)


def pack_params(params, cfg):
    """Stack per-layer weights along a leading layer axis, cast matmul weights to
    bf16 (f32 MXU accumulation is kept in-kernel) and reshape biases/LN params."""
    s = cfg["fe_conv_stride"]

    fe = params["fe"]
    fe_pack = {
        "w0m": _merge_taps(fe["convs"][0]["w"], s),
        "b0": fe["convs"][0]["b"].reshape(1, -1),
        "extra": [(c["w"].astype(BF16), c["b"].reshape(1, -1))
                  for c in fe["convs"][1:]],
        "proj_w": fe["proj"]["w"].astype(BF16),
        "proj_b": fe["proj"]["b"].reshape(1, -1),
    }

    def stack(layers, get, dtype=None):
        a = jnp.stack([get(l) for l in layers])
        return a.astype(dtype) if dtype is not None else a

    enc = params["encoder"]
    el = enc["layers"]
    enc_pack = {
        "prenet": [(c["w"].astype(BF16), c["b"].reshape(1, -1))
                   for c in enc["prenet"]],
        "emb_w": enc["embed"]["w"].astype(BF16),
        "emb_b": enc["embed"]["b"].reshape(1, -1),
        "pos": enc["pos_enc"],
        "layers": {
            "wqkv": stack(el, lambda l: l["self"]["wqkv"], BF16),
            "bqkv": stack(el, lambda l: l["self"]["bqkv"].reshape(1, -1)),
            "wo":   stack(el, lambda l: l["self"]["wo"], BF16),
            "bo":   stack(el, lambda l: l["self"]["bo"].reshape(1, -1)),
            "ln1g": stack(el, lambda l: l["self"]["ln_g"].reshape(1, -1)),
            "ln1b": stack(el, lambda l: l["self"]["ln_b"].reshape(1, -1)),
            "w1":   stack(el, lambda l: l["ffn"]["w1"], BF16),
            "b1":   stack(el, lambda l: l["ffn"]["b1"].reshape(1, -1)),
            "w2":   stack(el, lambda l: l["ffn"]["w2"], BF16),
            "b2":   stack(el, lambda l: l["ffn"]["b2"].reshape(1, -1)),
            "ln2g": stack(el, lambda l: l["ffn"]["ln_g"].reshape(1, -1)),
            "ln2b": stack(el, lambda l: l["ffn"]["ln_b"].reshape(1, -1)),
        },
    }

    dec = params["decoder"]
    dl = dec["layers"]
    dec_pack = {
        "pos": dec["pos_enc"],
        "layers": {
            "swqkv": stack(dl, lambda l: l["self"]["wqkv"], BF16),
            "sbqkv": stack(dl, lambda l: l["self"]["bqkv"].reshape(1, -1)),
            "swo":   stack(dl, lambda l: l["self"]["wo"], BF16),
            "sbo":   stack(dl, lambda l: l["self"]["bo"].reshape(1, -1)),
            "slng":  stack(dl, lambda l: l["self"]["ln_g"].reshape(1, -1)),
            "slnb":  stack(dl, lambda l: l["self"]["ln_b"].reshape(1, -1)),
            "cwq":   stack(dl, lambda l: l["cross"]["wq"], BF16),
            "cbq":   stack(dl, lambda l: l["cross"]["bq"].reshape(1, -1)),
            "cwkv":  stack(dl, lambda l: l["cross"]["wkv"], BF16),
            "cbkv":  stack(dl, lambda l: l["cross"]["bkv"].reshape(1, -1)),
            "cwo":   stack(dl, lambda l: l["cross"]["wo"], BF16),
            "cbo":   stack(dl, lambda l: l["cross"]["bo"].reshape(1, -1)),
            "clng":  stack(dl, lambda l: l["cross"]["ln_g"].reshape(1, -1)),
            "clnb":  stack(dl, lambda l: l["cross"]["ln_b"].reshape(1, -1)),
            "w1":    stack(dl, lambda l: l["ffn"]["w1"], BF16),
            "b1":    stack(dl, lambda l: l["ffn"]["b1"].reshape(1, -1)),
            "w2":    stack(dl, lambda l: l["ffn"]["w2"], BF16),
            "b2":    stack(dl, lambda l: l["ffn"]["b2"].reshape(1, -1)),
            "flng":  stack(dl, lambda l: l["ffn"]["ln_g"].reshape(1, -1)),
            "flnb":  stack(dl, lambda l: l["ffn"]["ln_b"].reshape(1, -1)),
        },
        "head": {
            "ln_g": params["head"]["ln_g"].reshape(1, -1),
            "ln_b": params["head"]["ln_b"].reshape(1, -1),
            "cls_w": params["head"]["cls_w"].astype(BF16),
            "cls_b": params["head"]["cls_b"].reshape(1, -1),
        },
    }
    return {"fe": fe_pack, "encoder": enc_pack, "decoder": dec_pack}


# --------------------------------------------------------------------------
if __name__ == "__main__":
    cfg = dict(
        dim_in=8,
        fe_conv_layer=2, fe_conv_channel=16, fe_conv_kernel=4, fe_conv_stride=2,
        fe_out_dim=32,
        conv_layers=1, conv_channels=32, conv_kernel_size=3,
        enc_num_layers=1, enc_att_hidden_dim=32, enc_num_heads=2,
        enc_input_maxlen=128, enc_att_filter_size=64,
        ds_rate=0.5,
        dec_num_layers=1, dec_att_hidden_dim=32, dec_num_heads=2,
        dec_target_maxlen=64, dec_att_filter_size=64,
    )

    key = jax.random.PRNGKey(0)
    pkey, xkey = jax.random.split(key)
    params = init_params(pkey, cfg)
    kp = pack_params(params, cfg)            # packed / bf16 / stacked, done once

    B, Tin = 2, 64
    input_sequence = jax.random.normal(xkey, (B, Tin, cfg["dim_in"]), F32)
    input_lengths = jnp.array([64, 48], jnp.int32)

    @jax.jit
    def fwd(p, x, lens):
        return my_e2e_forward(p, cfg, x, lens, tau=1.0)

    outputs, outputs_lens = fwd(kp, input_sequence, input_lengths)
    jax.block_until_ready(outputs)
    jax.block_until_ready(outputs_lens)

    assert outputs.shape == (B, 7, cfg["dec_att_hidden_dim"]), outputs.shape
    assert outputs_lens.shape == (B,), outputs_lens.shape
    assert bool(jnp.all(jnp.isfinite(outputs)))
    print("KERNEL_OK")
</pallas_src>

<mosaic_0001>
module attributes {stable_mosaic.version = 11 : i64} {
  func.func @_fe_kernel(%arg0: i32, %arg1: memref<1x32x16xf32, #tpu.memory_space<vmem>>, %arg2: memref<2x16x16xbf16, #tpu.memory_space<vmem>>, %arg3: memref<1x16xf32, #tpu.memory_space<vmem>>, %arg4: memref<4x16x16xbf16, #tpu.memory_space<vmem>>, %arg5: memref<1x16xf32, #tpu.memory_space<vmem>>, %arg6: memref<16x32xbf16, #tpu.memory_space<vmem>>, %arg7: memref<1x32xf32, #tpu.memory_space<vmem>>, %arg8: memref<1x16x32xf32, #tpu.memory_space<vmem>>) attributes {dimension_semantics = [#tpu.dimension_semantics<parallel>], iteration_bounds = array<i64: 2>, scalar_prefetch = 0 : i64, scratch_operands = 0 : i64, tpu.core_type = #tpu.core_type<tc>, window_params = [{transform_indices = @transform_0, window_bounds = array<i64: 1, 32, 16>}, {pipeline_mode = #tpu.pipeline_mode<synchronous>, transform_indices = @transform_1, window_bounds = array<i64: 2, 16, 16>}, {pipeline_mode = #tpu.pipeline_mode<synchronous>, transform_indices = @transform_2, window_bounds = array<i64: 1, 16>}, {pipeline_mode = #tpu.pipeline_mode<synchronous>, transform_indices = @transform_3, window_bounds = array<i64: 4, 16, 16>}, {pipeline_mode = #tpu.pipeline_mode<synchronous>, transform_indices = @transform_4, window_bounds = array<i64: 1, 16>}, {pipeline_mode = #tpu.pipeline_mode<synchronous>, transform_indices = @transform_5, window_bounds = array<i64: 16, 32>}, {pipeline_mode = #tpu.pipeline_mode<synchronous>, transform_indices = @transform_6, window_bounds = array<i64: 1, 32>}, {transform_indices = @transform_7, window_bounds = array<i64: 1, 16, 32>}]} {
    %c0 = arith.constant 0 : index
    %c0_0 = arith.constant 0 : index
    %c0_1 = arith.constant 0 : index
    %0 = vector.load %arg1[%c0, %c0_0, %c0_1] : memref<1x32x16xf32, #tpu.memory_space<vmem>>, vector<1x32x16xf32>
    %1 = vector.shape_cast %0 : vector<1x32x16xf32> to vector<32x16xf32>
    %2 = arith.truncf %1 : vector<32x16xf32> to vector<32x16xbf16>
    %c0_2 = arith.constant 0 : index
    %c0_3 = arith.constant 0 : index
    %3 = vector.load %arg3[%c0_2, %c0_3] : memref<1x16xf32, #tpu.memory_space<vmem>>, vector<1x16xf32>
    %4 = vector.extract_strided_slice %2 {offsets = [0, 0], sizes = [31, 16], strides = [1, 1]} : vector<32x16xbf16> to vector<31x16xbf16>
    %c0_4 = arith.constant 0 : index
    %c0_5 = arith.constant 0 : index
    %c0_6 = arith.constant 0 : index
    %5 = vector.load %arg2[%c0_4, %c0_5, %c0_6] : memref<2x16x16xbf16, #tpu.memory_space<vmem>>, vector<1x16x16xbf16>
    %6 = vector.shape_cast %5 : vector<1x16x16xbf16> to vector<16x16xbf16>
    %cst = arith.constant dense<0.000000e+00> : vector<31x16xf32>
    %7 = tpu.matmul %4, %6, %cst {dimension_numbers = #tpu.dot_dimension_numbers<[1], [0], [0], [1], [0, 0, 1, 1], [], []>} : vector<31x16xbf16>, vector<16x16xbf16>, vector<31x16xf32> -> vector<31x16xf32>
    %8 = vector.extract_strided_slice %2 {offsets = [1, 0], sizes = [31, 16], strides = [1, 1]} : vector<32x16xbf16> to vector<31x16xbf16>
    %c1 = arith.constant 1 : index
    %c0_7 = arith.constant 0 : index
    %c0_8 = arith.constant 0 : index
    %9 = vector.load %arg2[%c1, %c0_7, %c0_8] : memref<2x16x16xbf16, #tpu.memory_space<vmem>>, vector<1x16x16xbf16>
    %10 = vector.shape_cast %9 : vector<1x16x16xbf16> to vector<16x16xbf16>
    %cst_9 = arith.constant dense<0.000000e+00> : vector<31x16xf32>
    %11 = tpu.matmul %8, %10, %cst_9 {dimension_numbers = #tpu.dot_dimension_numbers<[1], [0], [0], [1], [0, 0, 1, 1], [], []>} : vector<31x16xbf16>, vector<16x16xbf16>, vector<31x16xf32> -> vector<31x16xf32>
    %12 = arith.addf %7, %11 : vector<31x16xf32>
    %13 = vector.broadcast %3 : vector<1x16xf32> to vector<31x16xf32>
    %14 = arith.addf %12, %13 : vector<31x16xf32>
    %cst_10 = arith.constant 5.000000e-01 : f32
    %15 = vector.broadcast %cst_10 : f32 to vector<31x16xf32>
    %16 = arith.mulf %15, %14 : vector<31x16xf32>
    %cst_11 = arith.constant 0.707106769 : f32
    %17 = vector.broadcast %cst_11 : f32 to vector<31x16xf32>
    %18 = arith.mulf %14, %17 : vector<31x16xf32>
    %cst_12 = arith.constant 0.000000e+00 : f32
    %19 = vector.broadcast %cst_12 : f32 to vector<31x16xf32>
    %20 = arith.cmpf oge, %18, %19 : vector<31x16xf32>
    %cst_13 = arith.constant 1.000000e+00 : f32
    %cst_14 = arith.constant -1.000000e+00 : f32
    %21 = vector.broadcast %cst_13 : f32 to vector<31x16xf32>
    %22 = vector.broadcast %cst_14 : f32 to vector<31x16xf32>
    %23 = arith.select %20, %21, %22 : vector<31x16xi1>, vector<31x16xf32>
    %24 = math.absf %18 : vector<31x16xf32>
    %cst_15 = arith.constant 0.327591091 : f32
    %25 = vector.broadcast %cst_15 : f32 to vector<31x16xf32>
    %26 = arith.mulf %25, %24 : vector<31x16xf32>
    %cst_16 = arith.constant 1.000000e+00 : f32
    %27 = vector.broadcast %cst_16 : f32 to vector<31x16xf32>
    %28 = arith.addf %27, %26 : vector<31x16xf32>
    %cst_17 = arith.constant 1.000000e+00 : f32
    %29 = vector.broadcast %cst_17 : f32 to vector<31x16xf32>
    %30 = arith.divf %29, %28 : vector<31x16xf32>
    %cst_18 = arith.constant 1.06140542 : f32
    %31 = vector.broadcast %cst_18 : f32 to vector<31x16xf32>
    %32 = arith.mulf %31, %30 : vector<31x16xf32>
    %cst_19 = arith.constant -1.45315206 : f32
    %33 = vector.broadcast %cst_19 : f32 to vector<31x16xf32>
    %34 = arith.addf %32, %33 : vector<31x16xf32>
    %35 = arith.mulf %34, %30 : vector<31x16xf32>
    %cst_20 = arith.constant 1.42141378 : f32
    %36 = vector.broadcast %cst_20 : f32 to vector<31x16xf32>
    %37 = arith.addf %35, %36 : vector<31x16xf32>
    %38 = arith.mulf %37, %30 : vector<31x16xf32>
    %cst_21 = arith.constant -0.284496725 : f32
    %39 = vector.broadcast %cst_21 : f32 to vector<31x16xf32>
    %40 = arith.addf %38, %39 : vector<31x16xf32>
    %41 = arith.mulf %40, %30 : vector<31x16xf32>
    %cst_22 = arith.constant 0.254829586 : f32
    %42 = vector.broadcast %cst_22 : f32 to vector<31x16xf32>
    %43 = arith.addf %41, %42 : vector<31x16xf32>
    %44 = arith.mulf %43, %30 : vector<31x16xf32>
    %cst_23 = arith.constant 0.000000e+00 : f32
    %45 = vector.broadcast %cst_23 : f32 to vector<31x16xf32>
    %46 = arith.subf %45, %24 : vector<31x16xf32>
    %47 = arith.mulf %46, %24 : vector<31x16xf32>
    %48 = math.exp %47 : vector<31x16xf32>
    %49 = arith.mulf %44, %48 : vector<31x16xf32>
    %cst_24 = arith.constant 1.000000e+00 : f32
    %50 = vector.broadcast %cst_24 : f32 to vector<31x16xf32>
    %51 = arith.subf %50, %49 : vector<31x16xf32>
    %52 = arith.mulf %23, %51 : vector<31x16xf32>
    %cst_25 = arith.constant 1.000000e+00 : f32
    %53 = vector.broadcast %cst_25 : f32 to vector<31x16xf32>
    %54 = arith.addf %53, %52 : vector<31x16xf32>
    %55 = arith.mulf %16, %54 : vector<31x16xf32>
    %56 = arith.truncf %55 : vector<31x16xf32> to vector<31x16xbf16>
    %c0_26 = arith.constant 0 : index
    %c0_27 = arith.constant 0 : index
    %57 = vector.load %arg5[%c0_26, %c0_27] : memref<1x16xf32, #tpu.memory_space<vmem>>, vector<1x16xf32>
    %58 = vector.extract_strided_slice %56 {offsets = [0, 0], sizes = [28, 16], strides = [1, 1]} : vector<31x16xbf16> to vector<28x16xbf16>
    %c0_28 = arith.constant 0 : index
    %c0_29 = arith.constant 0 : index
    %c0_30 = arith.constant 0 : index
    %59 = vector.load %arg4[%c0_28, %c0_29, %c0_30] : memref<4x16x16xbf16, #tpu.memory_space<vmem>>, vector<1x16x16xbf16>
    %60 = vector.shape_cast %59 : vector<1x16x16xbf16> to vector<16x16xbf16>
    %cst_31 = arith.constant dense<0.000000e+00> : vector<28x16xf32>
    %61 = tpu.matmul %58, %60, %cst_31 {dimension_numbers = #tpu.dot_dimension_numbers<[1], [0], [0], [1], [0, 0, 1, 1], [], []>} : vector<28x16xbf16>, vector<16x16xbf16>, vector<28x16xf32> -> vector<28x16xf32>
    %62 = vector.extract_strided_slice %56 {offsets = [1, 0], sizes = [28, 16], strides = [1, 1]} : vector<31x16xbf16> to vector<28x16xbf16>
    %c1_32 = arith.constant 1 : index
    %c0_33 = arith.constant 0 : index
    %c0_34 = arith.constant 0 : index
    %63 = vector.load %arg4[%c1_32, %c0_33, %c0_34] : memref<4x16x16xbf16, #tpu.memory_space<vmem>>, vector<1x16x16xbf16>
    %64 = vector.shape_cast %63 : vector<1x16x16xbf16> to vector<16x16xbf16>
    %cst_35 = arith.constant dense<0.000000e+00> : vector<28x16xf32>
    %65 = tpu.matmul %62, %64, %cst_35 {dimension_numbers = #tpu.dot_dimension_numbers<[1], [0], [0], [1], [0, 0, 1, 1], [], []>} : vector<28x16xbf16>, vector<16x16xbf16>, vector<28x16xf32> -> vector<28x16xf32>
    %66 = arith.addf %61, %65 : vector<28x16xf32>
    %67 = vector.extract_strided_slice %56 {offsets = [2, 0], sizes = [28, 16], strides = [1, 1]} : vector<31x16xbf16> to vector<28x16xbf16>
    %c2 = arith.constant 2 : index
    %c0_36 = arith.constant 0 : index
    %c0_37 = arith.constant 0 : index
    %68 = vector.load %arg4[%c2, %c0_36, %c0_37] : memref<4x16x16xbf16, #tpu.memory_space<vmem>>, vector<1x16x16xbf16>
    %69 = vector.shape_cast %68 : vector<1x16x16xbf16> to vector<16x16xbf16>
    %cst_38 = arith.constant dense<0.000000e+00> : vector<28x16xf32>
    %70 = tpu.matmul %67, %69, %cst_38 {dimension_numbers = #tpu.dot_dimension_numbers<[1], [0], [0], [1], [0, 0, 1, 1], [], []>} : vector<28x16xbf16>, vector<16x16xbf16>, vector<28x16xf32> -> vector<28x16xf32>
    %71 = arith.addf %66, %70 : vector<28x16xf32>
    %72 = vector.extract_strided_slice %56 {offsets = [3, 0], sizes = [28, 16], strides = [1, 1]} : vector<31x16xbf16> to vector<28x16xbf16>
    %c3 = arith.constant 3 : index
    %c0_39 = arith.constant 0 : index
    %c0_40 = arith.constant 0 : index
    %73 = vector.load %arg4[%c3, %c0_39, %c0_40] : memref<4x16x16xbf16, #tpu.memory_space<vmem>>, vector<1x16x16xbf16>
    %74 = vector.shape_cast %73 : vector<1x16x16xbf16> to vector<16x16xbf16>
    %cst_41 = arith.constant dense<0.000000e+00> : vector<28x16xf32>
    %75 = tpu.matmul %72, %74, %cst_41 {dimension_numbers = #tpu.dot_dimension_numbers<[1], [0], [0], [1], [0, 0, 1, 1], [], []>} : vector<28x16xbf16>, vector<16x16xbf16>, vector<28x16xf32> -> vector<28x16xf32>
    %76 = arith.addf %71, %75 : vector<28x16xf32>
    %77 = vector.broadcast %57 : vector<1x16xf32> to vector<28x16xf32>
    %78 = arith.addf %76, %77 : vector<28x16xf32>
    %79 = tpu.iota {dimensions = array<i32: 0>} : vector<14x28xi32>
    %80 = tpu.iota {dimensions = array<i32: 1>} : vector<14x28xi32>
    %c2_i32 = arith.constant 2 : i32
    %81 = vector.broadcast %c2_i32 : i32 to vector<14x28xi32>
    %82 = arith.muli %81, %79 : vector<14x28xi32>
    %83 = arith.cmpi eq, %80, %82 : vector<14x28xi32>
    %cst_42 = arith.constant 1.000000e+00 : f32
    %cst_43 = arith.constant 0.000000e+00 : f32
    %84 = vector.broadcast %cst_42 : f32 to vector<14x28xf32>
    %85 = vector.broadcast %cst_43 : f32 to vector<14x28xf32>
    %86 = arith.select %83, %84, %85 : vector<14x28xi1>, vector<14x28xf32>
    %87 = arith.truncf %86 : vector<14x28xf32> to vector<14x28xbf16>
    %88 = arith.truncf %78 : vector<28x16xf32> to vector<28x16xbf16>
    %cst_44 = arith.constant dense<0.000000e+00> : vector<14x16xf32>
    %89 = tpu.matmul %87, %88, %cst_44 {dimension_numbers = #tpu.dot_dimension_numbers<[1], [0], [0], [1], [0, 0, 1, 1], [], []>} : vector<14x28xbf16>, vector<28x16xbf16>, vector<14x16xf32> -> vector<14x16xf32>
    %cst_45 = arith.constant 5.000000e-01 : f32
    %90 = vector.broadcast %cst_45 : f32 to vector<14x16xf32>
    %91 = arith.mulf %90, %89 : vector<14x16xf32>
    %cst_46 = arith.constant 0.707106769 : f32
    %92 = vector.broadcast %cst_46 : f32 to vector<14x16xf32>
    %93 = arith.mulf %89, %92 : vector<14x16xf32>
    %cst_47 = arith.constant 0.000000e+00 : f32
    %94 = vector.broadcast %cst_47 : f32 to vector<14x16xf32>
    %95 = arith.cmpf oge, %93, %94 : vector<14x16xf32>
    %cst_48 = arith.constant 1.000000e+00 : f32
    %cst_49 = arith.constant -1.000000e+00 : f32
    %96 = vector.broadcast %cst_48 : f32 to vector<14x16xf32>
    %97 = vector.broadcast %cst_49 : f32 to vector<14x16xf32>
    %98 = arith.select %95, %96, %97 : vector<14x16xi1>, vector<14x16xf32>
    %99 = math.absf %93 : vector<14x16xf32>
    %cst_50 = arith.constant 0.327591091 : f32
    %100 = vector.broadcast %cst_50 : f32 to vector<14x16xf32>
    %101 = arith.mulf %100, %99 : vector<14x16xf32>
    %cst_51 = arith.constant 1.000000e+00 : f32
    %102 = vector.broadcast %cst_51 : f32 to vector<14x16xf32>
    %103 = arith.addf %102, %101 : vector<14x16xf32>
    %cst_52 = arith.constant 1.000000e+00 : f32
    %104 = vector.broadcast %cst_52 : f32 to vector<14x16xf32>
    %105 = arith.divf %104, %103 : vector<14x16xf32>
    %cst_53 = arith.constant 1.06140542 : f32
    %106 = vector.broadcast %cst_53 : f32 to vector<14x16xf32>
    %107 = arith.mulf %106, %105 : vector<14x16xf32>
    %cst_54 = arith.constant -1.45315206 : f32
    %108 = vector.broadcast %cst_54 : f32 to vector<14x16xf32>
    %109 = arith.addf %107, %108 : vector<14x16xf32>
    %110 = arith.mulf %109, %105 : vector<14x16xf32>
    %cst_55 = arith.constant 1.42141378 : f32
    %111 = vector.broadcast %cst_55 : f32 to vector<14x16xf32>
    %112 = arith.addf %110, %111 : vector<14x16xf32>
    %113 = arith.mulf %112, %105 : vector<14x16xf32>
    %cst_56 = arith.constant -0.284496725 : f32
    %114 = vector.broadcast %cst_56 : f32 to vector<14x16xf32>
    %115 = arith.addf %113, %114 : vector<14x16xf32>
    %116 = arith.mulf %115, %105 : vector<14x16xf32>
    %cst_57 = arith.constant 0.254829586 : f32
    %117 = vector.broadcast %cst_57 : f32 to vector<14x16xf32>
    %118 = arith.addf %116, %117 : vector<14x16xf32>
    %119 = arith.mulf %118, %105 : vector<14x16xf32>
    %cst_58 = arith.constant 0.000000e+00 : f32
    %120 = vector.broadcast %cst_58 : f32 to vector<14x16xf32>
    %121 = arith.subf %120, %99 : vector<14x16xf32>
    %122 = arith.mulf %121, %99 : vector<14x16xf32>
    %123 = math.exp %122 : vector<14x16xf32>
    %124 = arith.mulf %119, %123 : vector<14x16xf32>
    %cst_59 = arith.constant 1.000000e+00 : f32
    %125 = vector.broadcast %cst_59 : f32 to vector<14x16xf32>
    %126 = arith.subf %125, %124 : vector<14x16xf32>
    %127 = arith.mulf %98, %126 : vector<14x16xf32>
    %cst_60 = arith.constant 1.000000e+00 : f32
    %128 = vector.broadcast %cst_60 : f32 to vector<14x16xf32>
    %129 = arith.addf %128, %127 : vector<14x16xf32>
    %130 = arith.mulf %91, %129 : vector<14x16xf32>
    %c0_61 = arith.constant 0 : index
    %c0_62 = arith.constant 0 : index
    %131 = vector.load %arg6[%c0_61, %c0_62] : memref<16x32xbf16, #tpu.memory_space<vmem>>, vector<16x32xbf16>
    %132 = arith.truncf %130 : vector<14x16xf32> to vector<14x16xbf16>
    %cst_63 = arith.constant dense<0.000000e+00> : vector<14x32xf32>
    %133 = tpu.matmul %132, %131, %cst_63 {dimension_numbers = #tpu.dot_dimension_numbers<[1], [0], [0], [1], [0, 0, 1, 1], [], []>} : vector<14x16xbf16>, vector<16x32xbf16>, vector<14x32xf32> -> vector<14x32xf32>
    %c0_64 = arith.constant 0 : index
    %c0_65 = arith.constant 0 : index
    %134 = vector.load %arg7[%c0_64, %c0_65] : memref<1x32xf32, #tpu.memory_space<vmem>>, vector<1x32xf32>
    %135 = vector.broadcast %134 : vector<1x32xf32> to vector<14x32xf32>
    %136 = arith.addf %133, %135 : vector<14x32xf32>
    %cst_66 = arith.constant 0.000000e+00 : f32
    %137 = vector.broadcast %cst_66 : f32 to vector<1x32xf32>
    %138 = tpu.concatenate %137, %136, %137 in 0 : vector<1x32xf32>, vector<14x32xf32>, vector<1x32xf32> -> vector<16x32xf32>
    %c0_67 = arith.constant 0 : index
    %c0_68 = arith.constant 0 : index
    %c0_69 = arith.constant 0 : index
    %139 = vector.load %arg8[%c0_67, %c0_68, %c0_69] : memref<1x16x32xf32, #tpu.memory_space<vmem>>, vector<1x16x32xf32>
    %140 = vector.shape_cast %139 : vector<1x16x32xf32> to vector<16x32xf32>
    %141 = vector.shape_cast %138 : vector<16x32xf32> to vector<1x16x32xf32>
    tpu.vector_store %arg8[%c0_67, %c0_68, %c0_69], %141 {strides = array<i32>} : memref<1x16x32xf32, #tpu.memory_space<vmem>>, vector<1x16x32xf32>,
    return
  }
  func.func @transform_0(%arg0: i32) -> (i32, i32, i32) {
    %c0_i32 = arith.constant 0 : i32
    %c0_i32_0 = arith.constant 0 : i32
    %c0_i32_1 = arith.constant 0 : i32
    return %arg0, %c0_i32, %c0_i32_0 : i32, i32, i32
  }
  func.func @transform_1(%arg0: i32) -> (i32, i32, i32) {
    %c0_i32 = arith.constant 0 : i32
    %c0_i32_0 = arith.constant 0 : i32
    %c0_i32_1 = arith.constant 0 : i32
    %c0_i32_2 = arith.constant 0 : i32
    return %c0_i32, %c0_i32_0, %c0_i32_1 : i32, i32, i32
  }
  func.func @transform_2(%arg0: i32) -> (i32, i32) {
    %c0_i32 = arith.constant 0 : i32
    %c0_i32_0 = arith.constant 0 : i32
    %c0_i32_1 = arith.constant 0 : i32
    return %c0_i32, %c0_i32_0 : i32, i32
  }
  func.func @transform_3(%arg0: i32) -> (i32, i32, i32) {
    %c0_i32 = arith.constant 0 : i32
    %c0_i32_0 = arith.constant 0 : i32
    %c0_i32_1 = arith.constant 0 : i32
    %c0_i32_2 = arith.constant 0 : i32
    return %c0_i32, %c0_i32_0, %c0_i32_1 : i32, i32, i32
  }
  func.func @transform_4(%arg0: i32) -> (i32, i32) {
    %c0_i32 = arith.constant 0 : i32
    %c0_i32_0 = arith.constant 0 : i32
    %c0_i32_1 = arith.constant 0 : i32
    return %c0_i32, %c0_i32_0 : i32, i32
  }
  func.func @transform_5(%arg0: i32) -> (i32, i32) {
    %c0_i32 = arith.constant 0 : i32
    %c0_i32_0 = arith.constant 0 : i32
    %c0_i32_1 = arith.constant 0 : i32
    return %c0_i32, %c0_i32_0 : i32, i32
  }
  func.func @transform_6(%arg0: i32) -> (i32, i32) {
    %c0_i32 = arith.constant 0 : i32
    %c0_i32_0 = arith.constant 0 : i32
    %c0_i32_1 = arith.constant 0 : i32
    return %c0_i32, %c0_i32_0 : i32, i32
  }
  func.func @transform_7(%arg0: i32) -> (i32, i32, i32) {
    %c0_i32 = arith.constant 0 : i32
    %c0_i32_0 = arith.constant 0 : i32
    %c0_i32_1 = arith.constant 0 : i32
    return %arg0, %c0_i32, %c0_i32_0 : i32, i32, i32
  }
}

module attributes {stable_mosaic.version = 11 : i64} {
  func.func @_encoder_kernel(%arg0: i32, %arg1: memref<1x16x32xf32, #tpu.memory_space<vmem>>, %arg2: memref<3x32x32xbf16, #tpu.memory_space<vmem>>, %arg3: memref<1x32xf32, #tpu.memory_space<vmem>>, %arg4: memref<32x32xbf16, #tpu.memory_space<vmem>>, %arg5: memref<1x32xf32, #tpu.memory_space<vmem>>, %arg6: memref<14x32xf32, #tpu.memory_space<vmem>>, %arg7: memref<1x32x96xbf16, #tpu.memory_space<vmem>>, %arg8: memref<1x1x96xf32, #tpu.memory_space<vmem>>, %arg9: memref<1x32x32xbf16, #tpu.memory_space<vmem>>, %arg10: memref<1x1x32xf32, #tpu.memory_space<vmem>>, %arg11: memref<1x1x32xf32, #tpu.memory_space<vmem>>, %arg12: memref<1x1x32xf32, #tpu.memory_space<vmem>>, %arg13: memref<1x32x64xbf16, #tpu.memory_space<vmem>>, %arg14: memref<1x1x64xf32, #tpu.memory_space<vmem>>, %arg15: memref<1x64x32xbf16, #tpu.memory_space<vmem>>, %arg16: memref<1x1x32xf32, #tpu.memory_space<vmem>>, %arg17: memref<1x1x32xf32, #tpu.memory_space<vmem>>, %arg18: memref<1x1x32xf32, #tpu.memory_space<vmem>>, %arg19: memref<1x14x32xf32, #tpu.memory_space<vmem>>) attributes {dimension_semantics = [#tpu.dimension_semantics<parallel>], iteration_bounds = array<i64: 2>, scalar_prefetch = 0 : i64, scratch_operands = 0 : i64, tpu.core_type = #tpu.core_type<tc>, window_params = [{transform_indices = @transform_0, window_bounds = array<i64: 1, 16, 32>}, {pipeline_mode = #tpu.pipeline_mode<synchronous>, transform_indices = @transform_1, window_bounds = array<i64: 3, 32, 32>}, {pipeline_mode = #tpu.pipeline_mode<synchronous>, transform_indices = @transform_2, window_bounds = array<i64: 1, 32>}, {pipeline_mode = #tpu.pipeline_mode<synchronous>, transform_indices = @transform_3, window_bounds = array<i64: 32, 32>}, {pipeline_mode = #tpu.pipeline_mode<synchronous>, transform_indices = @transform_4, window_bounds = array<i64: 1, 32>}, {pipeline_mode = #tpu.pipeline_mode<synchronous>, transform_indices = @transform_5, window_bounds = array<i64: 14, 32>}, {pipeline_mode = #tpu.pipeline_mode<synchronous>, transform_indices = @transform_6, window_bounds = array<i64: 1, 32, 96>}, {pipeline_mode = #tpu.pipeline_mode<synchronous>, transform_indices = @transform_7, window_bounds = array<i64: 1, 1, 96>}, {pipeline_mode = #tpu.pipeline_mode<synchronous>, transform_indices = @transform_8, window_bounds = array<i64: 1, 32, 32>}, {pipeline_mode = #tpu.pipeline_mode<synchronous>, transform_indices = @transform_9, window_bounds = array<i64: 1, 1, 32>}, {pipeline_mode = #tpu.pipeline_mode<synchronous>, transform_indices = @transform_10, window_bounds = array<i64: 1, 1, 32>}, {pipeline_mode = #tpu.pipeline_mode<synchronous>, transform_indices = @transform_11, window_bounds = array<i64: 1, 1, 32>}, {pipeline_mode = #tpu.pipeline_mode<synchronous>, transform_indices = @transform_12, window_bounds = array<i64: 1, 32, 64>}, {pipeline_mode = #tpu.pipeline_mode<synchronous>, transform_indices = @transform_13, window_bounds = array<i64: 1, 1, 64>}, {pipeline_mode = #tpu.pipeline_mode<synchronous>, transform_indices = @transform_14, window_bounds = array<i64: 1, 64, 32>}, {pipeline_mode = #tpu.pipeline_mode<synchronous>, transform_indices = @transform_15, window_bounds = array<i64: 1, 1, 32>}, {pipeline_mode = #tpu.pipeline_mode<synchronous>, transform_indices = @transform_16, window_bounds = array<i64: 1, 1, 32>}, {pipeline_mode = #tpu.pipeline_mode<synchronous>, transform_indices = @transform_17, window_bounds = array<i64: 1, 1, 32>}, {transform_indices = @transform_18, window_bounds = array<i64: 1, 14, 32>}]} {
    %c0 = arith.constant 0 : index
    %c0_0 = arith.constant 0 : index
    %c0_1 = arith.constant 0 : index
    %0 = vector.load %arg1[%c0, %c0_0, %c0_1] : memref<1x16x32xf32, #tpu.memory_space<vmem>>, vector<1x16x32xf32>
    %1 = vector.shape_cast %0 : vector<1x16x32xf32> to vector<16x32xf32>
    %2 = arith.truncf %1 : vector<16x32xf32> to vector<16x32xbf16>
    %c0_2 = arith.constant 0 : index
    %c0_3 = arith.constant 0 : index
    %3 = vector.load %arg3[%c0_2, %c0_3] : memref<1x32xf32, #tpu.memory_space<vmem>>, vector<1x32xf32>
    %4 = vector.extract_strided_slice %2 {offsets = [0, 0], sizes = [14, 32], strides = [1, 1]} : vector<16x32xbf16> to vector<14x32xbf16>
    %c0_4 = arith.constant 0 : index
    %c0_5 = arith.constant 0 : index
    %c0_6 = arith.constant 0 : index
    %5 = vector.load %arg2[%c0_4, %c0_5, %c0_6] : memref<3x32x32xbf16, #tpu.memory_space<vmem>>, vector<1x32x32xbf16>
    %6 = vector.shape_cast %5 : vector<1x32x32xbf16> to vector<32x32xbf16>
    %cst = arith.constant dense<0.000000e+00> : vector<14x32xf32>
    %7 = tpu.matmul %4, %6, %cst {dimension_numbers = #tpu.dot_dimension_numbers<[1], [0], [0], [1], [0, 0, 1, 1], [], []>} : vector<14x32xbf16>, vector<32x32xbf16>, vector<14x32xf32> -> vector<14x32xf32>
    %8 = vector.extract_strided_slice %2 {offsets = [1, 0], sizes = [14, 32], strides = [1, 1]} : vector<16x32xbf16> to vector<14x32xbf16>
    %c1 = arith.constant 1 : index
    %c0_7 = arith.constant 0 : index
    %c0_8 = arith.constant 0 : index
    %9 = vector.load %arg2[%c1, %c0_7, %c0_8] : memref<3x32x32xbf16, #tpu.memory_space<vmem>>, vector<1x32x32xbf16>
    %10 = vector.shape_cast %9 : vector<1x32x32xbf16> to vector<32x32xbf16>
    %cst_9 = arith.constant dense<0.000000e+00> : vector<14x32xf32>
    %11 = tpu.matmul %8, %10, %cst_9 {dimension_numbers = #tpu.dot_dimension_numbers<[1], [0], [0], [1], [0, 0, 1, 1], [], []>} : vector<14x32xbf16>, vector<32x32xbf16>, vector<14x32xf32> -> vector<14x32xf32>
    %12 = arith.addf %7, %11 : vector<14x32xf32>
    %13 = vector.extract_strided_slice %2 {offsets = [2, 0], sizes = [14, 32], strides = [1, 1]} : vector<16x32xbf16> to vector<14x32xbf16>
    %c2 = arith.constant 2 : index
    %c0_10 = arith.constant 0 : index
    %c0_11 = arith.constant 0 : index
    %14 = vector.load %arg2[%c2, %c0_10, %c0_11] : memref<3x32x32xbf16, #tpu.memory_space<vmem>>, vector<1x32x32xbf16>
    %15 = vector.shape_cast %14 : vector<1x32x32xbf16> to vector<32x32xbf16>
    %cst_12 = arith.constant dense<0.000000e+00> : vector<14x32xf32>
    %16 = tpu.matmul %13, %15, %cst_12 {dimension_numbers = #tpu.dot_dimension_numbers<[1], [0], [0], [1], [0, 0, 1, 1], [], []>} : vector<14x32xbf16>, vector<32x32xbf16>, vector<14x32xf32> -> vector<14x32xf32>
    %17 = arith.addf %12, %16 : vector<14x32xf32>
    %18 = vector.broadcast %3 : vector<1x32xf32> to vector<14x32xf32>
    %19 = arith.addf %17, %18 : vector<14x32xf32>
    %cst_13 = arith.constant 0.000000e+00 : f32
    %20 = vector.broadcast %cst_13 : f32 to vector<14x32xf32>
    %21 = arith.maximumf %19, %20 : vector<14x32xf32>
    %c0_14 = arith.constant 0 : index
    %c0_15 = arith.constant 0 : index
    %22 = vector.load %arg4[%c0_14, %c0_15] : memref<32x32xbf16, #tpu.memory_space<vmem>>, vector<32x32xbf16>
    %23 = arith.truncf %21 : vector<14x32xf32> to vector<14x32xbf16>
    %cst_16 = arith.constant dense<0.000000e+00> : vector<14x32xf32>
    %24 = tpu.matmul %23, %22, %cst_16 {dimension_numbers = #tpu.dot_dimension_numbers<[1], [0], [0], [1], [0, 0, 1, 1], [], []>} : vector<14x32xbf16>, vector<32x32xbf16>, vector<14x32xf32> -> vector<14x32xf32>
    %c0_17 = arith.constant 0 : index
    %c0_18 = arith.constant 0 : index
    %25 = vector.load %arg5[%c0_17, %c0_18] : memref<1x32xf32, #tpu.memory_space<vmem>>, vector<1x32xf32>
    %26 = vector.broadcast %25 : vector<1x32xf32> to vector<14x32xf32>
    %27 = arith.addf %24, %26 : vector<14x32xf32>
    %c0_19 = arith.constant 0 : index
    %c0_20 = arith.constant 0 : index
    %28 = vector.load %arg6[%c0_19, %c0_20] : memref<14x32xf32, #tpu.memory_space<vmem>>, vector<14x32xf32>
    %29 = arith.addf %27, %28 : vector<14x32xf32>
    %c0_21 = arith.constant 0 : index
    %c0_22 = arith.constant 0 : index
    %c0_23 = arith.constant 0 : index
    %30 = vector.load %arg7[%c0_21, %c0_22, %c0_23] : memref<1x32x96xbf16, #tpu.memory_space<vmem>>, vector<1x32x96xbf16>
    %31 = vector.shape_cast %30 : vector<1x32x96xbf16> to vector<32x96xbf16>
    %32 = arith.truncf %29 : vector<14x32xf32> to vector<14x32xbf16>
    %cst_24 = arith.constant dense<0.000000e+00> : vector<14x96xf32>
    %33 = tpu.matmul %32, %31, %cst_24 {dimension_numbers = #tpu.dot_dimension_numbers<[1], [0], [0], [1], [0, 0, 1, 1], [], []>} : vector<14x32xbf16>, vector<32x96xbf16>, vector<14x96xf32> -> vector<14x96xf32>
    %c0_25 = arith.constant 0 : index
    %c0_26 = arith.constant 0 : index
    %c0_27 = arith.constant 0 : index
    %34 = vector.load %arg8[%c0_25, %c0_26, %c0_27] : memref<1x1x96xf32, #tpu.memory_space<vmem>>, vector<1x1x96xf32>
    %35 = vector.shape_cast %34 : vector<1x1x96xf32> to vector<1x96xf32>
    %36 = vector.broadcast %35 : vector<1x96xf32> to vector<14x96xf32>
    %37 = arith.addf %33, %36 : vector<14x96xf32>
    %38 = vector.extract_strided_slice %37 {offsets = [0, 0], sizes = [14, 32], strides = [1, 1]} : vector<14x96xf32> to vector<14x32xf32>
    %39 = vector.extract_strided_slice %37 {offsets = [0, 32], sizes = [14, 32], strides = [1, 1]} : vector<14x96xf32> to vector<14x32xf32>
    %40 = vector.extract_strided_slice %37 {offsets = [0, 64], sizes = [14, 32], strides = [1, 1]} : vector<14x96xf32> to vector<14x32xf32>
    %c0_28 = arith.constant 0 : index
    %c0_29 = arith.constant 0 : index
    %c0_30 = arith.constant 0 : index
    %41 = vector.load %arg9[%c0_28, %c0_29, %c0_30] : memref<1x32x32xbf16, #tpu.memory_space<vmem>>, vector<1x32x32xbf16>
    %42 = vector.shape_cast %41 : vector<1x32x32xbf16> to vector<32x32xbf16>
    %c0_31 = arith.constant 0 : index
    %c0_32 = arith.constant 0 : index
    %c0_33 = arith.constant 0 : index
    %43 = vector.load %arg10[%c0_31, %c0_32, %c0_33] : memref<1x1x32xf32, #tpu.memory_space<vmem>>, vector<1x1x32xf32>
    %44 = vector.shape_cast %43 : vector<1x1x32xf32> to vector<1x32xf32>
    %45 = vector.extract_strided_slice %38 {offsets = [0, 0], sizes = [14, 16], strides = [1, 1]} : vector<14x32xf32> to vector<14x16xf32>
    %46 = vector.extract_strided_slice %39 {offsets = [0, 0], sizes = [14, 16], strides = [1, 1]} : vector<14x32xf32> to vector<14x16xf32>
    %47 = arith.truncf %45 : vector<14x16xf32> to vector<14x16xbf16>
    %48 = arith.truncf %46 : vector<14x16xf32> to vector<14x16xbf16>
    %cst_34 = arith.constant dense<0.000000e+00> : vector<14x14xf32>
    %49 = tpu.matmul %47, %48, %cst_34 {dimension_numbers = #tpu.dot_dimension_numbers<[1], [1], [0], [0], [0, 0, 1, 0], [], []>} : vector<14x16xbf16>, vector<14x16xbf16>, vector<14x14xf32> -> vector<14x14xf32>
    %cst_35 = arith.constant 2.500000e-01 : f32
    %50 = vector.broadcast %cst_35 : f32 to vector<14x14xf32>
    %51 = arith.mulf %49, %50 : vector<14x14xf32>
    %cst_36 = arith.constant dense<0xFF800000> : vector<14xf32>
    %52 = vector.multi_reduction <maximumf>, %51, %cst_36 [1] : vector<14x14xf32> to vector<14xf32>
    %53 = vector.shape_cast %52 : vector<14xf32> to vector<14x1xf32>
    %54 = vector.broadcast %53 : vector<14x1xf32> to vector<14x14xf32>
    %55 = arith.subf %51, %54 : vector<14x14xf32>
    %56 = math.exp %55 : vector<14x14xf32>
    %cst_37 = arith.constant dense<0.000000e+00> : vector<14xf32>
    %57 = vector.multi_reduction <add>, %56, %cst_37 [1] : vector<14x14xf32> to vector<14xf32>
    %58 = vector.shape_cast %57 : vector<14xf32> to vector<14x1xf32>
    %59 = tpu.reciprocal %58 {approx = true} : vector<14x1xf32> -> vector<14x1xf32>
    %60 = vector.broadcast %59 : vector<14x1xf32> to vector<14x14xf32>
    %61 = arith.mulf %56, %60 : vector<14x14xf32>
    %62 = vector.extract_strided_slice %40 {offsets = [0, 0], sizes = [14, 16], strides = [1, 1]} : vector<14x32xf32> to vector<14x16xf32>
    %63 = arith.truncf %61 : vector<14x14xf32> to vector<14x14xbf16>
    %64 = arith.truncf %62 : vector<14x16xf32> to vector<14x16xbf16>
    %cst_38 = arith.constant dense<0.000000e+00> : vector<14x16xf32>
    %65 = tpu.matmul %63, %64, %cst_38 {dimension_numbers = #tpu.dot_dimension_numbers<[1], [0], [0], [1], [0, 0, 1, 1], [], []>} : vector<14x14xbf16>, vector<14x16xbf16>, vector<14x16xf32> -> vector<14x16xf32>
    %66 = vector.extract_strided_slice %38 {offsets = [0, 16], sizes = [14, 16], strides = [1, 1]} : vector<14x32xf32> to vector<14x16xf32>
    %67 = vector.extract_strided_slice %39 {offsets = [0, 16], sizes = [14, 16], strides = [1, 1]} : vector<14x32xf32> to vector<14x16xf32>
    %68 = arith.truncf %66 : vector<14x16xf32> to vector<14x16xbf16>
    %69 = arith.truncf %67 : vector<14x16xf32> to vector<14x16xbf16>
    %cst_39 = arith.constant dense<0.000000e+00> : vector<14x14xf32>
    %70 = tpu.matmul %68, %69, %cst_39 {dimension_numbers = #tpu.dot_dimension_numbers<[1], [1], [0], [0], [0, 0, 1, 0], [], []>} : vector<14x16xbf16>, vector<14x16xbf16>, vector<14x14xf32> -> vector<14x14xf32>
    %cst_40 = arith.constant 2.500000e-01 : f32
    %71 = vector.broadcast %cst_40 : f32 to vector<14x14xf32>
    %72 = arith.mulf %70, %71 : vector<14x14xf32>
    %cst_41 = arith.constant dense<0xFF800000> : vector<14xf32>
    %73 = vector.multi_reduction <maximumf>, %72, %cst_41 [1] : vector<14x14xf32> to vector<14xf32>
    %74 = vector.shape_cast %73 : vector<14xf32> to vector<14x1xf32>
    %75 = vector.broadcast %74 : vector<14x1xf32> to vector<14x14xf32>
    %76 = arith.subf %72, %75 : vector<14x14xf32>
    %77 = math.exp %76 : vector<14x14xf32>
    %cst_42 = arith.constant dense<0.000000e+00> : vector<14xf32>
    %78 = vector.multi_reduction <add>, %77, %cst_42 [1] : vector<14x14xf32> to vector<14xf32>
    %79 = vector.shape_cast %78 : vector<14xf32> to vector<14x1xf32>
    %80 = tpu.reciprocal %79 {approx = true} : vector<14x1xf32> -> vector<14x1xf32>
    %81 = vector.broadcast %80 : vector<14x1xf32> to vector<14x14xf32>
    %82 = arith.mulf %77, %81 : vector<14x14xf32>
    %83 = vector.extract_strided_slice %40 {offsets = [0, 16], sizes = [14, 16], strides = [1, 1]} : vector<14x32xf32> to vector<14x16xf32>
    %84 = arith.truncf %82 : vector<14x14xf32> to vector<14x14xbf16>
    %85 = arith.truncf %83 : vector<14x16xf32> to vector<14x16xbf16>
    %cst_43 = arith.constant dense<0.000000e+00> : vector<14x16xf32>
    %86 = tpu.matmul %84, %85, %cst_43 {dimension_numbers = #tpu.dot_dimension_numbers<[1], [0], [0], [1], [0, 0, 1, 1], [], []>} : vector<14x14xbf16>, vector<14x16xbf16>, vector<14x16xf32> -> vector<14x16xf32>
    %87 = tpu.concatenate %65, %86 in 1 : vector<14x16xf32>, vector<14x16xf32> -> vector<14x32xf32>
    %88 = arith.truncf %87 : vector<14x32xf32> to vector<14x32xbf16>
    %cst_44 = arith.constant dense<0.000000e+00> : vector<14x32xf32>
    %89 = tpu.matmul %88, %42, %cst_44 {dimension_numbers = #tpu.dot_dimension_numbers<[1], [0], [0], [1], [0, 0, 1, 1], [], []>} : vector<14x32xbf16>, vector<32x32xbf16>, vector<14x32xf32> -> vector<14x32xf32>
    %90 = vector.broadcast %44 : vector<1x32xf32> to vector<14x32xf32>
    %91 = arith.addf %89, %90 : vector<14x32xf32>
    %92 = arith.addf %29, %91 : vector<14x32xf32>
    %c0_45 = arith.constant 0 : index
    %c0_46 = arith.constant 0 : index
    %c0_47 = arith.constant 0 : index
    %93 = vector.load %arg11[%c0_45, %c0_46, %c0_47] : memref<1x1x32xf32, #tpu.memory_space<vmem>>, vector<1x1x32xf32>
    %94 = vector.shape_cast %93 : vector<1x1x32xf32> to vector<1x32xf32>
    %c0_48 = arith.constant 0 : index
    %c0_49 = arith.constant 0 : index
    %c0_50 = arith.constant 0 : index
    %95 = vector.load %arg12[%c0_48, %c0_49, %c0_50] : memref<1x1x32xf32, #tpu.memory_space<vmem>>, vector<1x1x32xf32>
    %96 = vector.shape_cast %95 : vector<1x1x32xf32> to vector<1x32xf32>
    %cst_51 = arith.constant dense<0.000000e+00> : vector<14xf32>
    %97 = vector.multi_reduction <add>, %92, %cst_51 [1] : vector<14x32xf32> to vector<14xf32>
    %98 = vector.shape_cast %97 : vector<14xf32> to vector<14x1xf32>
    %cst_52 = arith.constant 3.200000e+01 : f32
    %99 = vector.broadcast %cst_52 : f32 to vector<14x1xf32>
    %100 = arith.divf %98, %99 : vector<14x1xf32>
    %101 = vector.broadcast %100 : vector<14x1xf32> to vector<14x32xf32>
    %102 = arith.subf %92, %101 : vector<14x32xf32>
    %103 = arith.mulf %102, %102 : vector<14x32xf32>
    %cst_53 = arith.constant dense<0.000000e+00> : vector<14xf32>
    %104 = vector.multi_reduction <add>, %103, %cst_53 [1] : vector<14x32xf32> to vector<14xf32>
    %105 = vector.shape_cast %104 : vector<14xf32> to vector<14x1xf32>
    %cst_54 = arith.constant 3.200000e+01 : f32
    %106 = vector.broadcast %cst_54 : f32 to vector<14x1xf32>
    %107 = arith.divf %105, %106 : vector<14x1xf32>
    %108 = vector.broadcast %100 : vector<14x1xf32> to vector<14x32xf32>
    %109 = arith.subf %92, %108 : vector<14x32xf32>
    %cst_55 = arith.constant 9.99999974E-6 : f32
    %110 = vector.broadcast %cst_55 : f32 to vector<14x1xf32>
    %111 = arith.addf %107, %110 : vector<14x1xf32>
    %112 = math.rsqrt %111 : vector<14x1xf32>
    %113 = vector.broadcast %112 : vector<14x1xf32> to vector<14x32xf32>
    %114 = arith.mulf %109, %113 : vector<14x32xf32>
    %115 = vector.broadcast %94 : vector<1x32xf32> to vector<14x32xf32>
    %116 = arith.mulf %114, %115 : vector<14x32xf32>
    %117 = vector.broadcast %96 : vector<1x32xf32> to vector<14x32xf32>
    %118 = arith.addf %116, %117 : vector<14x32xf32>
    %c0_56 = arith.constant 0 : index
    %c0_57 = arith.constant 0 : index
    %c0_58 = arith.constant 0 : index
    %119 = vector.load %arg13[%c0_56, %c0_57, %c0_58] : memref<1x32x64xbf16, #tpu.memory_space<vmem>>, vector<1x32x64xbf16>
    %120 = vector.shape_cast %119 : vector<1x32x64xbf16> to vector<32x64xbf16>
    %121 = arith.truncf %118 : vector<14x32xf32> to vector<14x32xbf16>
    %cst_59 = arith.constant dense<0.000000e+00> : vector<14x64xf32>
    %122 = tpu.matmul %121, %120, %cst_59 {dimension_numbers = #tpu.dot_dimension_numbers<[1], [0], [0], [1], [0, 0, 1, 1], [], []>} : vector<14x32xbf16>, vector<32x64xbf16>, vector<14x64xf32> -> vector<14x64xf32>
    %c0_60 = arith.constant 0 : index
    %c0_61 = arith.constant 0 : index
    %c0_62 = arith.constant 0 : index
    %123 = vector.load %arg14[%c0_60, %c0_61, %c0_62] : memref<1x1x64xf32, #tpu.memory_space<vmem>>, vector<1x1x64xf32>
    %124 = vector.shape_cast %123 : vector<1x1x64xf32> to vector<1x64xf32>
    %125 = vector.broadcast %124 : vector<1x64xf32> to vector<14x64xf32>
    %126 = arith.addf %122, %125 : vector<14x64xf32>
    %cst_63 = arith.constant 0.000000e+00 : f32
    %127 = vector.broadcast %cst_63 : f32 to vector<14x64xf32>
    %128 = arith.maximumf %126, %127 : vector<14x64xf32>
    %c0_64 = arith.constant 0 : index
    %c0_65 = arith.constant 0 : index
    %c0_66 = arith.constant 0 : index
    %129 = vector.load %arg15[%c0_64, %c0_65, %c0_66] : memref<1x64x32xbf16, #tpu.memory_space<vmem>>, vector<1x64x32xbf16>
    %130 = vector.shape_cast %129 : vector<1x64x32xbf16> to vector<64x32xbf16>
    %131 = arith.truncf %128 : vector<14x64xf32> to vector<14x64xbf16>
    %cst_67 = arith.constant dense<0.000000e+00> : vector<14x32xf32>
    %132 = tpu.matmul %131, %130, %cst_67 {dimension_numbers = #tpu.dot_dimension_numbers<[1], [0], [0], [1], [0, 0, 1, 1], [], []>} : vector<14x64xbf16>, vector<64x32xbf16>, vector<14x32xf32> -> vector<14x32xf32>
    %c0_68 = arith.constant 0 : index
    %c0_69 = arith.constant 0 : index
    %c0_70 = arith.constant 0 : index
    %133 = vector.load %arg16[%c0_68, %c0_69, %c0_70] : memref<1x1x32xf32, #tpu.memory_space<vmem>>, vector<1x1x32xf32>
    %134 = vector.shape_cast %133 : vector<1x1x32xf32> to vector<1x32xf32>
    %135 = vector.broadcast %134 : vector<1x32xf32> to vector<14x32xf32>
    %136 = arith.addf %132, %135 : vector<14x32xf32>
    %137 = arith.addf %118, %136 : vector<14x32xf32>
    %c0_71 = arith.constant 0 : index
    %c0_72 = arith.constant 0 : index
    %c0_73 = arith.constant 0 : index
    %138 = vector.load %arg17[%c0_71, %c0_72, %c0_73] : memref<1x1x32xf32, #tpu.memory_space<vmem>>, vector<1x1x32xf32>
    %139 = vector.shape_cast %138 : vector<1x1x32xf32> to vector<1x32xf32>
    %c0_74 = arith.constant 0 : index
    %c0_75 = arith.constant 0 : index
    %c0_76 = arith.constant 0 : index
    %140 = vector.load %arg18[%c0_74, %c0_75, %c0_76] : memref<1x1x32xf32, #tpu.memory_space<vmem>>, vector<1x1x32xf32>
    %141 = vector.shape_cast %140 : vector<1x1x32xf32> to vector<1x32xf32>
    %cst_77 = arith.constant dense<0.000000e+00> : vector<14xf32>
    %142 = vector.multi_reduction <add>, %137, %cst_77 [1] : vector<14x32xf32> to vector<14xf32>
    %143 = vector.shape_cast %142 : vector<14xf32> to vector<14x1xf32>
    %cst_78 = arith.constant 3.200000e+01 : f32
    %144 = vector.broadcast %cst_78 : f32 to vector<14x1xf32>
    %145 = arith.divf %143, %144 : vector<14x1xf32>
    %146 = vector.broadcast %145 : vector<14x1xf32> to vector<14x32xf32>
    %147 = arith.subf %137, %146 : vector<14x32xf32>
    %148 = arith.mulf %147, %147 : vector<14x32xf32>
    %cst_79 = arith.constant dense<0.000000e+00> : vector<14xf32>
    %149 = vector.multi_reduction <add>, %148, %cst_79 [1] : vector<14x32xf32> to vector<14xf32>
    %150 = vector.shape_cast %149 : vector<14xf32> to vector<14x1xf32>
    %cst_80 = arith.constant 3.200000e+01 : f32
    %151 = vector.broadcast %cst_80 : f32 to vector<14x1xf32>
    %152 = arith.divf %150, %151 : vector<14x1xf32>
    %153 = vector.broadcast %145 : vector<14x1xf32> to vector<14x32xf32>
    %154 = arith.subf %137, %153 : vector<14x32xf32>
    %cst_81 = arith.constant 9.99999974E-6 : f32
    %155 = vector.broadcast %cst_81 : f32 to vector<14x1xf32>
    %156 = arith.addf %152, %155 : vector<14x1xf32>
    %157 = math.rsqrt %156 : vector<14x1xf32>
    %158 = vector.broadcast %157 : vector<14x1xf32> to vector<14x32xf32>
    %159 = arith.mulf %154, %158 : vector<14x32xf32>
    %160 = vector.broadcast %139 : vector<1x32xf32> to vector<14x32xf32>
    %161 = arith.mulf %159, %160 : vector<14x32xf32>
    %162 = vector.broadcast %141 : vector<1x32xf32> to vector<14x32xf32>
    %163 = arith.addf %161, %162 : vector<14x32xf32>
    %c0_82 = arith.constant 0 : index
    %c0_83 = arith.constant 0 : index
    %c0_84 = arith.constant 0 : index
    %164 = vector.load %arg19[%c0_82, %c0_83, %c0_84] : memref<1x14x32xf32, #tpu.memory_space<vmem>>, vector<1x14x32xf32>
    %165 = vector.shape_cast %164 : vector<1x14x32xf32> to vector<14x32xf32>
    %166 = vector.shape_cast %163 : vector<14x32xf32> to vector<1x14x32xf32>
    tpu.vector_store %arg19[%c0_82, %c0_83, %c0_84], %166 {strides = array<i32>} : memref<1x14x32xf32, #tpu.memory_space<vmem>>, vector<1x14x32xf32>,
    return
  }
  func.func @transform_0(%arg0: i32) -> (i32, i32, i32) {
    %c0_i32 = arith.constant 0 : i32
    %c0_i32_0 = arith.constant 0 : i32
    %c0_i32_1 = arith.constant 0 : i32
    return %arg0, %c0_i32, %c0_i32_0 : i32, i32, i32
  }
  func.func @transform_1(%arg0: i32) -> (i32, i32, i32) {
    %c0_i32 = arith.constant 0 : i32
    %c0_i32_0 = arith.constant 0 : i32
    %c0_i32_1 = arith.constant 0 : i32
    %c0_i32_2 = arith.constant 0 : i32
    return %c0_i32, %c0_i32_0, %c0_i32_1 : i32, i32, i32
  }
  func.func @transform_2(%arg0: i32) -> (i32, i32) {
    %c0_i32 = arith.constant 0 : i32
    %c0_i32_0 = arith.constant 0 : i32
    %c0_i32_1 = arith.constant 0 : i32
    return %c0_i32, %c0_i32_0 : i32, i32
  }
  func.func @transform_3(%arg0: i32) -> (i32, i32) {
    %c0_i32 = arith.constant 0 : i32
    %c0_i32_0 = arith.constant 0 : i32
    %c0_i32_1 = arith.constant 0 : i32
    return %c0_i32, %c0_i32_0 : i32, i32
  }
  func.func @transform_4(%arg0: i32) -> (i32, i32) {
    %c0_i32 = arith.constant 0 : i32
    %c0_i32_0 = arith.constant 0 : i32
    %c0_i32_1 = arith.constant 0 : i32
    return %c0_i32, %c0_i32_0 : i32, i32
  }
  func.func @transform_5(%arg0: i32) -> (i32, i32) {
    %c0_i32 = arith.constant 0 : i32
    %c0_i32_0 = arith.constant 0 : i32
    %c0_i32_1 = arith.constant 0 : i32
    return %c0_i32, %c0_i32_0 : i32, i32
  }
  func.func @transform_6(%arg0: i32) -> (i32, i32, i32) {
    %c0_i32 = arith.constant 0 : i32
    %c0_i32_0 = arith.constant 0 : i32
    %c0_i32_1 = arith.constant 0 : i32
    %c0_i32_2 = arith.constant 0 : i32
    return %c0_i32, %c0_i32_0, %c0_i32_1 : i32, i32, i32
  }
  func.func @transform_7(%arg0: i32) -> (i32, i32, i32) {
    %c0_i32 = arith.constant 0 : i32
    %c0_i32_0 = arith.constant 0 : i32
    %c0_i32_1 = arith.constant 0 : i32
    %c0_i32_2 = arith.constant 0 : i32
    return %c0_i32, %c0_i32_0, %c0_i32_1 : i32, i32, i32
  }
  func.func @transform_8(%arg0: i32) -> (i32, i32, i32) {
    %c0_i32 = arith.constant 0 : i32
    %c0_i32_0 = arith.constant 0 : i32
    %c0_i32_1 = arith.constant 0 : i32
    %c0_i32_2 = arith.constant 0 : i32
    return %c0_i32, %c0_i32_0, %c0_i32_1 : i32, i32, i32
  }
  func.func @transform_9(%arg0: i32) -> (i32, i32, i32) {
    %c0_i32 = arith.constant 0 : i32
    %c0_i32_0 = arith.constant 0 : i32
    %c0_i32_1 = arith.constant 0 : i32
    %c0_i32_2 = arith.constant 0 : i32
    return %c0_i32, %c0_i32_0, %c0_i32_1 : i32, i32, i32
  }
  func.func @transform_10(%arg0: i32) -> (i32, i32, i32) {
    %c0_i32 = arith.constant 0 : i32
    %c0_i32_0 = arith.constant 0 : i32
    %c0_i32_1 = arith.constant 0 : i32
    %c0_i32_2 = arith.constant 0 : i32
    return %c0_i32, %c0_i32_0, %c0_i32_1 : i32, i32, i32
  }
  func.func @transform_11(%arg0: i32) -> (i32, i32, i32) {
    %c0_i32 = arith.constant 0 : i32
    %c0_i32_0 = arith.constant 0 : i32
    %c0_i32_1 = arith.constant 0 : i32
    %c0_i32_2 = arith.constant 0 : i32
    return %c0_i32, %c0_i32_0, %c0_i32_1 : i32, i32, i32
  }
  func.func @transform_12(%arg0: i32) -> (i32, i32, i32) {
    %c0_i32 = arith.constant 0 : i32
    %c0_i32_0 = arith.constant 0 : i32
    %c0_i32_1 = arith.constant 0 : i32
    %c0_i32_2 = arith.constant 0 : i32
    return %c0_i32, %c0_i32_0, %c0_i32_1 : i32, i32, i32
  }
  func.func @transform_13(%arg0: i32) -> (i32, i32, i32) {
    %c0_i32 = arith.constant 0 : i32
    %c0_i32_0 = arith.constant 0 : i32
    %c0_i32_1 = arith.constant 0 : i32
    %c0_i32_2 = arith.constant 0 : i32
    return %c0_i32, %c0_i32_0, %c0_i32_1 : i32, i32, i32
  }
  func.func @transform_14(%arg0: i32) -> (i32, i32, i32) {
    %c0_i32 = arith.constant 0 : i32
    %c0_i32_0 = arith.constant 0 : i32
    %c0_i32_1 = arith.constant 0 : i32
    %c0_i32_2 = arith.constant 0 : i32
    return %c0_i32, %c0_i32_0, %c0_i32_1 : i32, i32, i32
  }
  func.func @transform_15(%arg0: i32) -> (i32, i32, i32) {
    %c0_i32 = arith.constant 0 : i32
    %c0_i32_0 = arith.constant 0 : i32
    %c0_i32_1 = arith.constant 0 : i32
    %c0_i32_2 = arith.constant 0 : i32
    return %c0_i32, %c0_i32_0, %c0_i32_1 : i32, i32, i32
  }
  func.func @transform_16(%arg0: i32) -> (i32, i32, i32) {
    %c0_i32 = arith.constant 0 : i32
    %c0_i32_0 = arith.constant 0 : i32
    %c0_i32_1 = arith.constant 0 : i32
    %c0_i32_2 = arith.constant 0 : i32
    return %c0_i32, %c0_i32_0, %c0_i32_1 : i32, i32, i32
  }
  func.func @transform_17(%arg0: i32) -> (i32, i32, i32) {
    %c0_i32 = arith.constant 0 : i32
    %c0_i32_0 = arith.constant 0 : i32
    %c0_i32_1 = arith.constant 0 : i32
    %c0_i32_2 = arith.constant 0 : i32
    return %c0_i32, %c0_i32_0, %c0_i32_1 : i32, i32, i32
  }
  func.func @transform_18(%arg0: i32) -> (i32, i32, i32) {
    %c0_i32 = arith.constant 0 : i32
    %c0_i32_0 = arith.constant 0 : i32
    %c0_i32_1 = arith.constant 0 : i32
    return %arg0, %c0_i32, %c0_i32_0 : i32, i32, i32
  }
}

module attributes {stable_mosaic.version = 11 : i64} {
  func.func @_decoder_kernel(%arg0: i32, %arg1: memref<1x14x32xf32, #tpu.memory_space<vmem>>, %arg2: memref<7x14xbf16, #tpu.memory_space<vmem>>, %arg3: memref<7x32xf32, #tpu.memory_space<vmem>>, %arg4: memref<1x32x96xbf16, #tpu.memory_space<vmem>>, %arg5: memref<1x1x96xf32, #tpu.memory_space<vmem>>, %arg6: memref<1x32x32xbf16, #tpu.memory_space<vmem>>, %arg7: memref<1x1x32xf32, #tpu.memory_space<vmem>>, %arg8: memref<1x1x32xf32, #tpu.memory_space<vmem>>, %arg9: memref<1x1x32xf32, #tpu.memory_space<vmem>>, %arg10: memref<1x32x32xbf16, #tpu.memory_space<vmem>>, %arg11: memref<1x1x32xf32, #tpu.memory_space<vmem>>, %arg12: memref<1x32x64xbf16, #tpu.memory_space<vmem>>, %arg13: memref<1x1x64xf32, #tpu.memory_space<vmem>>, %arg14: memref<1x32x32xbf16, #tpu.memory_space<vmem>>, %arg15: memref<1x1x32xf32, #tpu.memory_space<vmem>>, %arg16: memref<1x1x32xf32, #tpu.memory_space<vmem>>, %arg17: memref<1x1x32xf32, #tpu.memory_space<vmem>>, %arg18: memref<1x32x64xbf16, #tpu.memory_space<vmem>>, %arg19: memref<1x1x64xf32, #tpu.memory_space<vmem>>, %arg20: memref<1x64x32xbf16, #tpu.memory_space<vmem>>, %arg21: memref<1x1x32xf32, #tpu.memory_space<vmem>>, %arg22: memref<1x1x32xf32, #tpu.memory_space<vmem>>, %arg23: memref<1x1x32xf32, #tpu.memory_space<vmem>>, %arg24: memref<1x32xf32, #tpu.memory_space<vmem>>, %arg25: memref<1x32xf32, #tpu.memory_space<vmem>>, %arg26: memref<32x32xbf16, #tpu.memory_space<vmem>>, %arg27: memref<1x32xf32, #tpu.memory_space<vmem>>, %arg28: memref<1x7x32xf32, #tpu.memory_space<vmem>>) attributes {dimension_semantics = [#tpu.dimension_semantics<parallel>], iteration_bounds = array<i64: 2>, scalar_prefetch = 0 : i64, scratch_operands = 0 : i64, tpu.core_type = #tpu.core_type<tc>, window_params = [{transform_indices = @transform_0, window_bounds = array<i64: 1, 14, 32>}, {pipeline_mode = #tpu.pipeline_mode<synchronous>, transform_indices = @transform_1, window_bounds = array<i64: 7, 14>}, {pipeline_mode = #tpu.pipeline_mode<synchronous>, transform_indices = @transform_2, window_bounds = array<i64: 7, 32>}, {pipeline_mode = #tpu.pipeline_mode<synchronous>, transform_indices = @transform_3, window_bounds = array<i64: 1, 32, 96>}, {pipeline_mode = #tpu.pipeline_mode<synchronous>, transform_indices = @transform_4, window_bounds = array<i64: 1, 1, 96>}, {pipeline_mode = #tpu.pipeline_mode<synchronous>, transform_indices = @transform_5, window_bounds = array<i64: 1, 32, 32>}, {pipeline_mode = #tpu.pipeline_mode<synchronous>, transform_indices = @transform_6, window_bounds = array<i64: 1, 1, 32>}, {pipeline_mode = #tpu.pipeline_mode<synchronous>, transform_indices = @transform_7, window_bounds = array<i64: 1, 1, 32>}, {pipeline_mode = #tpu.pipeline_mode<synchronous>, transform_indices = @transform_8, window_bounds = array<i64: 1, 1, 32>}, {pipeline_mode = #tpu.pipeline_mode<synchronous>, transform_indices = @transform_9, window_bounds = array<i64: 1, 32, 32>}, {pipeline_mode = #tpu.pipeline_mode<synchronous>, transform_indices = @transform_10, window_bounds = array<i64: 1, 1, 32>}, {pipeline_mode = #tpu.pipeline_mode<synchronous>, transform_indices = @transform_11, window_bounds = array<i64: 1, 32, 64>}, {pipeline_mode = #tpu.pipeline_mode<synchronous>, transform_indices = @transform_12, window_bounds = array<i64: 1, 1, 64>}, {pipeline_mode = #tpu.pipeline_mode<synchronous>, transform_indices = @transform_13, window_bounds = array<i64: 1, 32, 32>}, {pipeline_mode = #tpu.pipeline_mode<synchronous>, transform_indices = @transform_14, window_bounds = array<i64: 1, 1, 32>}, {pipeline_mode = #tpu.pipeline_mode<synchronous>, transform_indices = @transform_15, window_bounds = array<i64: 1, 1, 32>}, {pipeline_mode = #tpu.pipeline_mode<synchronous>, transform_indices = @transform_16, window_bounds = array<i64: 1, 1, 32>}, {pipeline_mode = #tpu.pipeline_mode<synchronous>, transform_indices = @transform_17, window_bounds = array<i64: 1, 32, 64>}, {pipeline_mode = #tpu.pipeline_mode<synchronous>, transform_indices = @transform_18, window_bounds = array<i64: 1, 1, 64>}, {pipeline_mode = #tpu.pipeline_mode<synchronous>, transform_indices = @transform_19, window_bounds = array<i64: 1, 64, 32>}, {pipeline_mode = #tpu.pipeline_mode<synchronous>, transform_indices = @transform_20, window_bounds = array<i64: 1, 1, 32>}, {pipeline_mode = #tpu.pipeline_mode<synchronous>, transform_indices = @transform_21, window_bounds = array<i64: 1, 1, 32>}, {pipeline_mode = #tpu.pipeline_mode<synchronous>, transform_indices = @transform_22, window_bounds = array<i64: 1, 1, 32>}, {pipeline_mode = #tpu.pipeline_mode<synchronous>, transform_indices = @transform_23, window_bounds = array<i64: 1, 32>}, {pipeline_mode = #tpu.pipeline_mode<synchronous>, transform_indices = @transform_24, window_bounds = array<i64: 1, 32>}, {pipeline_mode = #tpu.pipeline_mode<synchronous>, transform_indices = @transform_25, window_bounds = array<i64: 32, 32>}, {pipeline_mode = #tpu.pipeline_mode<synchronous>, transform_indices = @transform_26, window_bounds = array<i64: 1, 32>}, {transform_indices = @transform_27, window_bounds = array<i64: 1, 7, 32>}]} {
    %c0 = arith.constant 0 : index
    %c0_0 = arith.constant 0 : index
    %c0_1 = arith.constant 0 : index
    %0 = vector.load %arg1[%c0, %c0_0, %c0_1] : memref<1x14x32xf32, #tpu.memory_space<vmem>>, vector<1x14x32xf32>
    %1 = vector.shape_cast %0 : vector<1x14x32xf32> to vector<14x32xf32>
    %c0_2 = arith.constant 0 : index
    %c0_3 = arith.constant 0 : index
    %2 = vector.load %arg2[%c0_2, %c0_3] : memref<7x14xbf16, #tpu.memory_space<vmem>>, vector<7x14xbf16>
    %3 = arith.truncf %1 : vector<14x32xf32> to vector<14x32xbf16>
    %cst = arith.constant dense<0.000000e+00> : vector<7x32xf32>
    %4 = tpu.matmul %2, %3, %cst {dimension_numbers = #tpu.dot_dimension_numbers<[1], [0], [0], [1], [0, 0, 1, 1], [], []>} : vector<7x14xbf16>, vector<14x32xbf16>, vector<7x32xf32> -> vector<7x32xf32>
    %c0_4 = arith.constant 0 : index
    %c0_5 = arith.constant 0 : index
    %5 = vector.load %arg3[%c0_4, %c0_5] : memref<7x32xf32, #tpu.memory_space<vmem>>, vector<7x32xf32>
    %6 = arith.addf %4, %5 : vector<7x32xf32>
    %c0_6 = arith.constant 0 : index
    %c0_7 = arith.constant 0 : index
    %c0_8 = arith.constant 0 : index
    %7 = vector.load %arg4[%c0_6, %c0_7, %c0_8] : memref<1x32x96xbf16, #tpu.memory_space<vmem>>, vector<1x32x96xbf16>
    %8 = vector.shape_cast %7 : vector<1x32x96xbf16> to vector<32x96xbf16>
    %9 = arith.truncf %6 : vector<7x32xf32> to vector<7x32xbf16>
    %cst_9 = arith.constant dense<0.000000e+00> : vector<7x96xf32>
    %10 = tpu.matmul %9, %8, %cst_9 {dimension_numbers = #tpu.dot_dimension_numbers<[1], [0], [0], [1], [0, 0, 1, 1], [], []>} : vector<7x32xbf16>, vector<32x96xbf16>, vector<7x96xf32> -> vector<7x96xf32>
    %c0_10 = arith.constant 0 : index
    %c0_11 = arith.constant 0 : index
    %c0_12 = arith.constant 0 : index
    %11 = vector.load %arg5[%c0_10, %c0_11, %c0_12] : memref<1x1x96xf32, #tpu.memory_space<vmem>>, vector<1x1x96xf32>
    %12 = vector.shape_cast %11 : vector<1x1x96xf32> to vector<1x96xf32>
    %13 = vector.broadcast %12 : vector<1x96xf32> to vector<7x96xf32>
    %14 = arith.addf %10, %13 : vector<7x96xf32>
    %15 = vector.extract_strided_slice %14 {offsets = [0, 0], sizes = [7, 32], strides = [1, 1]} : vector<7x96xf32> to vector<7x32xf32>
    %16 = vector.extract_strided_slice %14 {offsets = [0, 32], sizes = [7, 32], strides = [1, 1]} : vector<7x96xf32> to vector<7x32xf32>
    %17 = vector.extract_strided_slice %14 {offsets = [0, 64], sizes = [7, 32], strides = [1, 1]} : vector<7x96xf32> to vector<7x32xf32>
    %c0_13 = arith.constant 0 : index
    %c0_14 = arith.constant 0 : index
    %c0_15 = arith.constant 0 : index
    %18 = vector.load %arg6[%c0_13, %c0_14, %c0_15] : memref<1x32x32xbf16, #tpu.memory_space<vmem>>, vector<1x32x32xbf16>
    %19 = vector.shape_cast %18 : vector<1x32x32xbf16> to vector<32x32xbf16>
    %c0_16 = arith.constant 0 : index
    %c0_17 = arith.constant 0 : index
    %c0_18 = arith.constant 0 : index
    %20 = vector.load %arg7[%c0_16, %c0_17, %c0_18] : memref<1x1x32xf32, #tpu.memory_space<vmem>>, vector<1x1x32xf32>
    %21 = vector.shape_cast %20 : vector<1x1x32xf32> to vector<1x32xf32>
    %22 = tpu.iota {dimensions = array<i32: 0>} : vector<7x7xi32>
    %23 = tpu.iota {dimensions = array<i32: 1>} : vector<7x7xi32>
    %24 = arith.cmpi sle, %23, %22 : vector<7x7xi32>
    %25 = vector.extract_strided_slice %15 {offsets = [0, 0], sizes = [7, 16], strides = [1, 1]} : vector<7x32xf32> to vector<7x16xf32>
    %26 = vector.extract_strided_slice %16 {offsets = [0, 0], sizes = [7, 16], strides = [1, 1]} : vector<7x32xf32> to vector<7x16xf32>
    %27 = arith.truncf %25 : vector<7x16xf32> to vector<7x16xbf16>
    %28 = arith.truncf %26 : vector<7x16xf32> to vector<7x16xbf16>
    %cst_19 = arith.constant dense<0.000000e+00> : vector<7x7xf32>
    %29 = tpu.matmul %27, %28, %cst_19 {dimension_numbers = #tpu.dot_dimension_numbers<[1], [1], [0], [0], [0, 0, 1, 0], [], []>} : vector<7x16xbf16>, vector<7x16xbf16>, vector<7x7xf32> -> vector<7x7xf32>
    %cst_20 = arith.constant 2.500000e-01 : f32
    %30 = vector.broadcast %cst_20 : f32 to vector<7x7xf32>
    %31 = arith.mulf %29, %30 : vector<7x7xf32>
    %cst_21 = arith.constant -1.000000e+30 : f32
    %32 = vector.broadcast %cst_21 : f32 to vector<7x7xf32>
    %33 = arith.select %24, %31, %32 : vector<7x7xi1>, vector<7x7xf32>
    %cst_22 = arith.constant dense<0xFF800000> : vector<7xf32>
    %34 = vector.multi_reduction <maximumf>, %33, %cst_22 [1] : vector<7x7xf32> to vector<7xf32>
    %35 = vector.shape_cast %34 : vector<7xf32> to vector<7x1xf32>
    %36 = vector.broadcast %35 : vector<7x1xf32> to vector<7x7xf32>
    %37 = arith.subf %33, %36 : vector<7x7xf32>
    %38 = math.exp %37 : vector<7x7xf32>
    %cst_23 = arith.constant dense<0.000000e+00> : vector<7xf32>
    %39 = vector.multi_reduction <add>, %38, %cst_23 [1] : vector<7x7xf32> to vector<7xf32>
    %40 = vector.shape_cast %39 : vector<7xf32> to vector<7x1xf32>
    %41 = tpu.reciprocal %40 {approx = true} : vector<7x1xf32> -> vector<7x1xf32>
    %42 = vector.broadcast %41 : vector<7x1xf32> to vector<7x7xf32>
    %43 = arith.mulf %38, %42 : vector<7x7xf32>
    %44 = vector.extract_strided_slice %17 {offsets = [0, 0], sizes = [7, 16], strides = [1, 1]} : vector<7x32xf32> to vector<7x16xf32>
    %45 = arith.truncf %43 : vector<7x7xf32> to vector<7x7xbf16>
    %46 = arith.truncf %44 : vector<7x16xf32> to vector<7x16xbf16>
    %cst_24 = arith.constant dense<0.000000e+00> : vector<7x16xf32>
    %47 = tpu.matmul %45, %46, %cst_24 {dimension_numbers = #tpu.dot_dimension_numbers<[1], [0], [0], [1], [0, 0, 1, 1], [], []>} : vector<7x7xbf16>, vector<7x16xbf16>, vector<7x16xf32> -> vector<7x16xf32>
    %48 = vector.extract_strided_slice %15 {offsets = [0, 16], sizes = [7, 16], strides = [1, 1]} : vector<7x32xf32> to vector<7x16xf32>
    %49 = vector.extract_strided_slice %16 {offsets = [0, 16], sizes = [7, 16], strides = [1, 1]} : vector<7x32xf32> to vector<7x16xf32>
    %50 = arith.truncf %48 : vector<7x16xf32> to vector<7x16xbf16>
    %51 = arith.truncf %49 : vector<7x16xf32> to vector<7x16xbf16>
    %cst_25 = arith.constant dense<0.000000e+00> : vector<7x7xf32>
    %52 = tpu.matmul %50, %51, %cst_25 {dimension_numbers = #tpu.dot_dimension_numbers<[1], [1], [0], [0], [0, 0, 1, 0], [], []>} : vector<7x16xbf16>, vector<7x16xbf16>, vector<7x7xf32> -> vector<7x7xf32>
    %cst_26 = arith.constant 2.500000e-01 : f32
    %53 = vector.broadcast %cst_26 : f32 to vector<7x7xf32>
    %54 = arith.mulf %52, %53 : vector<7x7xf32>
    %cst_27 = arith.constant -1.000000e+30 : f32
    %55 = vector.broadcast %cst_27 : f32 to vector<7x7xf32>
    %56 = arith.select %24, %54, %55 : vector<7x7xi1>, vector<7x7xf32>
    %cst_28 = arith.constant dense<0xFF800000> : vector<7xf32>
    %57 = vector.multi_reduction <maximumf>, %56, %cst_28 [1] : vector<7x7xf32> to vector<7xf32>
    %58 = vector.shape_cast %57 : vector<7xf32> to vector<7x1xf32>
    %59 = vector.broadcast %58 : vector<7x1xf32> to vector<7x7xf32>
    %60 = arith.subf %56, %59 : vector<7x7xf32>
    %61 = math.exp %60 : vector<7x7xf32>
    %cst_29 = arith.constant dense<0.000000e+00> : vector<7xf32>
    %62 = vector.multi_reduction <add>, %61, %cst_29 [1] : vector<7x7xf32> to vector<7xf32>
    %63 = vector.shape_cast %62 : vector<7xf32> to vector<7x1xf32>
    %64 = tpu.reciprocal %63 {approx = true} : vector<7x1xf32> -> vector<7x1xf32>
    %65 = vector.broadcast %64 : vector<7x1xf32> to vector<7x7xf32>
    %66 = arith.mulf %61, %65 : vector<7x7xf32>
    %67 = vector.extract_strided_slice %17 {offsets = [0, 16], sizes = [7, 16], strides = [1, 1]} : vector<7x32xf32> to vector<7x16xf32>
    %68 = arith.truncf %66 : vector<7x7xf32> to vector<7x7xbf16>
    %69 = arith.truncf %67 : vector<7x16xf32> to vector<7x16xbf16>
    %cst_30 = arith.constant dense<0.000000e+00> : vector<7x16xf32>
    %70 = tpu.matmul %68, %69, %cst_30 {dimension_numbers = #tpu.dot_dimension_numbers<[1], [0], [0], [1], [0, 0, 1, 1], [], []>} : vector<7x7xbf16>, vector<7x16xbf16>, vector<7x16xf32> -> vector<7x16xf32>
    %71 = tpu.concatenate %47, %70 in 1 : vector<7x16xf32>, vector<7x16xf32> -> vector<7x32xf32>
    %72 = arith.truncf %71 : vector<7x32xf32> to vector<7x32xbf16>
    %cst_31 = arith.constant dense<0.000000e+00> : vector<7x32xf32>
    %73 = tpu.matmul %72, %19, %cst_31 {dimension_numbers = #tpu.dot_dimension_numbers<[1], [0], [0], [1], [0, 0, 1, 1], [], []>} : vector<7x32xbf16>, vector<32x32xbf16>, vector<7x32xf32> -> vector<7x32xf32>
    %74 = vector.broadcast %21 : vector<1x32xf32> to vector<7x32xf32>
    %75 = arith.addf %73, %74 : vector<7x32xf32>
    %76 = arith.addf %6, %75 : vector<7x32xf32>
    %c0_32 = arith.constant 0 : index
    %c0_33 = arith.constant 0 : index
    %c0_34 = arith.constant 0 : index
    %77 = vector.load %arg8[%c0_32, %c0_33, %c0_34] : memref<1x1x32xf32, #tpu.memory_space<vmem>>, vector<1x1x32xf32>
    %78 = vector.shape_cast %77 : vector<1x1x32xf32> to vector<1x32xf32>
    %c0_35 = arith.constant 0 : index
    %c0_36 = arith.constant 0 : index
    %c0_37 = arith.constant 0 : index
    %79 = vector.load %arg9[%c0_35, %c0_36, %c0_37] : memref<1x1x32xf32, #tpu.memory_space<vmem>>, vector<1x1x32xf32>
    %80 = vector.shape_cast %79 : vector<1x1x32xf32> to vector<1x32xf32>
    %cst_38 = arith.constant dense<0.000000e+00> : vector<7xf32>
    %81 = vector.multi_reduction <add>, %76, %cst_38 [1] : vector<7x32xf32> to vector<7xf32>
    %82 = vector.shape_cast %81 : vector<7xf32> to vector<7x1xf32>
    %cst_39 = arith.constant 3.200000e+01 : f32
    %83 = vector.broadcast %cst_39 : f32 to vector<7x1xf32>
    %84 = arith.divf %82, %83 : vector<7x1xf32>
    %85 = vector.broadcast %84 : vector<7x1xf32> to vector<7x32xf32>
    %86 = arith.subf %76, %85 : vector<7x32xf32>
    %87 = arith.mulf %86, %86 : vector<7x32xf32>
    %cst_40 = arith.constant dense<0.000000e+00> : vector<7xf32>
    %88 = vector.multi_reduction <add>, %87, %cst_40 [1] : vector<7x32xf32> to vector<7xf32>
    %89 = vector.shape_cast %88 : vector<7xf32> to vector<7x1xf32>
    %cst_41 = arith.constant 3.200000e+01 : f32
    %90 = vector.broadcast %cst_41 : f32 to vector<7x1xf32>
    %91 = arith.divf %89, %90 : vector<7x1xf32>
    %92 = vector.broadcast %84 : vector<7x1xf32> to vector<7x32xf32>
    %93 = arith.subf %76, %92 : vector<7x32xf32>
    %cst_42 = arith.constant 9.99999974E-6 : f32
    %94 = vector.broadcast %cst_42 : f32 to vector<7x1xf32>
    %95 = arith.addf %91, %94 : vector<7x1xf32>
    %96 = math.rsqrt %95 : vector<7x1xf32>
    %97 = vector.broadcast %96 : vector<7x1xf32> to vector<7x32xf32>
    %98 = arith.mulf %93, %97 : vector<7x32xf32>
    %99 = vector.broadcast %78 : vector<1x32xf32> to vector<7x32xf32>
    %100 = arith.mulf %98, %99 : vector<7x32xf32>
    %101 = vector.broadcast %80 : vector<1x32xf32> to vector<7x32xf32>
    %102 = arith.addf %100, %101 : vector<7x32xf32>
    %c0_43 = arith.constant 0 : index
    %c0_44 = arith.constant 0 : index
    %c0_45 = arith.constant 0 : index
    %103 = vector.load %arg10[%c0_43, %c0_44, %c0_45] : memref<1x32x32xbf16, #tpu.memory_space<vmem>>, vector<1x32x32xbf16>
    %104 = vector.shape_cast %103 : vector<1x32x32xbf16> to vector<32x32xbf16>
    %105 = arith.truncf %102 : vector<7x32xf32> to vector<7x32xbf16>
    %cst_46 = arith.constant dense<0.000000e+00> : vector<7x32xf32>
    %106 = tpu.matmul %105, %104, %cst_46 {dimension_numbers = #tpu.dot_dimension_numbers<[1], [0], [0], [1], [0, 0, 1, 1], [], []>} : vector<7x32xbf16>, vector<32x32xbf16>, vector<7x32xf32> -> vector<7x32xf32>
    %c0_47 = arith.constant 0 : index
    %c0_48 = arith.constant 0 : index
    %c0_49 = arith.constant 0 : index
    %107 = vector.load %arg11[%c0_47, %c0_48, %c0_49] : memref<1x1x32xf32, #tpu.memory_space<vmem>>, vector<1x1x32xf32>
    %108 = vector.shape_cast %107 : vector<1x1x32xf32> to vector<1x32xf32>
    %109 = vector.broadcast %108 : vector<1x32xf32> to vector<7x32xf32>
    %110 = arith.addf %106, %109 : vector<7x32xf32>
    %c0_50 = arith.constant 0 : index
    %c0_51 = arith.constant 0 : index
    %c0_52 = arith.constant 0 : index
    %111 = vector.load %arg12[%c0_50, %c0_51, %c0_52] : memref<1x32x64xbf16, #tpu.memory_space<vmem>>, vector<1x32x64xbf16>
    %112 = vector.shape_cast %111 : vector<1x32x64xbf16> to vector<32x64xbf16>
    %113 = arith.truncf %1 : vector<14x32xf32> to vector<14x32xbf16>
    %cst_53 = arith.constant dense<0.000000e+00> : vector<14x64xf32>
    %114 = tpu.matmul %113, %112, %cst_53 {dimension_numbers = #tpu.dot_dimension_numbers<[1], [0], [0], [1], [0, 0, 1, 1], [], []>} : vector<14x32xbf16>, vector<32x64xbf16>, vector<14x64xf32> -> vector<14x64xf32>
    %c0_54 = arith.constant 0 : index
    %c0_55 = arith.constant 0 : index
    %c0_56 = arith.constant 0 : index
    %115 = vector.load %arg13[%c0_54, %c0_55, %c0_56] : memref<1x1x64xf32, #tpu.memory_space<vmem>>, vector<1x1x64xf32>
    %116 = vector.shape_cast %115 : vector<1x1x64xf32> to vector<1x64xf32>
    %117 = vector.broadcast %116 : vector<1x64xf32> to vector<14x64xf32>
    %118 = arith.addf %114, %117 : vector<14x64xf32>
    %119 = vector.extract_strided_slice %118 {offsets = [0, 0], sizes = [14, 32], strides = [1, 1]} : vector<14x64xf32> to vector<14x32xf32>
    %120 = vector.extract_strided_slice %118 {offsets = [0, 32], sizes = [14, 32], strides = [1, 1]} : vector<14x64xf32> to vector<14x32xf32>
    %c0_57 = arith.constant 0 : index
    %c0_58 = arith.constant 0 : index
    %c0_59 = arith.constant 0 : index
    %121 = vector.load %arg14[%c0_57, %c0_58, %c0_59] : memref<1x32x32xbf16, #tpu.memory_space<vmem>>, vector<1x32x32xbf16>
    %122 = vector.shape_cast %121 : vector<1x32x32xbf16> to vector<32x32xbf16>
    %c0_60 = arith.constant 0 : index
    %c0_61 = arith.constant 0 : index
    %c0_62 = arith.constant 0 : index
    %123 = vector.load %arg15[%c0_60, %c0_61, %c0_62] : memref<1x1x32xf32, #tpu.memory_space<vmem>>, vector<1x1x32xf32>
    %124 = vector.shape_cast %123 : vector<1x1x32xf32> to vector<1x32xf32>
    %125 = vector.extract_strided_slice %110 {offsets = [0, 0], sizes = [7, 16], strides = [1, 1]} : vector<7x32xf32> to vector<7x16xf32>
    %126 = vector.extract_strided_slice %119 {offsets = [0, 0], sizes = [14, 16], strides = [1, 1]} : vector<14x32xf32> to vector<14x16xf32>
    %127 = arith.truncf %125 : vector<7x16xf32> to vector<7x16xbf16>
    %128 = arith.truncf %126 : vector<14x16xf32> to vector<14x16xbf16>
    %cst_63 = arith.constant dense<0.000000e+00> : vector<7x14xf32>
    %129 = tpu.matmul %127, %128, %cst_63 {dimension_numbers = #tpu.dot_dimension_numbers<[1], [1], [0], [0], [0, 0, 1, 0], [], []>} : vector<7x16xbf16>, vector<14x16xbf16>, vector<7x14xf32> -> vector<7x14xf32>
    %cst_64 = arith.constant 2.500000e-01 : f32
    %130 = vector.broadcast %cst_64 : f32 to vector<7x14xf32>
    %131 = arith.mulf %129, %130 : vector<7x14xf32>
    %cst_65 = arith.constant dense<0xFF800000> : vector<7xf32>
    %132 = vector.multi_reduction <maximumf>, %131, %cst_65 [1] : vector<7x14xf32> to vector<7xf32>
    %133 = vector.shape_cast %132 : vector<7xf32> to vector<7x1xf32>
    %134 = vector.broadcast %133 : vector<7x1xf32> to vector<7x14xf32>
    %135 = arith.subf %131, %134 : vector<7x14xf32>
    %136 = math.exp %135 : vector<7x14xf32>
    %cst_66 = arith.constant dense<0.000000e+00> : vector<7xf32>
    %137 = vector.multi_reduction <add>, %136, %cst_66 [1] : vector<7x14xf32> to vector<7xf32>
    %138 = vector.shape_cast %137 : vector<7xf32> to vector<7x1xf32>
    %139 = tpu.reciprocal %138 {approx = true} : vector<7x1xf32> -> vector<7x1xf32>
    %140 = vector.broadcast %139 : vector<7x1xf32> to vector<7x14xf32>
    %141 = arith.mulf %136, %140 : vector<7x14xf32>
    %142 = vector.extract_strided_slice %120 {offsets = [0, 0], sizes = [14, 16], strides = [1, 1]} : vector<14x32xf32> to vector<14x16xf32>
    %143 = arith.truncf %141 : vector<7x14xf32> to vector<7x14xbf16>
    %144 = arith.truncf %142 : vector<14x16xf32> to vector<14x16xbf16>
    %cst_67 = arith.constant dense<0.000000e+00> : vector<7x16xf32>
    %145 = tpu.matmul %143, %144, %cst_67 {dimension_numbers = #tpu.dot_dimension_numbers<[1], [0], [0], [1], [0, 0, 1, 1], [], []>} : vector<7x14xbf16>, vector<14x16xbf16>, vector<7x16xf32> -> vector<7x16xf32>
    %146 = vector.extract_strided_slice %110 {offsets = [0, 16], sizes = [7, 16], strides = [1, 1]} : vector<7x32xf32> to vector<7x16xf32>
    %147 = vector.extract_strided_slice %119 {offsets = [0, 16], sizes = [14, 16], strides = [1, 1]} : vector<14x32xf32> to vector<14x16xf32>
    %148 = arith.truncf %146 : vector<7x16xf32> to vector<7x16xbf16>
    %149 = arith.truncf %147 : vector<14x16xf32> to vector<14x16xbf16>
    %cst_68 = arith.constant dense<0.000000e+00> : vector<7x14xf32>
    %150 = tpu.matmul %148, %149, %cst_68 {dimension_numbers = #tpu.dot_dimension_numbers<[1], [1], [0], [0], [0, 0, 1, 0], [], []>} : vector<7x16xbf16>, vector<14x16xbf16>, vector<7x14xf32> -> vector<7x14xf32>
    %cst_69 = arith.constant 2.500000e-01 : f32
    %151 = vector.broadcast %cst_69 : f32 to vector<7x14xf32>
    %152 = arith.mulf %150, %151 : vector<7x14xf32>
    %cst_70 = arith.constant dense<0xFF800000> : vector<7xf32>
    %153 = vector.multi_reduction <maximumf>, %152, %cst_70 [1] : vector<7x14xf32> to vector<7xf32>
    %154 = vector.shape_cast %153 : vector<7xf32> to vector<7x1xf32>
    %155 = vector.broadcast %154 : vector<7x1xf32> to vector<7x14xf32>
    %156 = arith.subf %152, %155 : vector<7x14xf32>
    %157 = math.exp %156 : vector<7x14xf32>
    %cst_71 = arith.constant dense<0.000000e+00> : vector<7xf32>
    %158 = vector.multi_reduction <add>, %157, %cst_71 [1] : vector<7x14xf32> to vector<7xf32>
    %159 = vector.shape_cast %158 : vector<7xf32> to vector<7x1xf32>
    %160 = tpu.reciprocal %159 {approx = true} : vector<7x1xf32> -> vector<7x1xf32>
    %161 = vector.broadcast %160 : vector<7x1xf32> to vector<7x14xf32>
    %162 = arith.mulf %157, %161 : vector<7x14xf32>
    %163 = vector.extract_strided_slice %120 {offsets = [0, 16], sizes = [14, 16], strides = [1, 1]} : vector<14x32xf32> to vector<14x16xf32>
    %164 = arith.truncf %162 : vector<7x14xf32> to vector<7x14xbf16>
    %165 = arith.truncf %163 : vector<14x16xf32> to vector<14x16xbf16>
    %cst_72 = arith.constant dense<0.000000e+00> : vector<7x16xf32>
    %166 = tpu.matmul %164, %165, %cst_72 {dimension_numbers = #tpu.dot_dimension_numbers<[1], [0], [0], [1], [0, 0, 1, 1], [], []>} : vector<7x14xbf16>, vector<14x16xbf16>, vector<7x16xf32> -> vector<7x16xf32>
    %167 = tpu.concatenate %145, %166 in 1 : vector<7x16xf32>, vector<7x16xf32> -> vector<7x32xf32>
    %168 = arith.truncf %167 : vector<7x32xf32> to vector<7x32xbf16>
    %cst_73 = arith.constant dense<0.000000e+00> : vector<7x32xf32>
    %169 = tpu.matmul %168, %122, %cst_73 {dimension_numbers = #tpu.dot_dimension_numbers<[1], [0], [0], [1], [0, 0, 1, 1], [], []>} : vector<7x32xbf16>, vector<32x32xbf16>, vector<7x32xf32> -> vector<7x32xf32>
    %170 = vector.broadcast %124 : vector<1x32xf32> to vector<7x32xf32>
    %171 = arith.addf %169, %170 : vector<7x32xf32>
    %172 = arith.addf %102, %171 : vector<7x32xf32>
    %c0_74 = arith.constant 0 : index
    %c0_75 = arith.constant 0 : index
    %c0_76 = arith.constant 0 : index
    %173 = vector.load %arg16[%c0_74, %c0_75, %c0_76] : memref<1x1x32xf32, #tpu.memory_space<vmem>>, vector<1x1x32xf32>
    %174 = vector.shape_cast %173 : vector<1x1x32xf32> to vector<1x32xf32>
    %c0_77 = arith.constant 0 : index
    %c0_78 = arith.constant 0 : index
    %c0_79 = arith.constant 0 : index
    %175 = vector.load %arg17[%c0_77, %c0_78, %c0_79] : memref<1x1x32xf32, #tpu.memory_space<vmem>>, vector<1x1x32xf32>
    %176 = vector.shape_cast %175 : vector<1x1x32xf32> to vector<1x32xf32>
    %cst_80 = arith.constant dense<0.000000e+00> : vector<7xf32>
    %177 = vector.multi_reduction <add>, %172, %cst_80 [1] : vector<7x32xf32> to vector<7xf32>
    %178 = vector.shape_cast %177 : vector<7xf32> to vector<7x1xf32>
    %cst_81 = arith.constant 3.200000e+01 : f32
    %179 = vector.broadcast %cst_81 : f32 to vector<7x1xf32>
    %180 = arith.divf %178, %179 : vector<7x1xf32>
    %181 = vector.broadcast %180 : vector<7x1xf32> to vector<7x32xf32>
    %182 = arith.subf %172, %181 : vector<7x32xf32>
    %183 = arith.mulf %182, %182 : vector<7x32xf32>
    %cst_82 = arith.constant dense<0.000000e+00> : vector<7xf32>
    %184 = vector.multi_reduction <add>, %183, %cst_82 [1] : vector<7x32xf32> to vector<7xf32>
    %185 = vector.shape_cast %184 : vector<7xf32> to vector<7x1xf32>
    %cst_83 = arith.constant 3.200000e+01 : f32
    %186 = vector.broadcast %cst_83 : f32 to vector<7x1xf32>
    %187 = arith.divf %185, %186 : vector<7x1xf32>
    %188 = vector.broadcast %180 : vector<7x1xf32> to vector<7x32xf32>
    %189 = arith.subf %172, %188 : vector<7x32xf32>
    %cst_84 = arith.constant 9.99999974E-6 : f32
    %190 = vector.broadcast %cst_84 : f32 to vector<7x1xf32>
    %191 = arith.addf %187, %190 : vector<7x1xf32>
    %192 = math.rsqrt %191 : vector<7x1xf32>
    %193 = vector.broadcast %192 : vector<7x1xf32> to vector<7x32xf32>
    %194 = arith.mulf %189, %193 : vector<7x32xf32>
    %195 = vector.broadcast %174 : vector<1x32xf32> to vector<7x32xf32>
    %196 = arith.mulf %194, %195 : vector<7x32xf32>
    %197 = vector.broadcast %176 : vector<1x32xf32> to vector<7x32xf32>
    %198 = arith.addf %196, %197 : vector<7x32xf32>
    %c0_85 = arith.constant 0 : index
    %c0_86 = arith.constant 0 : index
    %c0_87 = arith.constant 0 : index
    %199 = vector.load %arg18[%c0_85, %c0_86, %c0_87] : memref<1x32x64xbf16, #tpu.memory_space<vmem>>, vector<1x32x64xbf16>
    %200 = vector.shape_cast %199 : vector<1x32x64xbf16> to vector<32x64xbf16>
    %201 = arith.truncf %198 : vector<7x32xf32> to vector<7x32xbf16>
    %cst_88 = arith.constant dense<0.000000e+00> : vector<7x64xf32>
    %202 = tpu.matmul %201, %200, %cst_88 {dimension_numbers = #tpu.dot_dimension_numbers<[1], [0], [0], [1], [0, 0, 1, 1], [], []>} : vector<7x32xbf16>, vector<32x64xbf16>, vector<7x64xf32> -> vector<7x64xf32>
    %c0_89 = arith.constant 0 : index
    %c0_90 = arith.constant 0 : index
    %c0_91 = arith.constant 0 : index
    %203 = vector.load %arg19[%c0_89, %c0_90, %c0_91] : memref<1x1x64xf32, #tpu.memory_space<vmem>>, vector<1x1x64xf32>
    %204 = vector.shape_cast %203 : vector<1x1x64xf32> to vector<1x64xf32>
    %205 = vector.broadcast %204 : vector<1x64xf32> to vector<7x64xf32>
    %206 = arith.addf %202, %205 : vector<7x64xf32>
    %cst_92 = arith.constant 0.000000e+00 : f32
    %207 = vector.broadcast %cst_92 : f32 to vector<7x64xf32>
    %208 = arith.maximumf %206, %207 : vector<7x64xf32>
    %c0_93 = arith.constant 0 : index
    %c0_94 = arith.constant 0 : index
    %c0_95 = arith.constant 0 : index
    %209 = vector.load %arg20[%c0_93, %c0_94, %c0_95] : memref<1x64x32xbf16, #tpu.memory_space<vmem>>, vector<1x64x32xbf16>
    %210 = vector.shape_cast %209 : vector<1x64x32xbf16> to vector<64x32xbf16>
    %211 = arith.truncf %208 : vector<7x64xf32> to vector<7x64xbf16>
    %cst_96 = arith.constant dense<0.000000e+00> : vector<7x32xf32>
    %212 = tpu.matmul %211, %210, %cst_96 {dimension_numbers = #tpu.dot_dimension_numbers<[1], [0], [0], [1], [0, 0, 1, 1], [], []>} : vector<7x64xbf16>, vector<64x32xbf16>, vector<7x32xf32> -> vector<7x32xf32>
    %c0_97 = arith.constant 0 : index
    %c0_98 = arith.constant 0 : index
    %c0_99 = arith.constant 0 : index
    %213 = vector.load %arg21[%c0_97, %c0_98, %c0_99] : memref<1x1x32xf32, #tpu.memory_space<vmem>>, vector<1x1x32xf32>
    %214 = vector.shape_cast %213 : vector<1x1x32xf32> to vector<1x32xf32>
    %215 = vector.broadcast %214 : vector<1x32xf32> to vector<7x32xf32>
    %216 = arith.addf %212, %215 : vector<7x32xf32>
    %217 = arith.addf %198, %216 : vector<7x32xf32>
    %c0_100 = arith.constant 0 : index
    %c0_101 = arith.constant 0 : index
    %c0_102 = arith.constant 0 : index
    %218 = vector.load %arg22[%c0_100, %c0_101, %c0_102] : memref<1x1x32xf32, #tpu.memory_space<vmem>>, vector<1x1x32xf32>
    %219 = vector.shape_cast %218 : vector<1x1x32xf32> to vector<1x32xf32>
    %c0_103 = arith.constant 0 : index
    %c0_104 = arith.constant 0 : index
    %c0_105 = arith.constant 0 : index
    %220 = vector.load %arg23[%c0_103, %c0_104, %c0_105] : memref<1x1x32xf32, #tpu.memory_space<vmem>>, vector<1x1x32xf32>
    %221 = vector.shape_cast %220 : vector<1x1x32xf32> to vector<1x32xf32>
    %cst_106 = arith.constant dense<0.000000e+00> : vector<7xf32>
    %222 = vector.multi_reduction <add>, %217, %cst_106 [1] : vector<7x32xf32> to vector<7xf32>
    %223 = vector.shape_cast %222 : vector<7xf32> to vector<7x1xf32>
    %cst_107 = arith.constant 3.200000e+01 : f32
    %224 = vector.broadcast %cst_107 : f32 to vector<7x1xf32>
    %225 = arith.divf %223, %224 : vector<7x1xf32>
    %226 = vector.broadcast %225 : vector<7x1xf32> to vector<7x32xf32>
    %227 = arith.subf %217, %226 : vector<7x32xf32>
    %228 = arith.mulf %227, %227 : vector<7x32xf32>
    %cst_108 = arith.constant dense<0.000000e+00> : vector<7xf32>
    %229 = vector.multi_reduction <add>, %228, %cst_108 [1] : vector<7x32xf32> to vector<7xf32>
    %230 = vector.shape_cast %229 : vector<7xf32> to vector<7x1xf32>
    %cst_109 = arith.constant 3.200000e+01 : f32
    %231 = vector.broadcast %cst_109 : f32 to vector<7x1xf32>
    %232 = arith.divf %230, %231 : vector<7x1xf32>
    %233 = vector.broadcast %225 : vector<7x1xf32> to vector<7x32xf32>
    %234 = arith.subf %217, %233 : vector<7x32xf32>
    %cst_110 = arith.constant 9.99999974E-6 : f32
    %235 = vector.broadcast %cst_110 : f32 to vector<7x1xf32>
    %236 = arith.addf %232, %235 : vector<7x1xf32>
    %237 = math.rsqrt %236 : vector<7x1xf32>
    %238 = vector.broadcast %237 : vector<7x1xf32> to vector<7x32xf32>
    %239 = arith.mulf %234, %238 : vector<7x32xf32>
    %240 = vector.broadcast %219 : vector<1x32xf32> to vector<7x32xf32>
    %241 = arith.mulf %239, %240 : vector<7x32xf32>
    %242 = vector.broadcast %221 : vector<1x32xf32> to vector<7x32xf32>
    %243 = arith.addf %241, %242 : vector<7x32xf32>
    %cst_111 = arith.constant 5.000000e-01 : f32
    %244 = vector.broadcast %cst_111 : f32 to vector<7x32xf32>
    %245 = arith.mulf %244, %243 : vector<7x32xf32>
    %cst_112 = arith.constant 0.707106769 : f32
    %246 = vector.broadcast %cst_112 : f32 to vector<7x32xf32>
    %247 = arith.mulf %243, %246 : vector<7x32xf32>
    %cst_113 = arith.constant 0.000000e+00 : f32
    %248 = vector.broadcast %cst_113 : f32 to vector<7x32xf32>
    %249 = arith.cmpf oge, %247, %248 : vector<7x32xf32>
    %cst_114 = arith.constant 1.000000e+00 : f32
    %cst_115 = arith.constant -1.000000e+00 : f32
    %250 = vector.broadcast %cst_114 : f32 to vector<7x32xf32>
    %251 = vector.broadcast %cst_115 : f32 to vector<7x32xf32>
    %252 = arith.select %249, %250, %251 : vector<7x32xi1>, vector<7x32xf32>
    %253 = math.absf %247 : vector<7x32xf32>
    %cst_116 = arith.constant 0.327591091 : f32
    %254 = vector.broadcast %cst_116 : f32 to vector<7x32xf32>
    %255 = arith.mulf %254, %253 : vector<7x32xf32>
    %cst_117 = arith.constant 1.000000e+00 : f32
    %256 = vector.broadcast %cst_117 : f32 to vector<7x32xf32>
    %257 = arith.addf %256, %255 : vector<7x32xf32>
    %cst_118 = arith.constant 1.000000e+00 : f32
    %258 = vector.broadcast %cst_118 : f32 to vector<7x32xf32>
    %259 = arith.divf %258, %257 : vector<7x32xf32>
    %cst_119 = arith.constant 1.06140542 : f32
    %260 = vector.broadcast %cst_119 : f32 to vector<7x32xf32>
    %261 = arith.mulf %260, %259 : vector<7x32xf32>
    %cst_120 = arith.constant -1.45315206 : f32
    %262 = vector.broadcast %cst_120 : f32 to vector<7x32xf32>
    %263 = arith.addf %261, %262 : vector<7x32xf32>
    %264 = arith.mulf %263, %259 : vector<7x32xf32>
    %cst_121 = arith.constant 1.42141378 : f32
    %265 = vector.broadcast %cst_121 : f32 to vector<7x32xf32>
    %266 = arith.addf %264, %265 : vector<7x32xf32>
    %267 = arith.mulf %266, %259 : vector<7x32xf32>
    %cst_122 = arith.constant -0.284496725 : f32
    %268 = vector.broadcast %cst_122 : f32 to vector<7x32xf32>
    %269 = arith.addf %267, %268 : vector<7x32xf32>
    %270 = arith.mulf %269, %259 : vector<7x32xf32>
    %cst_123 = arith.constant 0.254829586 : f32
    %271 = vector.broadcast %cst_123 : f32 to vector<7x32xf32>
    %272 = arith.addf %270, %271 : vector<7x32xf32>
    %273 = arith.mulf %272, %259 : vector<7x32xf32>
    %cst_124 = arith.constant 0.000000e+00 : f32
    %274 = vector.broadcast %cst_124 : f32 to vector<7x32xf32>
    %275 = arith.subf %274, %253 : vector<7x32xf32>
    %276 = arith.mulf %275, %253 : vector<7x32xf32>
    %277 = math.exp %276 : vector<7x32xf32>
    %278 = arith.mulf %273, %277 : vector<7x32xf32>
    %cst_125 = arith.constant 1.000000e+00 : f32
    %279 = vector.broadcast %cst_125 : f32 to vector<7x32xf32>
    %280 = arith.subf %279, %278 : vector<7x32xf32>
    %281 = arith.mulf %252, %280 : vector<7x32xf32>
    %cst_126 = arith.constant 1.000000e+00 : f32
    %282 = vector.broadcast %cst_126 : f32 to vector<7x32xf32>
    %283 = arith.addf %282, %281 : vector<7x32xf32>
    %284 = arith.mulf %245, %283 : vector<7x32xf32>
    %c0_127 = arith.constant 0 : index
    %c0_128 = arith.constant 0 : index
    %285 = vector.load %arg24[%c0_127, %c0_128] : memref<1x32xf32, #tpu.memory_space<vmem>>, vector<1x32xf32>
    %c0_129 = arith.constant 0 : index
    %c0_130 = arith.constant 0 : index
    %286 = vector.load %arg25[%c0_129, %c0_130] : memref<1x32xf32, #tpu.memory_space<vmem>>, vector<1x32xf32>
    %cst_131 = arith.constant dense<0.000000e+00> : vector<7xf32>
    %287 = vector.multi_reduction <add>, %284, %cst_131 [1] : vector<7x32xf32> to vector<7xf32>
    %288 = vector.shape_cast %287 : vector<7xf32> to vector<7x1xf32>
    %cst_132 = arith.constant 3.200000e+01 : f32
    %289 = vector.broadcast %cst_132 : f32 to vector<7x1xf32>
    %290 = arith.divf %288, %289 : vector<7x1xf32>
    %291 = vector.broadcast %290 : vector<7x1xf32> to vector<7x32xf32>
    %292 = arith.subf %284, %291 : vector<7x32xf32>
    %293 = arith.mulf %292, %292 : vector<7x32xf32>
    %cst_133 = arith.constant dense<0.000000e+00> : vector<7xf32>
    %294 = vector.multi_reduction <add>, %293, %cst_133 [1] : vector<7x32xf32> to vector<7xf32>
    %295 = vector.shape_cast %294 : vector<7xf32> to vector<7x1xf32>
    %cst_134 = arith.constant 3.200000e+01 : f32
    %296 = vector.broadcast %cst_134 : f32 to vector<7x1xf32>
    %297 = arith.divf %295, %296 : vector<7x1xf32>
    %298 = vector.broadcast %290 : vector<7x1xf32> to vector<7x32xf32>
    %299 = arith.subf %284, %298 : vector<7x32xf32>
    %cst_135 = arith.constant 9.99999974E-6 : f32
    %300 = vector.broadcast %cst_135 : f32 to vector<7x1xf32>
    %301 = arith.addf %297, %300 : vector<7x1xf32>
    %302 = math.rsqrt %301 : vector<7x1xf32>
    %303 = vector.broadcast %302 : vector<7x1xf32> to vector<7x32xf32>
    %304 = arith.mulf %299, %303 : vector<7x32xf32>
    %305 = vector.broadcast %285 : vector<1x32xf32> to vector<7x32xf32>
    %306 = arith.mulf %304, %305 : vector<7x32xf32>
    %307 = vector.broadcast %286 : vector<1x32xf32> to vector<7x32xf32>
    %308 = arith.addf %306, %307 : vector<7x32xf32>
    %c0_136 = arith.constant 0 : index
    %c0_137 = arith.constant 0 : index
    %309 = vector.load %arg26[%c0_136, %c0_137] : memref<32x32xbf16, #tpu.memory_space<vmem>>, vector<32x32xbf16>
    %310 = arith.truncf %308 : vector<7x32xf32> to vector<7x32xbf16>
    %cst_138 = arith.constant dense<0.000000e+00> : vector<7x32xf32>
    %311 = tpu.matmul %310, %309, %cst_138 {dimension_numbers = #tpu.dot_dimension_numbers<[1], [0], [0], [1], [0, 0, 1, 1], [], []>} : vector<7x32xbf16>, vector<32x32xbf16>, vector<7x32xf32> -> vector<7x32xf32>
    %c0_139 = arith.constant 0 : index
    %c0_140 = arith.constant 0 : index
    %312 = vector.load %arg27[%c0_139, %c0_140] : memref<1x32xf32, #tpu.memory_space<vmem>>, vector<1x32xf32>
    %313 = vector.broadcast %312 : vector<1x32xf32> to vector<7x32xf32>
    %314 = arith.addf %311, %313 : vector<7x32xf32>
    %c0_141 = arith.constant 0 : index
    %c0_142 = arith.constant 0 : index
    %c0_143 = arith.constant 0 : index
    %315 = vector.load %arg28[%c0_141, %c0_142, %c0_143] : memref<1x7x32xf32, #tpu.memory_space<vmem>>, vector<1x7x32xf32>
    %316 = vector.shape_cast %315 : vector<1x7x32xf32> to vector<7x32xf32>
    %317 = vector.shape_cast %314 : vector<7x32xf32> to vector<1x7x32xf32>
    tpu.vector_store %arg28[%c0_141, %c0_142, %c0_143], %317 {strides = array<i32>} : memref<1x7x32xf32, #tpu.memory_space<vmem>>, vector<1x7x32xf32>,
    return
  }
  func.func @transform_0(%arg0: i32) -> (i32, i32, i32) {
    %c0_i32 = arith.constant 0 : i32
    %c0_i32_0 = arith.constant 0 : i32
    %c0_i32_1 = arith.constant 0 : i32
    return %arg0, %c0_i32, %c0_i32_0 : i32, i32, i32
  }
  func.func @transform_1(%arg0: i32) -> (i32, i32) {
    %c0_i32 = arith.constant 0 : i32
    %c0_i32_0 = arith.constant 0 : i32
    %c0_i32_1 = arith.constant 0 : i32
    return %c0_i32, %c0_i32_0 : i32, i32
  }
  func.func @transform_2(%arg0: i32) -> (i32, i32) {
    %c0_i32 = arith.constant 0 : i32
    %c0_i32_0 = arith.constant 0 : i32
    %c0_i32_1 = arith.constant 0 : i32
    return %c0_i32, %c0_i32_0 : i32, i32
  }
  func.func @transform_3(%arg0: i32) -> (i32, i32, i32) {
    %c0_i32 = arith.constant 0 : i32
    %c0_i32_0 = arith.constant 0 : i32
    %c0_i32_1 = arith.constant 0 : i32
    %c0_i32_2 = arith.constant 0 : i32
    return %c0_i32, %c0_i32_0, %c0_i32_1 : i32, i32, i32
  }
  func.func @transform_4(%arg0: i32) -> (i32, i32, i32) {
    %c0_i32 = arith.constant 0 : i32
    %c0_i32_0 = arith.constant 0 : i32
    %c0_i32_1 = arith.constant 0 : i32
    %c0_i32_2 = arith.constant 0 : i32
    return %c0_i32, %c0_i32_0, %c0_i32_1 : i32, i32, i32
  }
  func.func @transform_5(%arg0: i32) -> (i32, i32, i32) {
    %c0_i32 = arith.constant 0 : i32
    %c0_i32_0 = arith.constant 0 : i32
    %c0_i32_1 = arith.constant 0 : i32
    %c0_i32_2 = arith.constant 0 : i32
    return %c0_i32, %c0_i32_0, %c0_i32_1 : i32, i32, i32
  }
  func.func @transform_6(%arg0: i32) -> (i32, i32, i32) {
    %c0_i32 = arith.constant 0 : i32
    %c0_i32_0 = arith.constant 0 : i32
    %c0_i32_1 = arith.constant 0 : i32
    %c0_i32_2 = arith.constant 0 : i32
    return %c0_i32, %c0_i32_0, %c0_i32_1 : i32, i32, i32
  }
  func.func @transform_7(%arg0: i32) -> (i32, i32, i32) {
    %c0_i32 = arith.constant 0 : i32
    %c0_i32_0 = arith.constant 0 : i32
    %c0_i32_1 = arith.constant 0 : i32
    %c0_i32_2 = arith.constant 0 : i32
    return %c0_i32, %c0_i32_0, %c0_i32_1 : i32, i32, i32
  }
  func.func @transform_8(%arg0: i32) -> (i32, i32, i32) {
    %c0_i32 = arith.constant 0 : i32
    %c0_i32_0 = arith.constant 0 : i32
    %c0_i32_1 = arith.constant 0 : i32
    %c0_i32_2 = arith.constant 0 : i32
    return %c0_i32, %c0_i32_0, %c0_i32_1 : i32, i32, i32
  }
  func.func @transform_9(%arg0: i32) -> (i32, i32, i32) {
    %c0_i32 = arith.constant 0 : i32
    %c0_i32_0 = arith.constant 0 : i32
    %c0_i32_1 = arith.constant 0 : i32
    %c0_i32_2 = arith.constant 0 : i32
    return %c0_i32, %c0_i32_0, %c0_i32_1 : i32, i32, i32
  }
  func.func @transform_10(%arg0: i32) -> (i32, i32, i32) {
    %c0_i32 = arith.constant 0 : i32
    %c0_i32_0 = arith.constant 0 : i32
    %c0_i32_1 = arith.constant 0 : i32
    %c0_i32_2 = arith.constant 0 : i32
    return %c0_i32, %c0_i32_0, %c0_i32_1 : i32, i32, i32
  }
  func.func @transform_11(%arg0: i32) -> (i32, i32, i32) {
    %c0_i32 = arith.constant 0 : i32
    %c0_i32_0 = arith.constant 0 : i32
    %c0_i32_1 = arith.constant 0 : i32
    %c0_i32_2 = arith.constant 0 : i32
    return %c0_i32, %c0_i32_0, %c0_i32_1 : i32, i32, i32
  }
  func.func @transform_12(%arg0: i32) -> (i32, i32, i32) {
    %c0_i32 = arith.constant 0 : i32
    %c0_i32_0 = arith.constant 0 : i32
    %c0_i32_1 = arith.constant 0 : i32
    %c0_i32_2 = arith.constant 0 : i32
    return %c0_i32, %c0_i32_0, %c0_i32_1 : i32, i32, i32
  }
  func.func @transform_13(%arg0: i32) -> (i32, i32, i32) {
    %c0_i32 = arith.constant 0 : i32
    %c0_i32_0 = arith.constant 0 : i32
    %c0_i32_1 = arith.constant 0 : i32
    %c0_i32_2 = arith.constant 0 : i32
    return %c0_i32, %c0_i32_0, %c0_i32_1 : i32, i32, i32
  }
  func.func @transform_14(%arg0: i32) -> (i32, i32, i32) {
    %c0_i32 = arith.constant 0 : i32
    %c0_i32_0 = arith.constant 0 : i32
    %c0_i32_1 = arith.constant 0 : i32
    %c0_i32_2 = arith.constant 0 : i32
    return %c0_i32, %c0_i32_0, %c0_i32_1 : i32, i32, i32
  }
  func.func @transform_15(%arg0: i32) -> (i32, i32, i32) {
    %c0_i32 = arith.constant 0 : i32
    %c0_i32_0 = arith.constant 0 : i32
    %c0_i32_1 = arith.constant 0 : i32
    %c0_i32_2 = arith.constant 0 : i32
    return %c0_i32, %c0_i32_0, %c0_i32_1 : i32, i32, i32
  }
  func.func @transform_16(%arg0: i32) -> (i32, i32, i32) {
    %c0_i32 = arith.constant 0 : i32
    %c0_i32_0 = arith.constant 0 : i32
    %c0_i32_1 = arith.constant 0 : i32
    %c0_i32_2 = arith.constant 0 : i32
    return %c0_i32, %c0_i32_0, %c0_i32_1 : i32, i32, i32
  }
  func.func @transform_17(%arg0: i32) -> (i32, i32, i32) {
    %c0_i32 = arith.constant 0 : i32
    %c0_i32_0 = arith.constant 0 : i32
    %c0_i32_1 = arith.constant 0 : i32
    %c0_i32_2 = arith.constant 0 : i32
    return %c0_i32, %c0_i32_0, %c0_i32_1 : i32, i32, i32
  }
  func.func @transform_18(%arg0: i32) -> (i32, i32, i32) {
    %c0_i32 = arith.constant 0 : i32
    %c0_i32_0 = arith.constant 0 : i32
    %c0_i32_1 = arith.constant 0 : i32
    %c0_i32_2 = arith.constant 0 : i32
    return %c0_i32, %c0_i32_0, %c0_i32_1 : i32, i32, i32
  }
  func.func @transform_19(%arg0: i32) -> (i32, i32, i32) {
    %c0_i32 = arith.constant 0 : i32
    %c0_i32_0 = arith.constant 0 : i32
    %c0_i32_1 = arith.constant 0 : i32
    %c0_i32_2 = arith.constant 0 : i32
    return %c0_i32, %c0_i32_0, %c0_i32_1 : i32, i32, i32
  }
  func.func @transform_20(%arg0: i32) -> (i32, i32, i32) {
    %c0_i32 = arith.constant 0 : i32
    %c0_i32_0 = arith.constant 0 : i32
    %c0_i32_1 = arith.constant 0 : i32
    %c0_i32_2 = arith.constant 0 : i32
    return %c0_i32, %c0_i32_0, %c0_i32_1 : i32, i32, i32
  }
  func.func @transform_21(%arg0: i32) -> (i32, i32, i32) {
    %c0_i32 = arith.constant 0 : i32
    %c0_i32_0 = arith.constant 0 : i32
    %c0_i32_1 = arith.constant 0 : i32
    %c0_i32_2 = arith.constant 0 : i32
    return %c0_i32, %c0_i32_0, %c0_i32_1 : i32, i32, i32
  }
  func.func @transform_22(%arg0: i32) -> (i32, i32, i32) {
    %c0_i32 = arith.constant 0 : i32
    %c0_i32_0 = arith.constant 0 : i32
    %c0_i32_1 = arith.constant 0 : i32
    %c0_i32_2 = arith.constant 0 : i32
    return %c0_i32, %c0_i32_0, %c0_i32_1 : i32, i32, i32
  }
  func.func @transform_23(%arg0: i32) -> (i32, i32) {
    %c0_i32 = arith.constant 0 : i32
    %c0_i32_0 = arith.constant 0 : i32
    %c0_i32_1 = arith.constant 0 : i32
    return %c0_i32, %c0_i32_0 : i32, i32
  }
  func.func @transform_24(%arg0: i32) -> (i32, i32) {
    %c0_i32 = arith.constant 0 : i32
    %c0_i32_0 = arith.constant 0 : i32
    %c0_i32_1 = arith.constant 0 : i32
    return %c0_i32, %c0_i32_0 : i32, i32
  }
  func.func @transform_25(%arg0: i32) -> (i32, i32) {
    %c0_i32 = arith.constant 0 : i32
    %c0_i32_0 = arith.constant 0 : i32
    %c0_i32_1 = arith.constant 0 : i32
    return %c0_i32, %c0_i32_0 : i32, i32
  }
  func.func @transform_26(%arg0: i32) -> (i32, i32) {
    %c0_i32 = arith.constant 0 : i32
    %c0_i32_0 = arith.constant 0 : i32
    %c0_i32_1 = arith.constant 0 : i32
    return %c0_i32, %c0_i32_0 : i32, i32
  }
  func.func @transform_27(%arg0: i32) -> (i32, i32, i32) {
    %c0_i32 = arith.constant 0 : i32
    %c0_i32_0 = arith.constant 0 : i32
    %c0_i32_1 = arith.constant 0 : i32
    return %arg0, %c0_i32, %c0_i32_0 : i32, i32, i32
  }
}

</mosaic_0001>

<bundles_post_ra>
// kernel: fwd.3
= control target key start
LH: loop header
LB: loop body
LE: loop exit
PB: predicated region body
PF: predicated region fallthrough
CT: control target
= control target key end

     0   :  { %12 = vsyncpa [#allocation3], 0  ;;  %s2303_s0 = inlined_call_operand.hbm [shape: f32[2,32,16], index: 0, kind: input, shape index: {}]   ;;  %s2304_s1 = inlined_call_operand.hbm [shape: bf16[2,16,16], index: 1, kind: input, shape index: {}]   ;;  %s2305_s2 = inlined_call_operand.hbm [shape: f32[1,16], index: 2, kind: input, shape index: {}]   ;;  %s2306_s3 = inlined_call_operand.hbm [shape: bf16[4,16,16], index: 3, kind: input, shape index: {}]   ;;  %s2307_s4 = inlined_call_operand.hbm [shape: f32[1,16], index: 4, kind: input, shape index: {}]   ;;  %s2308_s5 = inlined_call_operand.hbm [shape: bf16[16,32], index: 5, kind: input, shape index: {}]   ;;  %s2309_s6 = inlined_call_operand.hbm [shape: f32[1,32], index: 6, kind: input, shape index: {}]   ;;  %s2310_s7 = inlined_call_operand.hbm [shape: f32[2,16,32], index: 7, kind: output, shape index: {}]  }
   0x1   :  { %14 = vsyncpa [#allocation3 + $0x1], 0 }
   0x2   :  { %15 = vsyncpa [#allocation6], 0 }
   0x3   :  { %16 = vsyncpa [#allocation9], 0 }
   0x4   :  { %17 = vsyncpa [#allocation12], 0 }
   0x5   :  { %18 = vsyncpa [#allocation4], 0 }
   0x6   :  { %20 = vsyncpa [#allocation4 + $0x1], 0  ;;  %s1907_s24 = smov 0   ;;  %s1909_s25 = smov 0  }
   0x7   :  { %s1911_s26 = smov 0   ;;  %s1913_s27 = smov 0  }
   0x8 LB: > { %s1850_s28 = smov [#allocation5]   ;;  %s1928_s30 = sadd.s32 4294967295, %s1848_s27   ;;  %s1848_s27 = sphi %s1913_s27, %s2336_s27   ;;  %s1844_s26 = sphi %s1911_s26, %s2335_s26   ;;  %s1840_s25 = sphi %s1909_s25, %s2334_s25   ;;  %s1836_s24 = sphi %s1907_s24, %s2333_s24  }
   0x9   : > { %s221_s29 = sshll.u32 %s1850_s28, 4  ;;  %p1285_p0 = scmp.ge.s32.totalorder %s1848_s27, 1  ;;  %s1933_s29 = int_to_ptr.vmem [resolvable:$true] %s221_s29 }
   0xa   : > { %p2311_p1 = scmp.eq.s32.totalorder %s1928_s30, 0  ;;  %p209_p2 = scmp.lt.s32.totalorder %s1848_s27, 3 }
   0xb   : > { %s1851_s9 = smov [#allocation8]   ;;  %s1852_s12 = smov [#allocation11]  }
   0xc   : > { %p1935_p3 = pnand %p1285_p0, %p209_p2  ;;  %s245_s10 = sshll.u32 %s1851_s9, 4  ;;  %s1948_s10 = int_to_ptr.vmem [resolvable:$true] %s245_s10 }
   0xd   : > { %s269_s13 = sshll.u32 %s1852_s12, 4  ;;  %s1572_s16 = scalar_lea.hbm %s2304_s1, 256  ;;  %s1950_s13 = int_to_ptr.vmem [resolvable:$true] %s269_s13 }
   0xe   : > { %s2314_s8 = scalar_select %p1935_p3, 1, 0 }
   0xf   : > { %p1453_p5 = pneg %p1935_p3  ;;  %p1573_p7 = scmp.ne.s32.totalorder %s2304_s1, %s1572_s16 }
  0x10   : > { %p1579_p11 = scmp.lt.u32.totalorder %s1572_s16, %s2304_s1 }
  0x11   : > { %p1944_p6 = pnand %p1453_p5, %p2311_p1 }
  0x13   : > { %p1960_p8 = pneg %p1944_p6 }
  0x15   : > { %p1575_p9 = pnand %p1960_p8, %p1573_p7 }
  0x17   : > { %p1576_p10 = pneg %p1575_p9 }
  0x19   : > { %p1581_p12 = pnand %p1579_p11, %p1576_p10 }
  0x1b   : > { %1584 = shalt.err (!%p1581_p12)
}
  0x1c   : > { %s1585_s22 = scalar_lea.vmem %s1933_s29, 256  ;;  %p1593_p5 = scmp.lt.s32.totalorder %s1933_s29, %s1933_s29 }
  0x1d   : > { %p1586_p13 = scmp.ne.s32.totalorder %s1933_s29, %s1585_s22  ;;  %p1594_p4 = scmp.lt.s32.totalorder %s1585_s22, %s1585_s22 }
  0x1f   : > { %p1588_p0 = pnand %p1586_p13, %p1960_p8  ;;  %p1595_p7 = por %p1594_p4, %p1593_p5 }
  0x21   : > { %p1589_p2 = pneg %p1588_p0 }
  0x23   : > { %p1596_p9 = pnand %p1595_p7, %p1589_p2 }
  0x25   : > { %1599 = shalt.err (!%p1596_p9)
}
  0x26   : > { %s1853_s23 = smov 64   ;;  %s1854_s28 = smov 4  }
  0x27   : > { %1456 = dma.hbm_to_vmem [thread:$0]  (!%p1944_p6), %s2304_s1, 256, %s1933_s29, [#allocation6], %s1853_s23, %s1853_s23, %s1854_s28  }
  0x28   : > { %s1600_s16 = scalar_lea.hbm %s2306_s3, 512 }
  0x29   : > { %p1601_p4 = scmp.ne.s32.totalorder %s2306_s3, %s1600_s16  ;;  %p1607_p12 = scmp.lt.u32.totalorder %s1600_s16, %s2306_s3 }
  0x2b   : > { %p1603_p10 = pnand %p1601_p4, %p1960_p8 }
  0x2d   : > { %p1604_p11 = pneg %p1603_p10 }
  0x2f   : > { %p1609_p13 = pnand %p1607_p12, %p1604_p11 }
  0x31   : > { %1612 = shalt.err (!%p1609_p13)
}
  0x32   : > { %s1613_s29 = scalar_lea.vmem %s1948_s10, 512  ;;  %p1621_p7 = scmp.lt.s32.totalorder %s1948_s10, %s1948_s10 }
  0x33   : > { %p1614_p0 = scmp.ne.s32.totalorder %s1948_s10, %s1613_s29  ;;  %p1622_p9 = scmp.lt.s32.totalorder %s1613_s29, %s1613_s29 }
  0x35   : > { %p1616_p2 = pnand %p1614_p0, %p1960_p8  ;;  %p1623_p4 = por %p1622_p9, %p1621_p7 }
  0x37   : > { %p1617_p5 = pneg %p1616_p2 }
  0x39   : > { %p1624_p10 = pnand %p1623_p4, %p1617_p5 }
  0x3b   : > { %1627 = shalt.err (!%p1624_p10)
}
  0x3c   : > { %1462 = dma.hbm_to_vmem [thread:$0]  (!%p1944_p6), %s2306_s3, 512, %s1948_s10, [#allocation9], %s1853_s23, %s1853_s23, %s1854_s28  }
  0x3d   : > { %s1628_s15 = scalar_lea.hbm %s2308_s5, 128 }
  0x3e   : > { %p1629_p11 = scmp.ne.s32.totalorder %s2308_s5, %s1628_s15  ;;  %p1635_p0 = scmp.lt.u32.totalorder %s1628_s15, %s2308_s5 }
  0x40   : > { %p1631_p12 = pnand %p1629_p11, %p1960_p8 }
  0x42   : > { %p1632_p13 = pneg %p1631_p12 }
  0x44   : > { %p1637_p2 = pnand %p1635_p0, %p1632_p13 }
  0x46   : > { %1640 = shalt.err (!%p1637_p2)
}
  0x47   : > { %s1641_s10 = scalar_lea.vmem %s1950_s13, 128  ;;  %p1649_p4 = scmp.lt.s32.totalorder %s1950_s13, %s1950_s13 }
  0x48   : > { %p1642_p5 = scmp.ne.s32.totalorder %s1950_s13, %s1641_s10  ;;  %p1650_p10 = scmp.lt.s32.totalorder %s1641_s10, %s1641_s10 }
  0x4a   : > { %p1644_p7 = pnand %p1642_p5, %p1960_p8  ;;  %p1651_p11 = por %p1650_p10, %p1649_p4 }
  0x4c   : > { %p1645_p9 = pneg %p1644_p7 }
  0x4e   : > { %p1652_p12 = pnand %p1651_p11, %p1645_p9 }
  0x50   : > { %1655 = shalt.err (!%p1652_p12)
}
  0x51   : > { %1468 = dma.hbm_to_vmem [thread:$0]  (!%p1944_p6), %s2308_s5, 128, %s1950_s13, [#allocation12], %s1853_s23, %s1853_s23, %s1854_s28  }
  0x52   : > { %s1855_s22 = smov [#allocation7]   ;;  %s1856_s12 = smov [#allocation10]  }
  0x53   : > { %s235_s9 = sshll.u32 %s1855_s22, 4  ;;  %s259_s14 = sshll.u32 %s1856_s12, 4  ;;  %s236_s9 = int_to_ptr.vmem [resolvable:$true] %s235_s9  ;;  %s260_s14 = int_to_ptr.vmem [resolvable:$true] %s259_s14 }
  0x54   : > { %s1656_s17 = scalar_lea.hbm %s2305_s2, 16 }
  0x55   : > { %p1657_p13 = scmp.ne.s32.totalorder %s2305_s2, %s1656_s17  ;;  %p1663_p5 = scmp.lt.u32.totalorder %s1656_s17, %s2305_s2 }
  0x57   : > { %p1659_p0 = pnand %p1657_p13, %p1960_p8 }
  0x59   : > { %p1660_p2 = pneg %p1659_p0 }
  0x5b   : > { %p1665_p7 = pnand %p1663_p5, %p1660_p2 }
  0x5d   : > { %1668 = shalt.err (!%p1665_p7)
}
  0x5e   : > { %s1669_s13 = scalar_lea.vmem %s236_s9, 16  ;;  %s1676_s23 = scalar_lea.vmem %s236_s9, 32 }
  0x5f   : > { %p1670_p9 = scmp.ne.s32.totalorder %s236_s9, %s1669_s13  ;;  %p1677_p11 = scmp.lt.s32.totalorder %s236_s9, %s236_s9 }
  0x60   : > { %p1678_p12 = scmp.lt.s32.totalorder %s1676_s23, %s1669_s13 }
  0x61   : > { %p1672_p4 = pnand %p1670_p9, %p1960_p8 }
  0x62   : > { %p1679_p1 = por %p1678_p12, %p1677_p11 }
  0x63   : > { %p1673_p10 = pneg %p1672_p4 }
  0x65   : > { %p1680_p3 = pnand %p1679_p1, %p1673_p10 }
  0x67   : > { %1683 = shalt.err (!%p1680_p3)
}
  0x68   : > { %1459 = dma.hbm_to_vmem [thread:$0]  (!%p1944_p6), %s2305_s2, 16, %s236_s9, [#allocation6]  }
  0x69   : > { %s1684_s15 = scalar_lea.hbm %s2307_s4, 16 }
  0x6a   : > { %p1685_p13 = scmp.ne.s32.totalorder %s2307_s4, %s1684_s15  ;;  %p1691_p3 = scmp.lt.u32.totalorder %s1684_s15, %s2307_s4 }
  0x6c   : > { %p1687_p0 = pnand %p1685_p13, %p1960_p8 }
  0x6e   : > { %p1688_p1 = pneg %p1687_p0 }
  0x70   : > { %p1693_p2 = pnand %p1691_p3, %p1688_p1 }
  0x72   : > { %1696 = shalt.err (!%p1693_p2)
}
  0x73   : > { %s1697_s10 = scalar_lea.vmem %s260_s14, 16  ;;  %s1704_s9 = scalar_lea.vmem %s260_s14, 32 }
  0x74   : > { %p1698_p5 = scmp.ne.s32.totalorder %s260_s14, %s1697_s10  ;;  %p1705_p4 = scmp.lt.s32.totalorder %s260_s14, %s260_s14 }
  0x75   : > { %p1706_p10 = scmp.lt.s32.totalorder %s1704_s9, %s1697_s10 }
  0x76   : > { %p1700_p7 = pnand %p1698_p5, %p1960_p8 }
  0x77   : > { %p1707_p11 = por %p1706_p10, %p1705_p4 }
  0x78   : > { %p1701_p9 = pneg %p1700_p7 }
  0x7a   : > { %p1708_p12 = pnand %p1707_p11, %p1701_p9 }
  0x7c   : > { %1711 = shalt.err (!%p1708_p12)
}
  0x7d   : > { %1465 = dma.hbm_to_vmem [thread:$0]  (!%p1944_p6), %s2307_s4, 16, %s260_s14, [#allocation9]  }
  0x7e   : > { %s1857_s23 = smov [#allocation13]   ;;  %s1712_s12 = scalar_lea.hbm %s2309_s6, 16 }
  0x7f   : > { %s283_s28 = sshll.u32 %s1857_s23, 4  ;;  %p1713_p13 = scmp.ne.s32.totalorder %s2309_s6, %s1712_s12  ;;  %s284_s28 = int_to_ptr.vmem [resolvable:$true] %s283_s28 }
  0x80   : > { %p1719_p3 = scmp.lt.u32.totalorder %s1712_s12, %s2309_s6 }
  0x81   : > { %p1715_p0 = pnand %p1713_p13, %p1960_p8 }
  0x83   : > { %p1716_p1 = pneg %p1715_p0 }
  0x85   : > { %p1721_p2 = pnand %p1719_p3, %p1716_p1 }
  0x87   : > { %1724 = shalt.err (!%p1721_p2)
}
  0x88   : > { %s1725_s14 = scalar_lea.vmem %s284_s28, 16  ;;  %s1732_s20 = scalar_lea.vmem %s284_s28, 32 }
  0x89   : > { %p1726_p5 = scmp.ne.s32.totalorder %s284_s28, %s1725_s14  ;;  %p1733_p4 = scmp.lt.s32.totalorder %s284_s28, %s284_s28 }
  0x8a   : > { %p1734_p10 = scmp.lt.s32.totalorder %s1732_s20, %s1725_s14 }
  0x8b   : > { %p1728_p7 = pnand %p1726_p5, %p1960_p8 }
  0x8c   : > { %p1735_p11 = por %p1734_p10, %p1733_p4 }
  0x8d   : > { %p1729_p9 = pneg %p1728_p7 }
  0x8f   : > { %p1736_p12 = pnand %p1735_p11, %p1729_p9 }
  0x91   : > { %1739 = shalt.err (!%p1736_p12)
}
  0x92   : > { %1471 = dma.hbm_to_vmem [thread:$0]  (!%p1944_p6), %s2309_s6, 16, %s284_s28, [#allocation12]  }
  0x93   : > { %s1284_s19 = sadd.s32 4294967294, %s1848_s27   ;;  %s2092_s11 = sadd.s32 1, %s1848_s27  }
  0x94   : > { %s30_s21 = ssub.s32 %s1848_s27, %s2092_s11  ;;  %s33_s13 = sadd.s32 1, %s1844_s26 }
  0x95   : > { %p31_p8 = scmp.eq.s32.totalorder %s30_s21, 0  ;;  %p40_p13 = scmp.ne.s32.totalorder %s1844_s26, %s1840_s25 }
  0x96   : > { %p41_p0 = scmp.eq.s32.totalorder %s1848_s27, 0  ;;  %p46_p1 = scmp.ne.s32.totalorder %s1840_s25, %s1836_s24 }
  0x97   : > { %s2103_s23 = scalar_select %p31_p8, %s1844_s26, %s33_s13  }
  0x98   : > { %p2105_p3 = por %p41_p0, %p40_p13  ;;  %p2318_p2 = scmp.eq.s32.totalorder %s1928_s30, 0 }
  0x99   : > { %p196_p5 = scmp.eq.s32.totalorder %s1928_s30, 1  ;;  %p202_p7 = scmp.eq.s32.totalorder %s1284_s19, 1 }
  0x9a   : > { %p2111_p6 = por %p2318_p2, %p46_p1  ;;  %p1486_p9 = scmp.lt.s32.totalorder %s1848_s27, 2 }
  0x9b   : > { %s294_s22 = sand.u32 1, %s1844_s26   ;;  %p2118_p4 = por %p196_p5, %p40_p13 }
  0x9c   : > { %p2122_p10 = por %p202_p7, %p46_p1  ;;  %s1293_s16 = sshll.u32 %s294_s22, 5 }
  0x9d   : > { %s2320_s12 = scalar_select %p2118_p4, 1, 0 }
  0x9e   : > { %s2321_s15 = scalar_select %p2122_p10, 1, 0 }
  0x9f   : > { %s1334_s17 = sshll.u32 %s1848_s27, 9  ;;  %s298_s10 = scalar_lea.vmem [#allocation2], %s1293_s16 }
  0xa0   : > { %s2130_s20 = scalar_lea.hbm %s2303_s0, %s1334_s17  ;;  %s305_s9 = sshll.u32 %s298_s10, 4  ;;  %s2132_s9 = int_to_ptr.vmem [resolvable:$true] %s305_s9 }
  0xa1   : > { %p2136_p11 = pnand %p1486_p9, %p2105_p3  ;;  %s2140_s21 = scalar_lea.sflag [#allocation3], %s294_s22 }
  0xa2   : > { %s1740_s13 = scalar_lea.hbm %s2130_s20, 512  ;;  %s1745_s29 = scalar_lea.hbm %s2303_s0, 1024 }
  0xa3   : > { %p1741_p12 = scmp.ne.s32.totalorder %s2130_s20, %s1740_s13  ;;  %p1742_p8 = pneg %p2136_p11 }
  0xa4   : > { %p1746_p1 = scmp.lt.u32.totalorder %s2130_s20, %s2303_s0  ;;  %p1747_p3 = scmp.lt.u32.totalorder %s1745_s29, %s1740_s13 }
  0xa5   : > { %p1743_p13 = pnand %p1742_p8, %p1741_p12  ;;  %p1749_p5 = scmp.lt.u32.totalorder %s1740_s13, %s2130_s20 }
  0xa6   : > { %p1748_p2 = por %p1747_p3, %p1746_p1 }
  0xa7   : > { %p1744_p0 = pneg %p1743_p13 }
  0xa8   : > { %p1750_p7 = por %p1749_p5, %p1748_p2 }
  0xaa   : > { %p1751_p9 = pnand %p1750_p7, %p1744_p0 }
  0xac   : > { %1754 = shalt.err (!%p1751_p9)
}
  0xad   : > { %s1755_s22 = scalar_lea.vmem %s2132_s9, 512  ;;  %s1858_s10 = smov [#allocation2]  }
  0xae   : > { %p1756_p12 = scmp.ne.s32.totalorder %s2132_s9, %s1755_s22  ;;  %s1760_s16 = sshll.u32 %s1858_s10, 4  ;;  %s1761_s16 = int_to_ptr.vmem [resolvable:$false] %s1760_s16 }
  0xaf   : > { %s1762_s17 = scalar_lea.vmem %s1761_s16, 1024  ;;  %p1763_p4 = scmp.lt.s32.totalorder %s2132_s9, %s1761_s16 }
  0xb0   : > { %p1758_p13 = pnand %p1756_p12, %p1742_p8  ;;  %p1764_p1 = scmp.lt.s32.totalorder %s1762_s17, %s1755_s22 }
  0xb2   : > { %p1759_p10 = pneg %p1758_p13  ;;  %p1765_p3 = por %p1764_p1, %p1763_p4 }
  0xb4   : > { %p1766_p2 = pnand %p1765_p3, %p1759_p10 }
  0xb6   : > { %1769 = shalt.err (!%p1766_p2)
}
  0xb7   : > { %s1859_s13 = smov 128   ;;  %s1860_s29 = smov 8  }
  0xb8   : > { %1475 = dma.hbm_to_vmem [thread:$0]  (!%p2136_p11), %s2130_s20, 512, %s2132_s9, %s2140_s21, %s1859_s13, %s1859_s13, %s1860_s29  }
  0xb9   : > { %p2323_p8 = scmp.ne.s32.totalorder %s2314_s8, 0 }
  0xba   : > { %s2171_s18 = sand.u32 (!%p2323_p8), 1, %s1840_s25  }
  0xbb   : > { %317 = sbr.rel (%p2323_p8) target bundleno = 1263 (0x4ef), region = 48  ;;  %s1297_s14 = sshll.u32 (!%p2323_p8), %s2171_s18, 5 }
  0xbc   : > { %s320_s22 = scalar_lea.sflag (!%p2323_p8), [#allocation3], %s2171_s18  ;;  %s323_s10 = scalar_lea.vmem (!%p2323_p8), [#allocation2], %s1297_s14 }
  0xc2   : > { %1815 = dma.done.wait (%p2111_p6), %s320_s22, 512  }
  0xc3   : > { %1817 = vsyncadd (%p2111_p6), %s320_s22, 4294966784  ;;  %p2324_p4 = scmp.eq.s32.totalorder %s1928_s30, 0 }
  0xc5   : > { %1819 = dma.done.wait (%p2324_p4), [#allocation6], 272   ;;  %p2325_p10 = pmov %p2324_p4 }
  0xc6   : > { %p2326_p11 = pmov %p2324_p4 }
  0xc7   : > { %1821 = vsyncadd (%p2325_p10), [#allocation6], 4294967024 }
  0xc8   : > { %1823 = dma.done.wait (%p2326_p11), [#allocation9], 528   ;;  %p2327_p0 = pmov %p2324_p4 }
  0xca   : > { %1825 = vsyncadd (%p2327_p0), [#allocation9], 4294966768  ;;  %p2328_p5 = pmov %p2327_p0 }
  0xcb   : > { %p2329_p7 = pmov %p2327_p0 }
  0xcc   : > { %1827 = dma.done.wait (%p2328_p5), [#allocation12], 144  }
  0xcd   : > { %1829 = vsyncadd (%p2329_p7), [#allocation12], 4294967152  ;;  %v1541_v0 = vld [vmem:[#allocation5 + $0x8] sm:$0xff]   ;;  %v379_v1 = vld [vmem:[%s323_s10] sm:$0xff]  ;;  %vm391_vm0 = vsmask.f32 7424 }
  0xce   : > { %v380_v2 = vld [vmem:[%s323_s10 + $0x8] sm:$0xff]  ;;  %v381_v3 = vld [vmem:[%s323_s10 + $0x10] sm:$0xff]  ;;  %1359 = vmatprep.subr.bf16.mxu0 %v1541_v0  ;;  %v382_v4 = vld [vmem:[%s323_s10 + $0x18] sm:$0xff]  ;;  %vm413_vm1 = vcmask 130048   ;;  %vm794_vm6 = vcmask 1046528   ;;  %vm1863_vm8 = vmmov 0  }
  0xcf   : > { %v383_v5 = vpack.c.bf16 %v380_v2, %v379_v1  ;;  %1360 = vmatpush3.bf16.msra.mxu0 %v1541_v0  ;;  %v384_v6 = vpack.c.bf16 %v382_v4, %v381_v3  ;;  %v1542_v7 = vld [vmem:[#allocation5] sm:$0xff]   ;;  %v2196_v18 = vld [vmem:[#allocation8] sm:$0xff]   ;;  %v1311_v19 = vld [vmem:[#allocation7] ss:$0 sm:$0xff]  ;;  %vm866_vm7 = vsmask.f32 6400 }
  0xd0   : > { %1365 = vmatprep.subr.bf16.mxu0 %v1542_v7  ;;  %v1543_v17 = vld [vmem:[#allocation8 + $0x8] sm:$0xff]   ;;  %vm967_vm11 = vcmask 1045504   ;;  %vm963_vm12 = vcmask 228352   ;;  %s1304_s8 = sshll.u32 %s2171_s18, 4  ;;  %vm1128_vm15 = vcmask 1040384   ;;  %s1335_s9 = sshll.u32 %s1928_s30, 8 }
  0xd1   : > { %v393_v8 = vshrl.u32 %v383_v5, 16  ;;  %v395_v9 = vshll.u32 %v383_v5, 16  ;;  %v400_v10 = vshll.u32 %v384_v6, 16  ;;  %v404_v11 = vshrl.u32 %v384_v6, 16  ;;  %1371 = vmatprep.subr.bf16.mxu1 %v1543_v17  ;;  %s377_s28 = scalar_lea.vmem [#allocation14], %s1304_s8  ;;  %s2258_s16 = scalar_lea.hbm %s2310_s7, %s1335_s9 }
  0xd2   : > { %1372 = vmatpush3.bf16.msra.mxu1 %v1543_v17  ;;  %s1154_s20 = sshll.u32 %s377_s28, 4  ;;  %s1141_s17 = scalar_lea.sflag [#allocation4], %s2171_s18  ;;  %s2253_s20 = int_to_ptr.vmem [resolvable:$true] %s1154_s20 }
  0xd3   : > { %v397_v12 = vrot.slane %v395_v9, 1  ;;  %v402_v13 = vrot.slane %v400_v10, 1  ;;  %1377 = vmatprep.subr.bf16.mxu1 %v2196_v18  ;;  %s1770_s13 = scalar_lea.vmem %s2253_s20, 256  ;;  %p2330_p9 = scmp.ne.s32.totalorder %s2320_s12, 0 }
  0xd4   : > { %p1771_p6 = scmp.ne.s32.totalorder %s2253_s20, %s1770_s13  ;;  %s1864_s30 = smov [#allocation14]  }
  0xd5   : > { %v398_v14 = vor.u32 %v397_v12, %v393_v8  ;;  %v406_v15 = vor.u32 %v404_v11, %v402_v13  ;;  %s1774_s29 = sshll.u32 %s1864_s30, 4  ;;  %s1775_s29 = int_to_ptr.vmem [resolvable:$false] %s1774_s29 }
  0xd6   : > { %p1772_p12 = pnand %p1771_p6, %p2330_p9  ;;  %s1776_s14 = scalar_lea.vmem %s1775_s29, 512 }
  0xd7   : > { %v403_v16 = vsel %vm391_vm0, %v398_v14, %v402_v13  ;;  %p1777_p1 = scmp.lt.s32.totalorder %s2253_s20, %s1775_s29  ;;  %p1778_p3 = scmp.lt.s32.totalorder %s1776_s14, %s1770_s13 }
  0xd8   : > { %1361 = vmatprep.mubr.msk.bf16.mxu0 %vm413_vm1, %v403_v16  ;;  %p1773_p13 = pneg %p1772_p12 }
  0xd9   : > { %1362 = vmatmul.mubr.msk.bf16.vlgmr.msra.gmra.mrb[0].mxu0 %vm413_vm1, %v406_v15  ;;  %p1779_p2 = por %p1778_p3, %p1777_p1 }
  0xda   : > { %1366 = vmatpush3.bf16.msra.mxu0 %v1542_v7  ;;  %1367 = vmatprep.mubr.msk.bf16.mxu0 %vm413_vm1, %v383_v5 }
  0xdb   : > { %p1780_p8 = pnand %p1779_p2, %p1773_p13 }
  0xe5   : > { %1368 = vmatmul.mubr.msk.bf16.vlgmr.msra.gmra.mrb[0].mxu0 %vm413_vm1, %v384_v6 }
 0x1b8   : > { %v1369_v20 = vpop.f32.mrb[0].mxu0 }
 0x1b9   : > { %v2199_v21 = vadd.f32 %v1369_v20, %v1311_v19  ;;  %v513_v22 = vpop.f32.mrb[1].mxu0 }
 0x1ba   : > { %v2201_v23 = vadd.f32 %v1311_v19, %v513_v22  ;;  %v1370_v24 = vpop.f32.mrb[2].mxu0 }
 0x1bb   : > { %v2204_v25 = vmul.f32 0.70710677, %v2199_v21  ;;  %v2206_v26 = vadd.f32 %v1370_v24, %v1311_v19  ;;  %v516_v27 = vpop.f32.mrb[3].mxu0 }
 0x1bc   : > { %v2209_v28 = vmul.f32 0.70710677, %v2201_v23  ;;  %v2215_v31 = vadd.f32 %v1311_v19, %v516_v27 }
 0x1bd   : > { %v556_v29 = vand.u32 2147483647, %v2204_v25  ;;  %v2213_v30 = vmul.f32 0.70710677, %v2206_v26  ;;  %vm548_vm2 = vcmp.ge.f32.partialorder %v2204_v25, 0.0 }
 0x1be   : > { %v554_v32 = vand.u32 2147483647, %v2209_v28  ;;  %v2220_v37 = vmul.f32 0.70710677, %v2215_v31  ;;  %vm546_vm3 = vcmp.ge.f32.partialorder %v2209_v28, 0.0 }
 0x1bf   : > { %v560_v33 = vmul.f32 0.3275911, %v556_v29  ;;  %v557_v35 = vand.u32 2147483647, %v2213_v30  ;;  %v612_v44 = vsub.f32 0.0, %v556_v29  ;;  %vm549_vm4 = vcmp.ge.f32.partialorder %v2213_v30, 0.0 }
 0x1c0   : > { %v558_v34 = vmul.f32 0.3275911, %v554_v32  ;;  %v555_v40 = vand.u32 2147483647, %v2220_v37  ;;  %v610_v45 = vsub.f32 0.0, %v554_v32  ;;  %vm547_vm5 = vcmp.ge.f32.partialorder %v2220_v37, 0.0 }
 0x1c1   : > { %v564_v36 = vadd.f32 1.0, %v560_v33  ;;  %v561_v39 = vmul.f32 0.3275911, %v557_v35  ;;  %v616_v47 = vmul.f32 %v612_v44, %v556_v29  ;;  %v613_v48 = vsub.f32 0.0, %v557_v35 }
 0x1c2   : > { %v562_v38 = vadd.f32 1.0, %v558_v34  ;;  %v559_v42 = vmul.f32 0.3275911, %v555_v40  ;;  %v614_v51 = vmul.f32 %v610_v45, %v554_v32  ;;  %v611_v53 = vsub.f32 0.0, %v555_v40 }
 0x1c3   : > { %1548 = vrcp.f32 %v564_v36  ;;  %v565_v41 = vadd.f32 1.0, %v561_v39  ;;  %v622_v56 = vmul.f32 1.442695, %v616_v47  ;;  %v617_v58 = vmul.f32 %v613_v48, %v557_v35 }
 0x1c4   : > { %1550 = vrcp.f32 %v562_v38  ;;  %v563_v43 = vadd.f32 1.0, %v559_v42  ;;  %v618_v60 = vmul.f32 1.442695, %v614_v51  ;;  %v615_v0 = vmul.f32 %v611_v53, %v555_v40 }
 0x1c5   : > { %1552 = vrcp.f32 %v565_v41  ;;  %v624_v5 = vmul.f32 1.442695, %v617_v58  ;;  %v1861_v47 = vmov -1.0   ;;  %v539_v37 = vmul.f32 0.5, %v2215_v31 }
 0x1c6   : > { %1554 = vrcp.f32 %v563_v43  ;;  %v620_v10 = vmul.f32 1.442695, %v615_v0  ;;  %v538_v0 = vmul.f32 0.5, %v2201_v23 }
 0x1c7   : > { %1556 = vpow2.f32 %v622_v56 }
 0x1c8   : > { %1558 = vpow2.f32 %v618_v60  ;;  %v551_v60 = vsel %vm547_vm5, 1.0, %v1861_v47 }
 0x1c9   : > { %1560 = vpow2.f32 %v624_v5 }
 0x1ca   : > { %1562 = vpow2.f32 %v620_v10 }
 0x1cd   : > { %v1549_v46 = vpop.eup %1548 }
 0x1ce   : > { %v1551_v49 = vpop.eup %1550  ;;  %v576_v50 = vmul.f32 1.0614054, %v1549_v46 }
 0x1cf   : > { %v574_v52 = vmul.f32 1.0614054, %v1551_v49  ;;  %v1553_v55 = vpop.eup %1552 }
 0x1d0   : > { %v580_v54 = vadd.f32 -1.4531521, %v576_v50  ;;  %v577_v61 = vmul.f32 1.0614054, %v1553_v55  ;;  %v1555_v62 = vpop.eup %1554 }
 0x1d1   : > { %v578_v57 = vadd.f32 -1.4531521, %v574_v52  ;;  %v575_v3 = vmul.f32 1.0614054, %v1555_v62  ;;  %v1557_v34 = vpop.eup %1556  ;;  %v550_v52 = vsel %vm546_vm3, 1.0, %v1861_v47 }
 0x1d2   : > { %v584_v59 = vmul.f32 %v1549_v46, %v580_v54  ;;  %v581_v2 = vadd.f32 -1.4531521, %v577_v61  ;;  %v1559_v36 = vpop.eup %1558  ;;  %v541_v61 = vmul.f32 0.5, %v2206_v26 }
 0x1d3   : > { %v582_v63 = vmul.f32 %v1551_v49, %v578_v57  ;;  %v579_v8 = vadd.f32 -1.4531521, %v575_v3  ;;  %v1561_v45 = vpop.eup %1560 }
 0x1d4   : > { %v588_v1 = vadd.f32 1.4214138, %v584_v59  ;;  %v585_v7 = vmul.f32 %v1553_v55, %v581_v2  ;;  %v1563_v25 = vpop.eup %1562  ;;  %v540_v59 = vmul.f32 0.5, %v2199_v21 }
 0x1d5   : > { %v586_v4 = vadd.f32 1.4214138, %v582_v63  ;;  %v583_v13 = vmul.f32 %v1555_v62, %v579_v8 }
 0x1d6   : > { %v592_v6 = vmul.f32 %v1549_v46, %v588_v1  ;;  %v589_v12 = vadd.f32 1.4214138, %v585_v7 }
 0x1d7   : > { %v590_v9 = vmul.f32 %v1551_v49, %v586_v4  ;;  %v587_v17 = vadd.f32 1.4214138, %v583_v13 }
 0x1d8   : > { %v596_v11 = vadd.f32 -0.28449672, %v592_v6  ;;  %v593_v16 = vmul.f32 %v1553_v55, %v589_v12 }
 0x1d9   : > { %v594_v14 = vadd.f32 -0.28449672, %v590_v9  ;;  %v591_v24 = vmul.f32 %v1555_v62, %v587_v17 }
 0x1da   : > { %v600_v15 = vmul.f32 %v1549_v46, %v596_v11  ;;  %v597_v22 = vadd.f32 -0.28449672, %v593_v16 }
 0x1db   : > { %v598_v19 = vmul.f32 %v1551_v49, %v594_v14  ;;  %v595_v33 = vadd.f32 -0.28449672, %v591_v24 }
 0x1dc   : > { %v604_v20 = vadd.f32 0.2548296, %v600_v15  ;;  %v601_v32 = vmul.f32 %v1553_v55, %v597_v22 }
 0x1dd   : > { %v602_v27 = vadd.f32 0.2548296, %v598_v19  ;;  %v599_v40 = vmul.f32 %v1555_v62, %v595_v33  ;;  %v1862_v33 = vmov 0.0  }
 0x1de   : > { %v608_v29 = vmul.f32 %v1549_v46, %v604_v20  ;;  %v605_v39 = vadd.f32 0.2548296, %v601_v32  ;;  %v552_v46 = vsel %vm548_vm2, 1.0, %v1861_v47  ;;  %v1546_v32 = vld [vmem:[#allocation8 + $0x18] sm:$0xff]   ;;  %1395 = vmatprep.subr.bf16.mxu0 %v1862_v33  ;;  %1399 = vmatprep.mubr.msk.bf16.mxu0 %vm1863_vm8, %v1862_v33 }
 0x1df   : > { %v606_v35 = vmul.f32 %v1551_v49, %v602_v27  ;;  %v603_v44 = vadd.f32 0.2548296, %v599_v40  ;;  %v1545_v27 = vld [vmem:[#allocation8 + $0x10] sm:$0xff]  }
 0x1e0   : > { %v628_v38 = vmul.f32 %v1557_v34, %v608_v29  ;;  %v609_v43 = vmul.f32 %v1553_v55, %v605_v39  ;;  %v553_v55 = vsel %vm549_vm4, 1.0, %v1861_v47 }
 0x1e1   : > { %v626_v41 = vmul.f32 %v1559_v36, %v606_v35  ;;  %v607_v51 = vmul.f32 %v1555_v62, %v603_v44  ;;  %v1324_v36 = vld [vmem:[#allocation10] ss:$0 sm:$0xff] }
 0x1e2   : > { %v632_v42 = vsub.f32 1.0, %v628_v38  ;;  %v629_v49 = vmul.f32 %v1561_v45, %v609_v43 }
 0x1e3   : > { %v630_v48 = vsub.f32 1.0, %v626_v41  ;;  %v627_v28 = vmul.f32 %v1563_v25, %v607_v51 }
 0x1e4   : > { %v636_v50 = vmul.f32 %v632_v42, %v552_v46  ;;  %v633_v54 = vsub.f32 1.0, %v629_v49 }
 0x1e5   : > { %v634_v53 = vmul.f32 %v630_v48, %v550_v52  ;;  %v631_v58 = vsub.f32 1.0, %v627_v28  ;;  %v1547_v28 = vld [vmem:[#allocation11] sm:$0xff]  }
 0x1e6   : > { %v640_v56 = vadd.f32 1.0, %v636_v50  ;;  %v637_v57 = vmul.f32 %v633_v54, %v553_v55 }
 0x1e7   : > { %v638_v30 = vadd.f32 1.0, %v634_v53  ;;  %v635_v63 = vmul.f32 %v631_v58, %v551_v60 }
 0x1e8   : > { %v641_v62 = vadd.f32 1.0, %v637_v57  ;;  %v644_v1 = vmul.f32 %v640_v56, %v540_v59 }
 0x1e9   : > { %v639_v3 = vadd.f32 1.0, %v635_v63  ;;  %v642_v4 = vmul.f32 %v638_v30, %v538_v0 }
 0x1ea   : > { %v645_v2 = vmul.f32 %v641_v62, %v541_v61 }
 0x1eb   : > { %v643_v6 = vmul.f32 %v639_v3, %v539_v37 }
 0x1ec   : > { %v647_v5 = vpack.c.bf16 %v645_v2, %v644_v1 }
 0x1ed   : > { %v646_v7 = vpack.c.bf16 %v643_v6, %v642_v4 }
 0x1ee   : > { %v662_v8 = vshll.u32 %v647_v5, 16  ;;  %v666_v21 = vshrl.u32 %v647_v5, 16  ;;  %v796_v9 = vrot.slane %v647_v5, 1 }
 0x1ef   : > { %v655_v10 = vshrl.u32 %v646_v7, 16  ;;  %v657_v11 = vshll.u32 %v646_v7, 16  ;;  %v795_v26 = vrot.slane %v646_v7, 1 }
 0x1f0   : > { %v871_v12 = vrot.slane %v662_v8, 2  ;;  %v870_v13 = vrot.slane %v666_v21, 1  ;;  %v664_v23 = vrot.slane %v662_v8, 1 }
 0x1f1   : > { %v659_v14 = vrot.slane %v657_v11, 1  ;;  %v867_v15 = vrot.slane %v655_v10, 1  ;;  %v868_v16 = vrot.slane %v657_v11, 2  ;;  %v797_v31 = vsel %vm794_vm6, %v795_v26, %v796_v9 }
 0x1f2   : > { %v872_v17 = vor.u32 %v871_v12, %v870_v13  ;;  %v668_v24 = vor.u32 %v666_v21, %v664_v23 }
 0x1f3   : > { %v660_v19 = vor.u32 %v659_v14, %v655_v10  ;;  %v869_v20 = vor.u32 %v868_v16, %v867_v15 }
 0x1f5   : > { %v665_v22 = vsel %vm391_vm0, %v660_v19, %v664_v23  ;;  %v873_v29 = vsel %vm866_vm7, %v869_v20, %v872_v17  ;;  %vm1137_vm0 = vcmask 261120  }
 0x1f6   : > { %1373 = vmatprep.mubr.msk.bf16.mxu1 %vm413_vm1, %v665_v22 }
 0x1f7   : > { %1374 = vmatmul.mubr.msk.bf16.vlgmr.msra.gmra.mrb[0].mxu1 %vm413_vm1, %v668_v24 }
 0x1f8   : > { %1378 = vmatpush3.bf16.msra.mxu1 %v2196_v18  ;;  %1379 = vmatprep.mubr.msk.bf16.mxu1 %vm413_vm1, %v646_v7  ;;  %v949_v18 = vlaneseq }
 0x1f9   : > { %1383 = vmatprep.subr.bf16.mxu1 %v1545_v27 }
 0x1fa   : > { %v950_v34 = vshrl.u32 %v949_v18, 7  ;;  %v953_v40 = vand.u32 127, %v949_v18 }
 0x1fc   : > { %v951_v35 = vadd.s32 8, %v950_v34  ;;  %v954_v41 = vmul.u32 2, %v950_v34 }
 0x1fe   : > { %v955_v42 = vmul.u32 2, %v951_v35  ;;  %vm956_vm9 = vcmp.eq.s32.totalorder %v953_v40, %v954_v41 }
 0x1ff   : > { %v958_v25 = vsel %vm956_vm9, 1.0, %v1862_v33 }
 0x200   : > { %vm957_vm10 = vcmp.eq.s32.totalorder %v953_v40, %v955_v42 }
 0x201   : > { %v959_v52 = vsel %vm957_vm10, 1.0, %v1862_v33 }
 0x202   : > { %v960_v54 = vpack.c.bf16 %v959_v52, %v958_v25 }
 0x203   : > { %1380 = vmatmul.mubr.msk.bf16.vlgmr.msra.gmra.mrb[0].mxu1 %vm413_vm1, %v647_v5 }
 0x204   : > { %1384 = vmatpush3.bf16.msra.mxu1 %v1545_v27  ;;  %1385 = vmatprep.mubr.msk.bf16.mxu1 %vm413_vm1, %v797_v31 }
 0x205   : > { %1389 = vmatprep.subr.bf16.mxu1 %v1546_v32 }
 0x20f   : > { %1386 = vmatmul.mubr.msk.bf16.vlgmr.msra.gmra.mrb[0].mxu1 %vm413_vm1, %v796_v9 }
 0x210   : > { %1390 = vmatpush3.bf16.msra.mxu1 %v1546_v32  ;;  %1391 = vmatprep.mubr.msk.bf16.mxu1 %vm413_vm1, %v873_v29 }
 0x21b   : > { %1392 = vmatmul.mubr.msk.bf16.vlgmr.msra.gmra.mrb[0].mxu1 %vm413_vm1, %v872_v17 }
 0x2ee   : > { %v1393_v38 = vpop.f32.mrb[0].mxu1 }
 0x2ef   : > { %v920_v39 = vpop.f32.mrb[1].mxu1  ;;  %v947_v44 = vadd.f32 %v1393_v38, %v1324_v36 }
 0x2f0   : > { %v1394_v43 = vpop.f32.mrb[2].mxu1  ;;  %v945_v48 = vadd.f32 %v1324_v36, %v920_v39 }
 0x2f1   : > { %v948_v45 = vadd.f32 %v1394_v43, %v1324_v36  ;;  %v923_v46 = vpop.f32.mrb[3].mxu1 }
 0x2f2   : > { %v946_v50 = vadd.f32 %v1324_v36, %v923_v46 }
 0x2f3   : > { %v962_v49 = vpack.c.bf16 %v948_v45, %v947_v44 }
 0x2f4   : > { %v961_v51 = vpack.c.bf16 %v946_v50, %v945_v48  ;;  %v1326_v50 = vld [vmem:[#allocation13] ss:$0 sm:$0xff] }
 0x2f5   : > { %v969_v53 = vsel %vm967_vm11, %v962_v49, 0 }
 0x2f6   : > { %1396 = vmatpush3.bf16.msra.mxu0 %v961_v51 }
 0x2f7   : > { %1397 = vmatprep.subr.bf16.mxu0 %v1862_v33 }
 0x2fa   : > { %1398 = vmatpush3.bf16.msra.mxu0 %v969_v53 }
 0x2fb   : > { %1403 = vmatprep.subr.bf16.mxu0 %v1862_v33 }
 0x2fd   : > { %1400 = vmatmul.mubr.msk.bf16.vlgmr.msra.gmra.mrb[4].mxu0 %vm963_vm12, %v960_v54 }
 0x2fe   : > { %1405 = vmatprep.mubr.msk.bf16.mxu0 %vm1863_vm8, %v1862_v33  ;;  %1404 = vmatpush3.bf16.msra.mxu0 %v1547_v28 }
 0x3d0   : > { %v1005_v55 = vpop.f32.mrb[4].mxu0 }
 0x3d1   : > { %v1014_v56 = vmul.f32 0.70710677, %v1005_v55  ;;  %v1401_v57 = vpop.f32.mrb[5].mxu0  ;;  %v1012_v42 = vmul.f32 0.5, %v1005_v55 }
 0x3d2   : > { %v1008_v58 = vpop.f32.mrb[6].mxu0 }
 0x3d3   : > { %v1020_v59 = vand.u32 2147483647, %v1014_v56  ;;  %v1015_v60 = vmul.f32 0.70710677, %v1008_v58  ;;  %v1402_v30 = vpop.f32.mrb[7].mxu0  ;;  %vm1016_vm13 = vcmp.ge.f32.partialorder %v1014_v56, 0.0 }
 0x3d4   : > { %v1018_v34 = vsel %vm1016_vm13, 1.0, %v1861_v47  ;;  %v1013_v43 = vmul.f32 0.5, %v1008_v58 }
 0x3d5   : > { %v1022_v61 = vmul.f32 0.3275911, %v1020_v59  ;;  %v1021_v62 = vand.u32 2147483647, %v1015_v60  ;;  %v1048_v2 = vsub.f32 0.0, %v1020_v59  ;;  %vm1017_vm14 = vcmp.ge.f32.partialorder %v1015_v60, 0.0 }
 0x3d6   : > { %v1019_v39 = vsel %vm1017_vm14, 1.0, %v1861_v47 }
 0x3d7   : > { %v1024_v63 = vadd.f32 1.0, %v1022_v61  ;;  %v1023_v0 = vmul.f32 0.3275911, %v1021_v62  ;;  %v1049_v37 = vsub.f32 0.0, %v1021_v62  ;;  %v1050_v4 = vmul.f32 %v1048_v2, %v1020_v59 }
 0x3d9   : > { %1564 = vrcp.f32 %v1024_v63  ;;  %v1025_v1 = vadd.f32 1.0, %v1023_v0  ;;  %v1051_v8 = vmul.f32 %v1049_v37, %v1021_v62  ;;  %v1052_v21 = vmul.f32 1.442695, %v1050_v4 }
 0x3db   : > { %1566 = vrcp.f32 %v1025_v1  ;;  %v1054_v26 = vmul.f32 1.442695, %v1051_v8 }
 0x3dc   : > { %1568 = vpow2.f32 %v1052_v21 }
 0x3dd   : > { %1570 = vpow2.f32 %v1054_v26 }
 0x3e3   : > { %v1565_v3 = vpop.eup %1564 }
 0x3e4   : > { %v1030_v5 = vmul.f32 1.0614054, %v1565_v3 }
 0x3e5   : > { %v1567_v6 = vpop.eup %1566 }
 0x3e6   : > { %v1032_v7 = vadd.f32 -1.4531521, %v1030_v5  ;;  %v1031_v9 = vmul.f32 1.0614054, %v1567_v6  ;;  %v1569_v24 = vpop.eup %1568 }
 0x3e7   : > { %v1571_v33 = vpop.eup %1570 }
 0x3e8   : > { %v1034_v10 = vmul.f32 %v1565_v3, %v1032_v7  ;;  %v1033_v11 = vadd.f32 -1.4531521, %v1031_v9 }
 0x3ea   : > { %v1036_v12 = vadd.f32 1.4214138, %v1034_v10  ;;  %v1035_v13 = vmul.f32 %v1567_v6, %v1033_v11 }
 0x3ec   : > { %v1038_v14 = vmul.f32 %v1565_v3, %v1036_v12  ;;  %v1037_v23 = vadd.f32 1.4214138, %v1035_v13 }
 0x3ee   : > { %v1040_v15 = vadd.f32 -0.28449672, %v1038_v14  ;;  %v1039_v16 = vmul.f32 %v1567_v6, %v1037_v23 }
 0x3f0   : > { %v1042_v31 = vmul.f32 %v1565_v3, %v1040_v15  ;;  %v1041_v17 = vadd.f32 -0.28449672, %v1039_v16 }
 0x3f2   : > { %v1044_v19 = vadd.f32 0.2548296, %v1042_v31  ;;  %v1043_v20 = vmul.f32 %v1567_v6, %v1041_v17 }
 0x3f4   : > { %v1046_v22 = vmul.f32 %v1565_v3, %v1044_v19  ;;  %v1045_v27 = vadd.f32 0.2548296, %v1043_v20 }
 0x3f6   : > { %v1056_v29 = vmul.f32 %v1569_v24, %v1046_v22  ;;  %v1047_v32 = vmul.f32 %v1567_v6, %v1045_v27 }
 0x3f8   : > { %v1058_v18 = vsub.f32 1.0, %v1056_v29  ;;  %v1057_v35 = vmul.f32 %v1571_v33, %v1047_v32 }
 0x3fa   : > { %v1060_v36 = vmul.f32 %v1058_v18, %v1018_v34  ;;  %v1059_v38 = vsub.f32 1.0, %v1057_v35 }
 0x3fc   : > { %v1062_v40 = vadd.f32 1.0, %v1060_v36  ;;  %v1061_v41 = vmul.f32 %v1059_v38, %v1019_v39 }
 0x3fe   : > { %v1063_v44 = vadd.f32 1.0, %v1061_v41  ;;  %v1064_v45 = vmul.f32 %v1062_v40, %v1012_v42 }
 0x400   : > { %v1065_v46 = vmul.f32 %v1063_v44, %v1013_v43 }
 0x402   : > { %v1068_v48 = vpack.c.bf16 %v1065_v46, %v1064_v45 }
 0x404   : > { %1406 = vmatmul.mubr.msk.bf16.vlgmr.msra.gmra.mrb[8].mxu0 %vm413_vm1, %v1068_v48 }
 0x4d7   : > { %v1119_v49 = vpop.f32.mrb[8].mxu0 }
 0x4d8   : > { %v1120_v51 = vadd.f32 %v1326_v50, %v1119_v49  ;;  %v1407_v25 = vpop.f32.mrb[9].mxu0 }
 0x4d9   : > { %v1122_v47 = vpop.f32.mrb[10].mxu0 }
 0x4da   : > { %v1129_v52 = vrot.slane %v1120_v51, 7  ;;  %v1123_v53 = vadd.f32 %v1326_v50, %v1122_v47  ;;  %v1408_v54 = vpop.f32.mrb[11].mxu0 }
 0x4dc   : > { %v1134_v28 = vsel %vm1128_vm15, 0.0, %v1129_v52  ;;  %v1130_v55 = vrot.slane %v1123_v53, 7 }
 0x4dd   : > { %1138 = vst.msk [vmem:[%s377_s28] sm:$0xff] %vm1137_vm0, %v1134_v28 }
 0x4de   : > { %v1131_v56 = vsel %vm1128_vm15, %v1129_v52, %v1130_v55 }
 0x4df   : > { %v1136_v57 = vsel %vm794_vm6, %v1131_v56, 0.0 }
 0x4e0   : > { %1139 = vst.msk [vmem:[%s377_s28 + $0x8] sm:$0xff] %vm1137_vm0, %v1136_v57 }
 0x4e1   : > { %1783 = shalt.err (!%p1780_p8)
}
 0x4e2   : > { %s1784_s22 = scalar_lea.hbm %s2258_s16, 256  ;;  %s1788_s28 = scalar_lea.hbm %s2310_s7, 512 }
 0x4e3   : > { %p1785_p4 = scmp.ne.s32.totalorder %s2258_s16, %s1784_s22  ;;  %p1789_p0 = scmp.lt.u32.totalorder %s2258_s16, %s2310_s7 }
 0x4e4   : > { %p1790_p5 = scmp.lt.u32.totalorder %s1788_s28, %s1784_s22  ;;  %p1792_p6 = scmp.lt.u32.totalorder %s1784_s22, %s2258_s16 }
 0x4e5   : > { %p1786_p10 = pnand %p1785_p4, %p2330_p9 }
 0x4e6   : > { %p1791_p7 = por %p1790_p5, %p1789_p0 }
 0x4e7   : > { %p1787_p11 = pneg %p1786_p10 }
 0x4e8   : > { %p1793_p12 = por %p1792_p6, %p1791_p7 }
 0x4ea   : > { %p1794_p13 = pnand %p1793_p12, %p1787_p11 }
 0x4ec   : > { %1797 = shalt.err (!%p1794_p13)
}
 0x4ed   : > { %s1865_s21 = smov 128   ;;  %s1866_s13 = smov 8  }
 0x4ee   : > { %1451 = dma.vmem_to_hbm [thread:$0]  (%p2330_p9), %s2253_s20, 256, %s2258_s16, %s1141_s17, %s1865_s21, %s1865_s21, %s1866_s13  }
 0x4ef PF: > { %s1169_s30 = sand.u32 1, %s1836_s24   ;;  %p2331_p1 = scmp.ne.s32.totalorder %s2321_s15, 0 }
 0x4f0   : > { %p2332_p3 = scmp.ge.s32.totalorder %s1848_s27, 2  ;;  %s1170_s29 = scalar_lea.sflag [#allocation4], %s1169_s30 }
 0x4f2   : > { %p1477_p2 = pnand %p2332_p3, %p2331_p1 }
 0x4f4   : > { %1831 = dma.done.wait (!%p1477_p2), %s1170_s29, 256  }
 0x4f5   : > { %1833 = vsyncadd (!%p1477_p2), %s1170_s29, 4294967040  ;;  %p23_p8 = scmp.ge.s32.totalorder %s2092_s11, 4   ;;  %s2333_s24 = smov %s1840_s25 }
 0x4f6   : > { %s2334_s25 = smov %s1844_s26  ;;  %s2335_s26 = smov %s2103_s23 }
 0x4f7   : > { %s2336_s27 = smov %s2092_s11  ;;  %25 = sbr.rel (!%p23_p8) target bundleno = 8 (0x8), region = 121 }
 0x4fe   :  { %1175 = vsyncpa [#allocation3], 1 }
 0x4ff   :  { %1177 = vsyncpa [#allocation3 + $0x1], 1 }
 0x500   :  { %1178 = vsyncpa [#allocation6], 1 }
 0x501   :  { %1179 = vsyncpa [#allocation9], 1 }
 0x502   :  { %1180 = vsyncpa [#allocation12], 1 }
 0x503   :  { %1181 = vsyncpa [#allocation4], 1 }
 0x504   :  { %1183 = vsyncpa [#allocation4 + $0x1], 1 }

// kernel: fwd.4
= control target key start
LH: loop header
LB: loop body
LE: loop exit
PB: predicated region body
PF: predicated region fallthrough
CT: control target
= control target key end

     0   :  { %s3901_s0 = inlined_call_operand.hbm [shape: f32[2,16,32], index: 0, kind: input, shape index: {}]   ;;  %s3902_s1 = inlined_call_operand.hbm [shape: bf16[3,32,32], index: 1, kind: input, shape index: {}]   ;;  %s3903_s2 = inlined_call_operand.hbm [shape: f32[1,32], index: 2, kind: input, shape index: {}]   ;;  %s3904_s3 = inlined_call_operand.hbm [shape: bf16[32,32], index: 3, kind: input, shape index: {}]   ;;  %s3905_s4 = inlined_call_operand.hbm [shape: f32[1,32], index: 4, kind: input, shape index: {}]   ;;  %s3906_s5 = inlined_call_operand.hbm [shape: f32[14,32], index: 5, kind: input, shape index: {}]   ;;  %s3907_s6 = inlined_call_operand.hbm [shape: bf16[1,32,96], index: 6, kind: input, shape index: {}]   ;;  %s3908_s7 = inlined_call_operand.hbm [shape: f32[1,1,96], index: 7, kind: input, shape index: {}]   ;;  %s3909_s8 = inlined_call_operand.hbm [shape: bf16[1,32,32], index: 8, kind: input, shape index: {}]   ;;  %s3910_s9 = inlined_call_operand.hbm [shape: f32[1,1,32], index: 9, kind: input, shape index: {}]   ;;  %s3911_s10 = inlined_call_operand.hbm [shape: f32[1,1,32], index: 10, kind: input, shape index: {}]   ;;  %s3912_s11 = inlined_call_operand.hbm [shape: f32[1,1,32], index: 11, kind: input, shape index: {}]   ;;  %s3913_s12 = inlined_call_operand.hbm [shape: bf16[1,32,64], index: 12, kind: input, shape index: {}]   ;;  %s3914_s13 = inlined_call_operand.hbm [shape: f32[1,1,64], index: 13, kind: input, shape index: {}]   ;;  %s3915_s14 = inlined_call_operand.hbm [shape: bf16[1,64,32], index: 14, kind: input, shape index: {}]   ;;  %s3916_s15 = inlined_call_operand.hbm [shape: f32[1,1,32], index: 15, kind: input, shape index: {}]   ;;  %s3917_s16 = inlined_call_operand.hbm [shape: f32[1,1,32], index: 16, kind: input, shape index: {}]   ;;  %s3918_s17 = inlined_call_operand.hbm [shape: f32[1,1,32], index: 17, kind: input, shape index: {}]   ;;  %s3919_s18 = inlined_call_operand.hbm [shape: f32[2,14,32], index: 18, kind: output, shape index: {}]  }
   0x1   :  { %3943 = sst [smem:[#allocation49_spill]] %s3901_s0 }
   0x2   :  { %3944 = sst [smem:[#allocation50_spill]] %s3902_s1 }
   0x3   :  { %3945 = sst [smem:[#allocation51_spill]] %s3903_s2 }
   0x4   :  { %3946 = sst [smem:[#allocation52_spill]] %s3904_s3 }
   0x5   :  { %3947 = sst [smem:[#allocation53_spill]] %s3905_s4 }
   0x6   :  { %3948 = sst [smem:[#allocation54_spill]] %s3906_s5 }
   0x7   :  { %3949 = sst [smem:[#allocation55_spill]] %s3918_s17 }
   0x8   :  { %3950 = sst [smem:[#allocation56_spill]] %s3919_s18 }
   0x9   :  { %23 = vsyncpa [#allocation3], 0 }
   0xa   :  { %25 = vsyncpa [#allocation3 + $0x1], 0 }
   0xb   :  { %26 = vsyncpa [#allocation6], 0 }
   0xc   :  { %27 = vsyncpa [#allocation9], 0 }
   0xd   :  { %28 = vsyncpa [#allocation12], 0 }
   0xe   :  { %29 = vsyncpa [#allocation15], 0 }
   0xf   :  { %30 = vsyncpa [#allocation18], 0 }
  0x10   :  { %31 = vsyncpa [#allocation21], 0 }
  0x11   :  { %32 = vsyncpa [#allocation24], 0 }
  0x12   :  { %33 = vsyncpa [#allocation27], 0 }
  0x13   :  { %34 = vsyncpa [#allocation30], 0 }
  0x14   :  { %35 = vsyncpa [#allocation4], 0 }
  0x15   :  { %37 = vsyncpa [#allocation4 + $0x1], 0  ;;  %s3233_s27 = smov 0   ;;  %s3235_s28 = smov 0  }
  0x16   :  { %s3237_s29 = smov 0   ;;  %s3239_s30 = smov 0  }
  0x17 LB: > { %3951 = sst [smem:[#allocation43_spill]] %s3091_s27  ;;  %s3105_s0 = smov [#allocation5]   ;;  %s3103_s30 = sphi %s3239_s30, %s3628_s30   ;;  %s3099_s29 = sphi %s3237_s29, %s4014_s29   ;;  %s3095_s28 = sphi %s3235_s28, %s4013_s28   ;;  %s3091_s27 = sphi %s3233_s27, %s4010_s27  }
  0x18   : > { %3952 = sst [smem:[#allocation44_spill]] %s3095_s28  ;;  %s469_s19 = sshll.u32 %s3105_s0, 4  ;;  %s3259_s19 = int_to_ptr.vmem [resolvable:$true] %s469_s19 }
  0x19   : > { %3953 = sst [smem:[#allocation45_spill]] %s3099_s29  ;;  %s3254_s1 = sadd.s32 4294967295, %s3103_s30  }
  0x1a   : > { %3954 = sst [smem:[#allocation46_spill]] %s3103_s30  ;;  %p2002_p0 = scmp.ge.s32.totalorder %s3103_s30, 1 }
  0x1b   : > { %3955 = sst [smem:[#allocation47_spill]] %s3254_s1  ;;  %p3938_p1 = scmp.eq.s32.totalorder %s3254_s1, 0 }
  0x1c   : > { %p457_p2 = scmp.lt.s32.totalorder %s3103_s30, 3  ;;  %s3106_s21 = smov [#allocation8]  }
  0x1d   : > { %s493_s22 = sshll.u32 %s3106_s21, 4  ;;  %s3107_s23 = smov [#allocation11]   ;;  %s3274_s22 = int_to_ptr.vmem [resolvable:$true] %s493_s22 }
  0x1e   : > { %p3261_p3 = pnand %p2002_p0, %p457_p2  ;;  %s517_s24 = sshll.u32 %s3107_s23, 4  ;;  %s3276_s24 = int_to_ptr.vmem [resolvable:$true] %s517_s24 }
  0x1f   : > { %s3959_s0 = sld [smem:[#allocation50_spill]] }
  0x20   : > { %s3956_s20 = scalar_select %p3261_p3, 1, 0 }
  0x21   : > { %p2289_p5 = pneg %p3261_p3 }
  0x22   : > { %3957 = sst [smem:[#allocation48_spill]] %s3956_s20 }
  0x23   : > { %p3270_p6 = pnand %p2289_p5, %p3938_p1 }
  0x25   : > { %s2495_s18 = scalar_lea.hbm %s3959_s0, 768  ;;  %p3286_p8 = pneg %p3270_p6 }
  0x26   : > { %p2496_p7 = scmp.ne.s32.totalorder %s3959_s0, %s2495_s18  ;;  %p2502_p11 = scmp.lt.u32.totalorder %s2495_s18, %s3959_s0 }
  0x28   : > { %p2498_p9 = pnand %p3286_p8, %p2496_p7 }
  0x2a   : > { %p2499_p10 = pneg %p2498_p9 }
  0x2c   : > { %p2504_p12 = pnand %p2502_p11, %p2499_p10 }
  0x2e   : > { %2507 = shalt.err (!%p2504_p12)
}
  0x2f   : > { %s2508_s27 = scalar_lea.vmem %s3259_s19, 768  ;;  %p2516_p5 = scmp.lt.s32.totalorder %s3259_s19, %s3259_s19 }
  0x30   : > { %p2509_p13 = scmp.ne.s32.totalorder %s3259_s19, %s2508_s27  ;;  %p2517_p4 = scmp.lt.s32.totalorder %s2508_s27, %s2508_s27 }
  0x32   : > { %p2511_p0 = pnand %p2509_p13, %p3286_p8  ;;  %p2518_p7 = por %p2517_p4, %p2516_p5 }
  0x34   : > { %p2512_p2 = pneg %p2511_p0 }
  0x36   : > { %p2519_p9 = pnand %p2518_p7, %p2512_p2 }
  0x38   : > { %2522 = shalt.err (!%p2519_p9)
}
  0x39   : > { %s3933_s20 = smov 64   ;;  %s3935_s18 = smov 4  }
  0x3a   : > { %2292 = dma.hbm_to_vmem [thread:$0]  (!%p3270_p6), %s3959_s0, 768, %s3259_s19, [#allocation6], %s3933_s20, %s3933_s20, %s3935_s18  }
  0x3b   : > { %s3961_s3 = sld [smem:[#allocation52_spill]] }
  0x41   : > { %s2523_s27 = scalar_lea.hbm %s3961_s3, 256 }
  0x42   : > { %p2524_p4 = scmp.ne.s32.totalorder %s3961_s3, %s2523_s27  ;;  %p2530_p12 = scmp.lt.u32.totalorder %s2523_s27, %s3961_s3 }
  0x44   : > { %p2526_p10 = pnand %p2524_p4, %p3286_p8 }
  0x46   : > { %p2527_p11 = pneg %p2526_p10 }
  0x48   : > { %p2532_p13 = pnand %p2530_p12, %p2527_p11 }
  0x4a   : > { %2535 = shalt.err (!%p2532_p13)
}
  0x4b   : > { %s2536_s19 = scalar_lea.vmem %s3274_s22, 256  ;;  %p2544_p7 = scmp.lt.s32.totalorder %s3274_s22, %s3274_s22 }
  0x4c   : > { %p2537_p0 = scmp.ne.s32.totalorder %s3274_s22, %s2536_s19  ;;  %p2545_p9 = scmp.lt.s32.totalorder %s2536_s19, %s2536_s19 }
  0x4e   : > { %p2539_p2 = pnand %p2537_p0, %p3286_p8  ;;  %p2546_p4 = por %p2545_p9, %p2544_p7 }
  0x50   : > { %p2540_p5 = pneg %p2539_p2 }
  0x52   : > { %p2547_p10 = pnand %p2546_p4, %p2540_p5 }
  0x54   : > { %2550 = shalt.err (!%p2547_p10)
}
  0x55   : > { %2298 = dma.hbm_to_vmem [thread:$0]  (!%p3270_p6), %s3961_s3, 256, %s3274_s22, [#allocation9], %s3933_s20, %s3933_s20, %s3935_s18  }
  0x56   : > { %s3962_s5 = sld [smem:[#allocation54_spill]] }
  0x5c   : > { %s2551_s1 = scalar_lea.hbm %s3962_s5, 256 }
  0x5d   : > { %p2552_p11 = scmp.ne.s32.totalorder %s3962_s5, %s2551_s1  ;;  %p2558_p0 = scmp.lt.u32.totalorder %s2551_s1, %s3962_s5 }
  0x5f   : > { %p2554_p12 = pnand %p2552_p11, %p3286_p8 }
  0x61   : > { %p2555_p13 = pneg %p2554_p12 }
  0x63   : > { %p2560_p2 = pnand %p2558_p0, %p2555_p13 }
  0x65   : > { %2563 = shalt.err (!%p2560_p2)
}
  0x66   : > { %s2564_s22 = scalar_lea.vmem %s3276_s24, 256  ;;  %p2572_p4 = scmp.lt.s32.totalorder %s3276_s24, %s3276_s24 }
  0x67   : > { %p2565_p5 = scmp.ne.s32.totalorder %s3276_s24, %s2564_s22  ;;  %p2573_p10 = scmp.lt.s32.totalorder %s2564_s22, %s2564_s22 }
  0x69   : > { %p2567_p7 = pnand %p2565_p5, %p3286_p8  ;;  %p2574_p11 = por %p2573_p10, %p2572_p4 }
  0x6b   : > { %p2568_p9 = pneg %p2567_p7 }
  0x6d   : > { %p2575_p12 = pnand %p2574_p11, %p2568_p9 }
  0x6f   : > { %2578 = shalt.err (!%p2575_p12)
}
  0x70   : > { %s3940_s19 = smov 128   ;;  %s3941_s17 = smov 8  }
  0x71   : > { %2304 = dma.hbm_to_vmem [thread:$0]  (!%p3270_p6), %s3962_s5, 256, %s3276_s24, [#allocation12], %s3940_s19, %s3940_s19, %s3941_s17  }
  0x72   : > { %s3112_s30 = smov [#allocation14]   ;;  %s3113_s25 = smov [#allocation17]  }
  0x73   : > { %s544_s1 = sshll.u32 %s3112_s30, 4  ;;  %s568_s26 = sshll.u32 %s3113_s25, 4  ;;  %s545_s1 = int_to_ptr.vmem [resolvable:$true] %s544_s1  ;;  %s569_s26 = int_to_ptr.vmem [resolvable:$true] %s568_s26 }
  0x74   : > { %s2579_s22 = scalar_lea.hbm %s3908_s7, 16 }
  0x75   : > { %p2580_p13 = scmp.ne.s32.totalorder %s3908_s7, %s2579_s22  ;;  %p2586_p5 = scmp.lt.u32.totalorder %s2579_s22, %s3908_s7 }
  0x77   : > { %p2582_p0 = pnand %p2580_p13, %p3286_p8 }
  0x79   : > { %p2583_p2 = pneg %p2582_p0 }
  0x7b   : > { %p2588_p7 = pnand %p2586_p5, %p2583_p2 }
  0x7d   : > { %2591 = shalt.err (!%p2588_p7)
}
  0x7e   : > { %s2592_s24 = scalar_lea.vmem %s545_s1, 16  ;;  %s2599_s28 = scalar_lea.vmem %s545_s1, 32 }
  0x7f   : > { %p2593_p9 = scmp.ne.s32.totalorder %s545_s1, %s2592_s24  ;;  %p2600_p11 = scmp.lt.s32.totalorder %s545_s1, %s545_s1 }
  0x80   : > { %p2601_p12 = scmp.lt.s32.totalorder %s2599_s28, %s2592_s24 }
  0x81   : > { %p2595_p4 = pnand %p2593_p9, %p3286_p8 }
  0x82   : > { %p2602_p1 = por %p2601_p12, %p2600_p11 }
  0x83   : > { %p2596_p10 = pneg %p2595_p4 }
  0x85   : > { %p2603_p3 = pnand %p2602_p1, %p2596_p10 }
  0x87   : > { %2606 = shalt.err (!%p2603_p3)
}
  0x88   : > { %2310 = dma.hbm_to_vmem [thread:$0]  (!%p3270_p6), %s3908_s7, 16, %s545_s1, [#allocation15]  }
  0x89   : > { %s2607_s29 = scalar_lea.hbm %s3910_s9, 16 }
  0x8a   : > { %p2608_p13 = scmp.ne.s32.totalorder %s3910_s9, %s2607_s29  ;;  %p2614_p3 = scmp.lt.u32.totalorder %s2607_s29, %s3910_s9 }
  0x8c   : > { %p2610_p0 = pnand %p2608_p13, %p3286_p8 }
  0x8e   : > { %p2611_p1 = pneg %p2610_p0 }
  0x90   : > { %p2616_p2 = pnand %p2614_p3, %p2611_p1 }
  0x92   : > { %2619 = shalt.err (!%p2616_p2)
}
  0x93   : > { %s2620_s22 = scalar_lea.vmem %s569_s26, 16  ;;  %s2627_s1 = scalar_lea.vmem %s569_s26, 32 }
  0x94   : > { %p2621_p5 = scmp.ne.s32.totalorder %s569_s26, %s2620_s22  ;;  %p2628_p4 = scmp.lt.s32.totalorder %s569_s26, %s569_s26 }
  0x95   : > { %p2629_p10 = scmp.lt.s32.totalorder %s2627_s1, %s2620_s22 }
  0x96   : > { %p2623_p7 = pnand %p2621_p5, %p3286_p8 }
  0x97   : > { %p2630_p11 = por %p2629_p10, %p2628_p4 }
  0x98   : > { %p2624_p9 = pneg %p2623_p7 }
  0x9a   : > { %p2631_p12 = pnand %p2630_p11, %p2624_p9 }
  0x9c   : > { %2634 = shalt.err (!%p2631_p12)
}
  0x9d   : > { %2316 = dma.hbm_to_vmem [thread:$0]  (!%p3270_p6), %s3910_s9, 16, %s569_s26, [#allocation18]  }
  0x9e   : > { %s3114_s20 = smov [#allocation20]   ;;  %s3115_s3 = smov [#allocation23]  }
  0x9f   : > { %s590_s18 = sshll.u32 %s3114_s20, 4  ;;  %s614_s0 = sshll.u32 %s3115_s3, 4  ;;  %s591_s18 = int_to_ptr.vmem [resolvable:$true] %s590_s18  ;;  %s615_s0 = int_to_ptr.vmem [resolvable:$true] %s614_s0 }
  0xa0   : > { %s2635_s25 = scalar_lea.hbm %s3912_s11, 16 }
  0xa1   : > { %p2636_p13 = scmp.ne.s32.totalorder %s3912_s11, %s2635_s25  ;;  %p2642_p3 = scmp.lt.u32.totalorder %s2635_s25, %s3912_s11 }
  0xa3   : > { %p2638_p0 = pnand %p2636_p13, %p3286_p8 }
  0xa5   : > { %p2639_p1 = pneg %p2638_p0 }
  0xa7   : > { %p2644_p2 = pnand %p2642_p3, %p2639_p1 }
  0xa9   : > { %2647 = shalt.err (!%p2644_p2)
}
  0xaa   : > { %s2648_s26 = scalar_lea.vmem %s591_s18, 16  ;;  %s2655_s24 = scalar_lea.vmem %s591_s18, 32 }
  0xab   : > { %p2649_p5 = scmp.ne.s32.totalorder %s591_s18, %s2648_s26  ;;  %p2656_p4 = scmp.lt.s32.totalorder %s591_s18, %s591_s18 }
  0xac   : > { %p2657_p10 = scmp.lt.s32.totalorder %s2655_s24, %s2648_s26 }
  0xad   : > { %p2651_p7 = pnand %p2649_p5, %p3286_p8 }
  0xae   : > { %p2658_p11 = por %p2657_p10, %p2656_p4 }
  0xaf   : > { %p2652_p9 = pneg %p2651_p7 }
  0xb1   : > { %p2659_p12 = pnand %p2658_p11, %p2652_p9 }
  0xb3   : > { %2662 = shalt.err (!%p2659_p12)
}
  0xb4   : > { %2322 = dma.hbm_to_vmem [thread:$0]  (!%p3270_p6), %s3912_s11, 16, %s591_s18, [#allocation21]  }
  0xb5   : > { %s2663_s30 = scalar_lea.hbm %s3914_s13, 16 }
  0xb6   : > { %p2664_p13 = scmp.ne.s32.totalorder %s3914_s13, %s2663_s30  ;;  %p2670_p3 = scmp.lt.u32.totalorder %s2663_s30, %s3914_s13 }
  0xb8   : > { %p2666_p0 = pnand %p2664_p13, %p3286_p8 }
  0xba   : > { %p2667_p1 = pneg %p2666_p0 }
  0xbc   : > { %p2672_p2 = pnand %p2670_p3, %p2667_p1 }
  0xbe   : > { %2675 = shalt.err (!%p2672_p2)
}
  0xbf   : > { %s2676_s1 = scalar_lea.vmem %s615_s0, 16  ;;  %s2683_s18 = scalar_lea.vmem %s615_s0, 32 }
  0xc0   : > { %p2677_p5 = scmp.ne.s32.totalorder %s615_s0, %s2676_s1  ;;  %p2684_p4 = scmp.lt.s32.totalorder %s615_s0, %s615_s0 }
  0xc1   : > { %p2685_p10 = scmp.lt.s32.totalorder %s2683_s18, %s2676_s1 }
  0xc2   : > { %p2679_p7 = pnand %p2677_p5, %p3286_p8 }
  0xc3   : > { %p2686_p11 = por %p2685_p10, %p2684_p4 }
  0xc4   : > { %p2680_p9 = pneg %p2679_p7 }
  0xc6   : > { %p2687_p12 = pnand %p2686_p11, %p2680_p9 }
  0xc8   : > { %2690 = shalt.err (!%p2687_p12)
}
  0xc9   : > { %2328 = dma.hbm_to_vmem [thread:$0]  (!%p3270_p6), %s3914_s13, 16, %s615_s0, [#allocation24]  }
  0xca   : > { %s3116_s28 = smov [#allocation26]   ;;  %s3117_s3 = smov [#allocation7]  }
  0xcb   : > { %s638_s20 = sshll.u32 %s3116_s28, 4  ;;  %s483_s29 = sshll.u32 %s3117_s3, 4  ;;  %s639_s20 = int_to_ptr.vmem [resolvable:$true] %s638_s20  ;;  %s484_s29 = int_to_ptr.vmem [resolvable:$true] %s483_s29 }
  0xcc   : > { %s2691_s23 = scalar_lea.hbm %s3916_s15, 16 }
  0xcd   : > { %p2692_p13 = scmp.ne.s32.totalorder %s3916_s15, %s2691_s23  ;;  %p2698_p3 = scmp.lt.u32.totalorder %s2691_s23, %s3916_s15 }
  0xcf   : > { %p2694_p0 = pnand %p2692_p13, %p3286_p8 }
  0xd1   : > { %p2695_p1 = pneg %p2694_p0 }
  0xd3   : > { %p2700_p2 = pnand %p2698_p3, %p2695_p1 }
  0xd5   : > { %2703 = shalt.err (!%p2700_p2)
}
  0xd6   : > { %s2704_s0 = scalar_lea.vmem %s639_s20, 16  ;;  %s2711_s26 = scalar_lea.vmem %s639_s20, 32 }
  0xd7   : > { %p2705_p5 = scmp.ne.s32.totalorder %s639_s20, %s2704_s0  ;;  %p2712_p4 = scmp.lt.s32.totalorder %s639_s20, %s639_s20 }
  0xd8   : > { %p2713_p10 = scmp.lt.s32.totalorder %s2711_s26, %s2704_s0 }
  0xd9   : > { %p2707_p7 = pnand %p2705_p5, %p3286_p8 }
  0xda   : > { %p2714_p11 = por %p2713_p10, %p2712_p4 }
  0xdb   : > { %p2708_p9 = pneg %p2707_p7 }
  0xdd   : > { %p2715_p12 = pnand %p2714_p11, %p2708_p9 }
  0xdf   : > { %2718 = shalt.err (!%p2715_p12)
}
  0xe0   : > { %2334 = dma.hbm_to_vmem [thread:$0]  (!%p3270_p6), %s3916_s15, 16, %s639_s20, [#allocation27]  }
  0xe1   : > { %s3963_s25 = sld [smem:[#allocation51_spill]] }
  0xe7   : > { %s2719_s23 = scalar_lea.hbm %s3963_s25, 16 }
  0xe8   : > { %p2720_p13 = scmp.ne.s32.totalorder %s3963_s25, %s2719_s23  ;;  %p2726_p3 = scmp.lt.u32.totalorder %s2719_s23, %s3963_s25 }
  0xea   : > { %p2722_p0 = pnand %p2720_p13, %p3286_p8 }
  0xec   : > { %p2723_p1 = pneg %p2722_p0 }
  0xee   : > { %p2728_p2 = pnand %p2726_p3, %p2723_p1 }
  0xf0   : > { %2731 = shalt.err (!%p2728_p2)
}
  0xf1   : > { %s2732_s0 = scalar_lea.vmem %s484_s29, 16  ;;  %s2739_s20 = scalar_lea.vmem %s484_s29, 32 }
  0xf2   : > { %p2733_p5 = scmp.ne.s32.totalorder %s484_s29, %s2732_s0  ;;  %p2740_p4 = scmp.lt.s32.totalorder %s484_s29, %s484_s29 }
  0xf3   : > { %p2741_p10 = scmp.lt.s32.totalorder %s2739_s20, %s2732_s0 }
  0xf4   : > { %p2735_p7 = pnand %p2733_p5, %p3286_p8 }
  0xf5   : > { %p2742_p11 = por %p2741_p10, %p2740_p4 }
  0xf6   : > { %p2736_p9 = pneg %p2735_p7 }
  0xf8   : > { %p2743_p12 = pnand %p2742_p11, %p2736_p9 }
  0xfa   : > { %2746 = shalt.err (!%p2743_p12)
}
  0xfb   : > { %2295 = dma.hbm_to_vmem [thread:$0]  (!%p3270_p6), %s3963_s25, 16, %s484_s29, [#allocation6]  }
  0xfc   : > { %s3118_s28 = smov [#allocation10]   ;;  %s3119_s30 = smov [#allocation13]  }
  0xfd   : > { %s507_s3 = sshll.u32 %s3118_s28, 4  ;;  %s530_s23 = sshll.u32 %s3119_s30, 4  ;;  %s508_s3 = int_to_ptr.vmem [resolvable:$true] %s507_s3  ;;  %s531_s23 = int_to_ptr.vmem [resolvable:$true] %s530_s23 }
  0xfe   : > { %s3964_s4 = sld [smem:[#allocation53_spill]] }
 0x104   : > { %s2747_s1 = scalar_lea.hbm %s3964_s4, 16 }
 0x105   : > { %p2748_p13 = scmp.ne.s32.totalorder %s3964_s4, %s2747_s1  ;;  %p2754_p3 = scmp.lt.u32.totalorder %s2747_s1, %s3964_s4 }
 0x107   : > { %p2750_p0 = pnand %p2748_p13, %p3286_p8 }
 0x109   : > { %p2751_p1 = pneg %p2750_p0 }
 0x10b   : > { %p2756_p2 = pnand %p2754_p3, %p2751_p1 }
 0x10d   : > { %2759 = shalt.err (!%p2756_p2)
}
 0x10e   : > { %s2760_s29 = scalar_lea.vmem %s508_s3, 16  ;;  %s2767_s24 = scalar_lea.vmem %s508_s3, 32 }
 0x10f   : > { %p2761_p5 = scmp.ne.s32.totalorder %s508_s3, %s2760_s29  ;;  %p2768_p4 = scmp.lt.s32.totalorder %s508_s3, %s508_s3 }
 0x110   : > { %p2769_p10 = scmp.lt.s32.totalorder %s2767_s24, %s2760_s29 }
 0x111   : > { %p2763_p7 = pnand %p2761_p5, %p3286_p8 }
 0x112   : > { %p2770_p11 = por %p2769_p10, %p2768_p4 }
 0x113   : > { %p2764_p9 = pneg %p2763_p7 }
 0x115   : > { %p2771_p12 = pnand %p2770_p11, %p2764_p9 }
 0x117   : > { %2774 = shalt.err (!%p2771_p12)
}
 0x118   : > { %2301 = dma.hbm_to_vmem [thread:$0]  (!%p3270_p6), %s3964_s4, 16, %s508_s3, [#allocation9]  }
 0x119   : > { %s2775_s1 = scalar_lea.hbm %s3907_s6, 256 }
 0x11a   : > { %p2776_p13 = scmp.ne.s32.totalorder %s3907_s6, %s2775_s1  ;;  %p2782_p3 = scmp.lt.u32.totalorder %s2775_s1, %s3907_s6 }
 0x11c   : > { %p2778_p0 = pnand %p2776_p13, %p3286_p8 }
 0x11e   : > { %p2779_p1 = pneg %p2778_p0 }
 0x120   : > { %p2784_p2 = pnand %p2782_p3, %p2779_p1 }
 0x122   : > { %2787 = shalt.err (!%p2784_p2)
}
 0x123   : > { %s2788_s29 = scalar_lea.vmem %s531_s23, 256  ;;  %p2796_p4 = scmp.lt.s32.totalorder %s531_s23, %s531_s23 }
 0x124   : > { %p2789_p5 = scmp.ne.s32.totalorder %s531_s23, %s2788_s29  ;;  %p2797_p10 = scmp.lt.s32.totalorder %s2788_s29, %s2788_s29 }
 0x126   : > { %p2791_p7 = pnand %p2789_p5, %p3286_p8  ;;  %p2798_p11 = por %p2797_p10, %p2796_p4 }
 0x128   : > { %p2792_p9 = pneg %p2791_p7 }
 0x12a   : > { %p2799_p12 = pnand %p2798_p11, %p2792_p9 }
 0x12c   : > { %2802 = shalt.err (!%p2799_p12)
}
 0x12d   : > { %s3965_s3 = smov 4   ;;  %s3966_s24 = smov 64  }
 0x12e   : > { %2307 = dma.hbm_to_vmem [thread:$0]  (!%p3270_p6), %s3907_s6, 256, %s531_s23, [#allocation12], %s3966_s24, %s3966_s24, %s3965_s3  }
 0x12f   : > { %s3120_s27 = smov [#allocation16]   ;;  %s3121_s1 = smov [#allocation19]  }
 0x130   : > { %s554_s22 = sshll.u32 %s3120_s27, 4  ;;  %s579_s18 = sshll.u32 %s3121_s1, 4  ;;  %s555_s22 = int_to_ptr.vmem [resolvable:$true] %s554_s22  ;;  %s580_s18 = int_to_ptr.vmem [resolvable:$true] %s579_s18 }
 0x131   : > { %s2803_s26 = scalar_lea.hbm %s3909_s8, 256 }
 0x132   : > { %p2804_p13 = scmp.ne.s32.totalorder %s3909_s8, %s2803_s26  ;;  %p2810_p3 = scmp.lt.u32.totalorder %s2803_s26, %s3909_s8 }
 0x134   : > { %p2806_p0 = pnand %p2804_p13, %p3286_p8 }
 0x136   : > { %p2807_p1 = pneg %p2806_p0 }
 0x138   : > { %p2812_p2 = pnand %p2810_p3, %p2807_p1 }
 0x13a   : > { %2815 = shalt.err (!%p2812_p2)
}
 0x13b   : > { %s2816_s23 = scalar_lea.vmem %s555_s22, 256  ;;  %p2824_p4 = scmp.lt.s32.totalorder %s555_s22, %s555_s22 }
 0x13c   : > { %p2817_p5 = scmp.ne.s32.totalorder %s555_s22, %s2816_s23  ;;  %p2825_p10 = scmp.lt.s32.totalorder %s2816_s23, %s2816_s23 }
 0x13e   : > { %p2819_p7 = pnand %p2817_p5, %p3286_p8  ;;  %p2826_p11 = por %p2825_p10, %p2824_p4 }
 0x140   : > { %p2820_p9 = pneg %p2819_p7 }
 0x142   : > { %p2827_p12 = pnand %p2826_p11, %p2820_p9 }
 0x144   : > { %2830 = shalt.err (!%p2827_p12)
}
 0x145   : > { %2313 = dma.hbm_to_vmem [thread:$0]  (!%p3270_p6), %s3909_s8, 256, %s555_s22, [#allocation15], %s3966_s24, %s3966_s24, %s3965_s3  }
 0x146   : > { %s2831_s1 = scalar_lea.hbm %s3911_s10, 16 }
 0x147   : > { %p2832_p13 = scmp.ne.s32.totalorder %s3911_s10, %s2831_s1  ;;  %p2838_p3 = scmp.lt.u32.totalorder %s2831_s1, %s3911_s10 }
 0x149   : > { %p2834_p0 = pnand %p2832_p13, %p3286_p8 }
 0x14b   : > { %p2835_p1 = pneg %p2834_p0 }
 0x14d   : > { %p2840_p2 = pnand %p2838_p3, %p2835_p1 }
 0x14f   : > { %2843 = shalt.err (!%p2840_p2)
}
 0x150   : > { %s2844_s28 = scalar_lea.vmem %s580_s18, 16  ;;  %s2851_s22 = scalar_lea.vmem %s580_s18, 32 }
 0x151   : > { %p2845_p5 = scmp.ne.s32.totalorder %s580_s18, %s2844_s28  ;;  %p2852_p4 = scmp.lt.s32.totalorder %s580_s18, %s580_s18 }
 0x152   : > { %p2853_p10 = scmp.lt.s32.totalorder %s2851_s22, %s2844_s28 }
 0x153   : > { %p2847_p7 = pnand %p2845_p5, %p3286_p8 }
 0x154   : > { %p2854_p11 = por %p2853_p10, %p2852_p4 }
 0x155   : > { %p2848_p9 = pneg %p2847_p7 }
 0x157   : > { %p2855_p12 = pnand %p2854_p11, %p2848_p9 }
 0x159   : > { %2858 = shalt.err (!%p2855_p12)
}
 0x15a   : > { %2319 = dma.hbm_to_vmem [thread:$0]  (!%p3270_p6), %s3911_s10, 16, %s580_s18, [#allocation18]  }
 0x15b   : > { %s3122_s17 = smov [#allocation22]   ;;  %s3123_s27 = smov [#allocation25]  }
 0x15c   : > { %s600_s30 = sshll.u32 %s3122_s17, 4  ;;  %s624_s1 = sshll.u32 %s3123_s27, 4  ;;  %s601_s30 = int_to_ptr.vmem [resolvable:$true] %s600_s30  ;;  %s625_s1 = int_to_ptr.vmem [resolvable:$true] %s624_s1 }
 0x15d   : > { %s2859_s26 = scalar_lea.hbm %s3913_s12, 256 }
 0x15e   : > { %p2860_p13 = scmp.ne.s32.totalorder %s3913_s12, %s2859_s26  ;;  %p2866_p3 = scmp.lt.u32.totalorder %s2859_s26, %s3913_s12 }
 0x160   : > { %p2862_p0 = pnand %p2860_p13, %p3286_p8 }
 0x162   : > { %p2863_p1 = pneg %p2862_p0 }
 0x164   : > { %p2868_p2 = pnand %p2866_p3, %p2863_p1 }
 0x166   : > { %2871 = shalt.err (!%p2868_p2)
}
 0x167   : > { %s2872_s18 = scalar_lea.vmem %s601_s30, 256  ;;  %p2880_p4 = scmp.lt.s32.totalorder %s601_s30, %s601_s30 }
 0x168   : > { %p2873_p5 = scmp.ne.s32.totalorder %s601_s30, %s2872_s18  ;;  %p2881_p10 = scmp.lt.s32.totalorder %s2872_s18, %s2872_s18 }
 0x16a   : > { %p2875_p7 = pnand %p2873_p5, %p3286_p8  ;;  %p2882_p11 = por %p2881_p10, %p2880_p4 }
 0x16c   : > { %p2876_p9 = pneg %p2875_p7 }
 0x16e   : > { %p2883_p12 = pnand %p2882_p11, %p2876_p9 }
 0x170   : > { %2886 = shalt.err (!%p2883_p12)
}
 0x171   : > { %2325 = dma.hbm_to_vmem [thread:$0]  (!%p3270_p6), %s3913_s12, 256, %s601_s30, [#allocation21], %s3966_s24, %s3966_s24, %s3965_s3  }
 0x172   : > { %s2887_s20 = scalar_lea.hbm %s3915_s14, 512 }
 0x173   : > { %p2888_p13 = scmp.ne.s32.totalorder %s3915_s14, %s2887_s20  ;;  %p2894_p3 = scmp.lt.u32.totalorder %s2887_s20, %s3915_s14 }
 0x175   : > { %p2890_p0 = pnand %p2888_p13, %p3286_p8 }
 0x177   : > { %p2891_p1 = pneg %p2890_p0 }
 0x179   : > { %p2896_p2 = pnand %p2894_p3, %p2891_p1 }
 0x17b   : > { %2899 = shalt.err (!%p2896_p2)
}
 0x17c   : > { %s2900_s23 = scalar_lea.vmem %s625_s1, 512  ;;  %p2908_p4 = scmp.lt.s32.totalorder %s625_s1, %s625_s1 }
 0x17d   : > { %p2901_p5 = scmp.ne.s32.totalorder %s625_s1, %s2900_s23  ;;  %p2909_p10 = scmp.lt.s32.totalorder %s2900_s23, %s2900_s23 }
 0x17f   : > { %p2903_p7 = pnand %p2901_p5, %p3286_p8  ;;  %p2910_p11 = por %p2909_p10, %p2908_p4 }
 0x181   : > { %p2904_p9 = pneg %p2903_p7 }
 0x183   : > { %p2911_p12 = pnand %p2910_p11, %p2904_p9 }
 0x185   : > { %2914 = shalt.err (!%p2911_p12)
}
 0x186   : > { %2331 = dma.hbm_to_vmem [thread:$0]  (!%p3270_p6), %s3915_s14, 512, %s625_s1, [#allocation24], %s3966_s24, %s3966_s24, %s3965_s3  }
 0x187   : > { %s3124_s19 = smov [#allocation28]   ;;  %s3125_s27 = smov [#allocation29]  }
 0x188   : > { %s649_s17 = sshll.u32 %s3124_s19, 4  ;;  %s660_s0 = sshll.u32 %s3125_s27, 4  ;;  %s650_s17 = int_to_ptr.vmem [resolvable:$true] %s649_s17  ;;  %s661_s0 = int_to_ptr.vmem [resolvable:$true] %s660_s0 }
 0x189   : > { %s2915_s29 = scalar_lea.hbm %s3917_s16, 16 }
 0x18a   : > { %p2916_p13 = scmp.ne.s32.totalorder %s3917_s16, %s2915_s29  ;;  %p2922_p3 = scmp.lt.u32.totalorder %s2915_s29, %s3917_s16 }
 0x18c   : > { %p2918_p0 = pnand %p2916_p13, %p3286_p8 }
 0x18e   : > { %p2919_p1 = pneg %p2918_p0 }
 0x190   : > { %p2924_p2 = pnand %p2922_p3, %p2919_p1 }
 0x192   : > { %2927 = shalt.err (!%p2924_p2)
}
 0x193   : > { %s2928_s3 = scalar_lea.vmem %s650_s17, 16  ;;  %s2935_s24 = scalar_lea.vmem %s650_s17, 32 }
 0x194   : > { %p2929_p5 = scmp.ne.s32.totalorder %s650_s17, %s2928_s3  ;;  %p2936_p4 = scmp.lt.s32.totalorder %s650_s17, %s650_s17 }
 0x195   : > { %p2937_p10 = scmp.lt.s32.totalorder %s2935_s24, %s2928_s3 }
 0x196   : > { %p2931_p7 = pnand %p2929_p5, %p3286_p8 }
 0x197   : > { %p2938_p11 = por %p2937_p10, %p2936_p4 }
 0x198   : > { %p2932_p9 = pneg %p2931_p7 }
 0x19a   : > { %p2939_p12 = pnand %p2938_p11, %p2932_p9 }
 0x19c   : > { %2942 = shalt.err (!%p2939_p12)
}
 0x19d   : > { %2337 = dma.hbm_to_vmem [thread:$0]  (!%p3270_p6), %s3917_s16, 16, %s650_s17, [#allocation27]  }
 0x19e   : > { %s3967_s20 = sld [smem:[#allocation55_spill]] }
 0x1a4   : > { %s2943_s26 = scalar_lea.hbm %s3967_s20, 16 }
 0x1a5   : > { %p2944_p13 = scmp.ne.s32.totalorder %s3967_s20, %s2943_s26  ;;  %p2950_p3 = scmp.lt.u32.totalorder %s2943_s26, %s3967_s20 }
 0x1a7   : > { %p2946_p0 = pnand %p2944_p13, %p3286_p8 }
 0x1a9   : > { %p2947_p1 = pneg %p2946_p0 }
 0x1ab   : > { %p2952_p2 = pnand %p2950_p3, %p2947_p1 }
 0x1ad   : > { %2955 = shalt.err (!%p2952_p2)
}
 0x1ae   : > { %s2956_s30 = scalar_lea.vmem %s661_s0, 16  ;;  %s2963_s17 = scalar_lea.vmem %s661_s0, 32 }
 0x1af   : > { %p2957_p5 = scmp.ne.s32.totalorder %s661_s0, %s2956_s30  ;;  %p2964_p4 = scmp.lt.s32.totalorder %s661_s0, %s661_s0 }
 0x1b0   : > { %p2965_p10 = scmp.lt.s32.totalorder %s2963_s17, %s2956_s30 }
 0x1b1   : > { %p2959_p7 = pnand %p2957_p5, %p3286_p8 }
 0x1b2   : > { %p2966_p11 = por %p2965_p10, %p2964_p4 }
 0x1b3   : > { %p2960_p9 = pneg %p2959_p7 }
 0x1b5   : > { %p2967_p12 = pnand %p2966_p11, %p2960_p9 }
 0x1b7   : > { %2970 = shalt.err (!%p2967_p12)
}
 0x1b8   : > { %s3968_s1 = sld [smem:[#allocation46_spill]]  ;;  %s3969_s18 = sld [smem:[#allocation45_spill]] }
 0x1b9   : > { %s3970_s19 = sld [smem:[#allocation44_spill]]  ;;  %s3971_s21 = sld [smem:[#allocation43_spill]] }
 0x1ba   : > { %s3972_s27 = sld [smem:[#allocation47_spill]] }
 0x1bb   : > { %2340 = dma.hbm_to_vmem [thread:$0]  (!%p3270_p6), %s3967_s20, 16, %s661_s0, [#allocation30]  }
 0x1be   : > { %s2001_s26 = sadd.s32 4294967294, %s3968_s1   ;;  %s3628_s30 = sadd.s32 1, %s3968_s1  }
 0x1bf   : > { %s50_s2 = sadd.s32 1, %s3969_s18  ;;  %s47_s29 = ssub.s32 %s3968_s1, %s3628_s30 }
 0x1c0   : > { %p57_p8 = scmp.ne.s32.totalorder %s3969_s18, %s3970_s19  ;;  %p48_p13 = scmp.eq.s32.totalorder %s47_s29, 0 }
 0x1c1   : > { %p58_p0 = scmp.eq.s32.totalorder %s3968_s1, 0  ;;  %p63_p1 = scmp.ne.s32.totalorder %s3970_s19, %s3971_s21 }
 0x1c2   : > { %p444_p3 = scmp.eq.s32.totalorder %s3972_s27, 1  ;;  %p3973_p5 = scmp.eq.s32.totalorder %s3972_s27, 0 }
 0x1c3   : > { %s3640_s28 = scalar_select %p48_p13, %s3969_s18, %s50_s2  }
 0x1c4   : > { %p59_p2 = por %p58_p0, %p57_p8  ;;  %p3644_p7 = por %p3973_p5, %p63_p1 }
 0x1c5   : > { %p3648_p6 = por %p444_p3, %p57_p8  ;;  %p450_p9 = scmp.eq.s32.totalorder %s2001_s26, 1 }
 0x1c6   : > { %p2366_p4 = scmp.lt.s32.totalorder %s3968_s1, 2  ;;  %s671_s23 = sand.u32 1, %s3969_s18  }
 0x1c7   : > { %s3975_s0 = scalar_select %p3648_p6, 1, 0 }
 0x1c8   : > { %p3654_p10 = por %p450_p9, %p63_p1  ;;  %s2021_s3 = sshll.u32 %s671_s23, 4 }
 0x1c9   : > { %s2089_s24 = sshll.u32 %s3968_s1, 8  ;;  %s3977_s27 = sld [smem:[#allocation49_spill]] }
 0x1ca   : > { %s3976_s17 = scalar_select %p3654_p10, 1, 0 }
 0x1cb   : > { %s675_s4 = scalar_lea.vmem [#allocation2], %s2021_s3  ;;  %p3664_p11 = pnand %p2366_p4, %p59_p2 }
 0x1cc   : > { %s682_s5 = sshll.u32 %s675_s4, 4  ;;  %s3670_s1 = scalar_lea.sflag [#allocation3], %s671_s23  ;;  %s3668_s5 = int_to_ptr.vmem [resolvable:$true] %s682_s5 }
 0x1cd   : > { %p2973_p8 = pneg %p3664_p11 }
 0x1cf   : > { %s3978_s2 = smov %s3977_s27  ;;  %s3662_s29 = scalar_lea.hbm %s3977_s27, %s2089_s24 }
 0x1d0   : > { %s2971_s18 = scalar_lea.hbm %s3662_s29, 256  ;;  %s2976_s24 = scalar_lea.hbm %s3978_s2, 512 }
 0x1d1   : > { %p2972_p12 = scmp.ne.s32.totalorder %s3662_s29, %s2971_s18  ;;  %p2977_p1 = scmp.lt.u32.totalorder %s3662_s29, %s3978_s2 }
 0x1d2   : > { %p2978_p3 = scmp.lt.u32.totalorder %s2976_s24, %s2971_s18  ;;  %p2980_p5 = scmp.lt.u32.totalorder %s2971_s18, %s3662_s29 }
 0x1d3   : > { %p2974_p13 = pnand %p2973_p8, %p2972_p12 }
 0x1d4   : > { %p2979_p2 = por %p2978_p3, %p2977_p1 }
 0x1d5   : > { %p2975_p0 = pneg %p2974_p13 }
 0x1d6   : > { %p2981_p9 = por %p2980_p5, %p2979_p2 }
 0x1d8   : > { %p2982_p4 = pnand %p2981_p9, %p2975_p0 }
 0x1da   : > { %2985 = shalt.err (!%p2982_p4)
}
 0x1db   : > { %s2986_s23 = scalar_lea.vmem %s3668_s5, 256  ;;  %s3126_s27 = smov [#allocation2]  }
 0x1dc   : > { %p2987_p12 = scmp.ne.s32.totalorder %s3668_s5, %s2986_s23  ;;  %s2991_s3 = sshll.u32 %s3126_s27, 4  ;;  %s2992_s3 = int_to_ptr.vmem [resolvable:$false] %s2991_s3 }
 0x1dd   : > { %s2993_s4 = scalar_lea.vmem %s2992_s3, 512  ;;  %p2994_p6 = scmp.lt.s32.totalorder %s3668_s5, %s2992_s3 }
 0x1de   : > { %p2989_p13 = pnand %p2987_p12, %p2973_p8  ;;  %p2995_p1 = scmp.lt.s32.totalorder %s2993_s4, %s2986_s23 }
 0x1e0   : > { %p2990_p10 = pneg %p2989_p13  ;;  %p2996_p3 = por %p2995_p1, %p2994_p6 }
 0x1e2   : > { %p2997_p2 = pnand %p2996_p3, %p2990_p10 }
 0x1e4   : > { %3000 = shalt.err (!%p2997_p2)
}
 0x1e5   : > { %s3980_s18 = smov 8   ;;  %s3981_s24 = smov 128  }
 0x1e6   : > { %2344 = dma.hbm_to_vmem [thread:$0]  (!%p3664_p11), %s3662_s29, 256, %s3668_s5, %s3670_s1, %s3981_s24, %s3981_s24, %s3980_s18  }
 0x1e7   : > { %s3982_s19 = sld [smem:[#allocation48_spill]] }
 0x1ed   : > { %p3983_p8 = scmp.ne.s32.totalorder %s3982_s19, 0 }
 0x1ee   : > { %s3984_s21 = sld [smem:[#allocation44_spill]] (!%p3983_p8) }
 0x1ef   : > { %694 = sbr.rel (%p3983_p8) target bundleno = 3517 (0xdbd), region = 92 }
 0x1f4   : > { %s3704_s27 = sand.u32 (!%p3983_p8), 1, %s3984_s21  }
 0x1f5   : > { %s2025_s23 = sshll.u32 (!%p3983_p8), %s3704_s27, 4  ;;  %s697_s3 = scalar_lea.sflag (!%p3983_p8), [#allocation3], %s3704_s27 }
 0x1f6   : > { %s3710_s26 = scalar_lea.vmem [#allocation2], %s2025_s23 }
 0x1f7   : > { %3046 = dma.done.wait (%p3644_p7), %s697_s3, 256  }
 0x1f8   : > { %3048 = vsyncadd (%p3644_p7), %s697_s3, 4294967040  ;;  %s3985_s5 = sld [smem:[#allocation47_spill]] }
 0x1fe   : > { %p3986_p6 = scmp.eq.s32.totalorder %s3985_s5, 0 }
 0x200   : > { %3050 = dma.done.wait (%p3986_p6), [#allocation6], 784   ;;  %p3987_p10 = pmov %p3986_p6 }
 0x201   : > { %p3988_p11 = pmov %p3986_p6 }
 0x202   : > { %3052 = vsyncadd (%p3987_p10), [#allocation6], 4294966512 }
 0x203   : > { %3054 = dma.done.wait (%p3988_p11), [#allocation9], 272   ;;  %p3989_p0 = pmov %p3986_p6 }
 0x205   : > { %3056 = vsyncadd (%p3989_p0), [#allocation9], 4294967024  ;;  %p3990_p5 = pmov %p3989_p0 }
 0x206   : > { %p3991_p9 = pmov %p3989_p0 }
 0x207   : > { %3058 = dma.done.wait (%p3990_p5), [#allocation12], 512  }
 0x208   : > { %3060 = vsyncadd (%p3991_p9), [#allocation12], 4294966784  ;;  %p3992_p7 = pmov %p3989_p0 }
 0x209   : > { %p3993_p4 = pmov %p3989_p0 }
 0x20a   : > { %3062 = dma.done.wait (%p3992_p7), [#allocation15], 272  }
 0x20b   : > { %3064 = vsyncadd (%p3993_p4), [#allocation15], 4294967024  ;;  %p3994_p12 = pmov %p3989_p0 }
 0x20c   : > { %p3995_p13 = pmov %p3989_p0 }
 0x20d   : > { %3066 = dma.done.wait (%p3994_p12), [#allocation18], 32  }
 0x20e   : > { %3068 = vsyncadd (%p3995_p13), [#allocation18], 4294967264  ;;  %p3996_p1 = pmov %p3989_p0 }
 0x20f   : > { %p3997_p3 = pmov %p3989_p0 }
 0x210   : > { %3070 = dma.done.wait (%p3996_p1), [#allocation21], 272  }
 0x211   : > { %3072 = vsyncadd (%p3997_p3), [#allocation21], 4294967024  ;;  %p3998_p2 = pmov %p3989_p0 }
 0x212   : > { %p3999_p8 = pmov %p3989_p0 }
 0x213   : > { %3074 = dma.done.wait (%p3998_p2), [#allocation24], 528  }
 0x214   : > { %3076 = vsyncadd (%p3999_p8), [#allocation24], 4294966768  ;;  %p4000_p6 = pmov %p3989_p0 }
 0x215   : > { %p4001_p10 = pmov %p3989_p0 }
 0x216   : > { %3078 = dma.done.wait (%p4000_p6), [#allocation27], 32  }
 0x217   : > { %3080 = vsyncadd (%p4001_p10), [#allocation27], 4294967264  ;;  %p4002_p11 = pmov %p3989_p0 }
 0x219   : > { %3082 = dma.done.wait (%p4002_p11), [#allocation30], 16  }
 0x21a   : > { %3084 = vsyncadd (%p3989_p0), [#allocation30], 4294967280  ;;  %v3127_v0 = vmov 0.0   ;;  %vm3128_vm0 = vmmov 0   ;;  %v2453_v1 = vld [vmem:[#allocation5 + $0x10] sm:$0xff]   ;;  %v2454_v2 = vld [vmem:[#allocation5] sm:$0xff]  }
 0x21b   : > { %2125 = vmatprep.subr.bf16.mxu0 %v3127_v0  ;;  %2133 = vmatprep.subr.bf16.mxu1 %v3127_v0  ;;  %v2455_v3 = vld [vmem:[#allocation5 + $0x18] sm:$0xff]   ;;  %v2456_v4 = vld [vmem:[#allocation5 + $0x8] sm:$0xff]   ;;  %v822_v5 = vld [vmem:[%s3710_s26] sm:$0xff]  ;;  %vm854_vm1 = vcmask 261120   ;;  %s3129_s22 = smov 112   ;;  %s3130_s29 = smov 96  }
 0x21c   : > { %2129 = vmatprep.mubr.msk.bf16.mxu0 %vm3128_vm0, %v3127_v0  ;;  %2137 = vmatprep.mubr.msk.bf16.mxu1 %vm3128_vm0, %v3127_v0  ;;  %v823_v6 = vld [vmem:[%s3710_s26 + $0x8] sm:$0xff]  ;;  %v2457_v11 = vld [vmem:[#allocation5 + $0x20] sm:$0xff]   ;;  %v2053_v27 = vld [vmem:[#allocation7] ss:$0 sm:$0xff]  ;;  %s3131_s1 = smov 80   ;;  %vm1178_vm2 = vcmask 130048  }
 0x21d   : > { %2126 = vmatpush3.bf16.msra.mxu0 %v2453_v1  ;;  %2134 = vmatpush3.bf16.msra.mxu1 %v2454_v2  ;;  %v824_v7 = vpack.c.bf16 %v823_v6, %v822_v5  ;;  %v2458_v13 = vld [vmem:[#allocation5 + $0x28] sm:$0xff]   ;;  %v2459_v15 = vld [vmem:[#allocation8] sm:$0xff]   ;;  %v2460_v16 = vld [vmem:[#allocation8 + $0x8] sm:$0xff]   ;;  %vm1228_vm3 = vcmask 113664   ;;  %vm1232_vm4 = vcmask 111616   ;;  %s3132_s4 = smov 48  }
 0x21e   : > { %2127 = vmatprep.subr.bf16.mxu0 %v3127_v0  ;;  %2135 = vmatprep.subr.bf16.mxu1 %v3127_v0  ;;  %v2461_v39 = vld [vmem:[#allocation13] sm:$0xff]   ;;  %v2462_v40 = vld [vmem:[#allocation13 + $0x8] sm:$0xff]   ;;  %v1097_v45 = vld [vmem:[#allocation11] sm:$0xff]  ;;  %s3133_s18 = smov 64   ;;  %vm1258_vm5 = vcmask 1046528   ;;  %s3134_s24 = smov 16  }
 0x21f   : > { %v836_v8 = vshrl.u32 %v824_v7, 16  ;;  %v838_v9 = vshll.u32 %v824_v7, 16  ;;  %v960_v14 = vrot.slane %v824_v7, 1  ;;  %v2054_v41 = vld [vmem:[#allocation10] ss:$0 sm:$0xff]  ;;  %vm1508_vm6 = vcmask 259072  }
 0x220   : > { %v1098_v47 = vld [vmem:[#allocation11 + $0x8] sm:$0x3f]  ;;  %v2058_v53 = vld [vmem:[#allocation14] ss:$0 sm:$0xff]  ;;  %vm1659_vm7 = vcmask 523264   ;;  %s2090_s19 = sshll.u32 %s3985_s5, 8 }
 0x221   : > { %2128 = vmatpush3.bf16.msra.mxu0 %v2455_v3  ;;  %2136 = vmatpush3.bf16.msra.mxu1 %v2456_v4  ;;  %v840_v10 = vrot.slane %v838_v9, 1  ;;  %s820_s21 = scalar_lea.vmem [#allocation31], %s2025_s23  ;;  %s1753_s5 = scalar_lea.sflag [#allocation4], %s3704_s27 }
 0x222   : > { %2141 = vmatprep.subr.bf16.mxu0 %v3127_v0  ;;  %2149 = vmatprep.subr.bf16.mxu1 %v3127_v0  ;;  %s1766_s3 = sshll.u32 %s820_s21, 4  ;;  %p4005_p9 = scmp.ne.s32.totalorder %s3975_s0, 0  ;;  %s3855_s3 = int_to_ptr.vmem [resolvable:$true] %s1766_s3 }
 0x223   : > { %v841_v12 = vor.u32 %v840_v10, %v836_v8  ;;  %s3001_s23 = scalar_lea.vmem %s3855_s3, 256 }
 0x224   : > { %2138 = vmatmul.mubr.msk.bf16.vlgmr.msra.gmra.mrb[0].mxu1 %vm854_vm1, %v824_v7  ;;  %p3002_p5 = scmp.ne.s32.totalorder %s3855_s3, %s3001_s23 }
 0x225   : > { %2153 = vmatprep.mubr.msk.bf16.mxu1 %vm3128_vm0, %v3127_v0  ;;  %2130 = vmatmul.mubr.msk.bf16.vlgmr.msra.gmra.mrb[0].mxu0 %vm854_vm1, %v841_v12 }
 0x226   : > { %2142 = vmatpush3.bf16.msra.mxu0 %v2457_v11  ;;  %2145 = vmatprep.mubr.msk.bf16.mxu0 %vm3128_vm0, %v3127_v0  ;;  %p3003_p7 = pnand %p3002_p5, %p4005_p9 }
 0x227   : > { %2143 = vmatprep.subr.bf16.mxu0 %v3127_v0  ;;  %2150 = vmatpush3.bf16.msra.mxu1 %v2459_v15 }
 0x228   : > { %2151 = vmatprep.subr.bf16.mxu1 %v3127_v0  ;;  %p3004_p4 = pneg %p3003_p7 }
 0x22a   : > { %2144 = vmatpush3.bf16.msra.mxu0 %v2458_v13 }
 0x22b   : > { %2157 = vmatprep.subr.bf16.mxu0 %v3127_v0  ;;  %2152 = vmatpush3.bf16.msra.mxu1 %v2460_v16 }
 0x22c   : > { %2165 = vmatprep.subr.bf16.mxu1 %v3127_v0 }
 0x22d   : > { %2146 = vmatmul.mubr.msk.bf16.vlgmr.msra.gmra.mrb[4].mxu0 %vm854_vm1, %v960_v14 }
 0x22e   : > { %2161 = vmatprep.mubr.msk.bf16.mxu0 %vm3128_vm0, %v3127_v0  ;;  %2158 = vmatpush3.bf16.msra.mxu0 %v2461_v39 }
 0x22f   : > { %2159 = vmatprep.subr.bf16.mxu0 %v3127_v0 }
 0x232   : > { %2160 = vmatpush3.bf16.msra.mxu0 %v2462_v40 }
 0x233   : > { %2171 = vmatprep.subr.bf16.mxu0 %v3127_v0 }
 0x2f7   : > { %v947_v17 = vpop.f32.mrb[0].mxu1 }
 0x2f8   : > { %v2139_v18 = vpop.f32.mrb[1].mxu1  ;;  %v892_v20 = vpop.f32.mrb[0].mxu0 }
 0x2f9   : > { %v950_v19 = vpop.f32.mrb[2].mxu1  ;;  %v948_v22 = vadd.f32 %v947_v17, %v892_v20  ;;  %v2131_v23 = vpop.f32.mrb[1].mxu0 }
 0x2fa   : > { %v2140_v21 = vpop.f32.mrb[3].mxu1  ;;  %v895_v24 = vpop.f32.mrb[2].mxu0 }
 0x2fb   : > { %v951_v25 = vadd.f32 %v950_v19, %v895_v24  ;;  %v2132_v26 = vpop.f32.mrb[3].mxu0 }
 0x300   : > { %v1010_v28 = vpop.f32.mrb[4].mxu0 }
 0x301   : > { %v1017_v29 = vadd.f32 %v1010_v28, %v948_v22  ;;  %v2147_v30 = vpop.f32.mrb[5].mxu0 }
 0x302   : > { %v1013_v31 = vpop.f32.mrb[6].mxu0 }
 0x303   : > { %v1025_v32 = vadd.f32 %v2053_v27, %v1017_v29  ;;  %v1018_v33 = vadd.f32 %v1013_v31, %v951_v25  ;;  %v2148_v34 = vpop.f32.mrb[7].mxu0 }
 0x305   : > { %v1026_v35 = vadd.f32 %v2053_v27, %v1018_v33  ;;  %v1027_v36 = vmax.f32 %v1025_v32, 0.0 }
 0x307   : > { %v1028_v37 = vmax.f32 %v1026_v35, 0.0 }
 0x309   : > { %v1033_v38 = vpack.c.bf16 %v1028_v37, %v1027_v36 }
 0x30b   : > { %2154 = vmatmul.mubr.msk.bf16.vlgmr.msra.gmra.mrb[4].mxu1 %vm854_vm1, %v1033_v38 }
 0x30c   : > { %2167 = vmatprep.mubr.msk.bf16.mxu1 %vm3128_vm0, %v3127_v0 }
 0x3de   : > { %v1090_v42 = vpop.f32.mrb[4].mxu1 }
 0x3df   : > { %v1091_v43 = vadd.f32 %v2054_v41, %v1090_v42  ;;  %v2155_v44 = vpop.f32.mrb[5].mxu1 }
 0x3e0   : > { %v1093_v46 = vpop.f32.mrb[6].mxu1 }
 0x3e1   : > { %v1094_v48 = vadd.f32 %v2054_v41, %v1093_v46  ;;  %v2156_v49 = vpop.f32.mrb[7].mxu1  ;;  %v3782_v50 = vadd.f32 %v1097_v45, %v1091_v43 }
 0x3e3   : > { %v3784_v51 = vadd.f32 %v1098_v47, %v1094_v48 }
 0x3e5   : > { %v1105_v52 = vpack.c.bf16 %v3784_v51, %v3782_v50 }
 0x3e7   : > { %2162 = vmatmul.mubr.msk.bf16.vlgmr.msra.gmra.mrb[8].mxu0 %vm854_vm1, %v1105_v52 }
 0x3e8   : > { %2173 = vmatprep.mubr.msk.bf16.mxu0 %vm3128_vm0, %v3127_v0 }
 0x4ba   : > { %v1162_v54 = vpop.f32.mrb[8].mxu0 }
 0x4bb   : > { %v2163_v55 = vpop.f32.mrb[9].mxu0  ;;  %v1163_v57 = vadd.f32 %v2058_v53, %v1162_v54 }
 0x4bc   : > { %v1165_v56 = vpop.f32.mrb[10].mxu0 }
 0x4bd   : > { %v1166_v58 = vadd.f32 %v2058_v53, %v1165_v56  ;;  %v2164_v59 = vpop.f32.mrb[11].mxu0 }
 0x4be   : > { %v2463_v59 = vld [vmem:[#allocation16] sm:$0xff]  }
 0x4bf   : > { %v3791_v60 = vpack.c.bf16 %v1166_v58, %v1163_v57 }
 0x4c1   : > { %1303 = vrot.lane.b32.xlu1 %v3791_v60, %s3129_s22  ;;  %1176 = vrot.lane.b32.xlu0 %v3791_v60, %s3130_s29  ;;  %s4003_s29 = sld [smem:[#allocation56_spill]] }
 0x4c5   : > { %1305 = vrot.lane.b32.xlu0 %v3791_v60, %s3131_s1 }
 0x4c7   : > { %s4004_s1 = smov %s4003_s29 }
 0x533   : > { %v1177_v61 = vpop.permute.xlu0 %1176  ;;  %v1304_v2 = vpop.permute.xlu1 %1303 }
 0x534   : > { %v1183_v62 = vsel %vm1178_vm2, %v1177_v61, 0 }
 0x535   : > { %2166 = vmatpush3.bf16.xpose.msra.mxu1 %v1183_v62  ;;  %v2464_v62 = vld [vmem:[#allocation16 + $0x8] sm:$0xff]  }
 0x536   : > { %2177 = vmatprep.subr.bf16.mxu1 %v3127_v0 }
 0x537   : > { %v1306_v63 = vpop.permute.xlu0 %1305 }
 0x538   : > { %v1311_v1 = vsel %vm1178_vm2, %v1306_v63, 0 }
 0x53c   : > { %2168 = vmatmul.mubr.msk.bf16.vlgmr.msra.gmra.mrb[8].mxu1 %vm1178_vm2, %v3791_v60 }
 0x53d   : > { %2178 = vmatpush3.bf16.xpose.msra.mxu1 %v1311_v1  ;;  %2179 = vmatprep.mubr.msk.bf16.mxu1 %vm3128_vm0, %v3127_v0 }
 0x53e   : > { %2189 = vmatprep.subr.bf16.mxu1 %v3127_v0 }
 0x544   : > { %2180 = vmatmul.mubr.msk.bf16.vlgmr.msra.gmra.mrb[12].mxu1 %vm1178_vm2, %v1304_v2 }
 0x545   : > { %2193 = vmatprep.mubr.msk.bf16.mxu1 %vm3128_vm0, %v3127_v0  ;;  %2190 = vmatpush3.bf16.msra.mxu1 %v2463_v59 }
 0x546   : > { %2191 = vmatprep.subr.bf16.mxu1 %v3127_v0 }
 0x549   : > { %2192 = vmatpush3.bf16.msra.mxu1 %v2464_v62 }
 0x54a   : > { %2205 = vmatprep.subr.bf16.mxu1 %v3127_v0 }
 0x60f   : > { %v1219_v3 = vpop.f32.mrb[8].mxu1 }
 0x610   : > { %v1226_v4 = vmul.f32 0.25, %v1219_v3  ;;  %v2169_v5 = vpop.f32.mrb[9].mxu1 }
 0x611   : > { %v1222_v6 = vpop.f32.mrb[10].mxu1 }
 0x612   : > { %v1227_v7 = vmul.f32 0.25, %v1222_v6  ;;  %v2170_v8 = vpop.f32.mrb[11].mxu1  ;;  %v1229_v9 = vsel %vm1228_vm3, %v1226_v4, -inf }
 0x613   : > { %1230 = vmax.xlane.f32.xlu1 %v1229_v9 }
 0x614   : > { %v1233_v10 = vsel %vm1232_vm4, %v1227_v7, -inf }
 0x615   : > { %1234 = vmax.xlane.f32.xlu0 %v1233_v10 }
 0x617   : > { %v1347_v11 = vpop.f32.mrb[12].mxu1 }
 0x618   : > { %v1354_v12 = vmul.f32 0.25, %v1347_v11  ;;  %v2181_v13 = vpop.f32.mrb[13].mxu1 }
 0x619   : > { %v1350_v14 = vpop.f32.mrb[14].mxu1  ;;  %v2066_v13 = vld [vmem:[#allocation17] ss:$0 sm:$0xff] }
 0x61a   : > { %v1355_v15 = vmul.f32 0.25, %v1350_v14  ;;  %v2182_v16 = vpop.f32.mrb[15].mxu1  ;;  %v1356_v17 = vsel %vm1228_vm3, %v1354_v12, -inf }
 0x61b   : > { %1357 = vmax.xlane.f32.xlu0 %v1356_v17 }
 0x61c   : > { %v1359_v18 = vsel %vm1232_vm4, %v1355_v15, -inf }
 0x61d   : > { %1360 = vmax.xlane.f32.xlu1 %v1359_v18 }
 0x6a0   : > { %v1231_v19 = vpop.xlane.xlu1 %1230 }
 0x6a1   : > { %v1236_v20 = vsub.f32 %v1226_v4, %v1231_v19 }
 0x6a2   : > { %v1235_v21 = vpop.xlane.xlu0 %1234 }
 0x6a3   : > { %v1238_v22 = vmul.f32 1.442695, %v1236_v20  ;;  %v1237_v23 = vsub.f32 %v1227_v7, %v1235_v21 }
 0x6a5   : > { %2471 = vpow2.f32 %v1238_v22  ;;  %v1240_v24 = vmul.f32 1.442695, %v1237_v23 }
 0x6a7   : > { %2473 = vpow2.f32 %v1240_v24 }
 0x6a8   : > { %v1358_v25 = vpop.xlane.xlu0 %1357 }
 0x6a9   : > { %v1362_v26 = vsub.f32 %v1354_v12, %v1358_v25 }
 0x6aa   : > { %v1361_v27 = vpop.xlane.xlu1 %1360 }
 0x6ab   : > { %v1364_v28 = vmul.f32 1.442695, %v1362_v26  ;;  %v1363_v29 = vsub.f32 %v1355_v15, %v1361_v27 }
 0x6ad   : > { %2475 = vpow2.f32 %v1364_v28  ;;  %v1366_v30 = vmul.f32 1.442695, %v1363_v29 }
 0x6af   : > { %v2472_v31 = vpop.eup %2471  ;;  %2477 = vpow2.f32 %v1366_v30 }
 0x6b0   : > { %v1242_v32 = vsel %vm1228_vm3, %v2472_v31, 0.0 }
 0x6b1   : > { %v2474_v33 = vpop.eup %2473  ;;  %1243 = vadd.xlane.f32.xlu0 %v1242_v32 }
 0x6b2   : > { %v1245_v34 = vsel %vm1232_vm4, %v2474_v33, 0.0 }
 0x6b3   : > { %1246 = vadd.xlane.f32.xlu1 %v1245_v34  ;;  %v2467_v34 = vld [vmem:[#allocation25] sm:$0xff]  }
 0x6b7   : > { %v2476_v35 = vpop.eup %2475 }
 0x6b8   : > { %v1368_v36 = vsel %vm1228_vm3, %v2476_v35, 0.0 }
 0x6b9   : > { %v2478_v37 = vpop.eup %2477  ;;  %1369 = vadd.xlane.f32.xlu0 %v1368_v36 }
 0x6ba   : > { %v1371_v38 = vsel %vm1232_vm4, %v2478_v37, 0.0 }
 0x6bb   : > { %1372 = vadd.xlane.f32.xlu1 %v1371_v38 }
 0x6cc   : > { %1379 = vrot.lane.b32.xlu1 %v3791_v60, %s3132_s4  ;;  %s3853_s4 = scalar_lea.hbm %s4003_s29, %s2090_s19 }
 0x6cf   : > { %1253 = vrot.lane.b32.xlu0 %v3791_v60, %s3133_s18  ;;  %s3135_s18 = smov [#allocation31]  }
 0x73e   : > { %v1244_v39 = vpop.xlane.xlu0 %1243 }
 0x73f   : > { %2479 = vrcp.f32 %v1244_v39 }
 0x740   : > { %v1247_v40 = vpop.xlane.xlu1 %1246 }
 0x741   : > { %2481 = vrcp.f32 %v1247_v40 }
 0x746   : > { %v1370_v41 = vpop.xlane.xlu0 %1369 }
 0x747   : > { %2483 = vrcp.f32 %v1370_v41 }
 0x748   : > { %v1373_v42 = vpop.xlane.xlu1 %1372 }
 0x749   : > { %v2480_v43 = vpop.eup %2479  ;;  %2485 = vrcp.f32 %v1373_v42 }
 0x74a   : > { %v1254_v44 = vpop.permute.xlu0 %1253  ;;  %v1250_v47 = vmul.f32 %v2480_v43, %v2472_v31 }
 0x74b   : > { %v2482_v45 = vpop.eup %2481  ;;  %v1260_v46 = vsel %vm1258_vm5, %v1254_v44, 0  ;;  %v2070_v44 = vld [vmem:[#allocation19] ss:$0 sm:$0xff] }
 0x74c   : > { %v1251_v48 = vmul.f32 %v2482_v45, %v2474_v33  ;;  %2172 = vmatpush3.bf16.msra.mxu0 %v1260_v46  ;;  %v1380_v49 = vpop.permute.xlu1 %1379  ;;  %v2465_v33 = vld [vmem:[#allocation22] sm:$0xff]  }
 0x74d   : > { %2183 = vmatprep.subr.bf16.mxu0 %v3127_v0  ;;  %v1385_v53 = vsel %vm1258_vm5, %v1380_v49, 0 }
 0x74e   : > { %v1252_v52 = vpack.c.bf16 %v1251_v48, %v1250_v47  ;;  %v2071_v48 = vld [vmem:[#allocation20] ss:$0 sm:$0xff] }
 0x750   : > { %2174 = vmatmul.mubr.msk.bf16.vlgmr.msra.gmra.mrb[12].mxu0 %vm1228_vm3, %v1252_v52 }
 0x751   : > { %v2484_v54 = vpop.eup %2483  ;;  %2184 = vmatpush3.bf16.msra.mxu0 %v1385_v53  ;;  %2185 = vmatprep.mubr.msk.bf16.mxu0 %vm3128_vm0, %v3127_v0 }
 0x752   : > { %2197 = vmatprep.subr.bf16.mxu0 %v3127_v0  ;;  %v1376_v56 = vmul.f32 %v2484_v54, %v2476_v35  ;;  %v2468_v35 = vld [vmem:[#allocation25 + $0x8] sm:$0xff]  }
 0x753   : > { %v2486_v55 = vpop.eup %2485 }
 0x754   : > { %v1377_v57 = vmul.f32 %v2486_v55, %v2478_v37  ;;  %v2469_v55 = vld [vmem:[#allocation25 + $0x10] sm:$0xff]  }
 0x756   : > { %v1378_v58 = vpack.c.bf16 %v1377_v57, %v1376_v56  ;;  %v2470_v56 = vld [vmem:[#allocation25 + $0x18] sm:$0xff]  }
 0x757   : > { %v2072_v57 = vld [vmem:[#allocation23] ss:$0 sm:$0xff] }
 0x758   : > { %2186 = vmatmul.mubr.msk.bf16.vlgmr.msra.gmra.mrb[16].mxu0 %vm1228_vm3, %v1378_v58 }
 0x759   : > { %2201 = vmatprep.mubr.msk.bf16.mxu0 %vm3128_vm0, %v3127_v0  ;;  %2198 = vmatpush3.bf16.msra.mxu0 %v2465_v33  ;;  %v2083_v33 = vld [vmem:[#allocation29] ss:$0 sm:$0xff] }
 0x75a   : > { %2199 = vmatprep.subr.bf16.mxu0 %v3127_v0 }
 0x823   : > { %v1296_v60 = vpop.f32.mrb[12].mxu0 }
 0x824   : > { %v2175_v61 = vpop.f32.mrb[13].mxu0 }
 0x825   : > { %v1299_v63 = vpop.f32.mrb[14].mxu0 }
 0x826   : > { %v2176_v1 = vpop.f32.mrb[15].mxu0 }
 0x82b   : > { %v1421_v2 = vpop.f32.mrb[16].mxu0 }
 0x82c   : > { %v2187_v3 = vpop.f32.mrb[17].mxu0 }
 0x82d   : > { %v1424_v4 = vpop.f32.mrb[18].mxu0 }
 0x82e   : > { %v2448_v5 = vpack.i.bf16 %v1424_v4, %v1421_v2  ;;  %v2188_v6 = vpop.f32.mrb[19].mxu0  ;;  %v2076_v4 = vld [vmem:[#allocation26] ss:$0 sm:$0xff] }
 0x830   : > { %2449 = vrot.lane.b32.xlu1 %v2448_v5, %s3134_s24  ;;  %s3005_s24 = sshll.u32 %s3135_s18, 4  ;;  %s3006_s24 = int_to_ptr.vmem [resolvable:$false] %s3005_s24 }
 0x831   : > { %s3007_s19 = scalar_lea.vmem %s3006_s24, 512  ;;  %p3008_p12 = scmp.lt.s32.totalorder %s3855_s3, %s3006_s24 }
 0x832   : > { %p3009_p13 = scmp.lt.s32.totalorder %s3007_s19, %s3001_s23 }
 0x834   : > { %p3010_p1 = por %p3009_p13, %p3008_p12 }
 0x836   : > { %p3011_p3 = pnand %p3010_p1, %p3004_p4 }
 0x8a2   : > { %v2450_v7 = vpop.permute.xlu1 %2449 }
 0x8a3   : > { %v2452_v8 = vunpack.i.h.bf16 %v2450_v7  ;;  %v2451_v9 = vunpack.i.l.bf16 %v2450_v7 }
 0x8a5   : > { %v1437_v10 = vsel %vm1178_vm2, %v1299_v63, %v2452_v8  ;;  %v1436_v11 = vsel %vm1178_vm2, %v1296_v60, %v2451_v9 }
 0x8a6   : > { %v1438_v12 = vpack.c.bf16 %v1437_v10, %v1436_v11 }
 0x8a8   : > { %2194 = vmatmul.mubr.msk.bf16.vlgmr.msra.gmra.mrb[16].mxu1 %vm854_vm1, %v1438_v12 }
 0x8a9   : > { %2213 = vmatprep.mubr.msk.bf16.mxu1 %vm3128_vm0, %v3127_v0  ;;  %2206 = vmatpush3.bf16.msra.mxu1 %v2467_v34 }
 0x8aa   : > { %2207 = vmatprep.subr.bf16.mxu1 %v3127_v0 }
 0x8ad   : > { %2208 = vmatpush3.bf16.msra.mxu1 %v2468_v35 }
 0x8ae   : > { %2209 = vmatprep.subr.bf16.mxu1 %v3127_v0 }
 0x8b1   : > { %2210 = vmatpush3.bf16.msra.mxu1 %v2469_v55 }
 0x8b2   : > { %2211 = vmatprep.subr.bf16.mxu1 %v3127_v0 }
 0x8b5   : > { %2212 = vmatpush3.bf16.msra.mxu1 %v2470_v56 }
 0x97b   : > { %v1494_v14 = vpop.f32.mrb[16].mxu1 }
 0x97c   : > { %v1495_v15 = vadd.f32 %v2066_v13, %v1494_v14  ;;  %v2195_v16 = vpop.f32.mrb[17].mxu1 }
 0x97d   : > { %v1497_v17 = vpop.f32.mrb[18].mxu1 }
 0x97e   : > { %v1498_v18 = vadd.f32 %v2066_v13, %v1497_v17  ;;  %v2196_v19 = vpop.f32.mrb[19].mxu1  ;;  %v1501_v20 = vadd.f32 %v1495_v15, %v3782_v50 }
 0x980   : > { %v1505_v21 = vsel %vm854_vm1, %v1501_v20, 0.0  ;;  %v1502_v22 = vadd.f32 %v1498_v18, %v3784_v51  ;;  %v2466_v51 = vld [vmem:[#allocation22 + $0x8] sm:$0xff]  }
 0x981   : > { %1506 = vadd.xlane.f32.xlu0 %v1505_v21  ;;  %2200 = vmatpush3.bf16.msra.mxu0 %v2466_v51 }
 0x982   : > { %v1509_v23 = vsel %vm1508_vm6, %v1502_v22, 0.0 }
 0x983   : > { %1510 = vadd.xlane.f32.xlu1 %v1509_v23 }
 0xa0e   : > { %v1507_v24 = vpop.xlane.xlu0 %1506 }
 0xa0f   : > { %v1513_v25 = vmul.f32 0.03125, %v1507_v24 }
 0xa10   : > { %v1511_v26 = vpop.xlane.xlu1 %1510 }
 0xa11   : > { %v1515_v27 = vsub.f32 %v1501_v20, %v1513_v25  ;;  %v1514_v28 = vmul.f32 0.03125, %v1511_v26 }
 0xa13   : > { %v1516_v29 = vsub.f32 %v1502_v22, %v1514_v28  ;;  %v1517_v30 = vmul.f32 %v1515_v27, %v1515_v27 }
 0xa15   : > { %v1519_v31 = vsel %vm854_vm1, %v1517_v30, 0.0  ;;  %v1518_v32 = vmul.f32 %v1516_v29, %v1516_v29 }
 0xa16   : > { %1520 = vadd.xlane.f32.xlu0 %v1519_v31  ;;  %v2082_v31 = vld [vmem:[#allocation28] ss:$0 sm:$0xff] }
 0xa17   : > { %v1522_v50 = vsel %vm1508_vm6, %v1518_v32, 0.0 }
 0xa1a   : > { %1523 = vadd.xlane.f32.xlu0 %v1522_v50 }
 0xaa3   : > { %v1521_v36 = vpop.xlane.xlu0 %1520 }
 0xaa4   : > { %v1525_v37 = vmul.f32 0.03125, %v1521_v36 }
 0xaa6   : > { %v1527_v38 = vadd.f32 1e-05, %v1525_v37 }
 0xaa7   : > { %v1524_v39 = vpop.xlane.xlu0 %1523 }
 0xaa8   : > { %2487 = vrsqrt.f32 %v1527_v38  ;;  %v1526_v40 = vmul.f32 0.03125, %v1524_v39 }
 0xaaa   : > { %v1528_v41 = vadd.f32 1e-05, %v1526_v40 }
 0xaac   : > { %2489 = vrsqrt.f32 %v1528_v41 }
 0xab2   : > { %v2488_v42 = vpop.eup %2487 }
 0xab3   : > { %v1531_v43 = vmul.f32 %v2488_v42, %v1515_v27 }
 0xab5   : > { %v1539_v46 = vmul.f32 %v2070_v44, %v1531_v43 }
 0xab6   : > { %v2490_v45 = vpop.eup %2489 }
 0xab7   : > { %v1532_v47 = vmul.f32 %v2490_v45, %v1516_v29  ;;  %v1547_v52 = vadd.f32 %v2071_v48, %v1539_v46 }
 0xab9   : > { %v1540_v49 = vmul.f32 %v2070_v44, %v1532_v47 }
 0xabb   : > { %v1548_v53 = vadd.f32 %v2071_v48, %v1540_v49 }
 0xabd   : > { %v1553_v54 = vpack.c.bf16 %v1548_v53, %v1547_v52 }
 0xabf   : > { %2202 = vmatmul.mubr.msk.bf16.vlgmr.msra.gmra.mrb[20].mxu0 %vm854_vm1, %v1553_v54 }
 0xb92   : > { %v1610_v58 = vpop.f32.mrb[20].mxu0 }
 0xb93   : > { %v1611_v59 = vadd.f32 %v2072_v57, %v1610_v58  ;;  %v2203_v60 = vpop.f32.mrb[21].mxu0 }
 0xb94   : > { %v1613_v61 = vpop.f32.mrb[22].mxu0 }
 0xb95   : > { %v1614_v62 = vadd.f32 %v2072_v57, %v1613_v61  ;;  %v2204_v63 = vpop.f32.mrb[23].mxu0  ;;  %v1617_v1 = vmax.f32 %v1611_v59, 0.0 }
 0xb97   : > { %v1618_v2 = vmax.f32 %v1614_v62, 0.0 }
 0xb99   : > { %v1627_v3 = vpack.c.bf16 %v1618_v2, %v1617_v1 }
 0xb9b   : > { %2214 = vmatmul.mubr.msk.bf16.vlgmr.msra.gmra.mrb[20].mxu1 %vm1659_vm7, %v1627_v3 }
 0xc6e   : > { %v1697_v5 = vpop.f32.mrb[20].mxu1 }
 0xc6f   : > { %v1698_v6 = vadd.f32 %v2076_v4, %v1697_v5  ;;  %v2215_v7 = vpop.f32.mrb[21].mxu1 }
 0xc70   : > { %v1700_v8 = vpop.f32.mrb[22].mxu1 }
 0xc71   : > { %v1701_v0 = vadd.f32 %v2076_v4, %v1700_v8  ;;  %v2216_v9 = vpop.f32.mrb[23].mxu1  ;;  %v1704_v10 = vadd.f32 %v1698_v6, %v1547_v52 }
 0xc73   : > { %v1708_v11 = vsel %vm854_vm1, %v1704_v10, 0.0  ;;  %v1705_v12 = vadd.f32 %v1701_v0, %v1548_v53 }
 0xc74   : > { %1709 = vadd.xlane.f32.xlu1 %v1708_v11 }
 0xc75   : > { %v1711_v13 = vsel %vm1508_vm6, %v1705_v12, 0.0 }
 0xc76   : > { %1712 = vadd.xlane.f32.xlu0 %v1711_v13 }
 0xd01   : > { %v1710_v14 = vpop.xlane.xlu1 %1709 }
 0xd02   : > { %v1714_v15 = vmul.f32 0.03125, %v1710_v14 }
 0xd03   : > { %v1713_v16 = vpop.xlane.xlu0 %1712 }
 0xd04   : > { %v1716_v17 = vsub.f32 %v1704_v10, %v1714_v15  ;;  %v1715_v18 = vmul.f32 0.03125, %v1713_v16 }
 0xd06   : > { %v1717_v19 = vsub.f32 %v1705_v12, %v1715_v18  ;;  %v1718_v20 = vmul.f32 %v1716_v17, %v1716_v17 }
 0xd08   : > { %v1720_v21 = vsel %vm854_vm1, %v1718_v20, 0.0  ;;  %v1719_v22 = vmul.f32 %v1717_v19, %v1717_v19 }
 0xd09   : > { %1721 = vadd.xlane.f32.xlu1 %v1720_v21 }
 0xd0a   : > { %v1723_v23 = vsel %vm1508_vm6, %v1719_v22, 0.0 }
 0xd0b   : > { %1724 = vadd.xlane.f32.xlu0 %v1723_v23 }
 0xd96   : > { %v1722_v24 = vpop.xlane.xlu1 %1721 }
 0xd97   : > { %v1726_v25 = vmul.f32 0.03125, %v1722_v24 }
 0xd98   : > { %v1725_v26 = vpop.xlane.xlu0 %1724 }
 0xd99   : > { %v1728_v27 = vadd.f32 1e-05, %v1726_v25  ;;  %v1727_v28 = vmul.f32 0.03125, %v1725_v26 }
 0xd9b   : > { %2491 = vrsqrt.f32 %v1728_v27  ;;  %v1729_v29 = vadd.f32 1e-05, %v1727_v28 }
 0xd9d   : > { %2493 = vrsqrt.f32 %v1729_v29 }
 0xda5   : > { %v2492_v30 = vpop.eup %2491 }
 0xda6   : > { %v1732_v32 = vmul.f32 %v2492_v30, %v1716_v17 }
 0xda7   : > { %v2494_v50 = vpop.eup %2493 }
 0xda8   : > { %v1740_v51 = vmul.f32 %v2082_v31, %v1732_v32  ;;  %v1733_v34 = vmul.f32 %v2494_v50, %v1717_v19 }
 0xdaa   : > { %v1748_v35 = vadd.f32 %v2083_v33, %v1740_v51  ;;  %v1741_v36 = vmul.f32 %v2082_v31, %v1733_v34 }
 0xdac   : > { %v1749_v37 = vadd.f32 %v2083_v33, %v1741_v36  ;;  %1750 = vst.msk [vmem:[%s820_s21] sm:$0xff] %vm854_vm1, %v1748_v35 }
 0xdae   : > { %1751 = vst.msk [vmem:[%s820_s21 + $0x8] sm:$0x3f] %vm1508_vm6, %v1749_v37 }
 0xdaf   : > { %3014 = shalt.err (!%p3011_p3)
}
 0xdb0   : > { %s3015_s21 = scalar_lea.hbm %s3853_s4, 256  ;;  %s3019_s29 = scalar_lea.hbm %s4004_s1, 512 }
 0xdb1   : > { %p3016_p2 = scmp.ne.s32.totalorder %s3853_s4, %s3015_s21  ;;  %p3020_p10 = scmp.lt.u32.totalorder %s3853_s4, %s4004_s1 }
 0xdb2   : > { %p3021_p11 = scmp.lt.u32.totalorder %s3019_s29, %s3015_s21  ;;  %p3023_p5 = scmp.lt.u32.totalorder %s3015_s21, %s3853_s4 }
 0xdb3   : > { %p3017_p8 = pnand %p3016_p2, %p4005_p9 }
 0xdb4   : > { %p3022_p0 = por %p3021_p11, %p3020_p10 }
 0xdb5   : > { %p3018_p6 = pneg %p3017_p8 }
 0xdb6   : > { %p3024_p7 = por %p3023_p5, %p3022_p0 }
 0xdb8   : > { %p3025_p4 = pnand %p3024_p7, %p3018_p6 }
 0xdba   : > { %3028 = shalt.err (!%p3025_p4)
}
 0xdbb   : > { %s3136_s23 = smov 128   ;;  %s3137_s19 = smov 8  }
 0xdbc   : > { %2287 = dma.vmem_to_hbm [thread:$0]  (%p4005_p9), %s3855_s3, 256, %s3853_s4, %s1753_s5, %s3136_s23, %s3136_s23, %s3137_s19  }
 0xdbd PF: > { %s4006_s26 = sld [smem:[#allocation43_spill]]  ;;  %s4007_s22 = sld [smem:[#allocation46_spill]] }
 0xdbe   : > { %p4008_p12 = scmp.ne.s32.totalorder %s3976_s17, 0 }
 0xdc3   : > { %s1781_s18 = sand.u32 1, %s4006_s26   ;;  %p4009_p13 = scmp.ge.s32.totalorder %s4007_s22, 2 }
 0xdc4   : > { %s1782_s21 = scalar_lea.sflag [#allocation4], %s1781_s18 }
 0xdc5   : > { %p2346_p1 = pnand %p4009_p13, %p4008_p12 }
 0xdc7   : > { %3086 = dma.done.wait (!%p2346_p1), %s1782_s21, 256  }
 0xdc8   : > { %3088 = vsyncadd (!%p2346_p1), %s1782_s21, 4294967040  ;;  %s4010_s27 = sld [smem:[#allocation44_spill]]  ;;  %s4011_s29 = sld [smem:[#allocation45_spill]] }
 0xdc9   : > { %s4012_s24 = smov %s3640_s28  ;;  %p40_p3 = scmp.ge.s32.totalorder %s3628_s30, 4  }
 0xdcb   :  { %42 = sbr.rel (!%p40_p3) target bundleno = 23 (0x17), region = 207 }
 0xdce   : > { %s4013_s28 = smov %s4011_s29  ;;  %s4014_s29 = smov %s4012_s24 }
 0xdd2   :  { %1787 = vsyncpa [#allocation3], 1 }
 0xdd3   :  { %1789 = vsyncpa [#allocation3 + $0x1], 1 }
 0xdd4   :  { %1790 = vsyncpa [#allocation6], 1 }
 0xdd5   :  { %1791 = vsyncpa [#allocation9], 1 }
 0xdd6   :  { %1792 = vsyncpa [#allocation12], 1 }
 0xdd7   :  { %1793 = vsyncpa [#allocation15], 1 }
 0xdd8   :  { %1794 = vsyncpa [#allocation18], 1 }
 0xdd9   :  { %1795 = vsyncpa [#allocation21], 1 }
 0xdda   :  { %1796 = vsyncpa [#allocation24], 1 }
 0xddb   :  { %1797 = vsyncpa [#allocation27], 1 }
 0xddc   :  { %1798 = vsyncpa [#allocation30], 1 }
 0xddd   :  { %1799 = vsyncpa [#allocation4], 1 }
 0xdde   :  { %1801 = vsyncpa [#allocation4 + $0x1], 1 }

// kernel: fwd.5
= control target key start
LH: loop header
LB: loop body
LE: loop exit
PB: predicated region body
PF: predicated region fallthrough
CT: control target
= control target key end

     0   :  { %s5314_s0 = inlined_call_operand.hbm [shape: f32[2,14,32], index: 0, kind: input, shape index: {}]   ;;  %s5315_s1 = inlined_call_operand.hbm [shape: bf16[7,14], index: 1, kind: input, shape index: {}]   ;;  %s5316_s2 = inlined_call_operand.hbm [shape: f32[7,32], index: 2, kind: input, shape index: {}]   ;;  %s5317_s3 = inlined_call_operand.hbm [shape: bf16[1,32,96], index: 3, kind: input, shape index: {}]   ;;  %s5318_s4 = inlined_call_operand.hbm [shape: f32[1,1,96], index: 4, kind: input, shape index: {}]   ;;  %s5319_s5 = inlined_call_operand.hbm [shape: bf16[1,32,32], index: 5, kind: input, shape index: {}]   ;;  %s5320_s6 = inlined_call_operand.hbm [shape: f32[1,1,32], index: 6, kind: input, shape index: {}]   ;;  %s5321_s7 = inlined_call_operand.hbm [shape: f32[1,1,32], index: 7, kind: input, shape index: {}]   ;;  %s5322_s8 = inlined_call_operand.hbm [shape: f32[1,1,32], index: 8, kind: input, shape index: {}]   ;;  %s5323_s9 = inlined_call_operand.hbm [shape: bf16[1,32,32], index: 9, kind: input, shape index: {}]   ;;  %s5324_s10 = inlined_call_operand.hbm [shape: f32[1,1,32], index: 10, kind: input, shape index: {}]   ;;  %s5325_s11 = inlined_call_operand.hbm [shape: bf16[1,32,64], index: 11, kind: input, shape index: {}]   ;;  %s5326_s12 = inlined_call_operand.hbm [shape: f32[1,1,64], index: 12, kind: input, shape index: {}]   ;;  %s5327_s13 = inlined_call_operand.hbm [shape: bf16[1,32,32], index: 13, kind: input, shape index: {}]   ;;  %s5328_s14 = inlined_call_operand.hbm [shape: f32[1,1,32], index: 14, kind: input, shape index: {}]   ;;  %s5329_s15 = inlined_call_operand.hbm [shape: f32[1,1,32], index: 15, kind: input, shape index: {}]   ;;  %s5330_s16 = inlined_call_operand.hbm [shape: f32[1,1,32], index: 16, kind: input, shape index: {}]   ;;  %s5331_s17 = inlined_call_operand.hbm [shape: bf16[1,32,64], index: 17, kind: input, shape index: {}]   ;;  %s5332_s18 = inlined_call_operand.hbm [shape: f32[1,1,64], index: 18, kind: input, shape index: {}]   ;;  %s5333_s19 = inlined_call_operand.hbm [shape: bf16[1,64,32], index: 19, kind: input, shape index: {}]   ;;  %s5334_s20 = inlined_call_operand.hbm [shape: f32[1,1,32], index: 20, kind: input, shape index: {}]   ;;  %s5335_s21 = inlined_call_operand.hbm [shape: f32[1,1,32], index: 21, kind: input, shape index: {}]   ;;  %s5336_s22 = inlined_call_operand.hbm [shape: f32[1,1,32], index: 22, kind: input, shape index: {}]   ;;  %s5337_s23 = inlined_call_operand.hbm [shape: f32[1,32], index: 23, kind: input, shape index: {}]   ;;  %s5338_s24 = inlined_call_operand.hbm [shape: f32[1,32], index: 24, kind: input, shape index: {}]   ;;  %s5339_s25 = inlined_call_operand.hbm [shape: bf16[32,32], index: 25, kind: input, shape index: {}]   ;;  %s5340_s26 = inlined_call_operand.hbm [shape: f32[1,32], index: 26, kind: input, shape index: {}]   ;;  %s5341_s27 = inlined_call_operand.hbm [shape: f32[2,7,32], index: 27, kind: output, shape index: {}]  }
   0x1   :  { %5380 = sst [smem:[#allocation66_spill]] %s5314_s0 }
   0x2   :  { %5381 = sst [smem:[#allocation67_spill]] %s5315_s1 }
   0x3   :  { %5382 = sst [smem:[#allocation68_spill]] %s5316_s2 }
   0x4   :  { %5383 = sst [smem:[#allocation69_spill]] %s5317_s3 }
   0x5   :  { %5384 = sst [smem:[#allocation70_spill]] %s5318_s4 }
   0x6   :  { %5385 = sst [smem:[#allocation71_spill]] %s5319_s5 }
   0x7   :  { %5386 = sst [smem:[#allocation72_spill]] %s5320_s6 }
   0x8   :  { %5387 = sst [smem:[#allocation73_spill]] %s5321_s7 }
   0x9   :  { %5388 = sst [smem:[#allocation74_spill]] %s5322_s8 }
   0xa   :  { %5389 = sst [smem:[#allocation75_spill]] %s5323_s9 }
   0xb   :  { %5390 = sst [smem:[#allocation76_spill]] %s5324_s10 }
   0xc   :  { %5391 = sst [smem:[#allocation77_spill]] %s5325_s11 }
   0xd   :  { %5392 = sst [smem:[#allocation78_spill]] %s5326_s12 }
   0xe   :  { %5393 = sst [smem:[#allocation79_spill]] %s5327_s13 }
   0xf   :  { %5394 = sst [smem:[#allocation80_spill]] %s5336_s22 }
  0x10   :  { %5395 = sst [smem:[#allocation81_spill]] %s5338_s24 }
  0x11   :  { %5396 = sst [smem:[#allocation82_spill]] %s5340_s26 }
  0x12   :  { %5397 = sst [smem:[#allocation83_spill]] %s5341_s27 }
  0x13   :  { %32 = vsyncpa [#allocation3], 0 }
  0x14   :  { %34 = vsyncpa [#allocation3 + $0x1], 0 }
  0x15   :  { %35 = vsyncpa [#allocation6], 0 }
  0x16   :  { %36 = vsyncpa [#allocation9], 0 }
  0x17   :  { %37 = vsyncpa [#allocation12], 0 }
  0x18   :  { %38 = vsyncpa [#allocation15], 0 }
  0x19   :  { %39 = vsyncpa [#allocation18], 0 }
  0x1a   :  { %40 = vsyncpa [#allocation21], 0 }
  0x1b   :  { %41 = vsyncpa [#allocation24], 0 }
  0x1c   :  { %42 = vsyncpa [#allocation27], 0 }
  0x1d   :  { %43 = vsyncpa [#allocation30], 0 }
  0x1e   :  { %44 = vsyncpa [#allocation33], 0 }
  0x1f   :  { %45 = vsyncpa [#allocation36], 0 }
  0x20   :  { %46 = vsyncpa [#allocation39], 0 }
  0x21   :  { %47 = vsyncpa [#allocation42], 0 }
  0x22   :  { %48 = vsyncpa [#allocation4], 0 }
  0x23   :  { %50 = vsyncpa [#allocation4 + $0x1], 0  ;;  %s4445_s7 = smov 0   ;;  %s4447_s4 = smov 0  }
  0x24   :  { %s4449_s8 = smov 0   ;;  %s4451_s30 = smov 0  }
  0x25 LB: > { %5398 = sst [smem:[#allocation60_spill]] %s4249_s7  ;;  %s4263_s9 = smov [#allocation5]   ;;  %s4261_s30 = sphi %s4451_s30, %s4998_s30   ;;  %s4257_s8 = sphi %s4449_s8, %s5474_s8   ;;  %s4253_s4 = sphi %s4447_s4, %s5473_s4   ;;  %s4249_s7 = sphi %s4445_s7, %s5472_s7  }
  0x26   : > { %5399 = sst [smem:[#allocation61_spill]] %s4253_s4  ;;  %s672_s5 = sshll.u32 %s4263_s9, 4  ;;  %s673_s5 = int_to_ptr.vmem [resolvable:$true] %s672_s5 }
  0x27   : > { %5400 = sst [smem:[#allocation62_spill]] %s4257_s8  ;;  %s4466_s28 = sadd.s32 4294967295, %s4261_s30  }
  0x28   : > { %5401 = sst [smem:[#allocation63_spill]] %s4261_s30  ;;  %p2736_p0 = scmp.ge.s32.totalorder %s4261_s30, 1 }
  0x29   : > { %5402 = sst [smem:[#allocation64_spill]] %s4466_s28  ;;  %p5359_p1 = scmp.eq.s32.totalorder %s4466_s28, 0 }
  0x2a   : > { %p659_p2 = scmp.lt.s32.totalorder %s4261_s30, 3  ;;  %s4264_s10 = smov [#allocation8]  }
  0x2b   : > { %s693_s29 = sshll.u32 %s4264_s10, 4  ;;  %s4265_s6 = smov [#allocation11]   ;;  %s4478_s29 = int_to_ptr.vmem [resolvable:$true] %s693_s29 }
  0x2c   : > { %p4471_p3 = pnand %p2736_p0, %p659_p2  ;;  %s717_s11 = sshll.u32 %s4265_s6, 4  ;;  %s4486_s11 = int_to_ptr.vmem [resolvable:$true] %s717_s11 }
  0x2d   : > { %s5406_s9 = sld [smem:[#allocation67_spill]] }
  0x2e   : > { %s5403_s0 = scalar_select %p4471_p3, 1, 0 }
  0x2f   : > { %p3126_p5 = pneg %p4471_p3 }
  0x30   : > { %5404 = sst [smem:[#allocation65_spill]] %s5403_s0 }
  0x31   : > { %p4482_p6 = pnand %p3126_p5, %p5359_p1 }
  0x33   : > { %s3385_s27 = scalar_lea.hbm %s5406_s9, 64  ;;  %p4496_p8 = pneg %p4482_p6 }
  0x34   : > { %p3386_p7 = scmp.ne.s32.totalorder %s5406_s9, %s3385_s27  ;;  %p3392_p11 = scmp.lt.u32.totalorder %s3385_s27, %s5406_s9 }
  0x36   : > { %p3388_p9 = pnand %p4496_p8, %p3386_p7 }
  0x38   : > { %p3389_p10 = pneg %p3388_p9 }
  0x3a   : > { %p3394_p12 = pnand %p3392_p11, %p3389_p10 }
  0x3c   : > { %3397 = shalt.err (!%p3394_p12)
}
  0x3d   : > { %s3398_s2 = scalar_lea.vmem %s673_s5, 64  ;;  %p3406_p5 = scmp.lt.s32.totalorder %s673_s5, %s673_s5 }
  0x3e   : > { %p3399_p13 = scmp.ne.s32.totalorder %s673_s5, %s3398_s2  ;;  %p3407_p4 = scmp.lt.s32.totalorder %s3398_s2, %s3398_s2 }
  0x40   : > { %p3401_p0 = pnand %p3399_p13, %p4496_p8  ;;  %p3408_p1 = por %p3407_p4, %p3406_p5 }
  0x42   : > { %p3402_p2 = pneg %p3401_p0 }
  0x44   : > { %p3409_p3 = pnand %p3408_p1, %p3402_p2 }
  0x46   : > { %3412 = shalt.err (!%p3409_p3)
}
  0x47   : > { %3129 = dma.hbm_to_vmem [thread:$0]  (!%p4482_p6), %s5406_s9, 64, %s673_s5, [#allocation6]  }
  0x48   : > { %s5408_s3 = sld [smem:[#allocation69_spill]] }
  0x4e   : > { %s3413_s6 = scalar_lea.hbm %s5408_s3, 256 }
  0x4f   : > { %p3414_p7 = scmp.ne.s32.totalorder %s5408_s3, %s3413_s6  ;;  %p3420_p1 = scmp.lt.u32.totalorder %s3413_s6, %s5408_s3 }
  0x51   : > { %p3416_p9 = pnand %p3414_p7, %p4496_p8 }
  0x53   : > { %p3417_p4 = pneg %p3416_p9 }
  0x55   : > { %p3422_p3 = pnand %p3420_p1, %p3417_p4 }
  0x57   : > { %3425 = shalt.err (!%p3422_p3)
}
  0x58   : > { %s3426_s5 = scalar_lea.vmem %s4478_s29, 256  ;;  %p3434_p13 = scmp.lt.s32.totalorder %s4478_s29, %s4478_s29 }
  0x59   : > { %p3427_p10 = scmp.ne.s32.totalorder %s4478_s29, %s3426_s5  ;;  %p3435_p0 = scmp.lt.s32.totalorder %s3426_s5, %s3426_s5 }
  0x5b   : > { %p3429_p11 = pnand %p3427_p10, %p4496_p8  ;;  %p3436_p2 = por %p3435_p0, %p3434_p13 }
  0x5d   : > { %p3430_p12 = pneg %p3429_p11 }
  0x5f   : > { %p3437_p5 = pnand %p3436_p2, %p3430_p12 }
  0x61   : > { %3440 = shalt.err (!%p3437_p5)
}
  0x62   : > { %s4266_s4 = smov 64   ;;  %s4267_s8 = smov 4  }
  0x63   : > { %3135 = dma.hbm_to_vmem [thread:$0]  (!%p4482_p6), %s5408_s3, 256, %s4478_s29, [#allocation9], %s4266_s4, %s4266_s4, %s4267_s8  }
  0x64   : > { %s5409_s28 = sld [smem:[#allocation71_spill]] }
  0x6a   : > { %s3441_s6 = scalar_lea.hbm %s5409_s28, 256 }
  0x6b   : > { %p3442_p7 = scmp.ne.s32.totalorder %s5409_s28, %s3441_s6  ;;  %p3448_p1 = scmp.lt.u32.totalorder %s3441_s6, %s5409_s28 }
  0x6d   : > { %p3444_p9 = pnand %p3442_p7, %p4496_p8 }
  0x6f   : > { %p3445_p4 = pneg %p3444_p9 }
  0x71   : > { %p3450_p3 = pnand %p3448_p1, %p3445_p4 }
  0x73   : > { %3453 = shalt.err (!%p3450_p3)
}
  0x74   : > { %s3454_s29 = scalar_lea.vmem %s4486_s11, 256  ;;  %p3462_p13 = scmp.lt.s32.totalorder %s4486_s11, %s4486_s11 }
  0x75   : > { %p3455_p10 = scmp.ne.s32.totalorder %s4486_s11, %s3454_s29  ;;  %p3463_p0 = scmp.lt.s32.totalorder %s3454_s29, %s3454_s29 }
  0x77   : > { %p3457_p11 = pnand %p3455_p10, %p4496_p8  ;;  %p3464_p2 = por %p3463_p0, %p3462_p13 }
  0x79   : > { %p3458_p12 = pneg %p3457_p11 }
  0x7b   : > { %p3465_p5 = pnand %p3464_p2, %p3458_p12 }
  0x7d   : > { %3468 = shalt.err (!%p3465_p5)
}
  0x7e   : > { %3141 = dma.hbm_to_vmem [thread:$0]  (!%p4482_p6), %s5409_s28, 256, %s4486_s11, [#allocation12], %s4266_s4, %s4266_s4, %s4267_s8  }
  0x7f   : > { %s4268_s30 = smov [#allocation14]   ;;  %s4269_s0 = smov [#allocation17]  }
  0x80   : > { %s742_s7 = sshll.u32 %s4268_s30, 4  ;;  %s763_s27 = sshll.u32 %s4269_s0, 4  ;;  %s743_s7 = int_to_ptr.vmem [resolvable:$true] %s742_s7  ;;  %s764_s27 = int_to_ptr.vmem [resolvable:$true] %s763_s27 }
  0x81   : > { %s5410_s5 = sld [smem:[#allocation73_spill]] }
  0x87   : > { %s3469_s29 = scalar_lea.hbm %s5410_s5, 16 }
  0x88   : > { %p3470_p7 = scmp.ne.s32.totalorder %s5410_s5, %s3469_s29  ;;  %p3476_p1 = scmp.lt.u32.totalorder %s3469_s29, %s5410_s5 }
  0x8a   : > { %p3472_p9 = pnand %p3470_p7, %p4496_p8 }
  0x8c   : > { %p3473_p4 = pneg %p3472_p9 }
  0x8e   : > { %p3478_p3 = pnand %p3476_p1, %p3473_p4 }
  0x90   : > { %3481 = shalt.err (!%p3478_p3)
}
  0x91   : > { %s3482_s11 = scalar_lea.vmem %s743_s7, 16  ;;  %s3489_s9 = scalar_lea.vmem %s743_s7, 32 }
  0x92   : > { %p3483_p10 = scmp.ne.s32.totalorder %s743_s7, %s3482_s11  ;;  %p3490_p13 = scmp.lt.s32.totalorder %s743_s7, %s743_s7 }
  0x93   : > { %p3491_p0 = scmp.lt.s32.totalorder %s3489_s9, %s3482_s11 }
  0x94   : > { %p3485_p11 = pnand %p3483_p10, %p4496_p8 }
  0x95   : > { %p3492_p2 = por %p3491_p0, %p3490_p13 }
  0x96   : > { %p3486_p12 = pneg %p3485_p11 }
  0x98   : > { %p3493_p5 = pnand %p3492_p2, %p3486_p12 }
  0x9a   : > { %3496 = shalt.err (!%p3493_p5)
}
  0x9b   : > { %3147 = dma.hbm_to_vmem [thread:$0]  (!%p4482_p6), %s5410_s5, 16, %s743_s7, [#allocation15]  }
  0x9c   : > { %s5411_s0 = sld [smem:[#allocation75_spill]] }
  0xa2   : > { %s3497_s6 = scalar_lea.hbm %s5411_s0, 256 }
  0xa3   : > { %p3498_p7 = scmp.ne.s32.totalorder %s5411_s0, %s3497_s6  ;;  %p3504_p1 = scmp.lt.u32.totalorder %s3497_s6, %s5411_s0 }
  0xa5   : > { %p3500_p9 = pnand %p3498_p7, %p4496_p8 }
  0xa7   : > { %p3501_p4 = pneg %p3500_p9 }
  0xa9   : > { %p3506_p3 = pnand %p3504_p1, %p3501_p4 }
  0xab   : > { %3509 = shalt.err (!%p3506_p3)
}
  0xac   : > { %s3510_s9 = scalar_lea.vmem %s764_s27, 256  ;;  %p3518_p13 = scmp.lt.s32.totalorder %s764_s27, %s764_s27 }
  0xad   : > { %p3511_p10 = scmp.ne.s32.totalorder %s764_s27, %s3510_s9  ;;  %p3519_p0 = scmp.lt.s32.totalorder %s3510_s9, %s3510_s9 }
  0xaf   : > { %p3513_p11 = pnand %p3511_p10, %p4496_p8  ;;  %p3520_p2 = por %p3519_p0, %p3518_p13 }
  0xb1   : > { %p3514_p12 = pneg %p3513_p11 }
  0xb3   : > { %p3521_p5 = pnand %p3520_p2, %p3514_p12 }
  0xb5   : > { %3524 = shalt.err (!%p3521_p5)
}
  0xb6   : > { %3153 = dma.hbm_to_vmem [thread:$0]  (!%p4482_p6), %s5411_s0, 256, %s764_s27, [#allocation18], %s4266_s4, %s4266_s4, %s4267_s8  }
  0xb7   : > { %s4270_s3 = smov [#allocation20]   ;;  %s4271_s30 = smov [#allocation23]  }
  0xb8   : > { %s787_s22 = sshll.u32 %s4270_s3, 4  ;;  %s811_s6 = sshll.u32 %s4271_s30, 4  ;;  %s788_s22 = int_to_ptr.vmem [resolvable:$true] %s787_s22  ;;  %s812_s6 = int_to_ptr.vmem [resolvable:$true] %s811_s6 }
  0xb9   : > { %s5412_s26 = sld [smem:[#allocation77_spill]] }
  0xbf   : > { %s3525_s11 = scalar_lea.hbm %s5412_s26, 256 }
  0xc0   : > { %p3526_p7 = scmp.ne.s32.totalorder %s5412_s26, %s3525_s11  ;;  %p3532_p1 = scmp.lt.u32.totalorder %s3525_s11, %s5412_s26 }
  0xc2   : > { %p3528_p9 = pnand %p3526_p7, %p4496_p8 }
  0xc4   : > { %p3529_p4 = pneg %p3528_p9 }
  0xc6   : > { %p3534_p3 = pnand %p3532_p1, %p3529_p4 }
  0xc8   : > { %3537 = shalt.err (!%p3534_p3)
}
  0xc9   : > { %s3538_s27 = scalar_lea.vmem %s788_s22, 256  ;;  %p3546_p13 = scmp.lt.s32.totalorder %s788_s22, %s788_s22 }
  0xca   : > { %p3539_p10 = scmp.ne.s32.totalorder %s788_s22, %s3538_s27  ;;  %p3547_p0 = scmp.lt.s32.totalorder %s3538_s27, %s3538_s27 }
  0xcc   : > { %p3541_p11 = pnand %p3539_p10, %p4496_p8  ;;  %p3548_p2 = por %p3547_p0, %p3546_p13 }
  0xce   : > { %p3542_p12 = pneg %p3541_p11 }
  0xd0   : > { %p3549_p5 = pnand %p3548_p2, %p3542_p12 }
  0xd2   : > { %3552 = shalt.err (!%p3549_p5)
}
  0xd3   : > { %3159 = dma.hbm_to_vmem [thread:$0]  (!%p4482_p6), %s5412_s26, 256, %s788_s22, [#allocation21], %s4266_s4, %s4266_s4, %s4267_s8  }
  0xd4   : > { %s5413_s13 = sld [smem:[#allocation79_spill]] }
  0xda   : > { %s3553_s30 = scalar_lea.hbm %s5413_s13, 256 }
  0xdb   : > { %p3554_p7 = scmp.ne.s32.totalorder %s5413_s13, %s3553_s30  ;;  %p3560_p1 = scmp.lt.u32.totalorder %s3553_s30, %s5413_s13 }
  0xdd   : > { %p3556_p9 = pnand %p3554_p7, %p4496_p8 }
  0xdf   : > { %p3557_p4 = pneg %p3556_p9 }
  0xe1   : > { %p3562_p3 = pnand %p3560_p1, %p3557_p4 }
  0xe3   : > { %3565 = shalt.err (!%p3562_p3)
}
  0xe4   : > { %s3566_s7 = scalar_lea.vmem %s812_s6, 256  ;;  %p3574_p13 = scmp.lt.s32.totalorder %s812_s6, %s812_s6 }
  0xe5   : > { %p3567_p10 = scmp.ne.s32.totalorder %s812_s6, %s3566_s7  ;;  %p3575_p0 = scmp.lt.s32.totalorder %s3566_s7, %s3566_s7 }
  0xe7   : > { %p3569_p11 = pnand %p3567_p10, %p4496_p8  ;;  %p3576_p2 = por %p3575_p0, %p3574_p13 }
  0xe9   : > { %p3570_p12 = pneg %p3569_p11 }
  0xeb   : > { %p3577_p5 = pnand %p3576_p2, %p3570_p12 }
  0xed   : > { %3580 = shalt.err (!%p3577_p5)
}
  0xee   : > { %3165 = dma.hbm_to_vmem [thread:$0]  (!%p4482_p6), %s5413_s13, 256, %s812_s6, [#allocation24], %s4266_s4, %s4266_s4, %s4267_s8  }
  0xef   : > { %s4272_s28 = smov [#allocation26]   ;;  %s4273_s24 = smov [#allocation29]  }
  0xf0   : > { %s836_s5 = sshll.u32 %s4272_s28, 4  ;;  %s857_s3 = sshll.u32 %s4273_s24, 4  ;;  %s837_s5 = int_to_ptr.vmem [resolvable:$true] %s836_s5  ;;  %s858_s3 = int_to_ptr.vmem [resolvable:$true] %s857_s3 }
  0xf1   : > { %s3581_s29 = scalar_lea.hbm %s5329_s15, 16 }
  0xf2   : > { %p3582_p7 = scmp.ne.s32.totalorder %s5329_s15, %s3581_s29  ;;  %p3588_p1 = scmp.lt.u32.totalorder %s3581_s29, %s5329_s15 }
  0xf4   : > { %p3584_p9 = pnand %p3582_p7, %p4496_p8 }
  0xf6   : > { %p3585_p4 = pneg %p3584_p9 }
  0xf8   : > { %p3590_p3 = pnand %p3588_p1, %p3585_p4 }
  0xfa   : > { %3593 = shalt.err (!%p3590_p3)
}
  0xfb   : > { %s3594_s6 = scalar_lea.vmem %s837_s5, 16  ;;  %s3601_s27 = scalar_lea.vmem %s837_s5, 32 }
  0xfc   : > { %p3595_p10 = scmp.ne.s32.totalorder %s837_s5, %s3594_s6  ;;  %p3602_p13 = scmp.lt.s32.totalorder %s837_s5, %s837_s5 }
  0xfd   : > { %p3603_p0 = scmp.lt.s32.totalorder %s3601_s27, %s3594_s6 }
  0xfe   : > { %p3597_p11 = pnand %p3595_p10, %p4496_p8 }
  0xff   : > { %p3604_p2 = por %p3603_p0, %p3602_p13 }
 0x100   : > { %p3598_p12 = pneg %p3597_p11 }
 0x102   : > { %p3605_p5 = pnand %p3604_p2, %p3598_p12 }
 0x104   : > { %3608 = shalt.err (!%p3605_p5)
}
 0x105   : > { %3171 = dma.hbm_to_vmem [thread:$0]  (!%p4482_p6), %s5329_s15, 16, %s837_s5, [#allocation27]  }
 0x106   : > { %s3609_s29 = scalar_lea.hbm %s5331_s17, 256 }
 0x107   : > { %p3610_p7 = scmp.ne.s32.totalorder %s5331_s17, %s3609_s29  ;;  %p3616_p1 = scmp.lt.u32.totalorder %s3609_s29, %s5331_s17 }
 0x109   : > { %p3612_p9 = pnand %p3610_p7, %p4496_p8 }
 0x10b   : > { %p3613_p4 = pneg %p3612_p9 }
 0x10d   : > { %p3618_p3 = pnand %p3616_p1, %p3613_p4 }
 0x10f   : > { %3621 = shalt.err (!%p3618_p3)
}
 0x110   : > { %s3622_s6 = scalar_lea.vmem %s858_s3, 256  ;;  %p3630_p13 = scmp.lt.s32.totalorder %s858_s3, %s858_s3 }
 0x111   : > { %p3623_p10 = scmp.ne.s32.totalorder %s858_s3, %s3622_s6  ;;  %p3631_p0 = scmp.lt.s32.totalorder %s3622_s6, %s3622_s6 }
 0x113   : > { %p3625_p11 = pnand %p3623_p10, %p4496_p8  ;;  %p3632_p2 = por %p3631_p0, %p3630_p13 }
 0x115   : > { %p3626_p12 = pneg %p3625_p11 }
 0x117   : > { %p3633_p5 = pnand %p3632_p2, %p3626_p12 }
 0x119   : > { %3636 = shalt.err (!%p3633_p5)
}
 0x11a   : > { %3177 = dma.hbm_to_vmem [thread:$0]  (!%p4482_p6), %s5331_s17, 256, %s858_s3, [#allocation30], %s4266_s4, %s4266_s4, %s4267_s8  }
 0x11b   : > { %s4274_s28 = smov [#allocation32]   ;;  %s4275_s30 = smov [#allocation35]  }
 0x11c   : > { %s881_s24 = sshll.u32 %s4274_s28, 4  ;;  %s906_s2 = sshll.u32 %s4275_s30, 4  ;;  %s882_s24 = int_to_ptr.vmem [resolvable:$true] %s881_s24  ;;  %s907_s2 = int_to_ptr.vmem [resolvable:$true] %s906_s2 }
 0x11d   : > { %s3637_s9 = scalar_lea.hbm %s5333_s19, 512 }
 0x11e   : > { %p3638_p7 = scmp.ne.s32.totalorder %s5333_s19, %s3637_s9  ;;  %p3644_p1 = scmp.lt.u32.totalorder %s3637_s9, %s5333_s19 }
 0x120   : > { %p3640_p9 = pnand %p3638_p7, %p4496_p8 }
 0x122   : > { %p3641_p4 = pneg %p3640_p9 }
 0x124   : > { %p3646_p3 = pnand %p3644_p1, %p3641_p4 }
 0x126   : > { %3649 = shalt.err (!%p3646_p3)
}
 0x127   : > { %s3650_s3 = scalar_lea.vmem %s882_s24, 512  ;;  %p3658_p13 = scmp.lt.s32.totalorder %s882_s24, %s882_s24 }
 0x128   : > { %p3651_p10 = scmp.ne.s32.totalorder %s882_s24, %s3650_s3  ;;  %p3659_p0 = scmp.lt.s32.totalorder %s3650_s3, %s3650_s3 }
 0x12a   : > { %p3653_p11 = pnand %p3651_p10, %p4496_p8  ;;  %p3660_p2 = por %p3659_p0, %p3658_p13 }
 0x12c   : > { %p3654_p12 = pneg %p3653_p11 }
 0x12e   : > { %p3661_p5 = pnand %p3660_p2, %p3654_p12 }
 0x130   : > { %3664 = shalt.err (!%p3661_p5)
}
 0x131   : > { %3183 = dma.hbm_to_vmem [thread:$0]  (!%p4482_p6), %s5333_s19, 512, %s882_s24, [#allocation33], %s4266_s4, %s4266_s4, %s4267_s8  }
 0x132   : > { %s3665_s11 = scalar_lea.hbm %s5335_s21, 16 }
 0x133   : > { %p3666_p7 = scmp.ne.s32.totalorder %s5335_s21, %s3665_s11  ;;  %p3672_p1 = scmp.lt.u32.totalorder %s3665_s11, %s5335_s21 }
 0x135   : > { %p3668_p9 = pnand %p3666_p7, %p4496_p8 }
 0x137   : > { %p3669_p4 = pneg %p3668_p9 }
 0x139   : > { %p3674_p3 = pnand %p3672_p1, %p3669_p4 }
 0x13b   : > { %3677 = shalt.err (!%p3674_p3)
}
 0x13c   : > { %s3678_s5 = scalar_lea.vmem %s907_s2, 16  ;;  %s3685_s24 = scalar_lea.vmem %s907_s2, 32 }
 0x13d   : > { %p3679_p10 = scmp.ne.s32.totalorder %s907_s2, %s3678_s5  ;;  %p3686_p13 = scmp.lt.s32.totalorder %s907_s2, %s907_s2 }
 0x13e   : > { %p3687_p0 = scmp.lt.s32.totalorder %s3685_s24, %s3678_s5 }
 0x13f   : > { %p3681_p11 = pnand %p3679_p10, %p4496_p8 }
 0x140   : > { %p3688_p2 = por %p3687_p0, %p3686_p13 }
 0x141   : > { %p3682_p12 = pneg %p3681_p11 }
 0x143   : > { %p3689_p5 = pnand %p3688_p2, %p3682_p12 }
 0x145   : > { %3692 = shalt.err (!%p3689_p5)
}
 0x146   : > { %3189 = dma.hbm_to_vmem [thread:$0]  (!%p4482_p6), %s5335_s21, 16, %s907_s2, [#allocation36]  }
 0x147   : > { %s4276_s28 = smov [#allocation38]   ;;  %s4277_s29 = smov [#allocation41]  }
 0x148   : > { %s928_s30 = sshll.u32 %s4276_s28, 4  ;;  %s949_s11 = sshll.u32 %s4277_s29, 4  ;;  %s929_s30 = int_to_ptr.vmem [resolvable:$true] %s928_s30  ;;  %s950_s11 = int_to_ptr.vmem [resolvable:$true] %s949_s11 }
 0x149   : > { %s3693_s22 = scalar_lea.hbm %s5337_s23, 16 }
 0x14a   : > { %p3694_p7 = scmp.ne.s32.totalorder %s5337_s23, %s3693_s22  ;;  %p3700_p1 = scmp.lt.u32.totalorder %s3693_s22, %s5337_s23 }
 0x14c   : > { %p3696_p9 = pnand %p3694_p7, %p4496_p8 }
 0x14e   : > { %p3697_p4 = pneg %p3696_p9 }
 0x150   : > { %p3702_p3 = pnand %p3700_p1, %p3697_p4 }
 0x152   : > { %3705 = shalt.err (!%p3702_p3)
}
 0x153   : > { %s3706_s2 = scalar_lea.vmem %s929_s30, 16  ;;  %s3713_s27 = scalar_lea.vmem %s929_s30, 32 }
 0x154   : > { %p3707_p10 = scmp.ne.s32.totalorder %s929_s30, %s3706_s2  ;;  %p3714_p13 = scmp.lt.s32.totalorder %s929_s30, %s929_s30 }
 0x155   : > { %p3715_p0 = scmp.lt.s32.totalorder %s3713_s27, %s3706_s2 }
 0x156   : > { %p3709_p11 = pnand %p3707_p10, %p4496_p8 }
 0x157   : > { %p3716_p2 = por %p3715_p0, %p3714_p13 }
 0x158   : > { %p3710_p12 = pneg %p3709_p11 }
 0x15a   : > { %p3717_p5 = pnand %p3716_p2, %p3710_p12 }
 0x15c   : > { %3720 = shalt.err (!%p3717_p5)
}
 0x15d   : > { %3195 = dma.hbm_to_vmem [thread:$0]  (!%p4482_p6), %s5337_s23, 16, %s929_s30, [#allocation39]  }
 0x15e   : > { %s3721_s22 = scalar_lea.hbm %s5339_s25, 256 }
 0x15f   : > { %p3722_p7 = scmp.ne.s32.totalorder %s5339_s25, %s3721_s22  ;;  %p3728_p1 = scmp.lt.u32.totalorder %s3721_s22, %s5339_s25 }
 0x161   : > { %p3724_p9 = pnand %p3722_p7, %p4496_p8 }
 0x163   : > { %p3725_p4 = pneg %p3724_p9 }
 0x165   : > { %p3730_p3 = pnand %p3728_p1, %p3725_p4 }
 0x167   : > { %3733 = shalt.err (!%p3730_p3)
}
 0x168   : > { %s3734_s2 = scalar_lea.vmem %s950_s11, 256  ;;  %p3742_p13 = scmp.lt.s32.totalorder %s950_s11, %s950_s11 }
 0x169   : > { %p3735_p10 = scmp.ne.s32.totalorder %s950_s11, %s3734_s2  ;;  %p3743_p0 = scmp.lt.s32.totalorder %s3734_s2, %s3734_s2 }
 0x16b   : > { %p3737_p11 = pnand %p3735_p10, %p4496_p8  ;;  %p3744_p2 = por %p3743_p0, %p3742_p13 }
 0x16d   : > { %p3738_p12 = pneg %p3737_p11 }
 0x16f   : > { %p3745_p5 = pnand %p3744_p2, %p3738_p12 }
 0x171   : > { %3748 = shalt.err (!%p3745_p5)
}
 0x172   : > { %3201 = dma.hbm_to_vmem [thread:$0]  (!%p4482_p6), %s5339_s25, 256, %s950_s11, [#allocation42], %s4266_s4, %s4266_s4, %s4267_s8  }
 0x173   : > { %s4278_s28 = smov [#allocation7]   ;;  %s4279_s9 = smov [#allocation10]  }
 0x174   : > { %s683_s29 = sshll.u32 %s4278_s28, 4  ;;  %s707_s7 = sshll.u32 %s4279_s9, 4  ;;  %s684_s29 = int_to_ptr.vmem [resolvable:$true] %s683_s29  ;;  %s708_s7 = int_to_ptr.vmem [resolvable:$true] %s707_s7 }
 0x175   : > { %s5414_s5 = sld [smem:[#allocation68_spill]] }
 0x17b   : > { %s3749_s24 = scalar_lea.hbm %s5414_s5, 128 }
 0x17c   : > { %p3750_p7 = scmp.ne.s32.totalorder %s5414_s5, %s3749_s24  ;;  %p3756_p1 = scmp.lt.u32.totalorder %s3749_s24, %s5414_s5 }
 0x17e   : > { %p3752_p9 = pnand %p3750_p7, %p4496_p8 }
 0x180   : > { %p3753_p4 = pneg %p3752_p9 }
 0x182   : > { %p3758_p3 = pnand %p3756_p1, %p3753_p4 }
 0x184   : > { %3761 = shalt.err (!%p3758_p3)
}
 0x185   : > { %s3762_s4 = scalar_lea.vmem %s684_s29, 128  ;;  %p3770_p13 = scmp.lt.s32.totalorder %s684_s29, %s684_s29 }
 0x186   : > { %p3763_p10 = scmp.ne.s32.totalorder %s684_s29, %s3762_s4  ;;  %p3771_p0 = scmp.lt.s32.totalorder %s3762_s4, %s3762_s4 }
 0x188   : > { %p3765_p11 = pnand %p3763_p10, %p4496_p8  ;;  %p3772_p2 = por %p3771_p0, %p3770_p13 }
 0x18a   : > { %p3766_p12 = pneg %p3765_p11 }
 0x18c   : > { %p3773_p5 = pnand %p3772_p2, %p3766_p12 }
 0x18e   : > { %3776 = shalt.err (!%p3773_p5)
}
 0x18f   : > { %3132 = dma.hbm_to_vmem [thread:$0]  (!%p4482_p6), %s5414_s5, 128, %s684_s29, [#allocation6]  }
 0x190   : > { %s5415_s28 = sld [smem:[#allocation70_spill]] }
 0x196   : > { %s3777_s9 = scalar_lea.hbm %s5415_s28, 16 }
 0x197   : > { %p3778_p7 = scmp.ne.s32.totalorder %s5415_s28, %s3777_s9  ;;  %p3784_p1 = scmp.lt.u32.totalorder %s3777_s9, %s5415_s28 }
 0x199   : > { %p3780_p9 = pnand %p3778_p7, %p4496_p8 }
 0x19b   : > { %p3781_p4 = pneg %p3780_p9 }
 0x19d   : > { %p3786_p3 = pnand %p3784_p1, %p3781_p4 }
 0x19f   : > { %3789 = shalt.err (!%p3786_p3)
}
 0x1a0   : > { %s3790_s2 = scalar_lea.vmem %s708_s7, 16  ;;  %s3797_s29 = scalar_lea.vmem %s708_s7, 32 }
 0x1a1   : > { %p3791_p10 = scmp.ne.s32.totalorder %s708_s7, %s3790_s2  ;;  %p3798_p13 = scmp.lt.s32.totalorder %s708_s7, %s708_s7 }
 0x1a2   : > { %p3799_p0 = scmp.lt.s32.totalorder %s3797_s29, %s3790_s2 }
 0x1a3   : > { %p3793_p11 = pnand %p3791_p10, %p4496_p8 }
 0x1a4   : > { %p3800_p2 = por %p3799_p0, %p3798_p13 }
 0x1a5   : > { %p3794_p12 = pneg %p3793_p11 }
 0x1a7   : > { %p3801_p5 = pnand %p3800_p2, %p3794_p12 }
 0x1a9   : > { %3804 = shalt.err (!%p3801_p5)
}
 0x1aa   : > { %3138 = dma.hbm_to_vmem [thread:$0]  (!%p4482_p6), %s5415_s28, 16, %s708_s7, [#allocation9]  }
 0x1ab   : > { %s4280_s8 = smov [#allocation13]   ;;  %s4281_s0 = smov [#allocation16]  }
 0x1ac   : > { %s731_s11 = sshll.u32 %s4280_s8, 4  ;;  %s753_s27 = sshll.u32 %s4281_s0, 4  ;;  %s732_s11 = int_to_ptr.vmem [resolvable:$true] %s731_s11  ;;  %s754_s27 = int_to_ptr.vmem [resolvable:$true] %s753_s27 }
 0x1ad   : > { %s5416_s6 = sld [smem:[#allocation72_spill]] }
 0x1b3   : > { %s3805_s24 = scalar_lea.hbm %s5416_s6, 16 }
 0x1b4   : > { %p3806_p7 = scmp.ne.s32.totalorder %s5416_s6, %s3805_s24  ;;  %p3812_p1 = scmp.lt.u32.totalorder %s3805_s24, %s5416_s6 }
 0x1b6   : > { %p3808_p9 = pnand %p3806_p7, %p4496_p8 }
 0x1b8   : > { %p3809_p4 = pneg %p3808_p9 }
 0x1ba   : > { %p3814_p3 = pnand %p3812_p1, %p3809_p4 }
 0x1bc   : > { %3817 = shalt.err (!%p3814_p3)
}
 0x1bd   : > { %s3818_s7 = scalar_lea.vmem %s732_s11, 16  ;;  %s3825_s4 = scalar_lea.vmem %s732_s11, 32 }
 0x1be   : > { %p3819_p10 = scmp.ne.s32.totalorder %s732_s11, %s3818_s7  ;;  %p3826_p13 = scmp.lt.s32.totalorder %s732_s11, %s732_s11 }
 0x1bf   : > { %p3827_p0 = scmp.lt.s32.totalorder %s3825_s4, %s3818_s7 }
 0x1c0   : > { %p3821_p11 = pnand %p3819_p10, %p4496_p8 }
 0x1c1   : > { %p3828_p2 = por %p3827_p0, %p3826_p13 }
 0x1c2   : > { %p3822_p12 = pneg %p3821_p11 }
 0x1c4   : > { %p3829_p5 = pnand %p3828_p2, %p3822_p12 }
 0x1c6   : > { %3832 = shalt.err (!%p3829_p5)
}
 0x1c7   : > { %3144 = dma.hbm_to_vmem [thread:$0]  (!%p4482_p6), %s5416_s6, 16, %s732_s11, [#allocation12]  }
 0x1c8   : > { %s5417_s24 = sld [smem:[#allocation74_spill]] }
 0x1ce   : > { %s3833_s3 = scalar_lea.hbm %s5417_s24, 16 }
 0x1cf   : > { %p3834_p7 = scmp.ne.s32.totalorder %s5417_s24, %s3833_s3  ;;  %p3840_p1 = scmp.lt.u32.totalorder %s3833_s3, %s5417_s24 }
 0x1d1   : > { %p3836_p9 = pnand %p3834_p7, %p4496_p8 }
 0x1d3   : > { %p3837_p4 = pneg %p3836_p9 }
 0x1d5   : > { %p3842_p3 = pnand %p3840_p1, %p3837_p4 }
 0x1d7   : > { %3845 = shalt.err (!%p3842_p3)
}
 0x1d8   : > { %s3846_s4 = scalar_lea.vmem %s754_s27, 16  ;;  %s3853_s11 = scalar_lea.vmem %s754_s27, 32 }
 0x1d9   : > { %p3847_p10 = scmp.ne.s32.totalorder %s754_s27, %s3846_s4  ;;  %p3854_p13 = scmp.lt.s32.totalorder %s754_s27, %s754_s27 }
 0x1da   : > { %p3855_p0 = scmp.lt.s32.totalorder %s3853_s11, %s3846_s4 }
 0x1db   : > { %p3849_p11 = pnand %p3847_p10, %p4496_p8 }
 0x1dc   : > { %p3856_p2 = por %p3855_p0, %p3854_p13 }
 0x1dd   : > { %p3850_p12 = pneg %p3849_p11 }
 0x1df   : > { %p3857_p5 = pnand %p3856_p2, %p3850_p12 }
 0x1e1   : > { %3860 = shalt.err (!%p3857_p5)
}
 0x1e2   : > { %3150 = dma.hbm_to_vmem [thread:$0]  (!%p4482_p6), %s5417_s24, 16, %s754_s27, [#allocation15]  }
 0x1e3   : > { %s4282_s9 = smov [#allocation19]   ;;  %s4283_s3 = smov [#allocation22]  }
 0x1e4   : > { %s777_s22 = sshll.u32 %s4282_s9, 4  ;;  %s801_s2 = sshll.u32 %s4283_s3, 4  ;;  %s778_s22 = int_to_ptr.vmem [resolvable:$true] %s777_s22  ;;  %s802_s2 = int_to_ptr.vmem [resolvable:$true] %s801_s2 }
 0x1e5   : > { %s5418_s7 = sld [smem:[#allocation76_spill]] }
 0x1eb   : > { %s5419_s5 = smov %s5418_s7  ;;  %s3861_s6 = scalar_lea.hbm %s5418_s7, 16 }
 0x1ec   : > { %p3862_p7 = scmp.ne.s32.totalorder %s5419_s5, %s3861_s6  ;;  %p3868_p1 = scmp.lt.u32.totalorder %s3861_s6, %s5419_s5 }
 0x1ee   : > { %p3864_p9 = pnand %p3862_p7, %p4496_p8 }
 0x1f0   : > { %p3865_p4 = pneg %p3864_p9 }
 0x1f2   : > { %p3870_p3 = pnand %p3868_p1, %p3865_p4 }
 0x1f4   : > { %3873 = shalt.err (!%p3870_p3)
}
 0x1f5   : > { %s3874_s27 = scalar_lea.vmem %s778_s22, 16  ;;  %s3881_s0 = scalar_lea.vmem %s778_s22, 32 }
 0x1f6   : > { %p3875_p10 = scmp.ne.s32.totalorder %s778_s22, %s3874_s27  ;;  %p3882_p13 = scmp.lt.s32.totalorder %s778_s22, %s778_s22 }
 0x1f7   : > { %p3883_p0 = scmp.lt.s32.totalorder %s3881_s0, %s3874_s27 }
 0x1f8   : > { %p3877_p11 = pnand %p3875_p10, %p4496_p8 }
 0x1f9   : > { %p3884_p2 = por %p3883_p0, %p3882_p13 }
 0x1fa   : > { %p3878_p12 = pneg %p3877_p11 }
 0x1fc   : > { %p3885_p5 = pnand %p3884_p2, %p3878_p12 }
 0x1fe   : > { %3888 = shalt.err (!%p3885_p5)
}
 0x1ff   : > { %3156 = dma.hbm_to_vmem [thread:$0]  (!%p4482_p6), %s5419_s5, 16, %s778_s22, [#allocation18]  }
 0x200   : > { %s5420_s12 = sld [smem:[#allocation78_spill]] }
 0x206   : > { %s3889_s29 = scalar_lea.hbm %s5420_s12, 16 }
 0x207   : > { %p3890_p7 = scmp.ne.s32.totalorder %s5420_s12, %s3889_s29  ;;  %p3896_p1 = scmp.lt.u32.totalorder %s3889_s29, %s5420_s12 }
 0x209   : > { %p3892_p9 = pnand %p3890_p7, %p4496_p8 }
 0x20b   : > { %p3893_p4 = pneg %p3892_p9 }
 0x20d   : > { %p3898_p3 = pnand %p3896_p1, %p3893_p4 }
 0x20f   : > { %3901 = shalt.err (!%p3898_p3)
}
 0x210   : > { %s3902_s8 = scalar_lea.vmem %s802_s2, 16  ;;  %s3909_s22 = scalar_lea.vmem %s802_s2, 32 }
 0x211   : > { %p3903_p10 = scmp.ne.s32.totalorder %s802_s2, %s3902_s8  ;;  %p3910_p13 = scmp.lt.s32.totalorder %s802_s2, %s802_s2 }
 0x212   : > { %p3911_p0 = scmp.lt.s32.totalorder %s3909_s22, %s3902_s8 }
 0x213   : > { %p3905_p11 = pnand %p3903_p10, %p4496_p8 }
 0x214   : > { %p3912_p2 = por %p3911_p0, %p3910_p13 }
 0x215   : > { %p3906_p12 = pneg %p3905_p11 }
 0x217   : > { %p3913_p5 = pnand %p3912_p2, %p3906_p12 }
 0x219   : > { %3916 = shalt.err (!%p3913_p5)
}
 0x21a   : > { %3162 = dma.hbm_to_vmem [thread:$0]  (!%p4482_p6), %s5420_s12, 16, %s802_s2, [#allocation21]  }
 0x21b   : > { %s4284_s9 = smov [#allocation25]   ;;  %s4285_s13 = smov [#allocation28]  }
 0x21c   : > { %s825_s3 = sshll.u32 %s4284_s9, 4  ;;  %s847_s6 = sshll.u32 %s4285_s13, 4  ;;  %s826_s3 = int_to_ptr.vmem [resolvable:$true] %s825_s3  ;;  %s848_s6 = int_to_ptr.vmem [resolvable:$true] %s847_s6 }
 0x21d   : > { %s3917_s7 = scalar_lea.hbm %s5328_s14, 16 }
 0x21e   : > { %p3918_p7 = scmp.ne.s32.totalorder %s5328_s14, %s3917_s7  ;;  %p3924_p1 = scmp.lt.u32.totalorder %s3917_s7, %s5328_s14 }
 0x220   : > { %p3920_p9 = pnand %p3918_p7, %p4496_p8 }
 0x222   : > { %p3921_p4 = pneg %p3920_p9 }
 0x224   : > { %p3926_p3 = pnand %p3924_p1, %p3921_p4 }
 0x226   : > { %3929 = shalt.err (!%p3926_p3)
}
 0x227   : > { %s3930_s2 = scalar_lea.vmem %s826_s3, 16  ;;  %s3937_s27 = scalar_lea.vmem %s826_s3, 32 }
 0x228   : > { %p3931_p10 = scmp.ne.s32.totalorder %s826_s3, %s3930_s2  ;;  %p3938_p13 = scmp.lt.s32.totalorder %s826_s3, %s826_s3 }
 0x229   : > { %p3939_p0 = scmp.lt.s32.totalorder %s3937_s27, %s3930_s2 }
 0x22a   : > { %p3933_p11 = pnand %p3931_p10, %p4496_p8 }
 0x22b   : > { %p3940_p2 = por %p3939_p0, %p3938_p13 }
 0x22c   : > { %p3934_p12 = pneg %p3933_p11 }
 0x22e   : > { %p3941_p5 = pnand %p3940_p2, %p3934_p12 }
 0x230   : > { %3944 = shalt.err (!%p3941_p5)
}
 0x231   : > { %3168 = dma.hbm_to_vmem [thread:$0]  (!%p4482_p6), %s5328_s14, 16, %s826_s3, [#allocation24]  }
 0x232   : > { %s3945_s30 = scalar_lea.hbm %s5330_s16, 16 }
 0x233   : > { %p3946_p7 = scmp.ne.s32.totalorder %s5330_s16, %s3945_s30  ;;  %p3952_p1 = scmp.lt.u32.totalorder %s3945_s30, %s5330_s16 }
 0x235   : > { %p3948_p9 = pnand %p3946_p7, %p4496_p8 }
 0x237   : > { %p3949_p4 = pneg %p3948_p9 }
 0x239   : > { %p3954_p3 = pnand %p3952_p1, %p3949_p4 }
 0x23b   : > { %3957 = shalt.err (!%p3954_p3)
}
 0x23c   : > { %s3958_s22 = scalar_lea.vmem %s848_s6, 16  ;;  %s3965_s3 = scalar_lea.vmem %s848_s6, 32 }
 0x23d   : > { %p3959_p10 = scmp.ne.s32.totalorder %s848_s6, %s3958_s22  ;;  %p3966_p13 = scmp.lt.s32.totalorder %s848_s6, %s848_s6 }
 0x23e   : > { %p3967_p0 = scmp.lt.s32.totalorder %s3965_s3, %s3958_s22 }
 0x23f   : > { %p3961_p11 = pnand %p3959_p10, %p4496_p8 }
 0x240   : > { %p3968_p2 = por %p3967_p0, %p3966_p13 }
 0x241   : > { %p3962_p12 = pneg %p3961_p11 }
 0x243   : > { %p3969_p5 = pnand %p3968_p2, %p3962_p12 }
 0x245   : > { %3972 = shalt.err (!%p3969_p5)
}
 0x246   : > { %3174 = dma.hbm_to_vmem [thread:$0]  (!%p4482_p6), %s5330_s16, 16, %s848_s6, [#allocation27]  }
 0x247   : > { %s4286_s0 = smov [#allocation31]   ;;  %s4287_s13 = smov [#allocation34]  }
 0x248   : > { %s871_s9 = sshll.u32 %s4286_s0, 4  ;;  %s895_s29 = sshll.u32 %s4287_s13, 4  ;;  %s872_s9 = int_to_ptr.vmem [resolvable:$true] %s871_s9  ;;  %s896_s29 = int_to_ptr.vmem [resolvable:$true] %s895_s29 }
 0x249   : > { %s3973_s4 = scalar_lea.hbm %s5332_s18, 16 }
 0x24a   : > { %p3974_p7 = scmp.ne.s32.totalorder %s5332_s18, %s3973_s4  ;;  %p3980_p1 = scmp.lt.u32.totalorder %s3973_s4, %s5332_s18 }
 0x24c   : > { %p3976_p9 = pnand %p3974_p7, %p4496_p8 }
 0x24e   : > { %p3977_p4 = pneg %p3976_p9 }
 0x250   : > { %p3982_p3 = pnand %p3980_p1, %p3977_p4 }
 0x252   : > { %3985 = shalt.err (!%p3982_p3)
}
 0x253   : > { %s3986_s6 = scalar_lea.vmem %s872_s9, 16  ;;  %s3993_s2 = scalar_lea.vmem %s872_s9, 32 }
 0x254   : > { %p3987_p10 = scmp.ne.s32.totalorder %s872_s9, %s3986_s6  ;;  %p3994_p13 = scmp.lt.s32.totalorder %s872_s9, %s872_s9 }
 0x255   : > { %p3995_p0 = scmp.lt.s32.totalorder %s3993_s2, %s3986_s6 }
 0x256   : > { %p3989_p11 = pnand %p3987_p10, %p4496_p8 }
 0x257   : > { %p3996_p2 = por %p3995_p0, %p3994_p13 }
 0x258   : > { %p3990_p12 = pneg %p3989_p11 }
 0x25a   : > { %p3997_p5 = pnand %p3996_p2, %p3990_p12 }
 0x25c   : > { %4000 = shalt.err (!%p3997_p5)
}
 0x25d   : > { %3180 = dma.hbm_to_vmem [thread:$0]  (!%p4482_p6), %s5332_s18, 16, %s872_s9, [#allocation30]  }
 0x25e   : > { %s4001_s7 = scalar_lea.hbm %s5334_s20, 16 }
 0x25f   : > { %p4002_p7 = scmp.ne.s32.totalorder %s5334_s20, %s4001_s7  ;;  %p4008_p1 = scmp.lt.u32.totalorder %s4001_s7, %s5334_s20 }
 0x261   : > { %p4004_p9 = pnand %p4002_p7, %p4496_p8 }
 0x263   : > { %p4005_p4 = pneg %p4004_p9 }
 0x265   : > { %p4010_p3 = pnand %p4008_p1, %p4005_p4 }
 0x267   : > { %4013 = shalt.err (!%p4010_p3)
}
 0x268   : > { %s4014_s3 = scalar_lea.vmem %s896_s29, 16  ;;  %s4021_s9 = scalar_lea.vmem %s896_s29, 32 }
 0x269   : > { %p4015_p10 = scmp.ne.s32.totalorder %s896_s29, %s4014_s3  ;;  %p4022_p13 = scmp.lt.s32.totalorder %s896_s29, %s896_s29 }
 0x26a   : > { %p4023_p0 = scmp.lt.s32.totalorder %s4021_s9, %s4014_s3 }
 0x26b   : > { %p4017_p11 = pnand %p4015_p10, %p4496_p8 }
 0x26c   : > { %p4024_p2 = por %p4023_p0, %p4022_p13 }
 0x26d   : > { %p4018_p12 = pneg %p4017_p11 }
 0x26f   : > { %p4025_p5 = pnand %p4024_p2, %p4018_p12 }
 0x271   : > { %4028 = shalt.err (!%p4025_p5)
}
 0x272   : > { %3186 = dma.hbm_to_vmem [thread:$0]  (!%p4482_p6), %s5334_s20, 16, %s896_s29, [#allocation33]  }
 0x273   : > { %s4288_s27 = smov [#allocation37]   ;;  %s4289_s13 = smov [#allocation40]  }
 0x274   : > { %s917_s0 = sshll.u32 %s4288_s27, 4  ;;  %s939_s30 = sshll.u32 %s4289_s13, 4  ;;  %s918_s0 = int_to_ptr.vmem [resolvable:$true] %s917_s0  ;;  %s940_s30 = int_to_ptr.vmem [resolvable:$true] %s939_s30 }
 0x275   : > { %s5421_s11 = sld [smem:[#allocation80_spill]] }
 0x27b   : > { %s4029_s8 = scalar_lea.hbm %s5421_s11, 16 }
 0x27c   : > { %p4030_p7 = scmp.ne.s32.totalorder %s5421_s11, %s4029_s8  ;;  %p4036_p1 = scmp.lt.u32.totalorder %s4029_s8, %s5421_s11 }
 0x27e   : > { %p4032_p9 = pnand %p4030_p7, %p4496_p8 }
 0x280   : > { %p4033_p4 = pneg %p4032_p9 }
 0x282   : > { %p4038_p3 = pnand %p4036_p1, %p4033_p4 }
 0x284   : > { %4041 = shalt.err (!%p4038_p3)
}
 0x285   : > { %s4042_s29 = scalar_lea.vmem %s918_s0, 16  ;;  %s4049_s2 = scalar_lea.vmem %s918_s0, 32 }
 0x286   : > { %p4043_p10 = scmp.ne.s32.totalorder %s918_s0, %s4042_s29  ;;  %p4050_p13 = scmp.lt.s32.totalorder %s918_s0, %s918_s0 }
 0x287   : > { %p4051_p0 = scmp.lt.s32.totalorder %s4049_s2, %s4042_s29 }
 0x288   : > { %p4045_p11 = pnand %p4043_p10, %p4496_p8 }
 0x289   : > { %p4052_p2 = por %p4051_p0, %p4050_p13 }
 0x28a   : > { %p4046_p12 = pneg %p4045_p11 }
 0x28c   : > { %p4053_p5 = pnand %p4052_p2, %p4046_p12 }
 0x28e   : > { %4056 = shalt.err (!%p4053_p5)
}
 0x28f   : > { %3192 = dma.hbm_to_vmem [thread:$0]  (!%p4482_p6), %s5421_s11, 16, %s918_s0, [#allocation36]  }
 0x290   : > { %s5422_s8 = sld [smem:[#allocation81_spill]] }
 0x296   : > { %s5423_s22 = smov %s5422_s8  ;;  %s4057_s3 = scalar_lea.hbm %s5422_s8, 16 }
 0x297   : > { %p4058_p7 = scmp.ne.s32.totalorder %s5423_s22, %s4057_s3  ;;  %p4064_p1 = scmp.lt.u32.totalorder %s4057_s3, %s5423_s22 }
 0x299   : > { %p4060_p9 = pnand %p4058_p7, %p4496_p8 }
 0x29b   : > { %p4061_p4 = pneg %p4060_p9 }
 0x29d   : > { %p4066_p3 = pnand %p4064_p1, %p4061_p4 }
 0x29f   : > { %4069 = shalt.err (!%p4066_p3)
}
 0x2a0   : > { %s4070_s27 = scalar_lea.vmem %s940_s30, 16  ;;  %s4077_s0 = scalar_lea.vmem %s940_s30, 32 }
 0x2a1   : > { %p4071_p10 = scmp.ne.s32.totalorder %s940_s30, %s4070_s27  ;;  %p4078_p13 = scmp.lt.s32.totalorder %s940_s30, %s940_s30 }
 0x2a2   : > { %p4079_p0 = scmp.lt.s32.totalorder %s4077_s0, %s4070_s27 }
 0x2a3   : > { %p4073_p11 = pnand %p4071_p10, %p4496_p8 }
 0x2a4   : > { %p4080_p2 = por %p4079_p0, %p4078_p13 }
 0x2a5   : > { %p4074_p12 = pneg %p4073_p11 }
 0x2a7   : > { %p4081_p5 = pnand %p4080_p2, %p4074_p12 }
 0x2a9   : > { %4084 = shalt.err (!%p4081_p5)
}
 0x2aa   : > { %3198 = dma.hbm_to_vmem [thread:$0]  (!%p4482_p6), %s5423_s22, 16, %s940_s30, [#allocation39]  }
 0x2ab   : > { %s4290_s4 = smov [#allocation43]   ;;  %s5424_s6 = sld [smem:[#allocation82_spill]] }
 0x2ac   : > { %s963_s8 = sshll.u32 %s4290_s4, 4  ;;  %s964_s8 = int_to_ptr.vmem [resolvable:$true] %s963_s8 }
 0x2b1   : > { %s4085_s29 = scalar_lea.hbm %s5424_s6, 16 }
 0x2b2   : > { %p4086_p7 = scmp.ne.s32.totalorder %s5424_s6, %s4085_s29  ;;  %p4092_p1 = scmp.lt.u32.totalorder %s4085_s29, %s5424_s6 }
 0x2b4   : > { %p4088_p9 = pnand %p4086_p7, %p4496_p8 }
 0x2b6   : > { %p4089_p4 = pneg %p4088_p9 }
 0x2b8   : > { %p4094_p3 = pnand %p4092_p1, %p4089_p4 }
 0x2ba   : > { %4097 = shalt.err (!%p4094_p3)
}
 0x2bb   : > { %s4098_s30 = scalar_lea.vmem %s964_s8, 16  ;;  %s4105_s13 = scalar_lea.vmem %s964_s8, 32 }
 0x2bc   : > { %p4099_p10 = scmp.ne.s32.totalorder %s964_s8, %s4098_s30  ;;  %p4106_p13 = scmp.lt.s32.totalorder %s964_s8, %s964_s8 }
 0x2bd   : > { %p4107_p0 = scmp.lt.s32.totalorder %s4105_s13, %s4098_s30 }
 0x2be   : > { %p4101_p11 = pnand %p4099_p10, %p4496_p8 }
 0x2bf   : > { %p4108_p2 = por %p4107_p0, %p4106_p13 }
 0x2c0   : > { %p4102_p12 = pneg %p4101_p11 }
 0x2c2   : > { %p4109_p5 = pnand %p4108_p2, %p4102_p12 }
 0x2c4   : > { %4112 = shalt.err (!%p4109_p5)
}
 0x2c5   : > { %s5425_s4 = sld [smem:[#allocation63_spill]]  ;;  %s5426_s3 = sld [smem:[#allocation62_spill]] }
 0x2c6   : > { %s5427_s9 = sld [smem:[#allocation61_spill]]  ;;  %s5428_s10 = sld [smem:[#allocation60_spill]] }
 0x2c7   : > { %s5429_s29 = sld [smem:[#allocation64_spill]]  ;;  %s5435_s11 = sld [smem:[#allocation66_spill]] }
 0x2c8   : > { %3204 = dma.hbm_to_vmem [thread:$0]  (!%p4482_p6), %s5424_s6, 16, %s964_s8, [#allocation42]  }
 0x2cb   : > { %s2735_s2 = sadd.s32 4294967294, %s5425_s4   ;;  %s4998_s30 = sadd.s32 1, %s5425_s4  }
 0x2cc   : > { %s60_s1 = ssub.s32 %s5425_s4, %s4998_s30  ;;  %s63_s27 = sadd.s32 1, %s5426_s3 }
 0x2cd   : > { %p61_p8 = scmp.eq.s32.totalorder %s60_s1, 0  ;;  %p70_p7 = scmp.ne.s32.totalorder %s5426_s3, %s5427_s9 }
 0x2ce   : > { %p71_p9 = scmp.eq.s32.totalorder %s5425_s4, 0  ;;  %p76_p4 = scmp.ne.s32.totalorder %s5427_s9, %s5428_s10 }
 0x2cf   : > { %s5009_s0 = scalar_select %p61_p8, %s5426_s3, %s63_s27  }
 0x2d0   : > { %p5011_p1 = por %p71_p9, %p70_p7  ;;  %p5431_p3 = scmp.eq.s32.totalorder %s5429_s29, 0 }
 0x2d1   : > { %p646_p10 = scmp.eq.s32.totalorder %s5429_s29, 1  ;;  %p652_p11 = scmp.eq.s32.totalorder %s2735_s2, 1 }
 0x2d2   : > { %p5017_p6 = por %p5431_p3, %p76_p4  ;;  %p3239_p12 = scmp.lt.s32.totalorder %s5425_s4, 2 }
 0x2d3   : > { %s974_s5 = sand.u32 1, %s5426_s3   ;;  %p5024_p13 = por %p646_p10, %p70_p7 }
 0x2d4   : > { %p5028_p0 = por %p652_p11, %p76_p4  ;;  %s2764_s10 = sshll.u32 %s974_s5, 4 }
 0x2d5   : > { %s5433_s7 = scalar_select %p5024_p13, 1, 0 }
 0x2d6   : > { %s5434_s9 = scalar_select %p5028_p0, 1, 0 }
 0x2d7   : > { %s2851_s1 = sshll.u32 %s5425_s4, 8  ;;  %s978_s3 = scalar_lea.vmem [#allocation2], %s2764_s10 }
 0x2d8   : > { %s5036_s12 = scalar_lea.hbm %s5435_s11, %s2851_s1  ;;  %s985_s29 = sshll.u32 %s978_s3, 4  ;;  %s5038_s29 = int_to_ptr.vmem [resolvable:$true] %s985_s29 }
 0x2d9   : > { %p5042_p2 = pnand %p3239_p12, %p5011_p1  ;;  %s5046_s4 = scalar_lea.sflag [#allocation3], %s974_s5 }
 0x2da   : > { %s4113_s6 = scalar_lea.hbm %s5036_s12, 256  ;;  %s4118_s13 = scalar_lea.hbm %s5435_s11, 512 }
 0x2db   : > { %p4114_p5 = scmp.ne.s32.totalorder %s5036_s12, %s4113_s6  ;;  %p4115_p8 = pneg %p5042_p2 }
 0x2dc   : > { %p4119_p4 = scmp.lt.u32.totalorder %s5036_s12, %s5435_s11  ;;  %p4120_p1 = scmp.lt.u32.totalorder %s4118_s13, %s4113_s6 }
 0x2dd   : > { %p4116_p7 = pnand %p4115_p8, %p4114_p5  ;;  %p4122_p10 = scmp.lt.u32.totalorder %s4113_s6, %s5036_s12 }
 0x2de   : > { %p4121_p3 = por %p4120_p1, %p4119_p4 }
 0x2df   : > { %p4117_p9 = pneg %p4116_p7 }
 0x2e0   : > { %p4123_p11 = por %p4122_p10, %p4121_p3 }
 0x2e2   : > { %p4124_p12 = pnand %p4123_p11, %p4117_p9 }
 0x2e4   : > { %4127 = shalt.err (!%p4124_p12)
}
 0x2e5   : > { %s4128_s5 = scalar_lea.vmem %s5038_s29, 256  ;;  %s4291_s10 = smov [#allocation2]  }
 0x2e6   : > { %p4129_p5 = scmp.ne.s32.totalorder %s5038_s29, %s4128_s5  ;;  %s4133_s1 = sshll.u32 %s4291_s10, 4  ;;  %s4134_s1 = int_to_ptr.vmem [resolvable:$false] %s4133_s1 }
 0x2e7   : > { %s4135_s27 = scalar_lea.vmem %s4134_s1, 512  ;;  %p4136_p13 = scmp.lt.s32.totalorder %s5038_s29, %s4134_s1 }
 0x2e8   : > { %p4131_p7 = pnand %p4129_p5, %p4115_p8  ;;  %p4137_p4 = scmp.lt.s32.totalorder %s4135_s27, %s4128_s5 }
 0x2ea   : > { %p4132_p0 = pneg %p4131_p7  ;;  %p4138_p1 = por %p4137_p4, %p4136_p13 }
 0x2ec   : > { %p4139_p3 = pnand %p4138_p1, %p4132_p0 }
 0x2ee   : > { %4142 = shalt.err (!%p4139_p3)
}
 0x2ef   : > { %s4292_s6 = smov 128   ;;  %s4293_s13 = smov 8  }
 0x2f0   : > { %3208 = dma.hbm_to_vmem [thread:$0]  (!%p5042_p2), %s5036_s12, 256, %s5038_s29, %s5046_s4, %s4292_s6, %s4292_s6, %s4293_s13  }
 0x2f1   : > { %s5437_s3 = sld [smem:[#allocation65_spill]] }
 0x2f7   : > { %p5438_p8 = scmp.ne.s32.totalorder %s5437_s3, 0 }
 0x2f8   : > { %s5439_s11 = sld [smem:[#allocation61_spill]] (!%p5438_p8) }
 0x2f9   : > { %997 = sbr.rel (%p5438_p8) target bundleno = 5838 (0x16ce), region = 128 }
 0x2fe   : > { %s5077_s10 = sand.u32 (!%p5438_p8), 1, %s5439_s11  }
 0x2ff   : > { %s2768_s5 = sshll.u32 (!%p5438_p8), %s5077_s10, 4  ;;  %s1000_s1 = scalar_lea.sflag (!%p5438_p8), [#allocation3], %s5077_s10 }
 0x300   : > { %s5081_s27 = scalar_lea.vmem [#allocation2], %s2768_s5 }
 0x301   : > { %4188 = dma.done.wait (%p5017_p6), %s1000_s1, 256  }
 0x302   : > { %4190 = vsyncadd (%p5017_p6), %s1000_s1, 4294967040  ;;  %s5440_s2 = sld [smem:[#allocation64_spill]] }
 0x308   : > { %p5441_p13 = scmp.eq.s32.totalorder %s5440_s2, 0 }
 0x30a   : > { %4192 = dma.done.wait (%p5441_p13), [#allocation6], 192   ;;  %p5442_p0 = pmov %p5441_p13 }
 0x30c   : > { %4194 = vsyncadd (%p5442_p0), [#allocation6], 4294967104  ;;  %p5443_p2 = pmov %p5442_p0 }
 0x30d   : > { %p5444_p9 = pmov %p5442_p0 }
 0x30e   : > { %4196 = dma.done.wait (%p5443_p2), [#allocation9], 272  }
 0x30f   : > { %4198 = vsyncadd (%p5444_p9), [#allocation9], 4294967024  ;;  %p5445_p10 = pmov %p5442_p0 }
 0x310   : > { %p5446_p11 = pmov %p5442_p0 }
 0x311   : > { %4200 = dma.done.wait (%p5445_p10), [#allocation12], 272  }
 0x312   : > { %4202 = vsyncadd (%p5446_p11), [#allocation12], 4294967024  ;;  %p5447_p6 = pmov %p5442_p0 }
 0x313   : > { %p5448_p12 = pmov %p5442_p0 }
 0x314   : > { %4204 = dma.done.wait (%p5447_p6), [#allocation15], 32  }
 0x315   : > { %4206 = vsyncadd (%p5448_p12), [#allocation15], 4294967264  ;;  %p5449_p5 = pmov %p5442_p0 }
 0x316   : > { %p5450_p7 = pmov %p5442_p0 }
 0x317   : > { %4208 = dma.done.wait (%p5449_p5), [#allocation18], 272  }
 0x318   : > { %4210 = vsyncadd (%p5450_p7), [#allocation18], 4294967024  ;;  %p5451_p4 = pmov %p5442_p0 }
 0x319   : > { %p5452_p1 = pmov %p5442_p0 }
 0x31a   : > { %4212 = dma.done.wait (%p5451_p4), [#allocation21], 272  }
 0x31b   : > { %4214 = vsyncadd (%p5452_p1), [#allocation21], 4294967024  ;;  %p5453_p3 = pmov %p5442_p0 }
 0x31c   : > { %p5454_p8 = pmov %p5442_p0 }
 0x31d   : > { %4216 = dma.done.wait (%p5453_p3), [#allocation24], 272  }
 0x31e   : > { %4218 = vsyncadd (%p5454_p8), [#allocation24], 4294967024  ;;  %p5455_p13 = pmov %p5442_p0 }
 0x320   : > { %4220 = dma.done.wait (%p5455_p13), [#allocation27], 32  }
 0x321   : > { %4222 = vsyncadd (%p5442_p0), [#allocation27], 4294967264  ;;  %p5456_p2 = pmov %p5442_p0 }
 0x322   : > { %p5457_p9 = pmov %p5442_p0 }
 0x323   : > { %4224 = dma.done.wait (%p5456_p2), [#allocation30], 272  }
 0x324   : > { %4226 = vsyncadd (%p5457_p9), [#allocation30], 4294967024  ;;  %p5458_p10 = pmov %p5442_p0 }
 0x325   : > { %p5459_p11 = pmov %p5442_p0 }
 0x326   : > { %4228 = dma.done.wait (%p5458_p10), [#allocation33], 528  }
 0x327   : > { %4230 = vsyncadd (%p5459_p11), [#allocation33], 4294966768  ;;  %p5460_p6 = pmov %p5442_p0 }
 0x328   : > { %p5461_p12 = pmov %p5442_p0 }
 0x329   : > { %4232 = dma.done.wait (%p5460_p6), [#allocation36], 32  }
 0x32a   : > { %4234 = vsyncadd (%p5461_p12), [#allocation36], 4294967264  ;;  %p5462_p5 = pmov %p5442_p0 }
 0x32b   : > { %p5463_p7 = pmov %p5442_p0 }
 0x32c   : > { %4236 = dma.done.wait (%p5462_p5), [#allocation39], 32  }
 0x32d   : > { %4238 = vsyncadd (%p5463_p7), [#allocation39], 4294967264  ;;  %p5464_p4 = pmov %p5442_p0 }
 0x32e   : > { %p5465_p1 = pmov %p5442_p0 }
 0x32f   : > { %4240 = dma.done.wait (%p5464_p4), [#allocation42], 272  }
 0x330   : > { %4242 = vsyncadd (%p5465_p1), [#allocation42], 4294967024  ;;  %v4294_v0 = vmov 0.0   ;;  %vm4295_vm0 = vmmov 0   ;;  %v1179_v1 = vld [vmem:[%s5081_s27] sm:$0xff]  ;;  %vm1188_vm1 = vcmask 1046528   ;;  %v1305_v27 = vlaneseq }
 0x331   : > { %2896 = vmatprep.subr.bf16.mxu0 %v4294_v0  ;;  %2898 = vmatprep.mubr.msk.bf16.mxu0 %vm4295_vm0, %v4294_v0  ;;  %v1180_v2 = vld [vmem:[%s5081_s27 + $0x8] sm:$0x3f]  ;;  %v1181_v5 = vld [vmem:[#allocation5] sm:$0xf]  ;;  %vm1184_vm2 = vcmask 113664   ;;  %vm1256_vm3 = vcmask 261120  }
 0x332   : > { %2902 = vmatprep.subr.bf16.mxu1 %v4294_v0  ;;  %2906 = vmatprep.mubr.msk.bf16.mxu1 %vm4295_vm0, %v4294_v0  ;;  %v5147_v3 = vpack.c.bf16 %v1180_v2, %v1179_v1  ;;  %v3339_v4 = vld [vmem:[#allocation8] sm:$0xff]   ;;  %v3340_v7 = vld [vmem:[#allocation8 + $0x8] sm:$0xff]   ;;  %v1183_v8 = vld [vmem:[#allocation7] sm:$0x7f]  ;;  %s4296_s12 = smov 112   ;;  %s4297_s11 = smov 96  }
 0x333   : > { %2903 = vmatpush3.bf16.msra.mxu1 %v3339_v4  ;;  %v2797_v15 = vld [vmem:[#allocation10] ss:$0 sm:$0xff]  ;;  %s4298_s8 = smov 80   ;;  %vm1314_vm4 = vcmask 130048   ;;  %v1306_v28 = vshrl.u32 %v1305_v27, 7  ;;  %v1308_v29 = vand.u32 127, %v1305_v27 }
 0x334   : > { %v1190_v6 = vsel %vm1188_vm1, %v5147_v3, 0  ;;  %2904 = vmatprep.subr.bf16.mxu1 %v4294_v0  ;;  %vm1363_vm6 = vcmask 55296   ;;  %s4299_s29 = smov 64   ;;  %s4300_s4 = smov 48   ;;  %vm1382_vm7 = vcmask 1042432   ;;  %vm1383_vm8 = vcmask 1043456  }
 0x335   : > { %2897 = vmatpush3.bf16.msra.mxu0 %v1190_v6  ;;  %vm1309_vm5 = vcmp.le.s32.totalorder %v1308_v29, %v1306_v28  ;;  %v4301_v54 = vmov 65535   ;;  %vm1378_vm9 = vcmask 56320   ;;  %s4302_s6 = smov 16   ;;  %vm1611_vm10 = vcmask 260096   ;;  %s2795_s13 = sshll.u32 %s5077_s10, 3 }
 0x336   : > { %2910 = vmatprep.subr.bf16.mxu0 %v4294_v0  ;;  %v1384_v55 = vsel %vm1382_vm7, 4294967295, %v4301_v54  ;;  %vm1827_vm11 = vcmask 112640   ;;  %vm2206_vm12 = vcmask 523264   ;;  %s2848_s3 = sshll.u32 %s5440_s2, 7  ;;  %s1177_s5 = scalar_lea.vmem [#allocation44], %s2795_s13 }
 0x337   : > { %2905 = vmatpush3.bf16.msra.mxu1 %v3340_v7  ;;  %v1385_v57 = vsel %vm1383_vm8, %v1384_v55, 0  ;;  %v3341_v7 = vld [vmem:[#allocation11] sm:$0xff]   ;;  %s2418_s1 = sshll.u32 %s1177_s5, 4  ;;  %s2405_s2 = scalar_lea.sflag [#allocation4], %s5077_s10  ;;  %s5271_s1 = int_to_ptr.vmem [resolvable:$true] %s2418_s1 }
 0x338   : > { %2899 = vmatmul.mubr.msk.bf16.vlgmr.msra.gmra.mrb[0].mxu0 %vm1184_vm2, %v1181_v5  ;;  %2916 = vmatprep.subr.bf16.mxu1 %v4294_v0  ;;  %v2811_v55 = vld [vmem:[#allocation19] ss:$0 sm:$0xff]  ;;  %p5467_p8 = scmp.ne.s32.totalorder %s5433_s7, 0 }
 0x339   : > { %2912 = vmatprep.mubr.msk.bf16.mxu0 %vm4295_vm0, %v4294_v0 }
 0x40b   : > { %v1226_v9 = vpop.f32.mrb[0].mxu0 }
 0x40c   : > { %v5157_v10 = vadd.f32 %v1226_v9, %v1183_v8  ;;  %v2900_v11 = vpop.f32.mrb[1].mxu0  ;;  %v3342_v8 = vld [vmem:[#allocation11 + $0x8] sm:$0xff]  }
 0x40d   : > { %v1229_v12 = vpop.f32.mrb[2].mxu0 }
 0x40e   : > { %v1236_v13 = vpack.c.bf16 %v5157_v10, %v5157_v10  ;;  %v2901_v14 = vpop.f32.mrb[3].mxu0 }
 0x410   : > { %2907 = vmatmul.mubr.msk.bf16.vlgmr.msra.gmra.mrb[0].mxu1 %vm1256_vm3, %v1236_v13 }
 0x411   : > { %2918 = vmatprep.mubr.msk.bf16.mxu1 %vm4295_vm0, %v4294_v0 }
 0x4e3   : > { %v1294_v16 = vpop.f32.mrb[0].mxu1 }
 0x4e4   : > { %v1295_v17 = vadd.f32 %v2797_v15, %v1294_v16  ;;  %v2908_v18 = vpop.f32.mrb[1].mxu1 }
 0x4e5   : > { %v1297_v19 = vpop.f32.mrb[2].mxu1 }
 0x4e6   : > { %v1310_v20 = vpack.c.bf16 %v1295_v17, %v1295_v17  ;;  %v2909_v21 = vpop.f32.mrb[3].mxu1 }
 0x4e7   : > { %v2805_v21 = vld [vmem:[#allocation13] ss:$0 sm:$0xff] }
 0x4e8   : > { %1429 = vrot.lane.b32.xlu1 %v1310_v20, %s4296_s12  ;;  %1312 = vrot.lane.b32.xlu0 %v1310_v20, %s4297_s11 }
 0x4ec   : > { %1431 = vrot.lane.b32.xlu0 %v1310_v20, %s4298_s8 }
 0x55a   : > { %v1313_v22 = vpop.permute.xlu0 %1312  ;;  %v1430_v26 = vpop.permute.xlu1 %1429 }
 0x55b   : > { %v1319_v23 = vsel %vm1314_vm4, %v1313_v22, 0 }
 0x55c   : > { %2911 = vmatpush3.bf16.xpose.msra.mxu0 %v1319_v23 }
 0x55d   : > { %2922 = vmatprep.subr.bf16.mxu0 %v4294_v0 }
 0x55e   : > { %v1432_v24 = vpop.permute.xlu0 %1431 }
 0x55f   : > { %v1437_v25 = vsel %vm1314_vm4, %v1432_v24, 0 }
 0x563   : > { %2913 = vmatmul.mubr.msk.bf16.vlgmr.msra.gmra.mrb[4].mxu0 %vm1314_vm4, %v1310_v20 }
 0x564   : > { %2923 = vmatpush3.bf16.xpose.msra.mxu0 %v1437_v25  ;;  %2924 = vmatprep.mubr.msk.bf16.mxu0 %vm4295_vm0, %v4294_v0 }
 0x565   : > { %2934 = vmatprep.subr.bf16.mxu0 %v4294_v0 }
 0x56b   : > { %2925 = vmatmul.mubr.msk.bf16.vlgmr.msra.gmra.mrb[8].mxu0 %vm1314_vm4, %v1430_v26 }
 0x56c   : > { %2938 = vmatprep.mubr.msk.bf16.mxu0 %vm4295_vm0, %v4294_v0  ;;  %2935 = vmatpush3.bf16.msra.mxu0 %v3341_v7 }
 0x56d   : > { %2936 = vmatprep.subr.bf16.mxu0 %v4294_v0 }
 0x570   : > { %2937 = vmatpush3.bf16.msra.mxu0 %v3342_v8 }
 0x571   : > { %2950 = vmatprep.subr.bf16.mxu0 %v4294_v0 }
 0x636   : > { %v1355_v30 = vpop.f32.mrb[4].mxu0 }
 0x637   : > { %v1361_v31 = vmul.f32 0.25, %v1355_v30  ;;  %v2914_v32 = vpop.f32.mrb[5].mxu0 }
 0x638   : > { %v1358_v33 = vpop.f32.mrb[6].mxu0 }
 0x639   : > { %v2915_v34 = vpop.f32.mrb[7].mxu0  ;;  %v1362_v35 = vsel %vm1309_vm5, %v1361_v31, -1e+30 }
 0x63a   : > { %v1364_v36 = vsel %vm1363_vm6, %v1362_v35, -inf  ;;  %v3343_v34 = vld [vmem:[#allocation20] sm:$0xff]  }
 0x63b   : > { %1365 = vmax.xlane.f32.xlu1 %v1364_v36  ;;  %v3346_v36 = vld [vmem:[#allocation17 + $0x8] sm:$0xff]  }
 0x63e   : > { %v1473_v37 = vpop.f32.mrb[8].mxu0 }
 0x63f   : > { %v1479_v38 = vmul.f32 0.25, %v1473_v37  ;;  %v2926_v39 = vpop.f32.mrb[9].mxu0 }
 0x640   : > { %v1476_v40 = vpop.f32.mrb[10].mxu0 }
 0x641   : > { %v2927_v41 = vpop.f32.mrb[11].mxu0  ;;  %v1480_v42 = vsel %vm1309_vm5, %v1479_v38, -1e+30 }
 0x642   : > { %v1481_v43 = vsel %vm1363_vm6, %v1480_v42, -inf  ;;  %v2809_v41 = vld [vmem:[#allocation14] ss:$0 sm:$0xff] }
 0x643   : > { %1482 = vmax.xlane.f32.xlu0 %v1481_v43  ;;  %v2810_v43 = vld [vmem:[#allocation16] ss:$0 sm:$0xff] }
 0x6c8   : > { %v1366_v44 = vpop.xlane.xlu1 %1365 }
 0x6c9   : > { %v1367_v45 = vsub.f32 %v1362_v35, %v1366_v44  ;;  %v3344_v35 = vld [vmem:[#allocation20 + $0x8] sm:$0xff]  }
 0x6cb   : > { %v1368_v46 = vmul.f32 1.442695, %v1367_v45 }
 0x6cd   : > { %3357 = vpow2.f32 %v1368_v46  ;;  %v2815_v46 = vld [vmem:[#allocation22] ss:$0 sm:$0xff] }
 0x6d0   : > { %v1483_v47 = vpop.xlane.xlu0 %1482 }
 0x6d1   : > { %v1484_v48 = vsub.f32 %v1480_v42, %v1483_v47 }
 0x6d3   : > { %v1485_v49 = vmul.f32 1.442695, %v1484_v48 }
 0x6d5   : > { %3359 = vpow2.f32 %v1485_v49 }
 0x6d7   : > { %v3358_v50 = vpop.eup %3357 }
 0x6d8   : > { %v1370_v51 = vsel %vm1363_vm6, %v3358_v50, 0.0 }
 0x6d9   : > { %1371 = vadd.xlane.f32.xlu0 %v1370_v51 }
 0x6df   : > { %v3360_v52 = vpop.eup %3359 }
 0x6e0   : > { %v1487_v53 = vsel %vm1363_vm6, %v3360_v52, 0.0 }
 0x6e1   : > { %1488 = vadd.xlane.f32.xlu1 %v1487_v53 }
 0x6ef   : > { %1376 = vrot.lane.b32.xlu0 %v1310_v20, %s4299_s29  ;;  %s4143_s29 = scalar_lea.vmem %s5271_s1, 128 }
 0x6f0   : > { %p4144_p3 = scmp.ne.s32.totalorder %s5271_s1, %s4143_s29 }
 0x6f2   : > { %1493 = vrot.lane.b32.xlu1 %v1310_v20, %s4300_s4  ;;  %p4145_p13 = pnand %p4144_p3, %p5467_p8  ;;  %s4304_s4 = smov [#allocation44]  }
 0x6f4   : > { %p4146_p0 = pneg %p4145_p13 }
 0x766   : > { %v1372_v56 = vpop.xlane.xlu0 %1371 }
 0x767   : > { %3361 = vrcp.f32 %v1372_v56 }
 0x76a   : > { %v1377_v58 = vpop.permute.xlu0 %1376 }
 0x76b   : > { %v1387_v59 = vand.u32 %v1385_v57, %v1377_v58 }
 0x76d   : > { %2917 = vmatpush3.bf16.msra.mxu1 %v1387_v59 }
 0x76e   : > { %v1489_v60 = vpop.xlane.xlu1 %1488  ;;  %2928 = vmatprep.subr.bf16.mxu1 %v4294_v0 }
 0x76f   : > { %3363 = vrcp.f32 %v1489_v60 }
 0x771   : > { %v3362_v61 = vpop.eup %3361 }
 0x772   : > { %v1374_v62 = vmul.f32 %v3362_v61, %v3358_v50  ;;  %v1494_v63 = vpop.permute.xlu1 %1493 }
 0x773   : > { %v1499_v1 = vand.u32 %v1494_v63, %v1385_v57 }
 0x774   : > { %v1375_v2 = vpack.c.bf16 %v1374_v62, %v1374_v62 }
 0x776   : > { %2919 = vmatmul.mubr.msk.bf16.vlgmr.msra.gmra.mrb[4].mxu1 %vm1378_vm9, %v1375_v2 }
 0x777   : > { %2929 = vmatpush3.bf16.msra.mxu1 %v1499_v1  ;;  %2930 = vmatprep.mubr.msk.bf16.mxu1 %vm4295_vm0, %v4294_v0 }
 0x778   : > { %2942 = vmatprep.subr.bf16.mxu1 %v4294_v0 }
 0x779   : > { %v3364_v4 = vpop.eup %3363 }
 0x77a   : > { %v1491_v5 = vmul.f32 %v3364_v4, %v3360_v52 }
 0x77c   : > { %v1492_v6 = vpack.c.bf16 %v1491_v5, %v1491_v5 }
 0x77e   : > { %2931 = vmatmul.mubr.msk.bf16.vlgmr.msra.gmra.mrb[8].mxu1 %vm1378_vm9, %v1492_v6 }
 0x77f   : > { %2946 = vmatprep.mubr.msk.bf16.mxu1 %vm4295_vm0, %v4294_v0 }
 0x849   : > { %v1423_v9 = vpop.f32.mrb[4].mxu1 }
 0x84a   : > { %v2920_v11 = vpop.f32.mrb[5].mxu1 }
 0x84b   : > { %v1426_v12 = vpop.f32.mrb[6].mxu1 }
 0x84c   : > { %v2921_v13 = vpop.f32.mrb[7].mxu1 }
 0x851   : > { %v1535_v14 = vpop.f32.mrb[8].mxu1 }
 0x852   : > { %1542 = vrot.lane.b32.xlu1 %v1535_v14, %s4302_s6  ;;  %v2932_v15 = vpop.f32.mrb[9].mxu1 }
 0x853   : > { %v1538_v16 = vpop.f32.mrb[10].mxu1 }
 0x854   : > { %v2933_v17 = vpop.f32.mrb[11].mxu1 }
 0x8c4   : > { %v1543_v18 = vpop.permute.xlu1 %1542 }
 0x8c5   : > { %v1545_v19 = vsel %vm1314_vm4, %v1423_v9, %v1543_v18 }
 0x8c6   : > { %v1546_v20 = vpack.c.bf16 %v1545_v19, %v1545_v19 }
 0x8c8   : > { %2939 = vmatmul.mubr.msk.bf16.vlgmr.msra.gmra.mrb[12].mxu0 %vm1256_vm3, %v1546_v20 }
 0x8c9   : > { %2954 = vmatprep.mubr.msk.bf16.mxu0 %vm4295_vm0, %v4294_v0  ;;  %2951 = vmatpush3.bf16.msra.mxu0 %v3343_v34 }
 0x8ca   : > { %2952 = vmatprep.subr.bf16.mxu0 %v4294_v0 }
 0x8cd   : > { %2953 = vmatpush3.bf16.msra.mxu0 %v3344_v35 }
 0x8ce   : > { %2964 = vmatprep.subr.bf16.mxu0 %v4294_v0 }
 0x8d0   : > { %2955 = vmatmul.mubr.msk.bf16.vlgmr.msra.gmra.mrb[16].mxu0 %vm1256_vm3, %v5147_v3 }
 0x8d1   : > { %2966 = vmatprep.mubr.msk.bf16.mxu0 %vm4295_vm0, %v4294_v0 }
 0x99b   : > { %v1602_v22 = vpop.f32.mrb[12].mxu0 }
 0x99c   : > { %v1603_v23 = vadd.f32 %v2805_v21, %v1602_v22  ;;  %v2940_v24 = vpop.f32.mrb[13].mxu0 }
 0x99d   : > { %v1605_v25 = vpop.f32.mrb[14].mxu0 }
 0x99e   : > { %v2941_v26 = vpop.f32.mrb[15].mxu0  ;;  %v1608_v27 = vadd.f32 %v1603_v23, %v5157_v10  ;;  %v3345_v10 = vld [vmem:[#allocation17] sm:$0xff]  }
 0x99f   : > { %2943 = vmatpush3.bf16.msra.mxu1 %v3345_v10 }
 0x9a0   : > { %v1612_v28 = vsel %vm1611_vm10, %v1608_v27, 0.0  ;;  %2944 = vmatprep.subr.bf16.mxu1 %v4294_v0 }
 0x9a1   : > { %1613 = vadd.xlane.f32.xlu0 %v1612_v28 }
 0x9a3   : > { %2945 = vmatpush3.bf16.msra.mxu1 %v3346_v36  ;;  %v1766_v47 = vpop.f32.mrb[16].mxu0 }
 0x9a4   : > { %2958 = vmatprep.subr.bf16.mxu1 %v4294_v0  ;;  %v1767_v48 = vadd.f32 %v2815_v46, %v1766_v47  ;;  %v2956_v49 = vpop.f32.mrb[17].mxu0 }
 0x9a5   : > { %v1769_v50 = vpop.f32.mrb[18].mxu0 }
 0x9a6   : > { %v1770_v51 = vadd.f32 %v2815_v46, %v1769_v50  ;;  %v2957_v52 = vpop.f32.mrb[19].mxu0  ;;  %v2823_v50 = vld [vmem:[#allocation25] ss:$0 sm:$0xff] }
 0x9a8   : > { %v1779_v53 = vpack.c.bf16 %v1770_v51, %v1767_v48 }
 0x9aa   : > { %v1784_v54 = vsel %vm1314_vm4, %v1779_v53, 0 }
 0x9b7   : > { %1892 = vrot.lane.b32.xlu0 %v1779_v53, %s4296_s12 }
 0xa2e   : > { %v1614_v29 = vpop.xlane.xlu0 %1613 }
 0xa2f   : > { %v1616_v30 = vmul.f32 0.03125, %v1614_v29 }
 0xa31   : > { %v1617_v31 = vsub.f32 %v1608_v27, %v1616_v30 }
 0xa32   : > { %v1893_v57 = vpop.permute.xlu0 %1892 }
 0xa33   : > { %v1618_v32 = vmul.f32 %v1617_v31, %v1617_v31  ;;  %v1898_v63 = vsel %vm1314_vm4, %v1893_v57, 0 }
 0xa35   : > { %v1619_v33 = vsel %vm1611_vm10, %v1618_v32, 0.0 }
 0xa36   : > { %1620 = vadd.xlane.f32.xlu1 %v1619_v33 }
 0xac3   : > { %v1621_v37 = vpop.xlane.xlu1 %1620 }
 0xac4   : > { %v1622_v38 = vmul.f32 0.03125, %v1621_v37  ;;  %v3347_v37 = vld [vmem:[#allocation23] sm:$0xff]  }
 0xac6   : > { %v1623_v39 = vadd.f32 1e-05, %v1622_v38 }
 0xac8   : > { %3365 = vrsqrt.f32 %v1623_v39 }
 0xad2   : > { %v3366_v40 = vpop.eup %3365 }
 0xad3   : > { %v1625_v42 = vmul.f32 %v3366_v40, %v1617_v31 }
 0xad5   : > { %v1632_v3 = vmul.f32 %v2809_v41, %v1625_v42  ;;  %v3348_v42 = vld [vmem:[#allocation23 + $0x8] sm:$0xff]  }
 0xad7   : > { %v5205_v44 = vadd.f32 %v2810_v43, %v1632_v3 }
 0xad9   : > { %v1644_v45 = vpack.c.bf16 %v5205_v44, %v5205_v44 }
 0xadb   : > { %2947 = vmatmul.mubr.msk.bf16.vlgmr.msra.gmra.mrb[12].mxu1 %vm1256_vm3, %v1644_v45 }
 0xadc   : > { %2960 = vmatprep.mubr.msk.bf16.mxu1 %vm4295_vm0, %v4294_v0  ;;  %2959 = vmatpush3.bf16.xpose.msra.mxu1 %v1784_v54 }
 0xadd   : > { %2970 = vmatprep.subr.bf16.mxu1 %v4294_v0 }
 0xbae   : > { %v1701_v56 = vpop.f32.mrb[12].mxu1 }
 0xbaf   : > { %v1702_v58 = vadd.f32 %v2811_v55, %v1701_v56  ;;  %v2948_v59 = vpop.f32.mrb[13].mxu1 }
 0xbb0   : > { %v1704_v60 = vpop.f32.mrb[14].mxu1 }
 0xbb1   : > { %v1778_v61 = vpack.c.bf16 %v1702_v58, %v1702_v58  ;;  %v2949_v62 = vpop.f32.mrb[15].mxu1 }
 0xbb3   : > { %1890 = vrot.lane.b32.xlu1 %v1778_v61, %s4296_s12  ;;  %2961 = vmatmul.mubr.msk.bf16.vlgmr.msra.gmra.mrb[16].mxu1 %vm1314_vm4, %v1778_v61 }
 0xbb4   : > { %2971 = vmatpush3.bf16.xpose.msra.mxu1 %v1898_v63  ;;  %2972 = vmatprep.mubr.msk.bf16.mxu1 %vm4295_vm0, %v4294_v0  ;;  %v3349_v63 = vld [vmem:[#allocation29] sm:$0xff]  }
 0xbb5   : > { %2982 = vmatprep.subr.bf16.mxu1 %v4294_v0 }
 0xc25   : > { %v1891_v1 = vpop.permute.xlu1 %1890 }
 0xc26   : > { %2973 = vmatmul.mubr.msk.bf16.vlgmr.msra.gmra.mrb[20].mxu1 %vm1314_vm4, %v1891_v1  ;;  %v3350_v1 = vld [vmem:[#allocation29 + $0x8] sm:$0xff]  }
 0xc27   : > { %2986 = vmatprep.mubr.msk.bf16.mxu1 %vm4295_vm0, %v4294_v0  ;;  %2983 = vmatpush3.bf16.msra.mxu1 %v3347_v37 }
 0xc28   : > { %2984 = vmatprep.subr.bf16.mxu1 %v4294_v0 }
 0xc2b   : > { %2985 = vmatpush3.bf16.msra.mxu1 %v3348_v42 }
 0xc2c   : > { %2998 = vmatprep.subr.bf16.mxu1 %v4294_v0 }
 0xc86   : > { %v1820_v2 = vpop.f32.mrb[16].mxu1 }
 0xc87   : > { %v1826_v4 = vmul.f32 0.25, %v1820_v2  ;;  %v2962_v5 = vpop.f32.mrb[17].mxu1  ;;  %v3351_v2 = vld [vmem:[#allocation32] sm:$0xff]  }
 0xc88   : > { %v1823_v6 = vpop.f32.mrb[18].mxu1 }
 0xc89   : > { %v2963_v7 = vpop.f32.mrb[19].mxu1  ;;  %v1828_v8 = vsel %vm1827_vm11, %v1826_v4, -inf }
 0xc8a   : > { %1829 = vmax.xlane.f32.xlu0 %v1828_v8  ;;  %v2827_v8 = vld [vmem:[#allocation26] ss:$0 sm:$0xff] }
 0xcf9   : > { %v1934_v9 = vpop.f32.mrb[20].mxu1 }
 0xcfa   : > { %v1940_v11 = vmul.f32 0.25, %v1934_v9  ;;  %v2974_v12 = vpop.f32.mrb[21].mxu1 }
 0xcfb   : > { %v1937_v13 = vpop.f32.mrb[22].mxu1 }
 0xcfc   : > { %v2975_v14 = vpop.f32.mrb[23].mxu1  ;;  %v1941_v15 = vsel %vm1827_vm11, %v1940_v11, -inf }
 0xcfd   : > { %1942 = vmax.xlane.f32.xlu1 %v1941_v15  ;;  %v3353_v15 = vld [vmem:[#allocation32 + $0x10] sm:$0xff]  }
 0xd0e   : > { %1841 = vrot.lane.b32.xlu1 %v1779_v53, %s4297_s11  ;;  %s5466_s11 = sld [smem:[#allocation83_spill]] }
 0xd17   : > { %v1830_v16 = vpop.xlane.xlu0 %1829 }
 0xd18   : > { %v1831_v17 = vsub.f32 %v1826_v4, %v1830_v16  ;;  %v3354_v16 = vld [vmem:[#allocation32 + $0x18] sm:$0xff]  }
 0xd1a   : > { %v1832_v18 = vmul.f32 1.442695, %v1831_v17  ;;  %v2829_v17 = vld [vmem:[#allocation31] ss:$0 sm:$0xff] }
 0xd1c   : > { %3367 = vpow2.f32 %v1832_v18 }
 0xd26   : > { %v3368_v19 = vpop.eup %3367 }
 0xd27   : > { %v1834_v20 = vsel %vm1827_vm11, %v3368_v19, 0.0 }
 0xd28   : > { %1835 = vadd.xlane.f32.xlu0 %v1834_v20 }
 0xd8a   : > { %v1943_v21 = vpop.xlane.xlu1 %1942 }
 0xd8b   : > { %v1944_v22 = vsub.f32 %v1940_v11, %v1943_v21  ;;  %v2828_v11 = vld [vmem:[#allocation28] ss:$0 sm:$0xff] }
 0xd8d   : > { %v1945_v23 = vmul.f32 1.442695, %v1944_v22 }
 0xd8e   : > { %v1842_v24 = vpop.permute.xlu1 %1841 }
 0xd8f   : > { %3369 = vpow2.f32 %v1945_v23  ;;  %v1847_v25 = vsel %vm1188_vm1, %v1842_v24, 0 }
 0xd90   : > { %2965 = vmatpush3.bf16.msra.mxu0 %v1847_v25  ;;  %v2833_v25 = vld [vmem:[#allocation34] ss:$0 sm:$0xff] }
 0xd91   : > { %2976 = vmatprep.subr.bf16.mxu0 %v4294_v0 }
 0xd99   : > { %v3370_v26 = vpop.eup %3369 }
 0xd9a   : > { %v1947_v27 = vsel %vm1827_vm11, %v3370_v26, 0.0 }
 0xd9b   : > { %1948 = vadd.xlane.f32.xlu0 %v1947_v27 }
 0xdb1   : > { %1953 = vrot.lane.b32.xlu0 %v1779_v53, %s4298_s8  ;;  %s5269_s8 = scalar_lea.hbm %s5466_s11, %s2848_s3 }
 0xdb5   : > { %v1836_v28 = vpop.xlane.xlu0 %1835 }
 0xdb6   : > { %3371 = vrcp.f32 %v1836_v28 }
 0xdc0   : > { %v3372_v29 = vpop.eup %3371 }
 0xdc1   : > { %v1838_v30 = vmul.f32 %v3372_v29, %v3368_v19 }
 0xdc3   : > { %v1839_v31 = vpack.c.bf16 %v1838_v30, %v1838_v30 }
 0xdc5   : > { %2967 = vmatmul.mubr.msk.bf16.vlgmr.msra.gmra.mrb[20].mxu0 %vm1184_vm2, %v1839_v31 }
 0xdc6   : > { %2978 = vmatprep.mubr.msk.bf16.mxu0 %vm4295_vm0, %v4294_v0 }
 0xe28   : > { %v1949_v32 = vpop.xlane.xlu0 %1948 }
 0xe29   : > { %3373 = vrcp.f32 %v1949_v32 }
 0xe2c   : > { %v1954_v33 = vpop.permute.xlu0 %1953 }
 0xe2d   : > { %v1959_v34 = vsel %vm1188_vm1, %v1954_v33, 0 }
 0xe2e   : > { %2977 = vmatpush3.bf16.msra.mxu0 %v1959_v34 }
 0xe2f   : > { %2990 = vmatprep.subr.bf16.mxu0 %v4294_v0 }
 0xe33   : > { %v3374_v35 = vpop.eup %3373 }
 0xe34   : > { %v1951_v10 = vmul.f32 %v3374_v35, %v3370_v26 }
 0xe36   : > { %v1952_v36 = vpack.c.bf16 %v1951_v10, %v1951_v10 }
 0xe38   : > { %2979 = vmatmul.mubr.msk.bf16.vlgmr.msra.gmra.mrb[24].mxu0 %vm1184_vm2, %v1952_v36 }
 0xe39   : > { %2994 = vmatprep.mubr.msk.bf16.mxu0 %vm4295_vm0, %v4294_v0  ;;  %2991 = vmatpush3.bf16.msra.mxu0 %v3349_v63 }
 0xe3a   : > { %2992 = vmatprep.subr.bf16.mxu0 %v4294_v0 }
 0xe3d   : > { %2993 = vmatpush3.bf16.msra.mxu0 %v3350_v1 }
 0xe3e   : > { %3010 = vmatprep.subr.bf16.mxu0 %v4294_v0 }
 0xe98   : > { %v1883_v38 = vpop.f32.mrb[20].mxu0 }
 0xe99   : > { %v2968_v39 = vpop.f32.mrb[21].mxu0 }
 0xe9a   : > { %v1886_v40 = vpop.f32.mrb[22].mxu0 }
 0xe9b   : > { %v2969_v41 = vpop.f32.mrb[23].mxu0 }
 0xe9c   : > { %v2839_v41 = vld [vmem:[#allocation35] ss:$0 sm:$0xff] }
 0xf0b   : > { %v1995_v43 = vpop.f32.mrb[24].mxu0 }
 0xf0c   : > { %2002 = vrot.lane.b32.xlu1 %v1995_v43, %s4302_s6  ;;  %v2980_v3 = vpop.f32.mrb[25].mxu0  ;;  %v2840_v43 = vld [vmem:[#allocation37] ss:$0 sm:$0xff]  ;;  %s4147_s6 = sshll.u32 %s4304_s4, 4  ;;  %s4148_s6 = int_to_ptr.vmem [resolvable:$false] %s4147_s6 }
 0xf0d   : > { %v1998_v45 = vpop.f32.mrb[26].mxu0  ;;  %s4149_s13 = scalar_lea.vmem %s4148_s6, 256  ;;  %p4150_p2 = scmp.lt.s32.totalorder %s5271_s1, %s4148_s6 }
 0xf0e   : > { %v2981_v46 = vpop.f32.mrb[27].mxu0  ;;  %p4151_p9 = scmp.lt.s32.totalorder %s4149_s13, %s4143_s29 }
 0xf10   : > { %p4152_p10 = por %p4151_p9, %p4150_p2 }
 0xf12   : > { %p4153_p11 = pnand %p4152_p10, %p4146_p0 }
 0xf7e   : > { %v2003_v47 = vpop.permute.xlu1 %2002 }
 0xf7f   : > { %v2005_v48 = vsel %vm1314_vm4, %v1883_v38, %v2003_v47 }
 0xf80   : > { %v2006_v49 = vpack.c.bf16 %v2005_v48, %v2005_v48 }
 0xf82   : > { %2987 = vmatmul.mubr.msk.bf16.vlgmr.msra.gmra.mrb[24].mxu1 %vm1256_vm3, %v2006_v49 }
 0xf83   : > { %3006 = vmatprep.mubr.msk.bf16.mxu1 %vm4295_vm0, %v4294_v0  ;;  %2999 = vmatpush3.bf16.msra.mxu1 %v3351_v2 }
 0xf84   : > { %3000 = vmatprep.subr.bf16.mxu1 %v4294_v0 }
0x1055   : > { %v2062_v51 = vpop.f32.mrb[24].mxu1 }
0x1056   : > { %v2063_v52 = vadd.f32 %v2823_v50, %v2062_v51  ;;  %v2988_v53 = vpop.f32.mrb[25].mxu1 }
0x1057   : > { %v2065_v54 = vpop.f32.mrb[26].mxu1 }
0x1058   : > { %v2989_v55 = vpop.f32.mrb[27].mxu1  ;;  %v2068_v56 = vadd.f32 %v2063_v52, %v5205_v44  ;;  %v3352_v44 = vld [vmem:[#allocation32 + $0x8] sm:$0xff]  }
0x1059   : > { %3001 = vmatpush3.bf16.msra.mxu1 %v3352_v44  ;;  %v4303_v44 = vmov -1.0  }
0x105a   : > { %v2071_v57 = vsel %vm1611_vm10, %v2068_v56, 0.0  ;;  %3002 = vmatprep.subr.bf16.mxu1 %v4294_v0 }
0x105b   : > { %2072 = vadd.xlane.f32.xlu1 %v2071_v57 }
0x105d   : > { %3003 = vmatpush3.bf16.msra.mxu1 %v3353_v15 }
0x105e   : > { %3004 = vmatprep.subr.bf16.mxu1 %v4294_v0 }
0x1061   : > { %3005 = vmatpush3.bf16.msra.mxu1 %v3354_v16  ;;  %v3355_v16 = vld [vmem:[#allocation41] sm:$0xff]  }
0x10e8   : > { %v2073_v58 = vpop.xlane.xlu1 %2072 }
0x10e9   : > { %v2074_v59 = vmul.f32 0.03125, %v2073_v58 }
0x10eb   : > { %v2075_v60 = vsub.f32 %v2068_v56, %v2074_v59 }
0x10ed   : > { %v2076_v61 = vmul.f32 %v2075_v60, %v2075_v60 }
0x10ef   : > { %v2077_v62 = vsel %vm1611_vm10, %v2076_v61, 0.0 }
0x10f0   : > { %2078 = vadd.xlane.f32.xlu0 %v2077_v62 }
0x117d   : > { %v2079_v4 = vpop.xlane.xlu0 %2078 }
0x117e   : > { %v2080_v5 = vmul.f32 0.03125, %v2079_v4 }
0x1180   : > { %v2081_v6 = vadd.f32 1e-05, %v2080_v5 }
0x1182   : > { %3375 = vrsqrt.f32 %v2081_v6 }
0x118c   : > { %v3376_v7 = vpop.eup %3375 }
0x118d   : > { %v2083_v9 = vmul.f32 %v3376_v7, %v2075_v60 }
0x118f   : > { %v2090_v12 = vmul.f32 %v2827_v8, %v2083_v9 }
0x1191   : > { %v2097_v13 = vadd.f32 %v2828_v11, %v2090_v12 }
0x1193   : > { %v2102_v14 = vpack.c.bf16 %v2097_v13, %v2097_v13 }
0x1195   : > { %2995 = vmatmul.mubr.msk.bf16.vlgmr.msra.gmra.mrb[28].mxu0 %vm1256_vm3, %v2102_v14 }
0x1196   : > { %3014 = vmatprep.mubr.msk.bf16.mxu0 %vm4295_vm0, %v4294_v0  ;;  %3011 = vmatpush3.bf16.msra.mxu0 %v3355_v16 }
0x1197   : > { %3012 = vmatprep.subr.bf16.mxu0 %v4294_v0 }
0x1268   : > { %v2159_v18 = vpop.f32.mrb[28].mxu0 }
0x1269   : > { %v2160_v19 = vadd.f32 %v2829_v17, %v2159_v18  ;;  %v2996_v20 = vpop.f32.mrb[29].mxu0  ;;  %v3356_v17 = vld [vmem:[#allocation41 + $0x8] sm:$0xff]  }
0x126a   : > { %v2162_v21 = vpop.f32.mrb[30].mxu0  ;;  %3013 = vmatpush3.bf16.msra.mxu0 %v3356_v17 }
0x126b   : > { %v2165_v22 = vmax.f32 %v2160_v19, 0.0  ;;  %v2997_v23 = vpop.f32.mrb[31].mxu0 }
0x126d   : > { %v2174_v24 = vpack.c.bf16 %v2165_v22, %v2165_v22  ;;  %v2841_v22 = vld [vmem:[#allocation38] ss:$0 sm:$0xff] }
0x126f   : > { %3007 = vmatmul.mubr.msk.bf16.vlgmr.msra.gmra.mrb[28].mxu1 %vm2206_vm12, %v2174_v24  ;;  %v2842_v24 = vld [vmem:[#allocation40] ss:$0 sm:$0xff] }
0x1342   : > { %v2244_v26 = vpop.f32.mrb[28].mxu1 }
0x1343   : > { %v2245_v27 = vadd.f32 %v2833_v25, %v2244_v26  ;;  %v3008_v28 = vpop.f32.mrb[29].mxu1 }
0x1344   : > { %v2247_v29 = vpop.f32.mrb[30].mxu1  ;;  %v2843_v28 = vld [vmem:[#allocation43] ss:$0 sm:$0xff] }
0x1345   : > { %v3009_v30 = vpop.f32.mrb[31].mxu1  ;;  %v2250_v31 = vadd.f32 %v2245_v27, %v2097_v13 }
0x1347   : > { %v2253_v32 = vsel %vm1611_vm10, %v2250_v31, 0.0 }
0x1348   : > { %2254 = vadd.xlane.f32.xlu0 %v2253_v32 }
0x13d5   : > { %v2255_v33 = vpop.xlane.xlu0 %2254 }
0x13d6   : > { %v2256_v34 = vmul.f32 0.03125, %v2255_v33 }
0x13d8   : > { %v2257_v35 = vsub.f32 %v2250_v31, %v2256_v34 }
0x13da   : > { %v2258_v10 = vmul.f32 %v2257_v35, %v2257_v35 }
0x13dc   : > { %v2259_v36 = vsel %vm1611_vm10, %v2258_v10, 0.0 }
0x13dd   : > { %2260 = vadd.xlane.f32.xlu1 %v2259_v36 }
0x146a   : > { %v2261_v37 = vpop.xlane.xlu1 %2260 }
0x146b   : > { %v2262_v38 = vmul.f32 0.03125, %v2261_v37 }
0x146d   : > { %v2263_v39 = vadd.f32 1e-05, %v2262_v38 }
0x146f   : > { %3377 = vrsqrt.f32 %v2263_v39 }
0x1479   : > { %v3378_v40 = vpop.eup %3377 }
0x147a   : > { %v2265_v42 = vmul.f32 %v3378_v40, %v2257_v35 }
0x147c   : > { %v2272_v3 = vmul.f32 %v2839_v41, %v2265_v42 }
0x147e   : > { %v2279_v45 = vadd.f32 %v2840_v43, %v2272_v3 }
0x1480   : > { %v2281_v46 = vmul.f32 0.70710677, %v2279_v45  ;;  %v2280_v6 = vmul.f32 0.5, %v2279_v45 }
0x1482   : > { %v2284_v47 = vand.u32 2147483647, %v2281_v46  ;;  %vm2282_vm13 = vcmp.ge.f32.partialorder %v2281_v46, 0.0 }
0x1483   : > { %v2283_v4 = vsel %vm2282_vm13, 1.0, %v4303_v44 }
0x1484   : > { %v2285_v48 = vmul.f32 0.3275911, %v2284_v47  ;;  %v2298_v50 = vsub.f32 0.0, %v2284_v47 }
0x1486   : > { %v2286_v49 = vadd.f32 1.0, %v2285_v48  ;;  %v2299_v52 = vmul.f32 %v2298_v50, %v2284_v47 }
0x1488   : > { %3379 = vrcp.f32 %v2286_v49  ;;  %v2300_v55 = vmul.f32 1.442695, %v2299_v52 }
0x148a   : > { %3381 = vpow2.f32 %v2300_v55 }
0x1492   : > { %v3380_v51 = vpop.eup %3379 }
0x1493   : > { %v2289_v53 = vmul.f32 1.0614054, %v3380_v51 }
0x1494   : > { %v3382_v63 = vpop.eup %3381 }
0x1495   : > { %v2290_v54 = vadd.f32 -1.4531521, %v2289_v53 }
0x1497   : > { %v2291_v56 = vmul.f32 %v3380_v51, %v2290_v54 }
0x1499   : > { %v2292_v57 = vadd.f32 1.4214138, %v2291_v56 }
0x149b   : > { %v2293_v58 = vmul.f32 %v3380_v51, %v2292_v57 }
0x149d   : > { %v2294_v59 = vadd.f32 -0.28449672, %v2293_v58 }
0x149f   : > { %v2295_v60 = vmul.f32 %v3380_v51, %v2294_v59 }
0x14a1   : > { %v2296_v61 = vadd.f32 0.2548296, %v2295_v60 }
0x14a3   : > { %v2297_v62 = vmul.f32 %v3380_v51, %v2296_v61 }
0x14a5   : > { %v2302_v1 = vmul.f32 %v3382_v63, %v2297_v62 }
0x14a7   : > { %v2303_v2 = vsub.f32 1.0, %v2302_v1 }
0x14a9   : > { %v2304_v5 = vmul.f32 %v2303_v2, %v2283_v4 }
0x14ab   : > { %v2305_v7 = vadd.f32 1.0, %v2304_v5 }
0x14ad   : > { %v2306_v8 = vmul.f32 %v2305_v7, %v2280_v6 }
0x14af   : > { %v2309_v9 = vsel %vm1611_vm10, %v2306_v8, 0.0 }
0x14b0   : > { %2310 = vadd.xlane.f32.xlu0 %v2309_v9 }
0x153d   : > { %v2311_v11 = vpop.xlane.xlu0 %2310 }
0x153e   : > { %v2312_v12 = vmul.f32 0.03125, %v2311_v11 }
0x1540   : > { %v2313_v13 = vsub.f32 %v2306_v8, %v2312_v12 }
0x1542   : > { %v2314_v14 = vmul.f32 %v2313_v13, %v2313_v13 }
0x1544   : > { %v2315_v15 = vsel %vm1611_vm10, %v2314_v14, 0.0 }
0x1545   : > { %2316 = vadd.xlane.f32.xlu1 %v2315_v15 }
0x15d2   : > { %v2317_v18 = vpop.xlane.xlu1 %2316 }
0x15d3   : > { %v2318_v19 = vmul.f32 0.03125, %v2317_v18 }
0x15d5   : > { %v2319_v20 = vadd.f32 1e-05, %v2318_v19 }
0x15d7   : > { %3383 = vrsqrt.f32 %v2319_v20 }
0x15e1   : > { %v3384_v21 = vpop.eup %3383 }
0x15e2   : > { %v2321_v23 = vmul.f32 %v3384_v21, %v2313_v13 }
0x15e4   : > { %v2328_v25 = vmul.f32 %v2841_v22, %v2321_v23 }
0x15e6   : > { %v2335_v26 = vadd.f32 %v2842_v24, %v2328_v25 }
0x15e8   : > { %v2340_v27 = vpack.c.bf16 %v2335_v26, %v2335_v26 }
0x15ea   : > { %3015 = vmatmul.mubr.msk.bf16.vlgmr.msra.gmra.mrb[32].mxu0 %vm1256_vm3, %v2340_v27 }
0x16bd   : > { %v2397_v0 = vpop.f32.mrb[32].mxu0 }
0x16be   : > { %v2398_v29 = vadd.f32 %v2843_v28, %v2397_v0  ;;  %v3016_v30 = vpop.f32.mrb[33].mxu0 }
0x16bf   : > { %v2400_v31 = vpop.f32.mrb[34].mxu0 }
0x16c0   : > { %v3017_v32 = vpop.f32.mrb[35].mxu0  ;;  %2403 = vst.msk [vmem:[%s1177_s5] sm:$0x7f] %vm1611_vm10, %v2398_v29 }
0x16c1   : > { %4156 = shalt.err (!%p4153_p11)
}
0x16c2   : > { %s4157_s10 = scalar_lea.hbm %s5269_s8, 128  ;;  %s4161_s27 = scalar_lea.hbm %s5466_s11, 256 }
0x16c3   : > { %p4158_p6 = scmp.ne.s32.totalorder %s5269_s8, %s4157_s10  ;;  %p4162_p7 = scmp.lt.u32.totalorder %s5269_s8, %s5466_s11 }
0x16c4   : > { %p4163_p4 = scmp.lt.u32.totalorder %s4161_s27, %s4157_s10  ;;  %p4165_p3 = scmp.lt.u32.totalorder %s4157_s10, %s5269_s8 }
0x16c5   : > { %p4159_p12 = pnand %p4158_p6, %p5467_p8 }
0x16c6   : > { %p4164_p1 = por %p4163_p4, %p4162_p7 }
0x16c7   : > { %p4160_p5 = pneg %p4159_p12 }
0x16c8   : > { %p4166_p13 = por %p4165_p3, %p4164_p1 }
0x16ca   : > { %p4167_p0 = pnand %p4166_p13, %p4160_p5 }
0x16cc   : > { %4170 = shalt.err (!%p4167_p0)
}
0x16cd   : > { %3124 = dma.vmem_to_hbm [thread:$0]  (%p5467_p8), %s5271_s1, 128, %s5269_s8, %s2405_s2  }
0x16ce PF: > { %s5468_s29 = sld [smem:[#allocation60_spill]]  ;;  %s5469_s6 = sld [smem:[#allocation63_spill]] }
0x16cf   : > { %p5470_p2 = scmp.ne.s32.totalorder %s5434_s9, 0 }
0x16d4   : > { %s2430_s13 = sand.u32 1, %s5468_s29   ;;  %p5471_p9 = scmp.ge.s32.totalorder %s5469_s6, 2 }
0x16d5   : > { %s2431_s3 = scalar_lea.sflag [#allocation4], %s2430_s13 }
0x16d6   : > { %p3210_p10 = pnand %p5471_p9, %p5470_p2 }
0x16d8   : > { %4244 = dma.done.wait (!%p3210_p10), %s2431_s3, 128  }
0x16d9   : > { %4246 = vsyncadd (!%p3210_p10), %s2431_s3, 4294967168  ;;  %s5472_s7 = sld [smem:[#allocation61_spill]]  ;;  %s5473_s4 = sld [smem:[#allocation62_spill]] }
0x16da   : > { %p53_p11 = scmp.ge.s32.totalorder %s4998_s30, 4   ;;  %s5474_s8 = smov %s5009_s0 }
0x16dc   :  { %55 = sbr.rel (!%p53_p11) target bundleno = 37 (0x25), region = 277 }
0x16e3   :  { %2436 = vsyncpa [#allocation3], 1 }
0x16e4   :  { %2438 = vsyncpa [#allocation3 + $0x1], 1 }
0x16e5   :  { %2439 = vsyncpa [#allocation6], 1 }
0x16e6   :  { %2440 = vsyncpa [#allocation9], 1 }
0x16e7   :  { %2441 = vsyncpa [#allocation12], 1 }
0x16e8   :  { %2442 = vsyncpa [#allocation15], 1 }
0x16e9   :  { %2443 = vsyncpa [#allocation18], 1 }
0x16ea   :  { %2444 = vsyncpa [#allocation21], 1 }
0x16eb   :  { %2445 = vsyncpa [#allocation24], 1 }
0x16ec   :  { %2446 = vsyncpa [#allocation27], 1 }
0x16ed   :  { %2447 = vsyncpa [#allocation30], 1 }
0x16ee   :  { %2448 = vsyncpa [#allocation33], 1 }
0x16ef   :  { %2449 = vsyncpa [#allocation36], 1 }
0x16f0   :  { %2450 = vsyncpa [#allocation39], 1 }
0x16f1   :  { %2451 = vsyncpa [#allocation42], 1 }
0x16f2   :  { %2452 = vsyncpa [#allocation4], 1 }
0x16f3   :  { %2454 = vsyncpa [#allocation4 + $0x1], 1 }

</bundles_post_ra>
